<compile_context>
chip_gen: v5e
topology: v5e:2x2
jax: 0.10.0
libtpu: 0.0.40
codegen_flags: <defaults>
</compile_context>

<pallas_src>
import math
from functools import partial

import jax
import jax.numpy as jnp
from jax.experimental import pallas as pl
from jax.experimental.pallas import tpu as pltpu


# ----------------------------------------------------------------------------- #
# Tiling helpers
# ----------------------------------------------------------------------------- #
_LANE_TILE = 2048                      # target spatial tile (multiple of 128)
_VMEM_LIMIT = 48 * 1024 * 1024         # fits under v7x's 64 MiB / v5e-v6e 128 MiB physical VMEM


def _round_up(x, m):
    return ((x + m - 1) // m) * m


def _lane_tiling(n):
    n_tile = min(_LANE_TILE, _round_up(n, 128))
    return n_tile, _round_up(n, n_tile)


def _pad_lanes(x, np_):
    n = x.shape[-1]
    if np_ == n:
        return x
    return jnp.pad(x, ((0, 0), (0, 0), (0, np_ - n)))


# ----------------------------------------------------------------------------- #
# Pallas kernels
# ----------------------------------------------------------------------------- #
def _mm_bias_kernel(w_ref, x_ref, b_ref, o_ref):
    # w: (Co, Ck) bf16   x: (1, Ck, nt) bf16   b: (Co, 1) f32   o: (1, Co, nt) f32
    o_ref[0] = jnp.dot(w_ref[...], x_ref[0], preferred_element_type=jnp.float32) + b_ref[...]


def _mm_bias_stats_kernel(w_ref, x_ref, b_ref, o_ref, sum_ref, ssq_ref, *, n_valid, n_tile):
    # conv matmul + fused per-channel sum / sumsq accumulation (masking padded lanes).
    ni = pl.program_id(1)

    @pl.when(ni == 0)
    def _():
        sum_ref[...] = jnp.zeros_like(sum_ref)
        ssq_ref[...] = jnp.zeros_like(ssq_ref)

    y = jnp.dot(w_ref[...], x_ref[0], preferred_element_type=jnp.float32) + b_ref[...]
    o_ref[0] = y
    col = ni * n_tile + jax.lax.broadcasted_iota(jnp.int32, y.shape, 1)
    yv = jnp.where(col < n_valid, y, 0.0)
    sum_ref[0] += jnp.sum(yv, axis=1, keepdims=True)
    ssq_ref[0] += jnp.sum(yv * yv, axis=1, keepdims=True)


def _stats_kernel(x_ref, sum_ref, ssq_ref, *, n_valid, n_tile):
    # standalone tiled per-(batch, channel) sum / sumsq (InstanceNorm statistics pass).
    ni = pl.program_id(1)

    @pl.when(ni == 0)
    def _():
        sum_ref[...] = jnp.zeros_like(sum_ref)
        ssq_ref[...] = jnp.zeros_like(ssq_ref)

    x = x_ref[0]
    col = ni * n_tile + jax.lax.broadcasted_iota(jnp.int32, x.shape, 1)
    xv = jnp.where(col < n_valid, x, 0.0)
    sum_ref[0] += jnp.sum(xv, axis=1, keepdims=True)
    ssq_ref[0] += jnp.sum(xv * xv, axis=1, keepdims=True)


def _norm_act_kernel(x_ref, m_ref, v_ref, o_ref, *, slope):
    # (x - mean) * inv_std, optionally fused LeakyReLU / PReLU(const slope).
    y = (x_ref[0] - m_ref[0]) * v_ref[0]
    if slope is not None:
        y = jnp.where(y >= 0, y, slope * y)
    o_ref[0] = y


# ----------------------------------------------------------------------------- #
# Pallas wrappers
# ----------------------------------------------------------------------------- #
def _pallas_mm(wm, xp, bias, n_tile):
    """out[b] = wm @ xp[b] + bias ; wm:(Co,Ck) xp:(B,Ck,Np) bias:(Co,1) -> (B,Co,Np) f32."""
    B, Ck, Np = xp.shape
    Co = wm.shape[0]
    return pl.pallas_call(
        _mm_bias_kernel,
        out_shape=jax.ShapeDtypeStruct((B, Co, Np), jnp.float32),
        grid=(B, Np // n_tile),
        in_specs=[
            pl.BlockSpec((Co, Ck), lambda bi, ni: (0, 0)),
            pl.BlockSpec((1, Ck, n_tile), lambda bi, ni: (bi, 0, ni)),
            pl.BlockSpec((Co, 1), lambda bi, ni: (0, 0)),
        ],
        out_specs=pl.BlockSpec((1, Co, n_tile), lambda bi, ni: (bi, 0, ni)),
        compiler_params=pltpu.CompilerParams(
            dimension_semantics=("parallel", "parallel"),
            vmem_limit_bytes=_VMEM_LIMIT),
    )(wm.astype(jnp.bfloat16), xp.astype(jnp.bfloat16), bias)


def _pallas_mm_stats(wm, xp, bias, n_tile, n_valid):
    """Matmul+bias with fused per-channel sum / sumsq over the first n_valid lanes."""
    B, Ck, Np = xp.shape
    Co = wm.shape[0]
    return pl.pallas_call(
        partial(_mm_bias_stats_kernel, n_valid=n_valid, n_tile=n_tile),
        out_shape=(jax.ShapeDtypeStruct((B, Co, Np), jnp.float32),
                   jax.ShapeDtypeStruct((B, Co, 1), jnp.float32),
                   jax.ShapeDtypeStruct((B, Co, 1), jnp.float32)),
        grid=(B, Np // n_tile),
        in_specs=[
            pl.BlockSpec((Co, Ck), lambda bi, ni: (0, 0)),
            pl.BlockSpec((1, Ck, n_tile), lambda bi, ni: (bi, 0, ni)),
            pl.BlockSpec((Co, 1), lambda bi, ni: (0, 0)),
        ],
        out_specs=(pl.BlockSpec((1, Co, n_tile), lambda bi, ni: (bi, 0, ni)),
                   pl.BlockSpec((1, Co, 1), lambda bi, ni: (bi, 0, 0)),
                   pl.BlockSpec((1, Co, 1), lambda bi, ni: (bi, 0, 0))),
        compiler_params=pltpu.CompilerParams(
            dimension_semantics=("parallel", "arbitrary"),
            vmem_limit_bytes=_VMEM_LIMIT),
    )(wm.astype(jnp.bfloat16), xp.astype(jnp.bfloat16), bias)


def _pallas_stats(xp, n_tile, n_valid):
    """Per-(batch, channel) sum and sumsq over the first n_valid lanes of xp:(B,C,Np)."""
    B, C, Np = xp.shape
    return pl.pallas_call(
        partial(_stats_kernel, n_valid=n_valid, n_tile=n_tile),
        out_shape=(jax.ShapeDtypeStruct((B, C, 1), jnp.float32),
                   jax.ShapeDtypeStruct((B, C, 1), jnp.float32)),
        grid=(B, Np // n_tile),
        in_specs=[pl.BlockSpec((1, C, n_tile), lambda bi, ni: (bi, 0, ni))],
        out_specs=(pl.BlockSpec((1, C, 1), lambda bi, ni: (bi, 0, 0)),
                   pl.BlockSpec((1, C, 1), lambda bi, ni: (bi, 0, 0))),
        compiler_params=pltpu.CompilerParams(
            dimension_semantics=("parallel", "arbitrary"),
            vmem_limit_bytes=_VMEM_LIMIT),
    )(xp)


def _pallas_norm_act(xp, mean, inv, slope, n_tile):
    """(xp - mean) * inv (+ optional LeakyReLU/PReLU), tiled over the lane axis."""
    B, C, Np = xp.shape
    return pl.pallas_call(
        partial(_norm_act_kernel, slope=slope),
        out_shape=jax.ShapeDtypeStruct((B, C, Np), jnp.float32),
        grid=(B, Np // n_tile),
        in_specs=[pl.BlockSpec((1, C, n_tile), lambda bi, ni: (bi, 0, ni)),
                  pl.BlockSpec((1, C, 1), lambda bi, ni: (bi, 0, 0)),
                  pl.BlockSpec((1, C, 1), lambda bi, ni: (bi, 0, 0))],
        out_specs=pl.BlockSpec((1, C, n_tile), lambda bi, ni: (bi, 0, ni)),
        compiler_params=pltpu.CompilerParams(
            dimension_semantics=("parallel", "parallel"),
            vmem_limit_bytes=_VMEM_LIMIT),
    )(xp, mean, inv)


# ----------------------------------------------------------------------------- #
# Convolution / InstanceNorm wrappers (JAX glue -> Pallas kernels)
# ----------------------------------------------------------------------------- #
def _im2col(x, KH, KW, padding):
    """im2col built in bf16 (halves the materialized HBM traffic)."""
    B, Ci, H, W = x.shape
    xp = jnp.pad(x.astype(jnp.bfloat16),
                 ((0, 0), (0, 0), (padding, padding), (padding, padding)))
    Ho = H + 2 * padding - KH + 1
    Wo = W + 2 * padding - KW + 1
    cols = [xp[:, :, dy:dy + Ho, dx:dx + Wo] for dy in range(KH) for dx in range(KW)]
    X = jnp.stack(cols, axis=1).reshape(B, KH * KW * Ci, Ho * Wo)
    return X, Ho, Wo


def conv2d(x, w, b=None, padding=0, *, fuse_norm=False, act_slope=None, eps=1e-5):
    """x: (B,Ci,H,W)  w: (Co,Ci,KH,KW)  ->  (B,Co,Ho,Wo).
    fuse_norm=True applies InstanceNorm2d (+optional LeakyReLU/PReLU slope) on the conv output,
    with the statistics accumulated inside the conv matmul kernel (one fewer HBM pass)."""
    B, Ci, H, W = x.shape
    Co, _, KH, KW = w.shape
    X, Ho, Wo = _im2col(x, KH, KW, padding)
    Wm = jnp.transpose(w, (0, 2, 3, 1)).reshape(Co, KH * KW * Ci)
    bias = jnp.zeros((Co, 1), jnp.float32) if b is None else b.reshape(Co, 1).astype(jnp.float32)
    N = Ho * Wo
    n_tile, Np = _lane_tiling(N)
    Xp = _pad_lanes(X, Np)
    if not fuse_norm:
        out = _pallas_mm(Wm, Xp, bias, n_tile)
        return out[:, :, :N].reshape(B, Co, Ho, Wo)
    out, s, ss = _pallas_mm_stats(Wm, Xp, bias, n_tile, N)
    mean = s / N
    var = jnp.maximum(ss / N - mean * mean, 0.0)
    inv = jax.lax.rsqrt(var + eps)
    out = _pallas_norm_act(out, mean, inv, act_slope, n_tile)
    return out[:, :, :N].reshape(B, Co, Ho, Wo)


def conv_transpose2d_2x2(x, w, *, fuse_norm=False, act_slope=None, eps=1e-5):
    """ConvTranspose2d(kernel=2, stride=2, bias=False). w: (Ci, Co, 2, 2)."""
    B, Ci, H, W = x.shape
    Co = w.shape[1]
    N = H * W
    X = x.reshape(B, Ci, N).astype(jnp.bfloat16)
    Wm = jnp.transpose(w, (2, 3, 1, 0)).reshape(4 * Co, Ci)
    bias = jnp.zeros((4 * Co, 1), jnp.float32)
    n_tile, Np = _lane_tiling(N)
    Xp = _pad_lanes(X, Np)
    if fuse_norm:
        out, s, ss = _pallas_mm_stats(Wm, Xp, bias, n_tile, N)
    else:
        out = _pallas_mm(Wm, Xp, bias, n_tile)
    out = out[:, :, :N].reshape(B, 2, 2, Co, H, W).transpose(0, 3, 4, 1, 5, 2)
    out = out.reshape(B, Co, 2 * H, 2 * W)
    # TODO(synk): the 6-D interleave above is an XLA copy; writing interleaved output directly
    #             from the kernel (custom out_spec) would remove one HBM round-trip.
    if not fuse_norm:
        return out
    cnt = 4.0 * N                                    # channel statistics over the full 2Hx2W map
    s_c = s[:, :, 0].reshape(B, 4, Co).sum(axis=1)[..., None]
    ss_c = ss[:, :, 0].reshape(B, 4, Co).sum(axis=1)[..., None]
    mean = s_c / cnt
    var = jnp.maximum(ss_c / cnt - mean * mean, 0.0)
    inv = jax.lax.rsqrt(var + eps)
    N2 = 4 * N
    n_tile2, Np2 = _lane_tiling(N2)
    of = _pad_lanes(out.reshape(B, Co, N2), Np2)
    y = _pallas_norm_act(of, mean, inv, act_slope, n_tile2)
    return y[:, :, :N2].reshape(B, Co, 2 * H, 2 * W)


def instance_norm2d(x, negative_slope=None, eps=1e-5):
    """InstanceNorm2d(affine=False), optionally fused with LeakyReLU/PReLU. Spatially tiled."""
    B, C, H, W = x.shape
    N = H * W
    n_tile, Np = _lane_tiling(N)
    xf = _pad_lanes(x.reshape(B, C, N), Np)
    s, ss = _pallas_stats(xf, n_tile, N)
    mean = s / N
    var = jnp.maximum(ss / N - mean * mean, 0.0)
    inv = jax.lax.rsqrt(var + eps)
    y = _pallas_norm_act(xf, mean, inv, negative_slope, n_tile)
    return y[:, :, :N].reshape(B, C, H, W)


def avg_pool2(x):
    B, C, H, W = x.shape
    return x.reshape(B, C, H // 2, 2, W // 2, 2).mean(axis=(3, 5))


# ----------------------------------------------------------------------------- #
# FFT / complex helpers (fastMRI conventions, complex stored in last dim of 2)
# ----------------------------------------------------------------------------- #
def _to_complex(x):
    return x[..., 0] + 1j * x[..., 1]


def _from_complex(xc):
    return jnp.stack([jnp.real(xc), jnp.imag(xc)], axis=-1).astype(jnp.float32)


def fft2c(x):
    xc = jnp.fft.ifftshift(_to_complex(x), axes=(-2, -1))
    xc = jnp.fft.fft2(xc, axes=(-2, -1), norm="ortho")
    return _from_complex(jnp.fft.fftshift(xc, axes=(-2, -1)))


def ifft2c(x):
    xc = jnp.fft.ifftshift(_to_complex(x), axes=(-2, -1))
    xc = jnp.fft.ifft2(xc, axes=(-2, -1), norm="ortho")
    return _from_complex(jnp.fft.fftshift(xc, axes=(-2, -1)))


def complex_mul(a, b):
    re = a[..., 0] * b[..., 0] - a[..., 1] * b[..., 1]
    im = a[..., 0] * b[..., 1] + a[..., 1] * b[..., 0]
    return jnp.stack([re, im], axis=-1)


def complex_conj(a):
    return jnp.stack([a[..., 0], -a[..., 1]], axis=-1)


def complex_abs(a):
    return jnp.sqrt(a[..., 0] ** 2 + a[..., 1] ** 2)


def rss(x, dim):
    return jnp.sqrt(jnp.sum(x ** 2, axis=dim))


def rss_complex(x, dim):
    return jnp.sqrt(jnp.sum(x[..., 0] ** 2 + x[..., 1] ** 2, axis=dim))


def complex_to_chan_dim(x):
    b, c, h, w, _ = x.shape
    return jnp.transpose(x, (0, 4, 1, 2, 3)).reshape(b, 2 * c, h, w)


def chan_complex_to_last_dim(x):
    b, c2, h, w = x.shape
    c = c2 // 2
    return jnp.transpose(x.reshape(b, 2, c, h, w), (0, 2, 3, 4, 1))


def sens_expand(x, sens_maps):
    # x: (B, 2, H, W) chan-form image -> k-space (B, coils, H, W, 2)
    return fft2c(complex_mul(chan_complex_to_last_dim(x), sens_maps))


def sens_reduce(kspace, sens_maps):
    # k-space (B, coils, H, W, 2) -> chan-form image (B, 2, H, W)
    img = jnp.sum(complex_mul(ifft2c(kspace), complex_conj(sens_maps)), axis=1, keepdims=True)
    return complex_to_chan_dim(img)


def center_crop(img, ch, cw):
    # clamped to the image size so small synthetic test shapes still work
    H, W = img.shape[-2:]
    ch, cw = min(H, ch), min(W, cw)
    top, left = (H - ch) // 2, (W - cw) // 2
    return img[..., top:top + ch, left:left + cw]


def image_crop(x, crop_size):
    H, W = x.shape[-2:]
    ch, cw = min(H, crop_size[0]), min(W, crop_size[1])
    top, left = (H - ch) // 2, (W - cw) // 2
    return x[..., top:top + ch, left:left + cw]


def image_uncrop(cropped, base):
    H, W = base.shape[-2:]
    ch, cw = cropped.shape[-2:]
    top, left = (H - ch) // 2, (W - cw) // 2
    return base.at[..., top:top + ch, left:left + cw].set(cropped)


# ----------------------------------------------------------------------------- #
# Parameter initialization (deterministic, PyTorch-default-like uniform bounds)
# ----------------------------------------------------------------------------- #
class KeyGen:
    def __init__(self, seed):
        self.key = jax.random.PRNGKey(seed)

    def __call__(self):
        self.key, sub = jax.random.split(self.key)
        return sub


def init_conv(kg, ci, co, kh, kw, bias=True):
    bound = 1.0 / math.sqrt(ci * kh * kw)
    w = jax.random.uniform(kg(), (co, ci, kh, kw), jnp.float32, -bound, bound)
    b = jax.random.uniform(kg(), (co,), jnp.float32, -bound, bound) if bias else None
    return {"w": w, "b": b}


def init_convT(kg, ci, co):
    bound = 1.0 / math.sqrt(ci * 4)
    return {"w": jax.random.uniform(kg(), (ci, co, 2, 2), jnp.float32, -bound, bound)}


# ----------------------------------------------------------------------------- #
# fastMRI Unet / NormUnet / Unet2d
# ----------------------------------------------------------------------------- #
def init_conv_block(kg, ci, co):
    return {"c1": init_conv(kg, ci, co, 3, 3, bias=False),
            "c2": init_conv(kg, co, co, 3, 3, bias=False)}


def apply_conv_block(p, x):
    # Conv3x3 -> InstanceNorm -> LeakyReLU(0.2) -> Dropout(0) -> Conv3x3 -> IN -> LReLU,
    # with IN statistics fused into each conv kernel.
    x = conv2d(x, p["c1"]["w"], None, padding=1, fuse_norm=True, act_slope=0.2)
    x = conv2d(x, p["c2"]["w"], None, padding=1, fuse_norm=True, act_slope=0.2)
    return x


def init_transpose_block(kg, ci, co):
    return {"ct": init_convT(kg, ci, co)}


def apply_transpose_block(p, x):
    # ConvTranspose2d(2,2) -> InstanceNorm -> LeakyReLU(0.2), stats fused into the matmul kernel.
    return conv_transpose2d_2x2(x, p["ct"]["w"], fuse_norm=True, act_slope=0.2)


def init_unet(kg, in_chans, out_chans, chans, pools):
    p = {"down": [], "up_t": [], "up_c": []}
    p["down"].append(init_conv_block(kg, in_chans, chans))
    ch = chans
    for _ in range(pools - 1):
        p["down"].append(init_conv_block(kg, ch, ch * 2))
        ch *= 2
    p["bottom"] = init_conv_block(kg, ch, ch * 2)
    for _ in range(pools - 1):
        p["up_t"].append(init_transpose_block(kg, ch * 2, ch))
        p["up_c"].append({"cb": init_conv_block(kg, ch * 2, ch)})
        ch //= 2
    p["up_t"].append(init_transpose_block(kg, ch * 2, ch))
    p["up_c"].append({"cb": init_conv_block(kg, ch * 2, ch),
                      "final": init_conv(kg, ch, out_chans, 1, 1, bias=True)})
    return p


def apply_unet(p, x):
    stack, out = [], x
    for blk in p["down"]:
        out = apply_conv_block(blk, out)
        stack.append(out)
        out = avg_pool2(out)
    out = apply_conv_block(p["bottom"], out)
    for tp, uc in zip(p["up_t"], p["up_c"]):
        skip = stack.pop()
        out = apply_transpose_block(tp, out)
        # TODO(synk): reflect-pad for odd spatial sizes omitted (test sizes are powers of two)
        out = jnp.concatenate([out, skip], axis=1)
        out = apply_conv_block(uc["cb"], out)
        if "final" in uc:
            out = conv2d(out, uc["final"]["w"], uc["final"]["b"], padding=0)
    return out


def _pad16(x):
    b, c, h, w = x.shape
    h_mult, w_mult = ((h - 1) | 15) + 1, ((w - 1) | 15) + 1
    h_pad = ((h_mult - h) // 2, (h_mult - h + 1) // 2)
    w_pad = ((w_mult - w) // 2, (w_mult - w + 1) // 2)
    xp = jnp.pad(x, ((0, 0), (0, 0), h_pad, w_pad))
    return xp, (h_pad, w_pad, h_mult, w_mult)


def _unpad16(x, pads):
    h_pad, w_pad, h_mult, w_mult = pads
    return x[:, :, h_pad[0]:h_mult - h_pad[1], w_pad[0]:w_mult - w_pad[1]]


def apply_unet2d(p, x):
    xp, pads = _pad16(x)
    return _unpad16(apply_unet(p, xp), pads)


def init_norm_unet(kg, chans, pools, in_chans=2, out_chans=2):
    return {"unet": init_unet(kg, in_chans, out_chans, chans, pools)}


def apply_norm_unet(p, x):
    # x: (B, C, H, W, 2) complex-last
    x = complex_to_chan_dim(x)
    b, c, h, w = x.shape
    xv = x.reshape(b, 2, (c // 2) * h * w)
    mean = xv.mean(axis=2).reshape(b, 2, 1, 1)
    std = xv.std(axis=2, ddof=1).reshape(b, 2, 1, 1)
    x = (x - mean) / std                       # c == 2 for every NormUnet call here
    xp, pads = _pad16(x)
    x = _unpad16(apply_unet(p["unet"], xp), pads)
    x = x * std + mean
    return chan_complex_to_last_dim(x)


# ----------------------------------------------------------------------------- #
# SensitivityModel / FeatureEncoder / FeatureDecoder / NormStats
# ----------------------------------------------------------------------------- #
def init_sens_model(kg, chans, pools):
    return {"norm_unet": init_norm_unet(kg, chans, pools)}


def apply_sens_model(p, masked_kspace, mask, num_low_frequencies, mask_center=True):
    B, C, H, W, _ = masked_kspace.shape
    if mask_center:
        if num_low_frequencies is None or num_low_frequencies == 0:
            sq = mask[:, 0, 0, :, 0].astype(jnp.int8)
            cent = sq.shape[1] // 2
            left = jnp.argmin(sq[:, :cent][:, ::-1], axis=1)
            right = jnp.argmin(sq[:, cent:], axis=1)
            nlf = jnp.maximum(2 * jnp.minimum(left, right), 1)
        else:
            nlf = jnp.full((B,), num_low_frequencies, jnp.int32)
        pad = (W - nlf + 1) // 2
        cols = jnp.arange(W)
        keep = (cols[None, :] >= pad[:, None]) & (cols[None, :] < (pad + nlf)[:, None])
        masked_kspace = masked_kspace * keep[:, None, None, :, None].astype(masked_kspace.dtype)
    images = ifft2c(masked_kspace).reshape(B * C, 1, H, W, 2)
    out = apply_norm_unet(p["norm_unet"], images).reshape(B, C, H, W, 2)
    denom = rss_complex(out, dim=1)[:, None, :, :, None]
    return out / denom


def init_feature_encoder(kg, in_chans, feature_chans):
    return {"conv": init_conv(kg, in_chans, feature_chans, 5, 5, bias=True)}


def apply_feature_encoder(p, image, means, variances):
    x = (image - means) * jax.lax.rsqrt(variances)
    return conv2d(x, p["conv"]["w"], p["conv"]["b"], padding=2)


def init_feature_decoder(kg, feature_chans, out_chans):
    return {"conv": init_conv(kg, feature_chans, out_chans, 5, 5, bias=True)}


def apply_feature_decoder(p, feats, means, variances):
    return conv2d(feats, p["conv"]["w"], p["conv"]["b"], padding=2) * jnp.sqrt(variances) + means


def norm_stats(image):
    # per-(batch, channel) mean / biased variance over spatial dims (NormStats)
    mean = image.mean(axis=(2, 3), keepdims=True)
    var = jnp.mean((image - mean) ** 2, axis=(2, 3), keepdims=True)
    return mean, var


# ----------------------------------------------------------------------------- #
# FeatureVarNetBlock / image-space VarNetBlock
# ----------------------------------------------------------------------------- #
def init_feature_block(kg, feature_chans, unet_chans, pools, use_extra_feature_conv):
    p = {"dc_weight": jnp.ones((1,), jnp.float32),
         "unet": init_unet(kg, feature_chans, feature_chans, unet_chans, pools),
         "use_extra": bool(use_extra_feature_conv)}
    if use_extra_feature_conv:
        p["out_conv"] = init_conv(kg, feature_chans, feature_chans, 5, 5, bias=False)
        p["prelu_a"] = 0.25   # TODO(synk): PReLU kept at the default constant slope (not learnable)
    return p


def apply_feature_block(p, enc_p, dec_p, fi):
    # block internals follow the fastMRI feature_varnet reference implementation
    feats = instance_norm2d(fi["features"])                         # input_norm
    fi = dict(fi, features=feats)
    # data-consistency term (decode -> k-space residual -> encode)
    est_k = sens_expand(apply_feature_decoder(dec_p, feats, fi["means"], fi["variances"]),
                        fi["sens_maps"])
    resid_k = jnp.where(fi["mask"], est_k - fi["ref_kspace"], 0.0)
    dc = p["dc_weight"][0] * apply_feature_encoder(
        enc_p, sens_reduce(resid_k, fi["sens_maps"]), fi["means"], fi["variances"])
    # feature processor (Unet2d) with crop / uncrop
    cropped = image_crop(feats, fi["crop_size"])
    model = image_uncrop(apply_unet2d(p["unet"], cropped), feats)
    new_feats = feats - dc - model
    if p["use_extra"]:
        # Conv5x5 -> InstanceNorm -> PReLU, stats fused into the conv kernel
        y = conv2d(new_feats, p["out_conv"]["w"], None, padding=2,
                   fuse_norm=True, act_slope=p["prelu_a"])
        new_feats = new_feats + y
    return dict(fi, features=new_feats)


def init_varnet_block(kg, chans, pools):
    return {"dc_weight": jnp.ones((1,), jnp.float32),
            "norm_unet": init_norm_unet(kg, chans, pools)}


def apply_varnet_block(p, current_kspace, ref_kspace, mask, sens_maps):
    soft_dc = jnp.where(mask, current_kspace - ref_kspace, 0.0) * p["dc_weight"][0]
    img = jnp.sum(complex_mul(ifft2c(current_kspace), complex_conj(sens_maps)),
                  axis=1, keepdims=True)                            # (B,1,H,W,2)
    model_term = fft2c(complex_mul(apply_norm_unet(p["norm_unet"], img), sens_maps))
    return current_kspace - soft_dc - model_term


# ----------------------------------------------------------------------------- #
# FlexibleCascadeVarNet
# ----------------------------------------------------------------------------- #
def init_model(kg, cfg):
    cascade_counts = cfg["cascade_counts"]
    feature_chans, unet_chans, pools = cfg["feature_chans"], cfg["unet_chans"], cfg["pools"]
    image_conv_cascades = [i for i in range(sum(cascade_counts)) if i % 3 == 0]
    params = {
        "sens": init_sens_model(kg, cfg["sens_chans"], cfg["sens_pools"]),
        "encoder": init_feature_encoder(kg, 2, feature_chans),
        "decoder": init_feature_decoder(kg, feature_chans, 2),
    }
    blocks, cur = [], 0
    # variant='dlka': cascade_counts[0] LKSA blocks (TODO(synk), count 0), then Unet2d feature blocks
    for _ in range(cascade_counts[1]):
        blocks.append(init_feature_block(kg, feature_chans, unet_chans, pools,
                                         cur in image_conv_cascades))
        cur += 1
    params["feat_cascades"] = blocks
    params["image_cascades"] = [init_varnet_block(kg, cfg["chans"], pools)
                                for _ in range(cascade_counts[-1])]
    return params


def forward(params, masked_kspace, mask, num_low_frequencies=None,
            kspace_mult_factor=1e6, crop_size=(640, 640)):
    masked_kspace = masked_kspace * kspace_mult_factor
    sens_maps = apply_sens_model(params["sens"], masked_kspace, mask, num_low_frequencies)
    image = sens_reduce(masked_kspace, sens_maps)                   # (B, 2, H, W)
    h, w = image.shape[-2:]
    crop_size = (min(h, crop_size[0]), min(w, crop_size[1]))
    means, variances = norm_stats(image)
    feats = apply_feature_encoder(params["encoder"], image, means, variances)
    fi = {"features": feats, "sens_maps": sens_maps, "crop_size": crop_size,
          "means": means, "variances": variances, "ref_kspace": masked_kspace, "mask": mask}
    for blk in params["feat_cascades"]:
        fi = apply_feature_block(blk, params["encoder"], params["decoder"], fi)
    # decode features back to k-space
    dec_in = instance_norm2d(fi["features"])                        # decode_norm
    kspace_pred = sens_expand(
        apply_feature_decoder(params["decoder"], dec_in, fi["means"], fi["variances"]),
        fi["sens_maps"])
    for blk in params["image_cascades"]:
        kspace_pred = apply_varnet_block(blk, kspace_pred, fi["ref_kspace"], mask, fi["sens_maps"])
    kspace_pred = kspace_pred / kspace_mult_factor
    img = rss(complex_abs(ifft2c(kspace_pred)), dim=1)              # (B, H, W)
    return center_crop(img, 384, 384)


# ----------------------------------------------------------------------------- #
if __name__ == "__main__":
    # Small synthetic problem: B=1, coils=4, 16x16 k-space.
    B, C, H, W = 1, 4, 16, 16
    key = jax.random.PRNGKey(0)
    k_data, _ = jax.random.split(key)
    masked_kspace = jax.random.normal(k_data, (B, C, H, W, 2), jnp.float32) * 1e-6

    # undersampling mask along W: every other line + 4 fully-sampled center lines
    cols = jnp.arange(W)
    mask1d = ((cols % 2) == 0) | ((cols >= 6) & (cols < 10))
    mask = jnp.broadcast_to(mask1d.reshape(1, 1, 1, W, 1), (B, 1, 1, W, 1))
    masked_kspace = masked_kspace * mask.astype(jnp.float32)

    cfg = dict(variant="dlka", cascade_counts=[0, 1, 1],
               feature_chans=8, unet_chans=8, chans=8, pools=2,
               sens_chans=4, sens_pools=2)
    params = init_model(KeyGen(1234), cfg)

    run = jax.jit(lambda k, m: forward(params, k, m, num_low_frequencies=4))
    out = run(masked_kspace, mask)
    jax.block_until_ready(out)

    assert out.shape == (B, 16, 16), out.shape
    assert bool(jnp.all(jnp.isfinite(out)))
    print("KERNEL_OK")
</pallas_src>

<mosaic_0001>
module attributes {stable_mosaic.version = 11 : i64} {
  func.func @_norm_act_kernel(%arg0: i32, %arg1: i32, %arg2: memref<1x4x256xf32, #tpu.memory_space<vmem>>, %arg3: memref<1x4x1xf32, #tpu.memory_space<vmem>>, %arg4: memref<1x4x1xf32, #tpu.memory_space<vmem>>, %arg5: memref<1x4x256xf32, #tpu.memory_space<vmem>>) attributes {dimension_semantics = [#tpu.dimension_semantics<parallel>, #tpu.dimension_semantics<parallel>], iteration_bounds = array<i64: 4, 1>, scalar_prefetch = 0 : i64, scratch_operands = 0 : i64, tpu.core_type = #tpu.core_type<tc>, window_params = [{transform_indices = @transform_0, window_bounds = array<i64: 1, 4, 256>}, {transform_indices = @transform_1, window_bounds = array<i64: 1, 4, 1>}, {transform_indices = @transform_2, window_bounds = array<i64: 1, 4, 1>}, {transform_indices = @transform_3, window_bounds = array<i64: 1, 4, 256>}]} {
    %c0 = arith.constant 0 : index
    %c0_0 = arith.constant 0 : index
    %c0_1 = arith.constant 0 : index
    %0 = vector.load %arg2[%c0, %c0_0, %c0_1] : memref<1x4x256xf32, #tpu.memory_space<vmem>>, vector<1x4x256xf32>
    %1 = vector.shape_cast %0 : vector<1x4x256xf32> to vector<4x256xf32>
    %c0_2 = arith.constant 0 : index
    %c0_3 = arith.constant 0 : index
    %c0_4 = arith.constant 0 : index
    %2 = vector.load %arg3[%c0_2, %c0_3, %c0_4] : memref<1x4x1xf32, #tpu.memory_space<vmem>>, vector<1x4x1xf32>
    %3 = vector.shape_cast %2 : vector<1x4x1xf32> to vector<4x1xf32>
    %4 = vector.broadcast %3 : vector<4x1xf32> to vector<4x256xf32>
    %5 = arith.subf %1, %4 : vector<4x256xf32>
    %c0_5 = arith.constant 0 : index
    %c0_6 = arith.constant 0 : index
    %c0_7 = arith.constant 0 : index
    %6 = vector.load %arg4[%c0_5, %c0_6, %c0_7] : memref<1x4x1xf32, #tpu.memory_space<vmem>>, vector<1x4x1xf32>
    %7 = vector.shape_cast %6 : vector<1x4x1xf32> to vector<4x1xf32>
    %8 = vector.broadcast %7 : vector<4x1xf32> to vector<4x256xf32>
    %9 = arith.mulf %5, %8 : vector<4x256xf32>
    %cst = arith.constant 0.000000e+00 : f32
    %10 = vector.broadcast %cst : f32 to vector<4x256xf32>
    %11 = arith.cmpf oge, %9, %10 : vector<4x256xf32>
    %cst_8 = arith.constant 2.000000e-01 : f32
    %12 = vector.broadcast %cst_8 : f32 to vector<4x256xf32>
    %13 = arith.mulf %12, %9 : vector<4x256xf32>
    %14 = arith.select %11, %9, %13 : vector<4x256xi1>, vector<4x256xf32>
    %c0_9 = arith.constant 0 : index
    %c0_10 = arith.constant 0 : index
    %c0_11 = arith.constant 0 : index
    %15 = vector.load %arg5[%c0_9, %c0_10, %c0_11] : memref<1x4x256xf32, #tpu.memory_space<vmem>>, vector<1x4x256xf32>
    %16 = vector.shape_cast %15 : vector<1x4x256xf32> to vector<4x256xf32>
    %17 = vector.shape_cast %14 : vector<4x256xf32> to vector<1x4x256xf32>
    tpu.vector_store %arg5[%c0_9, %c0_10, %c0_11], %17 {strides = array<i32>} : memref<1x4x256xf32, #tpu.memory_space<vmem>>, vector<1x4x256xf32>,
    return
  }
  func.func @transform_0(%arg0: i32, %arg1: i32) -> (i32, i32, i32) {
    %c0_i32 = arith.constant 0 : i32
    %c0_i32_0 = arith.constant 0 : i32
    return %arg0, %c0_i32, %arg1 : i32, i32, i32
  }
  func.func @transform_1(%arg0: i32, %arg1: i32) -> (i32, i32, i32) {
    %c0_i32 = arith.constant 0 : i32
    %c0_i32_0 = arith.constant 0 : i32
    %c0_i32_1 = arith.constant 0 : i32
    return %arg0, %c0_i32, %c0_i32_0 : i32, i32, i32
  }
  func.func @transform_2(%arg0: i32, %arg1: i32) -> (i32, i32, i32) {
    %c0_i32 = arith.constant 0 : i32
    %c0_i32_0 = arith.constant 0 : i32
    %c0_i32_1 = arith.constant 0 : i32
    return %arg0, %c0_i32, %c0_i32_0 : i32, i32, i32
  }
  func.func @transform_3(%arg0: i32, %arg1: i32) -> (i32, i32, i32) {
    %c0_i32 = arith.constant 0 : i32
    %c0_i32_0 = arith.constant 0 : i32
    return %arg0, %c0_i32, %arg1 : i32, i32, i32
  }
}

module attributes {stable_mosaic.version = 11 : i64} {
  func.func @_mm_bias_stats_kernel(%arg0: i32, %arg1: i32, %arg2: memref<4x18xbf16, #tpu.memory_space<vmem>>, %arg3: memref<1x18x256xbf16, #tpu.memory_space<vmem>>, %arg4: memref<4x1xf32, #tpu.memory_space<vmem>>, %arg5: memref<1x4x256xf32, #tpu.memory_space<vmem>>, %arg6: memref<1x4x1xf32, #tpu.memory_space<vmem>>, %arg7: memref<1x4x1xf32, #tpu.memory_space<vmem>>) attributes {dimension_semantics = [#tpu.dimension_semantics<parallel>, #tpu.dimension_semantics<arbitrary>], iteration_bounds = array<i64: 4, 1>, scalar_prefetch = 0 : i64, scratch_operands = 0 : i64, tpu.core_type = #tpu.core_type<tc>, window_params = [{pipeline_mode = #tpu.pipeline_mode<synchronous>, transform_indices = @transform_0, window_bounds = array<i64: 4, 18>}, {transform_indices = @transform_1, window_bounds = array<i64: 1, 18, 256>}, {pipeline_mode = #tpu.pipeline_mode<synchronous>, transform_indices = @transform_2, window_bounds = array<i64: 4, 1>}, {transform_indices = @transform_3, window_bounds = array<i64: 1, 4, 256>}, {transform_indices = @transform_4, window_bounds = array<i64: 1, 4, 1>}, {transform_indices = @transform_5, window_bounds = array<i64: 1, 4, 1>}]} {
    %c0_i32 = arith.constant 0 : i32
    %0 = arith.cmpi eq, %arg1, %c0_i32 : i32
    %1 = arith.extui %0 : i1 to i32
    %c0_i32_0 = arith.constant 0 : i32
    %2 = arith.cmpi ne, %1, %c0_i32_0 : i32
    scf.if %2 {
      %cst_26 = arith.constant 0.000000e+00 : f32
      %38 = vector.broadcast %cst_26 : f32 to vector<1x4x1xf32>
      %c0_27 = arith.constant 0 : index
      %c0_28 = arith.constant 0 : index
      %c0_29 = arith.constant 0 : index
      %39 = vector.load %arg6[%c0_27, %c0_28, %c0_29] : memref<1x4x1xf32, #tpu.memory_space<vmem>>, vector<1x4x1xf32>
      tpu.vector_store %arg6[%c0_27, %c0_28, %c0_29], %38 {strides = array<i32>} : memref<1x4x1xf32, #tpu.memory_space<vmem>>, vector<1x4x1xf32>,
      %cst_30 = arith.constant 0.000000e+00 : f32
      %40 = vector.broadcast %cst_30 : f32 to vector<1x4x1xf32>
      %c0_31 = arith.constant 0 : index
      %c0_32 = arith.constant 0 : index
      %c0_33 = arith.constant 0 : index
      %41 = vector.load %arg7[%c0_31, %c0_32, %c0_33] : memref<1x4x1xf32, #tpu.memory_space<vmem>>, vector<1x4x1xf32>
      tpu.vector_store %arg7[%c0_31, %c0_32, %c0_33], %40 {strides = array<i32>} : memref<1x4x1xf32, #tpu.memory_space<vmem>>, vector<1x4x1xf32>,
    } else {
    }
    %c0 = arith.constant 0 : index
    %c0_1 = arith.constant 0 : index
    %3 = vector.load %arg2[%c0, %c0_1] : memref<4x18xbf16, #tpu.memory_space<vmem>>, vector<4x18xbf16>
    %c0_2 = arith.constant 0 : index
    %c0_3 = arith.constant 0 : index
    %c0_4 = arith.constant 0 : index
    %4 = vector.load %arg3[%c0_2, %c0_3, %c0_4] : memref<1x18x256xbf16, #tpu.memory_space<vmem>>, vector<1x18x256xbf16>
    %5 = vector.shape_cast %4 : vector<1x18x256xbf16> to vector<18x256xbf16>
    %cst = arith.constant dense<0.000000e+00> : vector<4x256xf32>
    %6 = tpu.matmul %3, %5, %cst {dimension_numbers = #tpu.dot_dimension_numbers<[1], [0], [0], [1], [0, 0, 1, 1], [], []>} : vector<4x18xbf16>, vector<18x256xbf16>, vector<4x256xf32> -> vector<4x256xf32>
    %c0_5 = arith.constant 0 : index
    %c0_6 = arith.constant 0 : index
    %7 = vector.load %arg4[%c0_5, %c0_6] : memref<4x1xf32, #tpu.memory_space<vmem>>, vector<4x1xf32>
    %8 = vector.broadcast %7 : vector<4x1xf32> to vector<4x256xf32>
    %9 = arith.addf %6, %8 : vector<4x256xf32>
    %c0_7 = arith.constant 0 : index
    %c0_8 = arith.constant 0 : index
    %c0_9 = arith.constant 0 : index
    %10 = vector.load %arg5[%c0_7, %c0_8, %c0_9] : memref<1x4x256xf32, #tpu.memory_space<vmem>>, vector<1x4x256xf32>
    %11 = vector.shape_cast %10 : vector<1x4x256xf32> to vector<4x256xf32>
    %12 = vector.shape_cast %9 : vector<4x256xf32> to vector<1x4x256xf32>
    tpu.vector_store %arg5[%c0_7, %c0_8, %c0_9], %12 {strides = array<i32>} : memref<1x4x256xf32, #tpu.memory_space<vmem>>, vector<1x4x256xf32>,
    %c256_i32 = arith.constant 256 : i32
    %13 = arith.muli %arg1, %c256_i32 : i32
    %14 = tpu.iota {dimensions = array<i32: 1>} : vector<4x256xi32>
    %15 = vector.broadcast %13 : i32 to vector<4x256xi32>
    %16 = arith.addi %15, %14 : vector<4x256xi32>
    %c256_i32_10 = arith.constant 256 : i32
    %17 = vector.broadcast %c256_i32_10 : i32 to vector<4x256xi32>
    %18 = arith.cmpi slt, %16, %17 : vector<4x256xi32>
    %cst_11 = arith.constant 0.000000e+00 : f32
    %19 = vector.broadcast %cst_11 : f32 to vector<4x256xf32>
    %20 = arith.select %18, %9, %19 : vector<4x256xi1>, vector<4x256xf32>
    %c0_12 = arith.constant 0 : index
    %c0_13 = arith.constant 0 : index
    %c0_14 = arith.constant 0 : index
    %21 = vector.load %arg6[%c0_12, %c0_13, %c0_14] : memref<1x4x1xf32, #tpu.memory_space<vmem>>, vector<1x4x1xf32>
    %22 = vector.shape_cast %21 : vector<1x4x1xf32> to vector<4x1xf32>
    %cst_15 = arith.constant dense<0.000000e+00> : vector<4xf32>
    %23 = vector.multi_reduction <add>, %20, %cst_15 [1] : vector<4x256xf32> to vector<4xf32>
    %24 = vector.shape_cast %23 : vector<4xf32> to vector<4x1xf32>
    %25 = arith.addf %22, %24 : vector<4x1xf32>
    %c0_16 = arith.constant 0 : index
    %c0_17 = arith.constant 0 : index
    %c0_18 = arith.constant 0 : index
    %26 = vector.load %arg6[%c0_16, %c0_17, %c0_18] : memref<1x4x1xf32, #tpu.memory_space<vmem>>, vector<1x4x1xf32>
    %27 = vector.shape_cast %26 : vector<1x4x1xf32> to vector<4x1xf32>
    %28 = vector.shape_cast %25 : vector<4x1xf32> to vector<1x4x1xf32>
    tpu.vector_store %arg6[%c0_16, %c0_17, %c0_18], %28 {strides = array<i32>} : memref<1x4x1xf32, #tpu.memory_space<vmem>>, vector<1x4x1xf32>,
    %c0_19 = arith.constant 0 : index
    %c0_20 = arith.constant 0 : index
    %c0_21 = arith.constant 0 : index
    %29 = vector.load %arg7[%c0_19, %c0_20, %c0_21] : memref<1x4x1xf32, #tpu.memory_space<vmem>>, vector<1x4x1xf32>
    %30 = vector.shape_cast %29 : vector<1x4x1xf32> to vector<4x1xf32>
    %31 = arith.mulf %20, %20 : vector<4x256xf32>
    %cst_22 = arith.constant dense<0.000000e+00> : vector<4xf32>
    %32 = vector.multi_reduction <add>, %31, %cst_22 [1] : vector<4x256xf32> to vector<4xf32>
    %33 = vector.shape_cast %32 : vector<4xf32> to vector<4x1xf32>
    %34 = arith.addf %30, %33 : vector<4x1xf32>
    %c0_23 = arith.constant 0 : index
    %c0_24 = arith.constant 0 : index
    %c0_25 = arith.constant 0 : index
    %35 = vector.load %arg7[%c0_23, %c0_24, %c0_25] : memref<1x4x1xf32, #tpu.memory_space<vmem>>, vector<1x4x1xf32>
    %36 = vector.shape_cast %35 : vector<1x4x1xf32> to vector<4x1xf32>
    %37 = vector.shape_cast %34 : vector<4x1xf32> to vector<1x4x1xf32>
    tpu.vector_store %arg7[%c0_23, %c0_24, %c0_25], %37 {strides = array<i32>} : memref<1x4x1xf32, #tpu.memory_space<vmem>>, vector<1x4x1xf32>,
    return
  }
  func.func @transform_0(%arg0: i32, %arg1: i32) -> (i32, i32) {
    %c0_i32 = arith.constant 0 : i32
    %c0_i32_0 = arith.constant 0 : i32
    %c0_i32_1 = arith.constant 0 : i32
    return %c0_i32, %c0_i32_0 : i32, i32
  }
  func.func @transform_1(%arg0: i32, %arg1: i32) -> (i32, i32, i32) {
    %c0_i32 = arith.constant 0 : i32
    %c0_i32_0 = arith.constant 0 : i32
    return %arg0, %c0_i32, %arg1 : i32, i32, i32
  }
  func.func @transform_2(%arg0: i32, %arg1: i32) -> (i32, i32) {
    %c0_i32 = arith.constant 0 : i32
    %c0_i32_0 = arith.constant 0 : i32
    %c0_i32_1 = arith.constant 0 : i32
    return %c0_i32, %c0_i32_0 : i32, i32
  }
  func.func @transform_3(%arg0: i32, %arg1: i32) -> (i32, i32, i32) {
    %c0_i32 = arith.constant 0 : i32
    %c0_i32_0 = arith.constant 0 : i32
    return %arg0, %c0_i32, %arg1 : i32, i32, i32
  }
  func.func @transform_4(%arg0: i32, %arg1: i32) -> (i32, i32, i32) {
    %c0_i32 = arith.constant 0 : i32
    %c0_i32_0 = arith.constant 0 : i32
    %c0_i32_1 = arith.constant 0 : i32
    return %arg0, %c0_i32, %c0_i32_0 : i32, i32, i32
  }
  func.func @transform_5(%arg0: i32, %arg1: i32) -> (i32, i32, i32) {
    %c0_i32 = arith.constant 0 : i32
    %c0_i32_0 = arith.constant 0 : i32
    %c0_i32_1 = arith.constant 0 : i32
    return %arg0, %c0_i32, %c0_i32_0 : i32, i32, i32
  }
}

module attributes {stable_mosaic.version = 11 : i64} {
  func.func @_mm_bias_stats_kernel(%arg0: i32, %arg1: i32, %arg2: memref<4x36xbf16, #tpu.memory_space<vmem>>, %arg3: memref<1x36x256xbf16, #tpu.memory_space<vmem>>, %arg4: memref<4x1xf32, #tpu.memory_space<vmem>>, %arg5: memref<1x4x256xf32, #tpu.memory_space<vmem>>, %arg6: memref<1x4x1xf32, #tpu.memory_space<vmem>>, %arg7: memref<1x4x1xf32, #tpu.memory_space<vmem>>) attributes {dimension_semantics = [#tpu.dimension_semantics<parallel>, #tpu.dimension_semantics<arbitrary>], iteration_bounds = array<i64: 4, 1>, scalar_prefetch = 0 : i64, scratch_operands = 0 : i64, tpu.core_type = #tpu.core_type<tc>, window_params = [{pipeline_mode = #tpu.pipeline_mode<synchronous>, transform_indices = @transform_0, window_bounds = array<i64: 4, 36>}, {transform_indices = @transform_1, window_bounds = array<i64: 1, 36, 256>}, {pipeline_mode = #tpu.pipeline_mode<synchronous>, transform_indices = @transform_2, window_bounds = array<i64: 4, 1>}, {transform_indices = @transform_3, window_bounds = array<i64: 1, 4, 256>}, {transform_indices = @transform_4, window_bounds = array<i64: 1, 4, 1>}, {transform_indices = @transform_5, window_bounds = array<i64: 1, 4, 1>}]} {
    %c0_i32 = arith.constant 0 : i32
    %0 = arith.cmpi eq, %arg1, %c0_i32 : i32
    %1 = arith.extui %0 : i1 to i32
    %c0_i32_0 = arith.constant 0 : i32
    %2 = arith.cmpi ne, %1, %c0_i32_0 : i32
    scf.if %2 {
      %cst_26 = arith.constant 0.000000e+00 : f32
      %38 = vector.broadcast %cst_26 : f32 to vector<1x4x1xf32>
      %c0_27 = arith.constant 0 : index
      %c0_28 = arith.constant 0 : index
      %c0_29 = arith.constant 0 : index
      %39 = vector.load %arg6[%c0_27, %c0_28, %c0_29] : memref<1x4x1xf32, #tpu.memory_space<vmem>>, vector<1x4x1xf32>
      tpu.vector_store %arg6[%c0_27, %c0_28, %c0_29], %38 {strides = array<i32>} : memref<1x4x1xf32, #tpu.memory_space<vmem>>, vector<1x4x1xf32>,
      %cst_30 = arith.constant 0.000000e+00 : f32
      %40 = vector.broadcast %cst_30 : f32 to vector<1x4x1xf32>
      %c0_31 = arith.constant 0 : index
      %c0_32 = arith.constant 0 : index
      %c0_33 = arith.constant 0 : index
      %41 = vector.load %arg7[%c0_31, %c0_32, %c0_33] : memref<1x4x1xf32, #tpu.memory_space<vmem>>, vector<1x4x1xf32>
      tpu.vector_store %arg7[%c0_31, %c0_32, %c0_33], %40 {strides = array<i32>} : memref<1x4x1xf32, #tpu.memory_space<vmem>>, vector<1x4x1xf32>,
    } else {
    }
    %c0 = arith.constant 0 : index
    %c0_1 = arith.constant 0 : index
    %3 = vector.load %arg2[%c0, %c0_1] : memref<4x36xbf16, #tpu.memory_space<vmem>>, vector<4x36xbf16>
    %c0_2 = arith.constant 0 : index
    %c0_3 = arith.constant 0 : index
    %c0_4 = arith.constant 0 : index
    %4 = vector.load %arg3[%c0_2, %c0_3, %c0_4] : memref<1x36x256xbf16, #tpu.memory_space<vmem>>, vector<1x36x256xbf16>
    %5 = vector.shape_cast %4 : vector<1x36x256xbf16> to vector<36x256xbf16>
    %cst = arith.constant dense<0.000000e+00> : vector<4x256xf32>
    %6 = tpu.matmul %3, %5, %cst {dimension_numbers = #tpu.dot_dimension_numbers<[1], [0], [0], [1], [0, 0, 1, 1], [], []>} : vector<4x36xbf16>, vector<36x256xbf16>, vector<4x256xf32> -> vector<4x256xf32>
    %c0_5 = arith.constant 0 : index
    %c0_6 = arith.constant 0 : index
    %7 = vector.load %arg4[%c0_5, %c0_6] : memref<4x1xf32, #tpu.memory_space<vmem>>, vector<4x1xf32>
    %8 = vector.broadcast %7 : vector<4x1xf32> to vector<4x256xf32>
    %9 = arith.addf %6, %8 : vector<4x256xf32>
    %c0_7 = arith.constant 0 : index
    %c0_8 = arith.constant 0 : index
    %c0_9 = arith.constant 0 : index
    %10 = vector.load %arg5[%c0_7, %c0_8, %c0_9] : memref<1x4x256xf32, #tpu.memory_space<vmem>>, vector<1x4x256xf32>
    %11 = vector.shape_cast %10 : vector<1x4x256xf32> to vector<4x256xf32>
    %12 = vector.shape_cast %9 : vector<4x256xf32> to vector<1x4x256xf32>
    tpu.vector_store %arg5[%c0_7, %c0_8, %c0_9], %12 {strides = array<i32>} : memref<1x4x256xf32, #tpu.memory_space<vmem>>, vector<1x4x256xf32>,
    %c256_i32 = arith.constant 256 : i32
    %13 = arith.muli %arg1, %c256_i32 : i32
    %14 = tpu.iota {dimensions = array<i32: 1>} : vector<4x256xi32>
    %15 = vector.broadcast %13 : i32 to vector<4x256xi32>
    %16 = arith.addi %15, %14 : vector<4x256xi32>
    %c256_i32_10 = arith.constant 256 : i32
    %17 = vector.broadcast %c256_i32_10 : i32 to vector<4x256xi32>
    %18 = arith.cmpi slt, %16, %17 : vector<4x256xi32>
    %cst_11 = arith.constant 0.000000e+00 : f32
    %19 = vector.broadcast %cst_11 : f32 to vector<4x256xf32>
    %20 = arith.select %18, %9, %19 : vector<4x256xi1>, vector<4x256xf32>
    %c0_12 = arith.constant 0 : index
    %c0_13 = arith.constant 0 : index
    %c0_14 = arith.constant 0 : index
    %21 = vector.load %arg6[%c0_12, %c0_13, %c0_14] : memref<1x4x1xf32, #tpu.memory_space<vmem>>, vector<1x4x1xf32>
    %22 = vector.shape_cast %21 : vector<1x4x1xf32> to vector<4x1xf32>
    %cst_15 = arith.constant dense<0.000000e+00> : vector<4xf32>
    %23 = vector.multi_reduction <add>, %20, %cst_15 [1] : vector<4x256xf32> to vector<4xf32>
    %24 = vector.shape_cast %23 : vector<4xf32> to vector<4x1xf32>
    %25 = arith.addf %22, %24 : vector<4x1xf32>
    %c0_16 = arith.constant 0 : index
    %c0_17 = arith.constant 0 : index
    %c0_18 = arith.constant 0 : index
    %26 = vector.load %arg6[%c0_16, %c0_17, %c0_18] : memref<1x4x1xf32, #tpu.memory_space<vmem>>, vector<1x4x1xf32>
    %27 = vector.shape_cast %26 : vector<1x4x1xf32> to vector<4x1xf32>
    %28 = vector.shape_cast %25 : vector<4x1xf32> to vector<1x4x1xf32>
    tpu.vector_store %arg6[%c0_16, %c0_17, %c0_18], %28 {strides = array<i32>} : memref<1x4x1xf32, #tpu.memory_space<vmem>>, vector<1x4x1xf32>,
    %c0_19 = arith.constant 0 : index
    %c0_20 = arith.constant 0 : index
    %c0_21 = arith.constant 0 : index
    %29 = vector.load %arg7[%c0_19, %c0_20, %c0_21] : memref<1x4x1xf32, #tpu.memory_space<vmem>>, vector<1x4x1xf32>
    %30 = vector.shape_cast %29 : vector<1x4x1xf32> to vector<4x1xf32>
    %31 = arith.mulf %20, %20 : vector<4x256xf32>
    %cst_22 = arith.constant dense<0.000000e+00> : vector<4xf32>
    %32 = vector.multi_reduction <add>, %31, %cst_22 [1] : vector<4x256xf32> to vector<4xf32>
    %33 = vector.shape_cast %32 : vector<4xf32> to vector<4x1xf32>
    %34 = arith.addf %30, %33 : vector<4x1xf32>
    %c0_23 = arith.constant 0 : index
    %c0_24 = arith.constant 0 : index
    %c0_25 = arith.constant 0 : index
    %35 = vector.load %arg7[%c0_23, %c0_24, %c0_25] : memref<1x4x1xf32, #tpu.memory_space<vmem>>, vector<1x4x1xf32>
    %36 = vector.shape_cast %35 : vector<1x4x1xf32> to vector<4x1xf32>
    %37 = vector.shape_cast %34 : vector<4x1xf32> to vector<1x4x1xf32>
    tpu.vector_store %arg7[%c0_23, %c0_24, %c0_25], %37 {strides = array<i32>} : memref<1x4x1xf32, #tpu.memory_space<vmem>>, vector<1x4x1xf32>,
    return
  }
  func.func @transform_0(%arg0: i32, %arg1: i32) -> (i32, i32) {
    %c0_i32 = arith.constant 0 : i32
    %c0_i32_0 = arith.constant 0 : i32
    %c0_i32_1 = arith.constant 0 : i32
    return %c0_i32, %c0_i32_0 : i32, i32
  }
  func.func @transform_1(%arg0: i32, %arg1: i32) -> (i32, i32, i32) {
    %c0_i32 = arith.constant 0 : i32
    %c0_i32_0 = arith.constant 0 : i32
    return %arg0, %c0_i32, %arg1 : i32, i32, i32
  }
  func.func @transform_2(%arg0: i32, %arg1: i32) -> (i32, i32) {
    %c0_i32 = arith.constant 0 : i32
    %c0_i32_0 = arith.constant 0 : i32
    %c0_i32_1 = arith.constant 0 : i32
    return %c0_i32, %c0_i32_0 : i32, i32
  }
  func.func @transform_3(%arg0: i32, %arg1: i32) -> (i32, i32, i32) {
    %c0_i32 = arith.constant 0 : i32
    %c0_i32_0 = arith.constant 0 : i32
    return %arg0, %c0_i32, %arg1 : i32, i32, i32
  }
  func.func @transform_4(%arg0: i32, %arg1: i32) -> (i32, i32, i32) {
    %c0_i32 = arith.constant 0 : i32
    %c0_i32_0 = arith.constant 0 : i32
    %c0_i32_1 = arith.constant 0 : i32
    return %arg0, %c0_i32, %c0_i32_0 : i32, i32, i32
  }
  func.func @transform_5(%arg0: i32, %arg1: i32) -> (i32, i32, i32) {
    %c0_i32 = arith.constant 0 : i32
    %c0_i32_0 = arith.constant 0 : i32
    %c0_i32_1 = arith.constant 0 : i32
    return %arg0, %c0_i32, %c0_i32_0 : i32, i32, i32
  }
}

module attributes {stable_mosaic.version = 11 : i64} {
  func.func @_mm_bias_stats_kernel(%arg0: i32, %arg1: i32, %arg2: memref<8x36xbf16, #tpu.memory_space<vmem>>, %arg3: memref<1x36x128xbf16, #tpu.memory_space<vmem>>, %arg4: memref<8x1xf32, #tpu.memory_space<vmem>>, %arg5: memref<1x8x128xf32, #tpu.memory_space<vmem>>, %arg6: memref<1x8x1xf32, #tpu.memory_space<vmem>>, %arg7: memref<1x8x1xf32, #tpu.memory_space<vmem>>) attributes {dimension_semantics = [#tpu.dimension_semantics<parallel>, #tpu.dimension_semantics<arbitrary>], iteration_bounds = array<i64: 4, 1>, scalar_prefetch = 0 : i64, scratch_operands = 0 : i64, tpu.core_type = #tpu.core_type<tc>, window_params = [{pipeline_mode = #tpu.pipeline_mode<synchronous>, transform_indices = @transform_0, window_bounds = array<i64: 8, 36>}, {transform_indices = @transform_1, window_bounds = array<i64: 1, 36, 128>}, {pipeline_mode = #tpu.pipeline_mode<synchronous>, transform_indices = @transform_2, window_bounds = array<i64: 8, 1>}, {transform_indices = @transform_3, window_bounds = array<i64: 1, 8, 128>}, {transform_indices = @transform_4, window_bounds = array<i64: 1, 8, 1>}, {transform_indices = @transform_5, window_bounds = array<i64: 1, 8, 1>}]} {
    %c0_i32 = arith.constant 0 : i32
    %0 = arith.cmpi eq, %arg1, %c0_i32 : i32
    %1 = arith.extui %0 : i1 to i32
    %c0_i32_0 = arith.constant 0 : i32
    %2 = arith.cmpi ne, %1, %c0_i32_0 : i32
    scf.if %2 {
      %cst_25 = arith.constant 0.000000e+00 : f32
      %38 = vector.broadcast %cst_25 : f32 to vector<1x8x1xf32>
      %c0_26 = arith.constant 0 : index
      %c0_27 = arith.constant 0 : index
      %c0_28 = arith.constant 0 : index
      %39 = vector.load %arg6[%c0_26, %c0_27, %c0_28] : memref<1x8x1xf32, #tpu.memory_space<vmem>>, vector<1x8x1xf32>
      tpu.vector_store %arg6[%c0_26, %c0_27, %c0_28], %38 {strides = array<i32>} : memref<1x8x1xf32, #tpu.memory_space<vmem>>, vector<1x8x1xf32>,
      %cst_29 = arith.constant 0.000000e+00 : f32
      %40 = vector.broadcast %cst_29 : f32 to vector<1x8x1xf32>
      %c0_30 = arith.constant 0 : index
      %c0_31 = arith.constant 0 : index
      %c0_32 = arith.constant 0 : index
      %41 = vector.load %arg7[%c0_30, %c0_31, %c0_32] : memref<1x8x1xf32, #tpu.memory_space<vmem>>, vector<1x8x1xf32>
      tpu.vector_store %arg7[%c0_30, %c0_31, %c0_32], %40 {strides = array<i32>} : memref<1x8x1xf32, #tpu.memory_space<vmem>>, vector<1x8x1xf32>,
    } else {
    }
    %c0 = arith.constant 0 : index
    %c0_1 = arith.constant 0 : index
    %3 = vector.load %arg2[%c0, %c0_1] : memref<8x36xbf16, #tpu.memory_space<vmem>>, vector<8x36xbf16>
    %c0_2 = arith.constant 0 : index
    %c0_3 = arith.constant 0 : index
    %c0_4 = arith.constant 0 : index
    %4 = vector.load %arg3[%c0_2, %c0_3, %c0_4] : memref<1x36x128xbf16, #tpu.memory_space<vmem>>, vector<1x36x128xbf16>
    %5 = vector.shape_cast %4 : vector<1x36x128xbf16> to vector<36x128xbf16>
    %cst = arith.constant dense<0.000000e+00> : vector<8x128xf32>
    %6 = tpu.matmul %3, %5, %cst {dimension_numbers = #tpu.dot_dimension_numbers<[1], [0], [0], [1], [0, 0, 1, 1], [], []>} : vector<8x36xbf16>, vector<36x128xbf16>, vector<8x128xf32> -> vector<8x128xf32>
    %c0_5 = arith.constant 0 : index
    %c0_6 = arith.constant 0 : index
    %7 = vector.load %arg4[%c0_5, %c0_6] : memref<8x1xf32, #tpu.memory_space<vmem>>, vector<8x1xf32>
    %8 = vector.broadcast %7 : vector<8x1xf32> to vector<8x128xf32>
    %9 = arith.addf %6, %8 : vector<8x128xf32>
    %c0_7 = arith.constant 0 : index
    %c0_8 = arith.constant 0 : index
    %c0_9 = arith.constant 0 : index
    %10 = vector.load %arg5[%c0_7, %c0_8, %c0_9] : memref<1x8x128xf32, #tpu.memory_space<vmem>>, vector<1x8x128xf32>
    %11 = vector.shape_cast %10 : vector<1x8x128xf32> to vector<8x128xf32>
    %12 = vector.shape_cast %9 : vector<8x128xf32> to vector<1x8x128xf32>
    tpu.vector_store %arg5[%c0_7, %c0_8, %c0_9], %12 {strides = array<i32>} : memref<1x8x128xf32, #tpu.memory_space<vmem>>, vector<1x8x128xf32>,
    %c128_i32 = arith.constant 128 : i32
    %13 = arith.muli %arg1, %c128_i32 : i32
    %14 = tpu.iota {dimensions = array<i32: 1>} : vector<8x128xi32>
    %15 = vector.broadcast %13 : i32 to vector<8x128xi32>
    %16 = arith.addi %15, %14 : vector<8x128xi32>
    %c64_i32 = arith.constant 64 : i32
    %17 = vector.broadcast %c64_i32 : i32 to vector<8x128xi32>
    %18 = arith.cmpi slt, %16, %17 : vector<8x128xi32>
    %cst_10 = arith.constant 0.000000e+00 : f32
    %19 = vector.broadcast %cst_10 : f32 to vector<8x128xf32>
    %20 = arith.select %18, %9, %19 : vector<8x128xi1>, vector<8x128xf32>
    %c0_11 = arith.constant 0 : index
    %c0_12 = arith.constant 0 : index
    %c0_13 = arith.constant 0 : index
    %21 = vector.load %arg6[%c0_11, %c0_12, %c0_13] : memref<1x8x1xf32, #tpu.memory_space<vmem>>, vector<1x8x1xf32>
    %22 = vector.shape_cast %21 : vector<1x8x1xf32> to vector<8x1xf32>
    %cst_14 = arith.constant dense<0.000000e+00> : vector<8xf32>
    %23 = vector.multi_reduction <add>, %20, %cst_14 [1] : vector<8x128xf32> to vector<8xf32>
    %24 = vector.shape_cast %23 : vector<8xf32> to vector<8x1xf32>
    %25 = arith.addf %22, %24 : vector<8x1xf32>
    %c0_15 = arith.constant 0 : index
    %c0_16 = arith.constant 0 : index
    %c0_17 = arith.constant 0 : index
    %26 = vector.load %arg6[%c0_15, %c0_16, %c0_17] : memref<1x8x1xf32, #tpu.memory_space<vmem>>, vector<1x8x1xf32>
    %27 = vector.shape_cast %26 : vector<1x8x1xf32> to vector<8x1xf32>
    %28 = vector.shape_cast %25 : vector<8x1xf32> to vector<1x8x1xf32>
    tpu.vector_store %arg6[%c0_15, %c0_16, %c0_17], %28 {strides = array<i32>} : memref<1x8x1xf32, #tpu.memory_space<vmem>>, vector<1x8x1xf32>,
    %c0_18 = arith.constant 0 : index
    %c0_19 = arith.constant 0 : index
    %c0_20 = arith.constant 0 : index
    %29 = vector.load %arg7[%c0_18, %c0_19, %c0_20] : memref<1x8x1xf32, #tpu.memory_space<vmem>>, vector<1x8x1xf32>
    %30 = vector.shape_cast %29 : vector<1x8x1xf32> to vector<8x1xf32>
    %31 = arith.mulf %20, %20 : vector<8x128xf32>
    %cst_21 = arith.constant dense<0.000000e+00> : vector<8xf32>
    %32 = vector.multi_reduction <add>, %31, %cst_21 [1] : vector<8x128xf32> to vector<8xf32>
    %33 = vector.shape_cast %32 : vector<8xf32> to vector<8x1xf32>
    %34 = arith.addf %30, %33 : vector<8x1xf32>
    %c0_22 = arith.constant 0 : index
    %c0_23 = arith.constant 0 : index
    %c0_24 = arith.constant 0 : index
    %35 = vector.load %arg7[%c0_22, %c0_23, %c0_24] : memref<1x8x1xf32, #tpu.memory_space<vmem>>, vector<1x8x1xf32>
    %36 = vector.shape_cast %35 : vector<1x8x1xf32> to vector<8x1xf32>
    %37 = vector.shape_cast %34 : vector<8x1xf32> to vector<1x8x1xf32>
    tpu.vector_store %arg7[%c0_22, %c0_23, %c0_24], %37 {strides = array<i32>} : memref<1x8x1xf32, #tpu.memory_space<vmem>>, vector<1x8x1xf32>,
    return
  }
  func.func @transform_0(%arg0: i32, %arg1: i32) -> (i32, i32) {
    %c0_i32 = arith.constant 0 : i32
    %c0_i32_0 = arith.constant 0 : i32
    %c0_i32_1 = arith.constant 0 : i32
    return %c0_i32, %c0_i32_0 : i32, i32
  }
  func.func @transform_1(%arg0: i32, %arg1: i32) -> (i32, i32, i32) {
    %c0_i32 = arith.constant 0 : i32
    %c0_i32_0 = arith.constant 0 : i32
    return %arg0, %c0_i32, %arg1 : i32, i32, i32
  }
  func.func @transform_2(%arg0: i32, %arg1: i32) -> (i32, i32) {
    %c0_i32 = arith.constant 0 : i32
    %c0_i32_0 = arith.constant 0 : i32
    %c0_i32_1 = arith.constant 0 : i32
    return %c0_i32, %c0_i32_0 : i32, i32
  }
  func.func @transform_3(%arg0: i32, %arg1: i32) -> (i32, i32, i32) {
    %c0_i32 = arith.constant 0 : i32
    %c0_i32_0 = arith.constant 0 : i32
    return %arg0, %c0_i32, %arg1 : i32, i32, i32
  }
  func.func @transform_4(%arg0: i32, %arg1: i32) -> (i32, i32, i32) {
    %c0_i32 = arith.constant 0 : i32
    %c0_i32_0 = arith.constant 0 : i32
    %c0_i32_1 = arith.constant 0 : i32
    return %arg0, %c0_i32, %c0_i32_0 : i32, i32, i32
  }
  func.func @transform_5(%arg0: i32, %arg1: i32) -> (i32, i32, i32) {
    %c0_i32 = arith.constant 0 : i32
    %c0_i32_0 = arith.constant 0 : i32
    %c0_i32_1 = arith.constant 0 : i32
    return %arg0, %c0_i32, %c0_i32_0 : i32, i32, i32
  }
}

module attributes {stable_mosaic.version = 11 : i64} {
  func.func @_norm_act_kernel(%arg0: i32, %arg1: i32, %arg2: memref<1x8x128xf32, #tpu.memory_space<vmem>>, %arg3: memref<1x8x1xf32, #tpu.memory_space<vmem>>, %arg4: memref<1x8x1xf32, #tpu.memory_space<vmem>>, %arg5: memref<1x8x128xf32, #tpu.memory_space<vmem>>) attributes {dimension_semantics = [#tpu.dimension_semantics<parallel>, #tpu.dimension_semantics<parallel>], iteration_bounds = array<i64: 4, 1>, scalar_prefetch = 0 : i64, scratch_operands = 0 : i64, tpu.core_type = #tpu.core_type<tc>, window_params = [{transform_indices = @transform_0, window_bounds = array<i64: 1, 8, 128>}, {transform_indices = @transform_1, window_bounds = array<i64: 1, 8, 1>}, {transform_indices = @transform_2, window_bounds = array<i64: 1, 8, 1>}, {transform_indices = @transform_3, window_bounds = array<i64: 1, 8, 128>}]} {
    %c0 = arith.constant 0 : index
    %c0_0 = arith.constant 0 : index
    %c0_1 = arith.constant 0 : index
    %0 = vector.load %arg2[%c0, %c0_0, %c0_1] : memref<1x8x128xf32, #tpu.memory_space<vmem>>, vector<1x8x128xf32>
    %1 = vector.shape_cast %0 : vector<1x8x128xf32> to vector<8x128xf32>
    %c0_2 = arith.constant 0 : index
    %c0_3 = arith.constant 0 : index
    %c0_4 = arith.constant 0 : index
    %2 = vector.load %arg3[%c0_2, %c0_3, %c0_4] : memref<1x8x1xf32, #tpu.memory_space<vmem>>, vector<1x8x1xf32>
    %3 = vector.shape_cast %2 : vector<1x8x1xf32> to vector<8x1xf32>
    %4 = vector.broadcast %3 : vector<8x1xf32> to vector<8x128xf32>
    %5 = arith.subf %1, %4 : vector<8x128xf32>
    %c0_5 = arith.constant 0 : index
    %c0_6 = arith.constant 0 : index
    %c0_7 = arith.constant 0 : index
    %6 = vector.load %arg4[%c0_5, %c0_6, %c0_7] : memref<1x8x1xf32, #tpu.memory_space<vmem>>, vector<1x8x1xf32>
    %7 = vector.shape_cast %6 : vector<1x8x1xf32> to vector<8x1xf32>
    %8 = vector.broadcast %7 : vector<8x1xf32> to vector<8x128xf32>
    %9 = arith.mulf %5, %8 : vector<8x128xf32>
    %cst = arith.constant 0.000000e+00 : f32
    %10 = vector.broadcast %cst : f32 to vector<8x128xf32>
    %11 = arith.cmpf oge, %9, %10 : vector<8x128xf32>
    %cst_8 = arith.constant 2.000000e-01 : f32
    %12 = vector.broadcast %cst_8 : f32 to vector<8x128xf32>
    %13 = arith.mulf %12, %9 : vector<8x128xf32>
    %14 = arith.select %11, %9, %13 : vector<8x128xi1>, vector<8x128xf32>
    %c0_9 = arith.constant 0 : index
    %c0_10 = arith.constant 0 : index
    %c0_11 = arith.constant 0 : index
    %15 = vector.load %arg5[%c0_9, %c0_10, %c0_11] : memref<1x8x128xf32, #tpu.memory_space<vmem>>, vector<1x8x128xf32>
    %16 = vector.shape_cast %15 : vector<1x8x128xf32> to vector<8x128xf32>
    %17 = vector.shape_cast %14 : vector<8x128xf32> to vector<1x8x128xf32>
    tpu.vector_store %arg5[%c0_9, %c0_10, %c0_11], %17 {strides = array<i32>} : memref<1x8x128xf32, #tpu.memory_space<vmem>>, vector<1x8x128xf32>,
    return
  }
  func.func @transform_0(%arg0: i32, %arg1: i32) -> (i32, i32, i32) {
    %c0_i32 = arith.constant 0 : i32
    %c0_i32_0 = arith.constant 0 : i32
    return %arg0, %c0_i32, %arg1 : i32, i32, i32
  }
  func.func @transform_1(%arg0: i32, %arg1: i32) -> (i32, i32, i32) {
    %c0_i32 = arith.constant 0 : i32
    %c0_i32_0 = arith.constant 0 : i32
    %c0_i32_1 = arith.constant 0 : i32
    return %arg0, %c0_i32, %c0_i32_0 : i32, i32, i32
  }
  func.func @transform_2(%arg0: i32, %arg1: i32) -> (i32, i32, i32) {
    %c0_i32 = arith.constant 0 : i32
    %c0_i32_0 = arith.constant 0 : i32
    %c0_i32_1 = arith.constant 0 : i32
    return %arg0, %c0_i32, %c0_i32_0 : i32, i32, i32
  }
  func.func @transform_3(%arg0: i32, %arg1: i32) -> (i32, i32, i32) {
    %c0_i32 = arith.constant 0 : i32
    %c0_i32_0 = arith.constant 0 : i32
    return %arg0, %c0_i32, %arg1 : i32, i32, i32
  }
}

module attributes {stable_mosaic.version = 11 : i64} {
  func.func @_mm_bias_stats_kernel(%arg0: i32, %arg1: i32, %arg2: memref<8x72xbf16, #tpu.memory_space<vmem>>, %arg3: memref<1x72x128xbf16, #tpu.memory_space<vmem>>, %arg4: memref<8x1xf32, #tpu.memory_space<vmem>>, %arg5: memref<1x8x128xf32, #tpu.memory_space<vmem>>, %arg6: memref<1x8x1xf32, #tpu.memory_space<vmem>>, %arg7: memref<1x8x1xf32, #tpu.memory_space<vmem>>) attributes {dimension_semantics = [#tpu.dimension_semantics<parallel>, #tpu.dimension_semantics<arbitrary>], iteration_bounds = array<i64: 4, 1>, scalar_prefetch = 0 : i64, scratch_operands = 0 : i64, tpu.core_type = #tpu.core_type<tc>, window_params = [{pipeline_mode = #tpu.pipeline_mode<synchronous>, transform_indices = @transform_0, window_bounds = array<i64: 8, 72>}, {transform_indices = @transform_1, window_bounds = array<i64: 1, 72, 128>}, {pipeline_mode = #tpu.pipeline_mode<synchronous>, transform_indices = @transform_2, window_bounds = array<i64: 8, 1>}, {transform_indices = @transform_3, window_bounds = array<i64: 1, 8, 128>}, {transform_indices = @transform_4, window_bounds = array<i64: 1, 8, 1>}, {transform_indices = @transform_5, window_bounds = array<i64: 1, 8, 1>}]} {
    %c0_i32 = arith.constant 0 : i32
    %0 = arith.cmpi eq, %arg1, %c0_i32 : i32
    %1 = arith.extui %0 : i1 to i32
    %c0_i32_0 = arith.constant 0 : i32
    %2 = arith.cmpi ne, %1, %c0_i32_0 : i32
    scf.if %2 {
      %cst_25 = arith.constant 0.000000e+00 : f32
      %38 = vector.broadcast %cst_25 : f32 to vector<1x8x1xf32>
      %c0_26 = arith.constant 0 : index
      %c0_27 = arith.constant 0 : index
      %c0_28 = arith.constant 0 : index
      %39 = vector.load %arg6[%c0_26, %c0_27, %c0_28] : memref<1x8x1xf32, #tpu.memory_space<vmem>>, vector<1x8x1xf32>
      tpu.vector_store %arg6[%c0_26, %c0_27, %c0_28], %38 {strides = array<i32>} : memref<1x8x1xf32, #tpu.memory_space<vmem>>, vector<1x8x1xf32>,
      %cst_29 = arith.constant 0.000000e+00 : f32
      %40 = vector.broadcast %cst_29 : f32 to vector<1x8x1xf32>
      %c0_30 = arith.constant 0 : index
      %c0_31 = arith.constant 0 : index
      %c0_32 = arith.constant 0 : index
      %41 = vector.load %arg7[%c0_30, %c0_31, %c0_32] : memref<1x8x1xf32, #tpu.memory_space<vmem>>, vector<1x8x1xf32>
      tpu.vector_store %arg7[%c0_30, %c0_31, %c0_32], %40 {strides = array<i32>} : memref<1x8x1xf32, #tpu.memory_space<vmem>>, vector<1x8x1xf32>,
    } else {
    }
    %c0 = arith.constant 0 : index
    %c0_1 = arith.constant 0 : index
    %3 = vector.load %arg2[%c0, %c0_1] : memref<8x72xbf16, #tpu.memory_space<vmem>>, vector<8x72xbf16>
    %c0_2 = arith.constant 0 : index
    %c0_3 = arith.constant 0 : index
    %c0_4 = arith.constant 0 : index
    %4 = vector.load %arg3[%c0_2, %c0_3, %c0_4] : memref<1x72x128xbf16, #tpu.memory_space<vmem>>, vector<1x72x128xbf16>
    %5 = vector.shape_cast %4 : vector<1x72x128xbf16> to vector<72x128xbf16>
    %cst = arith.constant dense<0.000000e+00> : vector<8x128xf32>
    %6 = tpu.matmul %3, %5, %cst {dimension_numbers = #tpu.dot_dimension_numbers<[1], [0], [0], [1], [0, 0, 1, 1], [], []>} : vector<8x72xbf16>, vector<72x128xbf16>, vector<8x128xf32> -> vector<8x128xf32>
    %c0_5 = arith.constant 0 : index
    %c0_6 = arith.constant 0 : index
    %7 = vector.load %arg4[%c0_5, %c0_6] : memref<8x1xf32, #tpu.memory_space<vmem>>, vector<8x1xf32>
    %8 = vector.broadcast %7 : vector<8x1xf32> to vector<8x128xf32>
    %9 = arith.addf %6, %8 : vector<8x128xf32>
    %c0_7 = arith.constant 0 : index
    %c0_8 = arith.constant 0 : index
    %c0_9 = arith.constant 0 : index
    %10 = vector.load %arg5[%c0_7, %c0_8, %c0_9] : memref<1x8x128xf32, #tpu.memory_space<vmem>>, vector<1x8x128xf32>
    %11 = vector.shape_cast %10 : vector<1x8x128xf32> to vector<8x128xf32>
    %12 = vector.shape_cast %9 : vector<8x128xf32> to vector<1x8x128xf32>
    tpu.vector_store %arg5[%c0_7, %c0_8, %c0_9], %12 {strides = array<i32>} : memref<1x8x128xf32, #tpu.memory_space<vmem>>, vector<1x8x128xf32>,
    %c128_i32 = arith.constant 128 : i32
    %13 = arith.muli %arg1, %c128_i32 : i32
    %14 = tpu.iota {dimensions = array<i32: 1>} : vector<8x128xi32>
    %15 = vector.broadcast %13 : i32 to vector<8x128xi32>
    %16 = arith.addi %15, %14 : vector<8x128xi32>
    %c64_i32 = arith.constant 64 : i32
    %17 = vector.broadcast %c64_i32 : i32 to vector<8x128xi32>
    %18 = arith.cmpi slt, %16, %17 : vector<8x128xi32>
    %cst_10 = arith.constant 0.000000e+00 : f32
    %19 = vector.broadcast %cst_10 : f32 to vector<8x128xf32>
    %20 = arith.select %18, %9, %19 : vector<8x128xi1>, vector<8x128xf32>
    %c0_11 = arith.constant 0 : index
    %c0_12 = arith.constant 0 : index
    %c0_13 = arith.constant 0 : index
    %21 = vector.load %arg6[%c0_11, %c0_12, %c0_13] : memref<1x8x1xf32, #tpu.memory_space<vmem>>, vector<1x8x1xf32>
    %22 = vector.shape_cast %21 : vector<1x8x1xf32> to vector<8x1xf32>
    %cst_14 = arith.constant dense<0.000000e+00> : vector<8xf32>
    %23 = vector.multi_reduction <add>, %20, %cst_14 [1] : vector<8x128xf32> to vector<8xf32>
    %24 = vector.shape_cast %23 : vector<8xf32> to vector<8x1xf32>
    %25 = arith.addf %22, %24 : vector<8x1xf32>
    %c0_15 = arith.constant 0 : index
    %c0_16 = arith.constant 0 : index
    %c0_17 = arith.constant 0 : index
    %26 = vector.load %arg6[%c0_15, %c0_16, %c0_17] : memref<1x8x1xf32, #tpu.memory_space<vmem>>, vector<1x8x1xf32>
    %27 = vector.shape_cast %26 : vector<1x8x1xf32> to vector<8x1xf32>
    %28 = vector.shape_cast %25 : vector<8x1xf32> to vector<1x8x1xf32>
    tpu.vector_store %arg6[%c0_15, %c0_16, %c0_17], %28 {strides = array<i32>} : memref<1x8x1xf32, #tpu.memory_space<vmem>>, vector<1x8x1xf32>,
    %c0_18 = arith.constant 0 : index
    %c0_19 = arith.constant 0 : index
    %c0_20 = arith.constant 0 : index
    %29 = vector.load %arg7[%c0_18, %c0_19, %c0_20] : memref<1x8x1xf32, #tpu.memory_space<vmem>>, vector<1x8x1xf32>
    %30 = vector.shape_cast %29 : vector<1x8x1xf32> to vector<8x1xf32>
    %31 = arith.mulf %20, %20 : vector<8x128xf32>
    %cst_21 = arith.constant dense<0.000000e+00> : vector<8xf32>
    %32 = vector.multi_reduction <add>, %31, %cst_21 [1] : vector<8x128xf32> to vector<8xf32>
    %33 = vector.shape_cast %32 : vector<8xf32> to vector<8x1xf32>
    %34 = arith.addf %30, %33 : vector<8x1xf32>
    %c0_22 = arith.constant 0 : index
    %c0_23 = arith.constant 0 : index
    %c0_24 = arith.constant 0 : index
    %35 = vector.load %arg7[%c0_22, %c0_23, %c0_24] : memref<1x8x1xf32, #tpu.memory_space<vmem>>, vector<1x8x1xf32>
    %36 = vector.shape_cast %35 : vector<1x8x1xf32> to vector<8x1xf32>
    %37 = vector.shape_cast %34 : vector<8x1xf32> to vector<1x8x1xf32>
    tpu.vector_store %arg7[%c0_22, %c0_23, %c0_24], %37 {strides = array<i32>} : memref<1x8x1xf32, #tpu.memory_space<vmem>>, vector<1x8x1xf32>,
    return
  }
  func.func @transform_0(%arg0: i32, %arg1: i32) -> (i32, i32) {
    %c0_i32 = arith.constant 0 : i32
    %c0_i32_0 = arith.constant 0 : i32
    %c0_i32_1 = arith.constant 0 : i32
    return %c0_i32, %c0_i32_0 : i32, i32
  }
  func.func @transform_1(%arg0: i32, %arg1: i32) -> (i32, i32, i32) {
    %c0_i32 = arith.constant 0 : i32
    %c0_i32_0 = arith.constant 0 : i32
    return %arg0, %c0_i32, %arg1 : i32, i32, i32
  }
  func.func @transform_2(%arg0: i32, %arg1: i32) -> (i32, i32) {
    %c0_i32 = arith.constant 0 : i32
    %c0_i32_0 = arith.constant 0 : i32
    %c0_i32_1 = arith.constant 0 : i32
    return %c0_i32, %c0_i32_0 : i32, i32
  }
  func.func @transform_3(%arg0: i32, %arg1: i32) -> (i32, i32, i32) {
    %c0_i32 = arith.constant 0 : i32
    %c0_i32_0 = arith.constant 0 : i32
    return %arg0, %c0_i32, %arg1 : i32, i32, i32
  }
  func.func @transform_4(%arg0: i32, %arg1: i32) -> (i32, i32, i32) {
    %c0_i32 = arith.constant 0 : i32
    %c0_i32_0 = arith.constant 0 : i32
    %c0_i32_1 = arith.constant 0 : i32
    return %arg0, %c0_i32, %c0_i32_0 : i32, i32, i32
  }
  func.func @transform_5(%arg0: i32, %arg1: i32) -> (i32, i32, i32) {
    %c0_i32 = arith.constant 0 : i32
    %c0_i32_0 = arith.constant 0 : i32
    %c0_i32_1 = arith.constant 0 : i32
    return %arg0, %c0_i32, %c0_i32_0 : i32, i32, i32
  }
}

module attributes {stable_mosaic.version = 11 : i64} {
  func.func @_mm_bias_stats_kernel(%arg0: i32, %arg1: i32, %arg2: memref<16x72xbf16, #tpu.memory_space<vmem>>, %arg3: memref<1x72x128xbf16, #tpu.memory_space<vmem>>, %arg4: memref<16x1xf32, #tpu.memory_space<vmem>>, %arg5: memref<1x16x128xf32, #tpu.memory_space<vmem>>, %arg6: memref<1x16x1xf32, #tpu.memory_space<vmem>>, %arg7: memref<1x16x1xf32, #tpu.memory_space<vmem>>) attributes {dimension_semantics = [#tpu.dimension_semantics<parallel>, #tpu.dimension_semantics<arbitrary>], iteration_bounds = array<i64: 4, 1>, scalar_prefetch = 0 : i64, scratch_operands = 0 : i64, tpu.core_type = #tpu.core_type<tc>, window_params = [{pipeline_mode = #tpu.pipeline_mode<synchronous>, transform_indices = @transform_0, window_bounds = array<i64: 16, 72>}, {transform_indices = @transform_1, window_bounds = array<i64: 1, 72, 128>}, {pipeline_mode = #tpu.pipeline_mode<synchronous>, transform_indices = @transform_2, window_bounds = array<i64: 16, 1>}, {transform_indices = @transform_3, window_bounds = array<i64: 1, 16, 128>}, {transform_indices = @transform_4, window_bounds = array<i64: 1, 16, 1>}, {transform_indices = @transform_5, window_bounds = array<i64: 1, 16, 1>}]} {
    %c0_i32 = arith.constant 0 : i32
    %0 = arith.cmpi eq, %arg1, %c0_i32 : i32
    %1 = arith.extui %0 : i1 to i32
    %c0_i32_0 = arith.constant 0 : i32
    %2 = arith.cmpi ne, %1, %c0_i32_0 : i32
    scf.if %2 {
      %cst_25 = arith.constant 0.000000e+00 : f32
      %38 = vector.broadcast %cst_25 : f32 to vector<1x16x1xf32>
      %c0_26 = arith.constant 0 : index
      %c0_27 = arith.constant 0 : index
      %c0_28 = arith.constant 0 : index
      %39 = vector.load %arg6[%c0_26, %c0_27, %c0_28] : memref<1x16x1xf32, #tpu.memory_space<vmem>>, vector<1x16x1xf32>
      tpu.vector_store %arg6[%c0_26, %c0_27, %c0_28], %38 {strides = array<i32>} : memref<1x16x1xf32, #tpu.memory_space<vmem>>, vector<1x16x1xf32>,
      %cst_29 = arith.constant 0.000000e+00 : f32
      %40 = vector.broadcast %cst_29 : f32 to vector<1x16x1xf32>
      %c0_30 = arith.constant 0 : index
      %c0_31 = arith.constant 0 : index
      %c0_32 = arith.constant 0 : index
      %41 = vector.load %arg7[%c0_30, %c0_31, %c0_32] : memref<1x16x1xf32, #tpu.memory_space<vmem>>, vector<1x16x1xf32>
      tpu.vector_store %arg7[%c0_30, %c0_31, %c0_32], %40 {strides = array<i32>} : memref<1x16x1xf32, #tpu.memory_space<vmem>>, vector<1x16x1xf32>,
    } else {
    }
    %c0 = arith.constant 0 : index
    %c0_1 = arith.constant 0 : index
    %3 = vector.load %arg2[%c0, %c0_1] : memref<16x72xbf16, #tpu.memory_space<vmem>>, vector<16x72xbf16>
    %c0_2 = arith.constant 0 : index
    %c0_3 = arith.constant 0 : index
    %c0_4 = arith.constant 0 : index
    %4 = vector.load %arg3[%c0_2, %c0_3, %c0_4] : memref<1x72x128xbf16, #tpu.memory_space<vmem>>, vector<1x72x128xbf16>
    %5 = vector.shape_cast %4 : vector<1x72x128xbf16> to vector<72x128xbf16>
    %cst = arith.constant dense<0.000000e+00> : vector<16x128xf32>
    %6 = tpu.matmul %3, %5, %cst {dimension_numbers = #tpu.dot_dimension_numbers<[1], [0], [0], [1], [0, 0, 1, 1], [], []>} : vector<16x72xbf16>, vector<72x128xbf16>, vector<16x128xf32> -> vector<16x128xf32>
    %c0_5 = arith.constant 0 : index
    %c0_6 = arith.constant 0 : index
    %7 = vector.load %arg4[%c0_5, %c0_6] : memref<16x1xf32, #tpu.memory_space<vmem>>, vector<16x1xf32>
    %8 = vector.broadcast %7 : vector<16x1xf32> to vector<16x128xf32>
    %9 = arith.addf %6, %8 : vector<16x128xf32>
    %c0_7 = arith.constant 0 : index
    %c0_8 = arith.constant 0 : index
    %c0_9 = arith.constant 0 : index
    %10 = vector.load %arg5[%c0_7, %c0_8, %c0_9] : memref<1x16x128xf32, #tpu.memory_space<vmem>>, vector<1x16x128xf32>
    %11 = vector.shape_cast %10 : vector<1x16x128xf32> to vector<16x128xf32>
    %12 = vector.shape_cast %9 : vector<16x128xf32> to vector<1x16x128xf32>
    tpu.vector_store %arg5[%c0_7, %c0_8, %c0_9], %12 {strides = array<i32>} : memref<1x16x128xf32, #tpu.memory_space<vmem>>, vector<1x16x128xf32>,
    %c128_i32 = arith.constant 128 : i32
    %13 = arith.muli %arg1, %c128_i32 : i32
    %14 = tpu.iota {dimensions = array<i32: 1>} : vector<16x128xi32>
    %15 = vector.broadcast %13 : i32 to vector<16x128xi32>
    %16 = arith.addi %15, %14 : vector<16x128xi32>
    %c16_i32 = arith.constant 16 : i32
    %17 = vector.broadcast %c16_i32 : i32 to vector<16x128xi32>
    %18 = arith.cmpi slt, %16, %17 : vector<16x128xi32>
    %cst_10 = arith.constant 0.000000e+00 : f32
    %19 = vector.broadcast %cst_10 : f32 to vector<16x128xf32>
    %20 = arith.select %18, %9, %19 : vector<16x128xi1>, vector<16x128xf32>
    %c0_11 = arith.constant 0 : index
    %c0_12 = arith.constant 0 : index
    %c0_13 = arith.constant 0 : index
    %21 = vector.load %arg6[%c0_11, %c0_12, %c0_13] : memref<1x16x1xf32, #tpu.memory_space<vmem>>, vector<1x16x1xf32>
    %22 = vector.shape_cast %21 : vector<1x16x1xf32> to vector<16x1xf32>
    %cst_14 = arith.constant dense<0.000000e+00> : vector<16xf32>
    %23 = vector.multi_reduction <add>, %20, %cst_14 [1] : vector<16x128xf32> to vector<16xf32>
    %24 = vector.shape_cast %23 : vector<16xf32> to vector<16x1xf32>
    %25 = arith.addf %22, %24 : vector<16x1xf32>
    %c0_15 = arith.constant 0 : index
    %c0_16 = arith.constant 0 : index
    %c0_17 = arith.constant 0 : index
    %26 = vector.load %arg6[%c0_15, %c0_16, %c0_17] : memref<1x16x1xf32, #tpu.memory_space<vmem>>, vector<1x16x1xf32>
    %27 = vector.shape_cast %26 : vector<1x16x1xf32> to vector<16x1xf32>
    %28 = vector.shape_cast %25 : vector<16x1xf32> to vector<1x16x1xf32>
    tpu.vector_store %arg6[%c0_15, %c0_16, %c0_17], %28 {strides = array<i32>} : memref<1x16x1xf32, #tpu.memory_space<vmem>>, vector<1x16x1xf32>,
    %c0_18 = arith.constant 0 : index
    %c0_19 = arith.constant 0 : index
    %c0_20 = arith.constant 0 : index
    %29 = vector.load %arg7[%c0_18, %c0_19, %c0_20] : memref<1x16x1xf32, #tpu.memory_space<vmem>>, vector<1x16x1xf32>
    %30 = vector.shape_cast %29 : vector<1x16x1xf32> to vector<16x1xf32>
    %31 = arith.mulf %20, %20 : vector<16x128xf32>
    %cst_21 = arith.constant dense<0.000000e+00> : vector<16xf32>
    %32 = vector.multi_reduction <add>, %31, %cst_21 [1] : vector<16x128xf32> to vector<16xf32>
    %33 = vector.shape_cast %32 : vector<16xf32> to vector<16x1xf32>
    %34 = arith.addf %30, %33 : vector<16x1xf32>
    %c0_22 = arith.constant 0 : index
    %c0_23 = arith.constant 0 : index
    %c0_24 = arith.constant 0 : index
    %35 = vector.load %arg7[%c0_22, %c0_23, %c0_24] : memref<1x16x1xf32, #tpu.memory_space<vmem>>, vector<1x16x1xf32>
    %36 = vector.shape_cast %35 : vector<1x16x1xf32> to vector<16x1xf32>
    %37 = vector.shape_cast %34 : vector<16x1xf32> to vector<1x16x1xf32>
    tpu.vector_store %arg7[%c0_22, %c0_23, %c0_24], %37 {strides = array<i32>} : memref<1x16x1xf32, #tpu.memory_space<vmem>>, vector<1x16x1xf32>,
    return
  }
  func.func @transform_0(%arg0: i32, %arg1: i32) -> (i32, i32) {
    %c0_i32 = arith.constant 0 : i32
    %c0_i32_0 = arith.constant 0 : i32
    %c0_i32_1 = arith.constant 0 : i32
    return %c0_i32, %c0_i32_0 : i32, i32
  }
  func.func @transform_1(%arg0: i32, %arg1: i32) -> (i32, i32, i32) {
    %c0_i32 = arith.constant 0 : i32
    %c0_i32_0 = arith.constant 0 : i32
    return %arg0, %c0_i32, %arg1 : i32, i32, i32
  }
  func.func @transform_2(%arg0: i32, %arg1: i32) -> (i32, i32) {
    %c0_i32 = arith.constant 0 : i32
    %c0_i32_0 = arith.constant 0 : i32
    %c0_i32_1 = arith.constant 0 : i32
    return %c0_i32, %c0_i32_0 : i32, i32
  }
  func.func @transform_3(%arg0: i32, %arg1: i32) -> (i32, i32, i32) {
    %c0_i32 = arith.constant 0 : i32
    %c0_i32_0 = arith.constant 0 : i32
    return %arg0, %c0_i32, %arg1 : i32, i32, i32
  }
  func.func @transform_4(%arg0: i32, %arg1: i32) -> (i32, i32, i32) {
    %c0_i32 = arith.constant 0 : i32
    %c0_i32_0 = arith.constant 0 : i32
    %c0_i32_1 = arith.constant 0 : i32
    return %arg0, %c0_i32, %c0_i32_0 : i32, i32, i32
  }
  func.func @transform_5(%arg0: i32, %arg1: i32) -> (i32, i32, i32) {
    %c0_i32 = arith.constant 0 : i32
    %c0_i32_0 = arith.constant 0 : i32
    %c0_i32_1 = arith.constant 0 : i32
    return %arg0, %c0_i32, %c0_i32_0 : i32, i32, i32
  }
}

module attributes {stable_mosaic.version = 11 : i64} {
  func.func @_norm_act_kernel(%arg0: i32, %arg1: i32, %arg2: memref<1x16x128xf32, #tpu.memory_space<vmem>>, %arg3: memref<1x16x1xf32, #tpu.memory_space<vmem>>, %arg4: memref<1x16x1xf32, #tpu.memory_space<vmem>>, %arg5: memref<1x16x128xf32, #tpu.memory_space<vmem>>) attributes {dimension_semantics = [#tpu.dimension_semantics<parallel>, #tpu.dimension_semantics<parallel>], iteration_bounds = array<i64: 4, 1>, scalar_prefetch = 0 : i64, scratch_operands = 0 : i64, tpu.core_type = #tpu.core_type<tc>, window_params = [{transform_indices = @transform_0, window_bounds = array<i64: 1, 16, 128>}, {transform_indices = @transform_1, window_bounds = array<i64: 1, 16, 1>}, {transform_indices = @transform_2, window_bounds = array<i64: 1, 16, 1>}, {transform_indices = @transform_3, window_bounds = array<i64: 1, 16, 128>}]} {
    %c0 = arith.constant 0 : index
    %c0_0 = arith.constant 0 : index
    %c0_1 = arith.constant 0 : index
    %0 = vector.load %arg2[%c0, %c0_0, %c0_1] : memref<1x16x128xf32, #tpu.memory_space<vmem>>, vector<1x16x128xf32>
    %1 = vector.shape_cast %0 : vector<1x16x128xf32> to vector<16x128xf32>
    %c0_2 = arith.constant 0 : index
    %c0_3 = arith.constant 0 : index
    %c0_4 = arith.constant 0 : index
    %2 = vector.load %arg3[%c0_2, %c0_3, %c0_4] : memref<1x16x1xf32, #tpu.memory_space<vmem>>, vector<1x16x1xf32>
    %3 = vector.shape_cast %2 : vector<1x16x1xf32> to vector<16x1xf32>
    %4 = vector.broadcast %3 : vector<16x1xf32> to vector<16x128xf32>
    %5 = arith.subf %1, %4 : vector<16x128xf32>
    %c0_5 = arith.constant 0 : index
    %c0_6 = arith.constant 0 : index
    %c0_7 = arith.constant 0 : index
    %6 = vector.load %arg4[%c0_5, %c0_6, %c0_7] : memref<1x16x1xf32, #tpu.memory_space<vmem>>, vector<1x16x1xf32>
    %7 = vector.shape_cast %6 : vector<1x16x1xf32> to vector<16x1xf32>
    %8 = vector.broadcast %7 : vector<16x1xf32> to vector<16x128xf32>
    %9 = arith.mulf %5, %8 : vector<16x128xf32>
    %cst = arith.constant 0.000000e+00 : f32
    %10 = vector.broadcast %cst : f32 to vector<16x128xf32>
    %11 = arith.cmpf oge, %9, %10 : vector<16x128xf32>
    %cst_8 = arith.constant 2.000000e-01 : f32
    %12 = vector.broadcast %cst_8 : f32 to vector<16x128xf32>
    %13 = arith.mulf %12, %9 : vector<16x128xf32>
    %14 = arith.select %11, %9, %13 : vector<16x128xi1>, vector<16x128xf32>
    %c0_9 = arith.constant 0 : index
    %c0_10 = arith.constant 0 : index
    %c0_11 = arith.constant 0 : index
    %15 = vector.load %arg5[%c0_9, %c0_10, %c0_11] : memref<1x16x128xf32, #tpu.memory_space<vmem>>, vector<1x16x128xf32>
    %16 = vector.shape_cast %15 : vector<1x16x128xf32> to vector<16x128xf32>
    %17 = vector.shape_cast %14 : vector<16x128xf32> to vector<1x16x128xf32>
    tpu.vector_store %arg5[%c0_9, %c0_10, %c0_11], %17 {strides = array<i32>} : memref<1x16x128xf32, #tpu.memory_space<vmem>>, vector<1x16x128xf32>,
    return
  }
  func.func @transform_0(%arg0: i32, %arg1: i32) -> (i32, i32, i32) {
    %c0_i32 = arith.constant 0 : i32
    %c0_i32_0 = arith.constant 0 : i32
    return %arg0, %c0_i32, %arg1 : i32, i32, i32
  }
  func.func @transform_1(%arg0: i32, %arg1: i32) -> (i32, i32, i32) {
    %c0_i32 = arith.constant 0 : i32
    %c0_i32_0 = arith.constant 0 : i32
    %c0_i32_1 = arith.constant 0 : i32
    return %arg0, %c0_i32, %c0_i32_0 : i32, i32, i32
  }
  func.func @transform_2(%arg0: i32, %arg1: i32) -> (i32, i32, i32) {
    %c0_i32 = arith.constant 0 : i32
    %c0_i32_0 = arith.constant 0 : i32
    %c0_i32_1 = arith.constant 0 : i32
    return %arg0, %c0_i32, %c0_i32_0 : i32, i32, i32
  }
  func.func @transform_3(%arg0: i32, %arg1: i32) -> (i32, i32, i32) {
    %c0_i32 = arith.constant 0 : i32
    %c0_i32_0 = arith.constant 0 : i32
    return %arg0, %c0_i32, %arg1 : i32, i32, i32
  }
}

module attributes {stable_mosaic.version = 11 : i64} {
  func.func @_mm_bias_stats_kernel(%arg0: i32, %arg1: i32, %arg2: memref<16x144xbf16, #tpu.memory_space<vmem>>, %arg3: memref<1x144x128xbf16, #tpu.memory_space<vmem>>, %arg4: memref<16x1xf32, #tpu.memory_space<vmem>>, %arg5: memref<1x16x128xf32, #tpu.memory_space<vmem>>, %arg6: memref<1x16x1xf32, #tpu.memory_space<vmem>>, %arg7: memref<1x16x1xf32, #tpu.memory_space<vmem>>) attributes {dimension_semantics = [#tpu.dimension_semantics<parallel>, #tpu.dimension_semantics<arbitrary>], iteration_bounds = array<i64: 4, 1>, scalar_prefetch = 0 : i64, scratch_operands = 0 : i64, tpu.core_type = #tpu.core_type<tc>, window_params = [{pipeline_mode = #tpu.pipeline_mode<synchronous>, transform_indices = @transform_0, window_bounds = array<i64: 16, 144>}, {transform_indices = @transform_1, window_bounds = array<i64: 1, 144, 128>}, {pipeline_mode = #tpu.pipeline_mode<synchronous>, transform_indices = @transform_2, window_bounds = array<i64: 16, 1>}, {transform_indices = @transform_3, window_bounds = array<i64: 1, 16, 128>}, {transform_indices = @transform_4, window_bounds = array<i64: 1, 16, 1>}, {transform_indices = @transform_5, window_bounds = array<i64: 1, 16, 1>}]} {
    %c0_i32 = arith.constant 0 : i32
    %0 = arith.cmpi eq, %arg1, %c0_i32 : i32
    %1 = arith.extui %0 : i1 to i32
    %c0_i32_0 = arith.constant 0 : i32
    %2 = arith.cmpi ne, %1, %c0_i32_0 : i32
    scf.if %2 {
      %cst_25 = arith.constant 0.000000e+00 : f32
      %38 = vector.broadcast %cst_25 : f32 to vector<1x16x1xf32>
      %c0_26 = arith.constant 0 : index
      %c0_27 = arith.constant 0 : index
      %c0_28 = arith.constant 0 : index
      %39 = vector.load %arg6[%c0_26, %c0_27, %c0_28] : memref<1x16x1xf32, #tpu.memory_space<vmem>>, vector<1x16x1xf32>
      tpu.vector_store %arg6[%c0_26, %c0_27, %c0_28], %38 {strides = array<i32>} : memref<1x16x1xf32, #tpu.memory_space<vmem>>, vector<1x16x1xf32>,
      %cst_29 = arith.constant 0.000000e+00 : f32
      %40 = vector.broadcast %cst_29 : f32 to vector<1x16x1xf32>
      %c0_30 = arith.constant 0 : index
      %c0_31 = arith.constant 0 : index
      %c0_32 = arith.constant 0 : index
      %41 = vector.load %arg7[%c0_30, %c0_31, %c0_32] : memref<1x16x1xf32, #tpu.memory_space<vmem>>, vector<1x16x1xf32>
      tpu.vector_store %arg7[%c0_30, %c0_31, %c0_32], %40 {strides = array<i32>} : memref<1x16x1xf32, #tpu.memory_space<vmem>>, vector<1x16x1xf32>,
    } else {
    }
    %c0 = arith.constant 0 : index
    %c0_1 = arith.constant 0 : index
    %3 = vector.load %arg2[%c0, %c0_1] : memref<16x144xbf16, #tpu.memory_space<vmem>>, vector<16x144xbf16>
    %c0_2 = arith.constant 0 : index
    %c0_3 = arith.constant 0 : index
    %c0_4 = arith.constant 0 : index
    %4 = vector.load %arg3[%c0_2, %c0_3, %c0_4] : memref<1x144x128xbf16, #tpu.memory_space<vmem>>, vector<1x144x128xbf16>
    %5 = vector.shape_cast %4 : vector<1x144x128xbf16> to vector<144x128xbf16>
    %cst = arith.constant dense<0.000000e+00> : vector<16x128xf32>
    %6 = tpu.matmul %3, %5, %cst {dimension_numbers = #tpu.dot_dimension_numbers<[1], [0], [0], [1], [0, 0, 1, 1], [], []>} : vector<16x144xbf16>, vector<144x128xbf16>, vector<16x128xf32> -> vector<16x128xf32>
    %c0_5 = arith.constant 0 : index
    %c0_6 = arith.constant 0 : index
    %7 = vector.load %arg4[%c0_5, %c0_6] : memref<16x1xf32, #tpu.memory_space<vmem>>, vector<16x1xf32>
    %8 = vector.broadcast %7 : vector<16x1xf32> to vector<16x128xf32>
    %9 = arith.addf %6, %8 : vector<16x128xf32>
    %c0_7 = arith.constant 0 : index
    %c0_8 = arith.constant 0 : index
    %c0_9 = arith.constant 0 : index
    %10 = vector.load %arg5[%c0_7, %c0_8, %c0_9] : memref<1x16x128xf32, #tpu.memory_space<vmem>>, vector<1x16x128xf32>
    %11 = vector.shape_cast %10 : vector<1x16x128xf32> to vector<16x128xf32>
    %12 = vector.shape_cast %9 : vector<16x128xf32> to vector<1x16x128xf32>
    tpu.vector_store %arg5[%c0_7, %c0_8, %c0_9], %12 {strides = array<i32>} : memref<1x16x128xf32, #tpu.memory_space<vmem>>, vector<1x16x128xf32>,
    %c128_i32 = arith.constant 128 : i32
    %13 = arith.muli %arg1, %c128_i32 : i32
    %14 = tpu.iota {dimensions = array<i32: 1>} : vector<16x128xi32>
    %15 = vector.broadcast %13 : i32 to vector<16x128xi32>
    %16 = arith.addi %15, %14 : vector<16x128xi32>
    %c16_i32 = arith.constant 16 : i32
    %17 = vector.broadcast %c16_i32 : i32 to vector<16x128xi32>
    %18 = arith.cmpi slt, %16, %17 : vector<16x128xi32>
    %cst_10 = arith.constant 0.000000e+00 : f32
    %19 = vector.broadcast %cst_10 : f32 to vector<16x128xf32>
    %20 = arith.select %18, %9, %19 : vector<16x128xi1>, vector<16x128xf32>
    %c0_11 = arith.constant 0 : index
    %c0_12 = arith.constant 0 : index
    %c0_13 = arith.constant 0 : index
    %21 = vector.load %arg6[%c0_11, %c0_12, %c0_13] : memref<1x16x1xf32, #tpu.memory_space<vmem>>, vector<1x16x1xf32>
    %22 = vector.shape_cast %21 : vector<1x16x1xf32> to vector<16x1xf32>
    %cst_14 = arith.constant dense<0.000000e+00> : vector<16xf32>
    %23 = vector.multi_reduction <add>, %20, %cst_14 [1] : vector<16x128xf32> to vector<16xf32>
    %24 = vector.shape_cast %23 : vector<16xf32> to vector<16x1xf32>
    %25 = arith.addf %22, %24 : vector<16x1xf32>
    %c0_15 = arith.constant 0 : index
    %c0_16 = arith.constant 0 : index
    %c0_17 = arith.constant 0 : index
    %26 = vector.load %arg6[%c0_15, %c0_16, %c0_17] : memref<1x16x1xf32, #tpu.memory_space<vmem>>, vector<1x16x1xf32>
    %27 = vector.shape_cast %26 : vector<1x16x1xf32> to vector<16x1xf32>
    %28 = vector.shape_cast %25 : vector<16x1xf32> to vector<1x16x1xf32>
    tpu.vector_store %arg6[%c0_15, %c0_16, %c0_17], %28 {strides = array<i32>} : memref<1x16x1xf32, #tpu.memory_space<vmem>>, vector<1x16x1xf32>,
    %c0_18 = arith.constant 0 : index
    %c0_19 = arith.constant 0 : index
    %c0_20 = arith.constant 0 : index
    %29 = vector.load %arg7[%c0_18, %c0_19, %c0_20] : memref<1x16x1xf32, #tpu.memory_space<vmem>>, vector<1x16x1xf32>
    %30 = vector.shape_cast %29 : vector<1x16x1xf32> to vector<16x1xf32>
    %31 = arith.mulf %20, %20 : vector<16x128xf32>
    %cst_21 = arith.constant dense<0.000000e+00> : vector<16xf32>
    %32 = vector.multi_reduction <add>, %31, %cst_21 [1] : vector<16x128xf32> to vector<16xf32>
    %33 = vector.shape_cast %32 : vector<16xf32> to vector<16x1xf32>
    %34 = arith.addf %30, %33 : vector<16x1xf32>
    %c0_22 = arith.constant 0 : index
    %c0_23 = arith.constant 0 : index
    %c0_24 = arith.constant 0 : index
    %35 = vector.load %arg7[%c0_22, %c0_23, %c0_24] : memref<1x16x1xf32, #tpu.memory_space<vmem>>, vector<1x16x1xf32>
    %36 = vector.shape_cast %35 : vector<1x16x1xf32> to vector<16x1xf32>
    %37 = vector.shape_cast %34 : vector<16x1xf32> to vector<1x16x1xf32>
    tpu.vector_store %arg7[%c0_22, %c0_23, %c0_24], %37 {strides = array<i32>} : memref<1x16x1xf32, #tpu.memory_space<vmem>>, vector<1x16x1xf32>,
    return
  }
  func.func @transform_0(%arg0: i32, %arg1: i32) -> (i32, i32) {
    %c0_i32 = arith.constant 0 : i32
    %c0_i32_0 = arith.constant 0 : i32
    %c0_i32_1 = arith.constant 0 : i32
    return %c0_i32, %c0_i32_0 : i32, i32
  }
  func.func @transform_1(%arg0: i32, %arg1: i32) -> (i32, i32, i32) {
    %c0_i32 = arith.constant 0 : i32
    %c0_i32_0 = arith.constant 0 : i32
    return %arg0, %c0_i32, %arg1 : i32, i32, i32
  }
  func.func @transform_2(%arg0: i32, %arg1: i32) -> (i32, i32) {
    %c0_i32 = arith.constant 0 : i32
    %c0_i32_0 = arith.constant 0 : i32
    %c0_i32_1 = arith.constant 0 : i32
    return %c0_i32, %c0_i32_0 : i32, i32
  }
  func.func @transform_3(%arg0: i32, %arg1: i32) -> (i32, i32, i32) {
    %c0_i32 = arith.constant 0 : i32
    %c0_i32_0 = arith.constant 0 : i32
    return %arg0, %c0_i32, %arg1 : i32, i32, i32
  }
  func.func @transform_4(%arg0: i32, %arg1: i32) -> (i32, i32, i32) {
    %c0_i32 = arith.constant 0 : i32
    %c0_i32_0 = arith.constant 0 : i32
    %c0_i32_1 = arith.constant 0 : i32
    return %arg0, %c0_i32, %c0_i32_0 : i32, i32, i32
  }
  func.func @transform_5(%arg0: i32, %arg1: i32) -> (i32, i32, i32) {
    %c0_i32 = arith.constant 0 : i32
    %c0_i32_0 = arith.constant 0 : i32
    %c0_i32_1 = arith.constant 0 : i32
    return %arg0, %c0_i32, %c0_i32_0 : i32, i32, i32
  }
}

module attributes {stable_mosaic.version = 11 : i64} {
  func.func @_mm_bias_stats_kernel(%arg0: i32, %arg1: i32, %arg2: memref<32x16xbf16, #tpu.memory_space<vmem>>, %arg3: memref<1x16x128xbf16, #tpu.memory_space<vmem>>, %arg4: memref<32x1xf32, #tpu.memory_space<vmem>>, %arg5: memref<1x32x128xf32, #tpu.memory_space<vmem>>, %arg6: memref<1x32x1xf32, #tpu.memory_space<vmem>>, %arg7: memref<1x32x1xf32, #tpu.memory_space<vmem>>) attributes {dimension_semantics = [#tpu.dimension_semantics<parallel>, #tpu.dimension_semantics<arbitrary>], iteration_bounds = array<i64: 4, 1>, scalar_prefetch = 0 : i64, scratch_operands = 0 : i64, tpu.core_type = #tpu.core_type<tc>, window_params = [{pipeline_mode = #tpu.pipeline_mode<synchronous>, transform_indices = @transform_0, window_bounds = array<i64: 32, 16>}, {transform_indices = @transform_1, window_bounds = array<i64: 1, 16, 128>}, {pipeline_mode = #tpu.pipeline_mode<synchronous>, transform_indices = @transform_2, window_bounds = array<i64: 32, 1>}, {transform_indices = @transform_3, window_bounds = array<i64: 1, 32, 128>}, {transform_indices = @transform_4, window_bounds = array<i64: 1, 32, 1>}, {transform_indices = @transform_5, window_bounds = array<i64: 1, 32, 1>}]} {
    %c0_i32 = arith.constant 0 : i32
    %0 = arith.cmpi eq, %arg1, %c0_i32 : i32
    %1 = arith.extui %0 : i1 to i32
    %c0_i32_0 = arith.constant 0 : i32
    %2 = arith.cmpi ne, %1, %c0_i32_0 : i32
    scf.if %2 {
      %cst_25 = arith.constant 0.000000e+00 : f32
      %38 = vector.broadcast %cst_25 : f32 to vector<1x32x1xf32>
      %c0_26 = arith.constant 0 : index
      %c0_27 = arith.constant 0 : index
      %c0_28 = arith.constant 0 : index
      %39 = vector.load %arg6[%c0_26, %c0_27, %c0_28] : memref<1x32x1xf32, #tpu.memory_space<vmem>>, vector<1x32x1xf32>
      tpu.vector_store %arg6[%c0_26, %c0_27, %c0_28], %38 {strides = array<i32>} : memref<1x32x1xf32, #tpu.memory_space<vmem>>, vector<1x32x1xf32>,
      %cst_29 = arith.constant 0.000000e+00 : f32
      %40 = vector.broadcast %cst_29 : f32 to vector<1x32x1xf32>
      %c0_30 = arith.constant 0 : index
      %c0_31 = arith.constant 0 : index
      %c0_32 = arith.constant 0 : index
      %41 = vector.load %arg7[%c0_30, %c0_31, %c0_32] : memref<1x32x1xf32, #tpu.memory_space<vmem>>, vector<1x32x1xf32>
      tpu.vector_store %arg7[%c0_30, %c0_31, %c0_32], %40 {strides = array<i32>} : memref<1x32x1xf32, #tpu.memory_space<vmem>>, vector<1x32x1xf32>,
    } else {
    }
    %c0 = arith.constant 0 : index
    %c0_1 = arith.constant 0 : index
    %3 = vector.load %arg2[%c0, %c0_1] : memref<32x16xbf16, #tpu.memory_space<vmem>>, vector<32x16xbf16>
    %c0_2 = arith.constant 0 : index
    %c0_3 = arith.constant 0 : index
    %c0_4 = arith.constant 0 : index
    %4 = vector.load %arg3[%c0_2, %c0_3, %c0_4] : memref<1x16x128xbf16, #tpu.memory_space<vmem>>, vector<1x16x128xbf16>
    %5 = vector.shape_cast %4 : vector<1x16x128xbf16> to vector<16x128xbf16>
    %cst = arith.constant dense<0.000000e+00> : vector<32x128xf32>
    %6 = tpu.matmul %3, %5, %cst {dimension_numbers = #tpu.dot_dimension_numbers<[1], [0], [0], [1], [0, 0, 1, 1], [], []>} : vector<32x16xbf16>, vector<16x128xbf16>, vector<32x128xf32> -> vector<32x128xf32>
    %c0_5 = arith.constant 0 : index
    %c0_6 = arith.constant 0 : index
    %7 = vector.load %arg4[%c0_5, %c0_6] : memref<32x1xf32, #tpu.memory_space<vmem>>, vector<32x1xf32>
    %8 = vector.broadcast %7 : vector<32x1xf32> to vector<32x128xf32>
    %9 = arith.addf %6, %8 : vector<32x128xf32>
    %c0_7 = arith.constant 0 : index
    %c0_8 = arith.constant 0 : index
    %c0_9 = arith.constant 0 : index
    %10 = vector.load %arg5[%c0_7, %c0_8, %c0_9] : memref<1x32x128xf32, #tpu.memory_space<vmem>>, vector<1x32x128xf32>
    %11 = vector.shape_cast %10 : vector<1x32x128xf32> to vector<32x128xf32>
    %12 = vector.shape_cast %9 : vector<32x128xf32> to vector<1x32x128xf32>
    tpu.vector_store %arg5[%c0_7, %c0_8, %c0_9], %12 {strides = array<i32>} : memref<1x32x128xf32, #tpu.memory_space<vmem>>, vector<1x32x128xf32>,
    %c128_i32 = arith.constant 128 : i32
    %13 = arith.muli %arg1, %c128_i32 : i32
    %14 = tpu.iota {dimensions = array<i32: 1>} : vector<32x128xi32>
    %15 = vector.broadcast %13 : i32 to vector<32x128xi32>
    %16 = arith.addi %15, %14 : vector<32x128xi32>
    %c16_i32 = arith.constant 16 : i32
    %17 = vector.broadcast %c16_i32 : i32 to vector<32x128xi32>
    %18 = arith.cmpi slt, %16, %17 : vector<32x128xi32>
    %cst_10 = arith.constant 0.000000e+00 : f32
    %19 = vector.broadcast %cst_10 : f32 to vector<32x128xf32>
    %20 = arith.select %18, %9, %19 : vector<32x128xi1>, vector<32x128xf32>
    %c0_11 = arith.constant 0 : index
    %c0_12 = arith.constant 0 : index
    %c0_13 = arith.constant 0 : index
    %21 = vector.load %arg6[%c0_11, %c0_12, %c0_13] : memref<1x32x1xf32, #tpu.memory_space<vmem>>, vector<1x32x1xf32>
    %22 = vector.shape_cast %21 : vector<1x32x1xf32> to vector<32x1xf32>
    %cst_14 = arith.constant dense<0.000000e+00> : vector<32xf32>
    %23 = vector.multi_reduction <add>, %20, %cst_14 [1] : vector<32x128xf32> to vector<32xf32>
    %24 = vector.shape_cast %23 : vector<32xf32> to vector<32x1xf32>
    %25 = arith.addf %22, %24 : vector<32x1xf32>
    %c0_15 = arith.constant 0 : index
    %c0_16 = arith.constant 0 : index
    %c0_17 = arith.constant 0 : index
    %26 = vector.load %arg6[%c0_15, %c0_16, %c0_17] : memref<1x32x1xf32, #tpu.memory_space<vmem>>, vector<1x32x1xf32>
    %27 = vector.shape_cast %26 : vector<1x32x1xf32> to vector<32x1xf32>
    %28 = vector.shape_cast %25 : vector<32x1xf32> to vector<1x32x1xf32>
    tpu.vector_store %arg6[%c0_15, %c0_16, %c0_17], %28 {strides = array<i32>} : memref<1x32x1xf32, #tpu.memory_space<vmem>>, vector<1x32x1xf32>,
    %c0_18 = arith.constant 0 : index
    %c0_19 = arith.constant 0 : index
    %c0_20 = arith.constant 0 : index
    %29 = vector.load %arg7[%c0_18, %c0_19, %c0_20] : memref<1x32x1xf32, #tpu.memory_space<vmem>>, vector<1x32x1xf32>
    %30 = vector.shape_cast %29 : vector<1x32x1xf32> to vector<32x1xf32>
    %31 = arith.mulf %20, %20 : vector<32x128xf32>
    %cst_21 = arith.constant dense<0.000000e+00> : vector<32xf32>
    %32 = vector.multi_reduction <add>, %31, %cst_21 [1] : vector<32x128xf32> to vector<32xf32>
    %33 = vector.shape_cast %32 : vector<32xf32> to vector<32x1xf32>
    %34 = arith.addf %30, %33 : vector<32x1xf32>
    %c0_22 = arith.constant 0 : index
    %c0_23 = arith.constant 0 : index
    %c0_24 = arith.constant 0 : index
    %35 = vector.load %arg7[%c0_22, %c0_23, %c0_24] : memref<1x32x1xf32, #tpu.memory_space<vmem>>, vector<1x32x1xf32>
    %36 = vector.shape_cast %35 : vector<1x32x1xf32> to vector<32x1xf32>
    %37 = vector.shape_cast %34 : vector<32x1xf32> to vector<1x32x1xf32>
    tpu.vector_store %arg7[%c0_22, %c0_23, %c0_24], %37 {strides = array<i32>} : memref<1x32x1xf32, #tpu.memory_space<vmem>>, vector<1x32x1xf32>,
    return
  }
  func.func @transform_0(%arg0: i32, %arg1: i32) -> (i32, i32) {
    %c0_i32 = arith.constant 0 : i32
    %c0_i32_0 = arith.constant 0 : i32
    %c0_i32_1 = arith.constant 0 : i32
    return %c0_i32, %c0_i32_0 : i32, i32
  }
  func.func @transform_1(%arg0: i32, %arg1: i32) -> (i32, i32, i32) {
    %c0_i32 = arith.constant 0 : i32
    %c0_i32_0 = arith.constant 0 : i32
    return %arg0, %c0_i32, %arg1 : i32, i32, i32
  }
  func.func @transform_2(%arg0: i32, %arg1: i32) -> (i32, i32) {
    %c0_i32 = arith.constant 0 : i32
    %c0_i32_0 = arith.constant 0 : i32
    %c0_i32_1 = arith.constant 0 : i32
    return %c0_i32, %c0_i32_0 : i32, i32
  }
  func.func @transform_3(%arg0: i32, %arg1: i32) -> (i32, i32, i32) {
    %c0_i32 = arith.constant 0 : i32
    %c0_i32_0 = arith.constant 0 : i32
    return %arg0, %c0_i32, %arg1 : i32, i32, i32
  }
  func.func @transform_4(%arg0: i32, %arg1: i32) -> (i32, i32, i32) {
    %c0_i32 = arith.constant 0 : i32
    %c0_i32_0 = arith.constant 0 : i32
    %c0_i32_1 = arith.constant 0 : i32
    return %arg0, %c0_i32, %c0_i32_0 : i32, i32, i32
  }
  func.func @transform_5(%arg0: i32, %arg1: i32) -> (i32, i32, i32) {
    %c0_i32 = arith.constant 0 : i32
    %c0_i32_0 = arith.constant 0 : i32
    %c0_i32_1 = arith.constant 0 : i32
    return %arg0, %c0_i32, %c0_i32_0 : i32, i32, i32
  }
}

module attributes {stable_mosaic.version = 11 : i64} {
  func.func @_mm_bias_stats_kernel(%arg0: i32, %arg1: i32, %arg2: memref<16x8xbf16, #tpu.memory_space<vmem>>, %arg3: memref<1x8x128xbf16, #tpu.memory_space<vmem>>, %arg4: memref<16x1xf32, #tpu.memory_space<vmem>>, %arg5: memref<1x16x128xf32, #tpu.memory_space<vmem>>, %arg6: memref<1x16x1xf32, #tpu.memory_space<vmem>>, %arg7: memref<1x16x1xf32, #tpu.memory_space<vmem>>) attributes {dimension_semantics = [#tpu.dimension_semantics<parallel>, #tpu.dimension_semantics<arbitrary>], iteration_bounds = array<i64: 4, 1>, scalar_prefetch = 0 : i64, scratch_operands = 0 : i64, tpu.core_type = #tpu.core_type<tc>, window_params = [{pipeline_mode = #tpu.pipeline_mode<synchronous>, transform_indices = @transform_0, window_bounds = array<i64: 16, 8>}, {transform_indices = @transform_1, window_bounds = array<i64: 1, 8, 128>}, {pipeline_mode = #tpu.pipeline_mode<synchronous>, transform_indices = @transform_2, window_bounds = array<i64: 16, 1>}, {transform_indices = @transform_3, window_bounds = array<i64: 1, 16, 128>}, {transform_indices = @transform_4, window_bounds = array<i64: 1, 16, 1>}, {transform_indices = @transform_5, window_bounds = array<i64: 1, 16, 1>}]} {
    %c0_i32 = arith.constant 0 : i32
    %0 = arith.cmpi eq, %arg1, %c0_i32 : i32
    %1 = arith.extui %0 : i1 to i32
    %c0_i32_0 = arith.constant 0 : i32
    %2 = arith.cmpi ne, %1, %c0_i32_0 : i32
    scf.if %2 {
      %cst_25 = arith.constant 0.000000e+00 : f32
      %38 = vector.broadcast %cst_25 : f32 to vector<1x16x1xf32>
      %c0_26 = arith.constant 0 : index
      %c0_27 = arith.constant 0 : index
      %c0_28 = arith.constant 0 : index
      %39 = vector.load %arg6[%c0_26, %c0_27, %c0_28] : memref<1x16x1xf32, #tpu.memory_space<vmem>>, vector<1x16x1xf32>
      tpu.vector_store %arg6[%c0_26, %c0_27, %c0_28], %38 {strides = array<i32>} : memref<1x16x1xf32, #tpu.memory_space<vmem>>, vector<1x16x1xf32>,
      %cst_29 = arith.constant 0.000000e+00 : f32
      %40 = vector.broadcast %cst_29 : f32 to vector<1x16x1xf32>
      %c0_30 = arith.constant 0 : index
      %c0_31 = arith.constant 0 : index
      %c0_32 = arith.constant 0 : index
      %41 = vector.load %arg7[%c0_30, %c0_31, %c0_32] : memref<1x16x1xf32, #tpu.memory_space<vmem>>, vector<1x16x1xf32>
      tpu.vector_store %arg7[%c0_30, %c0_31, %c0_32], %40 {strides = array<i32>} : memref<1x16x1xf32, #tpu.memory_space<vmem>>, vector<1x16x1xf32>,
    } else {
    }
    %c0 = arith.constant 0 : index
    %c0_1 = arith.constant 0 : index
    %3 = vector.load %arg2[%c0, %c0_1] : memref<16x8xbf16, #tpu.memory_space<vmem>>, vector<16x8xbf16>
    %c0_2 = arith.constant 0 : index
    %c0_3 = arith.constant 0 : index
    %c0_4 = arith.constant 0 : index
    %4 = vector.load %arg3[%c0_2, %c0_3, %c0_4] : memref<1x8x128xbf16, #tpu.memory_space<vmem>>, vector<1x8x128xbf16>
    %5 = vector.shape_cast %4 : vector<1x8x128xbf16> to vector<8x128xbf16>
    %cst = arith.constant dense<0.000000e+00> : vector<16x128xf32>
    %6 = tpu.matmul %3, %5, %cst {dimension_numbers = #tpu.dot_dimension_numbers<[1], [0], [0], [1], [0, 0, 1, 1], [], []>} : vector<16x8xbf16>, vector<8x128xbf16>, vector<16x128xf32> -> vector<16x128xf32>
    %c0_5 = arith.constant 0 : index
    %c0_6 = arith.constant 0 : index
    %7 = vector.load %arg4[%c0_5, %c0_6] : memref<16x1xf32, #tpu.memory_space<vmem>>, vector<16x1xf32>
    %8 = vector.broadcast %7 : vector<16x1xf32> to vector<16x128xf32>
    %9 = arith.addf %6, %8 : vector<16x128xf32>
    %c0_7 = arith.constant 0 : index
    %c0_8 = arith.constant 0 : index
    %c0_9 = arith.constant 0 : index
    %10 = vector.load %arg5[%c0_7, %c0_8, %c0_9] : memref<1x16x128xf32, #tpu.memory_space<vmem>>, vector<1x16x128xf32>
    %11 = vector.shape_cast %10 : vector<1x16x128xf32> to vector<16x128xf32>
    %12 = vector.shape_cast %9 : vector<16x128xf32> to vector<1x16x128xf32>
    tpu.vector_store %arg5[%c0_7, %c0_8, %c0_9], %12 {strides = array<i32>} : memref<1x16x128xf32, #tpu.memory_space<vmem>>, vector<1x16x128xf32>,
    %c128_i32 = arith.constant 128 : i32
    %13 = arith.muli %arg1, %c128_i32 : i32
    %14 = tpu.iota {dimensions = array<i32: 1>} : vector<16x128xi32>
    %15 = vector.broadcast %13 : i32 to vector<16x128xi32>
    %16 = arith.addi %15, %14 : vector<16x128xi32>
    %c64_i32 = arith.constant 64 : i32
    %17 = vector.broadcast %c64_i32 : i32 to vector<16x128xi32>
    %18 = arith.cmpi slt, %16, %17 : vector<16x128xi32>
    %cst_10 = arith.constant 0.000000e+00 : f32
    %19 = vector.broadcast %cst_10 : f32 to vector<16x128xf32>
    %20 = arith.select %18, %9, %19 : vector<16x128xi1>, vector<16x128xf32>
    %c0_11 = arith.constant 0 : index
    %c0_12 = arith.constant 0 : index
    %c0_13 = arith.constant 0 : index
    %21 = vector.load %arg6[%c0_11, %c0_12, %c0_13] : memref<1x16x1xf32, #tpu.memory_space<vmem>>, vector<1x16x1xf32>
    %22 = vector.shape_cast %21 : vector<1x16x1xf32> to vector<16x1xf32>
    %cst_14 = arith.constant dense<0.000000e+00> : vector<16xf32>
    %23 = vector.multi_reduction <add>, %20, %cst_14 [1] : vector<16x128xf32> to vector<16xf32>
    %24 = vector.shape_cast %23 : vector<16xf32> to vector<16x1xf32>
    %25 = arith.addf %22, %24 : vector<16x1xf32>
    %c0_15 = arith.constant 0 : index
    %c0_16 = arith.constant 0 : index
    %c0_17 = arith.constant 0 : index
    %26 = vector.load %arg6[%c0_15, %c0_16, %c0_17] : memref<1x16x1xf32, #tpu.memory_space<vmem>>, vector<1x16x1xf32>
    %27 = vector.shape_cast %26 : vector<1x16x1xf32> to vector<16x1xf32>
    %28 = vector.shape_cast %25 : vector<16x1xf32> to vector<1x16x1xf32>
    tpu.vector_store %arg6[%c0_15, %c0_16, %c0_17], %28 {strides = array<i32>} : memref<1x16x1xf32, #tpu.memory_space<vmem>>, vector<1x16x1xf32>,
    %c0_18 = arith.constant 0 : index
    %c0_19 = arith.constant 0 : index
    %c0_20 = arith.constant 0 : index
    %29 = vector.load %arg7[%c0_18, %c0_19, %c0_20] : memref<1x16x1xf32, #tpu.memory_space<vmem>>, vector<1x16x1xf32>
    %30 = vector.shape_cast %29 : vector<1x16x1xf32> to vector<16x1xf32>
    %31 = arith.mulf %20, %20 : vector<16x128xf32>
    %cst_21 = arith.constant dense<0.000000e+00> : vector<16xf32>
    %32 = vector.multi_reduction <add>, %31, %cst_21 [1] : vector<16x128xf32> to vector<16xf32>
    %33 = vector.shape_cast %32 : vector<16xf32> to vector<16x1xf32>
    %34 = arith.addf %30, %33 : vector<16x1xf32>
    %c0_22 = arith.constant 0 : index
    %c0_23 = arith.constant 0 : index
    %c0_24 = arith.constant 0 : index
    %35 = vector.load %arg7[%c0_22, %c0_23, %c0_24] : memref<1x16x1xf32, #tpu.memory_space<vmem>>, vector<1x16x1xf32>
    %36 = vector.shape_cast %35 : vector<1x16x1xf32> to vector<16x1xf32>
    %37 = vector.shape_cast %34 : vector<16x1xf32> to vector<1x16x1xf32>
    tpu.vector_store %arg7[%c0_22, %c0_23, %c0_24], %37 {strides = array<i32>} : memref<1x16x1xf32, #tpu.memory_space<vmem>>, vector<1x16x1xf32>,
    return
  }
  func.func @transform_0(%arg0: i32, %arg1: i32) -> (i32, i32) {
    %c0_i32 = arith.constant 0 : i32
    %c0_i32_0 = arith.constant 0 : i32
    %c0_i32_1 = arith.constant 0 : i32
    return %c0_i32, %c0_i32_0 : i32, i32
  }
  func.func @transform_1(%arg0: i32, %arg1: i32) -> (i32, i32, i32) {
    %c0_i32 = arith.constant 0 : i32
    %c0_i32_0 = arith.constant 0 : i32
    return %arg0, %c0_i32, %arg1 : i32, i32, i32
  }
  func.func @transform_2(%arg0: i32, %arg1: i32) -> (i32, i32) {
    %c0_i32 = arith.constant 0 : i32
    %c0_i32_0 = arith.constant 0 : i32
    %c0_i32_1 = arith.constant 0 : i32
    return %c0_i32, %c0_i32_0 : i32, i32
  }
  func.func @transform_3(%arg0: i32, %arg1: i32) -> (i32, i32, i32) {
    %c0_i32 = arith.constant 0 : i32
    %c0_i32_0 = arith.constant 0 : i32
    return %arg0, %c0_i32, %arg1 : i32, i32, i32
  }
  func.func @transform_4(%arg0: i32, %arg1: i32) -> (i32, i32, i32) {
    %c0_i32 = arith.constant 0 : i32
    %c0_i32_0 = arith.constant 0 : i32
    %c0_i32_1 = arith.constant 0 : i32
    return %arg0, %c0_i32, %c0_i32_0 : i32, i32, i32
  }
  func.func @transform_5(%arg0: i32, %arg1: i32) -> (i32, i32, i32) {
    %c0_i32 = arith.constant 0 : i32
    %c0_i32_0 = arith.constant 0 : i32
    %c0_i32_1 = arith.constant 0 : i32
    return %arg0, %c0_i32, %c0_i32_0 : i32, i32, i32
  }
}

module attributes {stable_mosaic.version = 11 : i64} {
  func.func @_mm_bias_stats_kernel(%arg0: i32, %arg1: i32, %arg2: memref<8x144xbf16, #tpu.memory_space<vmem>>, %arg3: memref<1x144x128xbf16, #tpu.memory_space<vmem>>, %arg4: memref<8x1xf32, #tpu.memory_space<vmem>>, %arg5: memref<1x8x128xf32, #tpu.memory_space<vmem>>, %arg6: memref<1x8x1xf32, #tpu.memory_space<vmem>>, %arg7: memref<1x8x1xf32, #tpu.memory_space<vmem>>) attributes {dimension_semantics = [#tpu.dimension_semantics<parallel>, #tpu.dimension_semantics<arbitrary>], iteration_bounds = array<i64: 4, 1>, scalar_prefetch = 0 : i64, scratch_operands = 0 : i64, tpu.core_type = #tpu.core_type<tc>, window_params = [{pipeline_mode = #tpu.pipeline_mode<synchronous>, transform_indices = @transform_0, window_bounds = array<i64: 8, 144>}, {transform_indices = @transform_1, window_bounds = array<i64: 1, 144, 128>}, {pipeline_mode = #tpu.pipeline_mode<synchronous>, transform_indices = @transform_2, window_bounds = array<i64: 8, 1>}, {transform_indices = @transform_3, window_bounds = array<i64: 1, 8, 128>}, {transform_indices = @transform_4, window_bounds = array<i64: 1, 8, 1>}, {transform_indices = @transform_5, window_bounds = array<i64: 1, 8, 1>}]} {
    %c0_i32 = arith.constant 0 : i32
    %0 = arith.cmpi eq, %arg1, %c0_i32 : i32
    %1 = arith.extui %0 : i1 to i32
    %c0_i32_0 = arith.constant 0 : i32
    %2 = arith.cmpi ne, %1, %c0_i32_0 : i32
    scf.if %2 {
      %cst_25 = arith.constant 0.000000e+00 : f32
      %38 = vector.broadcast %cst_25 : f32 to vector<1x8x1xf32>
      %c0_26 = arith.constant 0 : index
      %c0_27 = arith.constant 0 : index
      %c0_28 = arith.constant 0 : index
      %39 = vector.load %arg6[%c0_26, %c0_27, %c0_28] : memref<1x8x1xf32, #tpu.memory_space<vmem>>, vector<1x8x1xf32>
      tpu.vector_store %arg6[%c0_26, %c0_27, %c0_28], %38 {strides = array<i32>} : memref<1x8x1xf32, #tpu.memory_space<vmem>>, vector<1x8x1xf32>,
      %cst_29 = arith.constant 0.000000e+00 : f32
      %40 = vector.broadcast %cst_29 : f32 to vector<1x8x1xf32>
      %c0_30 = arith.constant 0 : index
      %c0_31 = arith.constant 0 : index
      %c0_32 = arith.constant 0 : index
      %41 = vector.load %arg7[%c0_30, %c0_31, %c0_32] : memref<1x8x1xf32, #tpu.memory_space<vmem>>, vector<1x8x1xf32>
      tpu.vector_store %arg7[%c0_30, %c0_31, %c0_32], %40 {strides = array<i32>} : memref<1x8x1xf32, #tpu.memory_space<vmem>>, vector<1x8x1xf32>,
    } else {
    }
    %c0 = arith.constant 0 : index
    %c0_1 = arith.constant 0 : index
    %3 = vector.load %arg2[%c0, %c0_1] : memref<8x144xbf16, #tpu.memory_space<vmem>>, vector<8x144xbf16>
    %c0_2 = arith.constant 0 : index
    %c0_3 = arith.constant 0 : index
    %c0_4 = arith.constant 0 : index
    %4 = vector.load %arg3[%c0_2, %c0_3, %c0_4] : memref<1x144x128xbf16, #tpu.memory_space<vmem>>, vector<1x144x128xbf16>
    %5 = vector.shape_cast %4 : vector<1x144x128xbf16> to vector<144x128xbf16>
    %cst = arith.constant dense<0.000000e+00> : vector<8x128xf32>
    %6 = tpu.matmul %3, %5, %cst {dimension_numbers = #tpu.dot_dimension_numbers<[1], [0], [0], [1], [0, 0, 1, 1], [], []>} : vector<8x144xbf16>, vector<144x128xbf16>, vector<8x128xf32> -> vector<8x128xf32>
    %c0_5 = arith.constant 0 : index
    %c0_6 = arith.constant 0 : index
    %7 = vector.load %arg4[%c0_5, %c0_6] : memref<8x1xf32, #tpu.memory_space<vmem>>, vector<8x1xf32>
    %8 = vector.broadcast %7 : vector<8x1xf32> to vector<8x128xf32>
    %9 = arith.addf %6, %8 : vector<8x128xf32>
    %c0_7 = arith.constant 0 : index
    %c0_8 = arith.constant 0 : index
    %c0_9 = arith.constant 0 : index
    %10 = vector.load %arg5[%c0_7, %c0_8, %c0_9] : memref<1x8x128xf32, #tpu.memory_space<vmem>>, vector<1x8x128xf32>
    %11 = vector.shape_cast %10 : vector<1x8x128xf32> to vector<8x128xf32>
    %12 = vector.shape_cast %9 : vector<8x128xf32> to vector<1x8x128xf32>
    tpu.vector_store %arg5[%c0_7, %c0_8, %c0_9], %12 {strides = array<i32>} : memref<1x8x128xf32, #tpu.memory_space<vmem>>, vector<1x8x128xf32>,
    %c128_i32 = arith.constant 128 : i32
    %13 = arith.muli %arg1, %c128_i32 : i32
    %14 = tpu.iota {dimensions = array<i32: 1>} : vector<8x128xi32>
    %15 = vector.broadcast %13 : i32 to vector<8x128xi32>
    %16 = arith.addi %15, %14 : vector<8x128xi32>
    %c64_i32 = arith.constant 64 : i32
    %17 = vector.broadcast %c64_i32 : i32 to vector<8x128xi32>
    %18 = arith.cmpi slt, %16, %17 : vector<8x128xi32>
    %cst_10 = arith.constant 0.000000e+00 : f32
    %19 = vector.broadcast %cst_10 : f32 to vector<8x128xf32>
    %20 = arith.select %18, %9, %19 : vector<8x128xi1>, vector<8x128xf32>
    %c0_11 = arith.constant 0 : index
    %c0_12 = arith.constant 0 : index
    %c0_13 = arith.constant 0 : index
    %21 = vector.load %arg6[%c0_11, %c0_12, %c0_13] : memref<1x8x1xf32, #tpu.memory_space<vmem>>, vector<1x8x1xf32>
    %22 = vector.shape_cast %21 : vector<1x8x1xf32> to vector<8x1xf32>
    %cst_14 = arith.constant dense<0.000000e+00> : vector<8xf32>
    %23 = vector.multi_reduction <add>, %20, %cst_14 [1] : vector<8x128xf32> to vector<8xf32>
    %24 = vector.shape_cast %23 : vector<8xf32> to vector<8x1xf32>
    %25 = arith.addf %22, %24 : vector<8x1xf32>
    %c0_15 = arith.constant 0 : index
    %c0_16 = arith.constant 0 : index
    %c0_17 = arith.constant 0 : index
    %26 = vector.load %arg6[%c0_15, %c0_16, %c0_17] : memref<1x8x1xf32, #tpu.memory_space<vmem>>, vector<1x8x1xf32>
    %27 = vector.shape_cast %26 : vector<1x8x1xf32> to vector<8x1xf32>
    %28 = vector.shape_cast %25 : vector<8x1xf32> to vector<1x8x1xf32>
    tpu.vector_store %arg6[%c0_15, %c0_16, %c0_17], %28 {strides = array<i32>} : memref<1x8x1xf32, #tpu.memory_space<vmem>>, vector<1x8x1xf32>,
    %c0_18 = arith.constant 0 : index
    %c0_19 = arith.constant 0 : index
    %c0_20 = arith.constant 0 : index
    %29 = vector.load %arg7[%c0_18, %c0_19, %c0_20] : memref<1x8x1xf32, #tpu.memory_space<vmem>>, vector<1x8x1xf32>
    %30 = vector.shape_cast %29 : vector<1x8x1xf32> to vector<8x1xf32>
    %31 = arith.mulf %20, %20 : vector<8x128xf32>
    %cst_21 = arith.constant dense<0.000000e+00> : vector<8xf32>
    %32 = vector.multi_reduction <add>, %31, %cst_21 [1] : vector<8x128xf32> to vector<8xf32>
    %33 = vector.shape_cast %32 : vector<8xf32> to vector<8x1xf32>
    %34 = arith.addf %30, %33 : vector<8x1xf32>
    %c0_22 = arith.constant 0 : index
    %c0_23 = arith.constant 0 : index
    %c0_24 = arith.constant 0 : index
    %35 = vector.load %arg7[%c0_22, %c0_23, %c0_24] : memref<1x8x1xf32, #tpu.memory_space<vmem>>, vector<1x8x1xf32>
    %36 = vector.shape_cast %35 : vector<1x8x1xf32> to vector<8x1xf32>
    %37 = vector.shape_cast %34 : vector<8x1xf32> to vector<1x8x1xf32>
    tpu.vector_store %arg7[%c0_22, %c0_23, %c0_24], %37 {strides = array<i32>} : memref<1x8x1xf32, #tpu.memory_space<vmem>>, vector<1x8x1xf32>,
    return
  }
  func.func @transform_0(%arg0: i32, %arg1: i32) -> (i32, i32) {
    %c0_i32 = arith.constant 0 : i32
    %c0_i32_0 = arith.constant 0 : i32
    %c0_i32_1 = arith.constant 0 : i32
    return %c0_i32, %c0_i32_0 : i32, i32
  }
  func.func @transform_1(%arg0: i32, %arg1: i32) -> (i32, i32, i32) {
    %c0_i32 = arith.constant 0 : i32
    %c0_i32_0 = arith.constant 0 : i32
    return %arg0, %c0_i32, %arg1 : i32, i32, i32
  }
  func.func @transform_2(%arg0: i32, %arg1: i32) -> (i32, i32) {
    %c0_i32 = arith.constant 0 : i32
    %c0_i32_0 = arith.constant 0 : i32
    %c0_i32_1 = arith.constant 0 : i32
    return %c0_i32, %c0_i32_0 : i32, i32
  }
  func.func @transform_3(%arg0: i32, %arg1: i32) -> (i32, i32, i32) {
    %c0_i32 = arith.constant 0 : i32
    %c0_i32_0 = arith.constant 0 : i32
    return %arg0, %c0_i32, %arg1 : i32, i32, i32
  }
  func.func @transform_4(%arg0: i32, %arg1: i32) -> (i32, i32, i32) {
    %c0_i32 = arith.constant 0 : i32
    %c0_i32_0 = arith.constant 0 : i32
    %c0_i32_1 = arith.constant 0 : i32
    return %arg0, %c0_i32, %c0_i32_0 : i32, i32, i32
  }
  func.func @transform_5(%arg0: i32, %arg1: i32) -> (i32, i32, i32) {
    %c0_i32 = arith.constant 0 : i32
    %c0_i32_0 = arith.constant 0 : i32
    %c0_i32_1 = arith.constant 0 : i32
    return %arg0, %c0_i32, %c0_i32_0 : i32, i32, i32
  }
}

module attributes {stable_mosaic.version = 11 : i64} {
  func.func @_mm_bias_stats_kernel(%arg0: i32, %arg1: i32, %arg2: memref<4x72xbf16, #tpu.memory_space<vmem>>, %arg3: memref<1x72x256xbf16, #tpu.memory_space<vmem>>, %arg4: memref<4x1xf32, #tpu.memory_space<vmem>>, %arg5: memref<1x4x256xf32, #tpu.memory_space<vmem>>, %arg6: memref<1x4x1xf32, #tpu.memory_space<vmem>>, %arg7: memref<1x4x1xf32, #tpu.memory_space<vmem>>) attributes {dimension_semantics = [#tpu.dimension_semantics<parallel>, #tpu.dimension_semantics<arbitrary>], iteration_bounds = array<i64: 4, 1>, scalar_prefetch = 0 : i64, scratch_operands = 0 : i64, tpu.core_type = #tpu.core_type<tc>, window_params = [{pipeline_mode = #tpu.pipeline_mode<synchronous>, transform_indices = @transform_0, window_bounds = array<i64: 4, 72>}, {transform_indices = @transform_1, window_bounds = array<i64: 1, 72, 256>}, {pipeline_mode = #tpu.pipeline_mode<synchronous>, transform_indices = @transform_2, window_bounds = array<i64: 4, 1>}, {transform_indices = @transform_3, window_bounds = array<i64: 1, 4, 256>}, {transform_indices = @transform_4, window_bounds = array<i64: 1, 4, 1>}, {transform_indices = @transform_5, window_bounds = array<i64: 1, 4, 1>}]} {
    %c0_i32 = arith.constant 0 : i32
    %0 = arith.cmpi eq, %arg1, %c0_i32 : i32
    %1 = arith.extui %0 : i1 to i32
    %c0_i32_0 = arith.constant 0 : i32
    %2 = arith.cmpi ne, %1, %c0_i32_0 : i32
    scf.if %2 {
      %cst_26 = arith.constant 0.000000e+00 : f32
      %38 = vector.broadcast %cst_26 : f32 to vector<1x4x1xf32>
      %c0_27 = arith.constant 0 : index
      %c0_28 = arith.constant 0 : index
      %c0_29 = arith.constant 0 : index
      %39 = vector.load %arg6[%c0_27, %c0_28, %c0_29] : memref<1x4x1xf32, #tpu.memory_space<vmem>>, vector<1x4x1xf32>
      tpu.vector_store %arg6[%c0_27, %c0_28, %c0_29], %38 {strides = array<i32>} : memref<1x4x1xf32, #tpu.memory_space<vmem>>, vector<1x4x1xf32>,
      %cst_30 = arith.constant 0.000000e+00 : f32
      %40 = vector.broadcast %cst_30 : f32 to vector<1x4x1xf32>
      %c0_31 = arith.constant 0 : index
      %c0_32 = arith.constant 0 : index
      %c0_33 = arith.constant 0 : index
      %41 = vector.load %arg7[%c0_31, %c0_32, %c0_33] : memref<1x4x1xf32, #tpu.memory_space<vmem>>, vector<1x4x1xf32>
      tpu.vector_store %arg7[%c0_31, %c0_32, %c0_33], %40 {strides = array<i32>} : memref<1x4x1xf32, #tpu.memory_space<vmem>>, vector<1x4x1xf32>,
    } else {
    }
    %c0 = arith.constant 0 : index
    %c0_1 = arith.constant 0 : index
    %3 = vector.load %arg2[%c0, %c0_1] : memref<4x72xbf16, #tpu.memory_space<vmem>>, vector<4x72xbf16>
    %c0_2 = arith.constant 0 : index
    %c0_3 = arith.constant 0 : index
    %c0_4 = arith.constant 0 : index
    %4 = vector.load %arg3[%c0_2, %c0_3, %c0_4] : memref<1x72x256xbf16, #tpu.memory_space<vmem>>, vector<1x72x256xbf16>
    %5 = vector.shape_cast %4 : vector<1x72x256xbf16> to vector<72x256xbf16>
    %cst = arith.constant dense<0.000000e+00> : vector<4x256xf32>
    %6 = tpu.matmul %3, %5, %cst {dimension_numbers = #tpu.dot_dimension_numbers<[1], [0], [0], [1], [0, 0, 1, 1], [], []>} : vector<4x72xbf16>, vector<72x256xbf16>, vector<4x256xf32> -> vector<4x256xf32>
    %c0_5 = arith.constant 0 : index
    %c0_6 = arith.constant 0 : index
    %7 = vector.load %arg4[%c0_5, %c0_6] : memref<4x1xf32, #tpu.memory_space<vmem>>, vector<4x1xf32>
    %8 = vector.broadcast %7 : vector<4x1xf32> to vector<4x256xf32>
    %9 = arith.addf %6, %8 : vector<4x256xf32>
    %c0_7 = arith.constant 0 : index
    %c0_8 = arith.constant 0 : index
    %c0_9 = arith.constant 0 : index
    %10 = vector.load %arg5[%c0_7, %c0_8, %c0_9] : memref<1x4x256xf32, #tpu.memory_space<vmem>>, vector<1x4x256xf32>
    %11 = vector.shape_cast %10 : vector<1x4x256xf32> to vector<4x256xf32>
    %12 = vector.shape_cast %9 : vector<4x256xf32> to vector<1x4x256xf32>
    tpu.vector_store %arg5[%c0_7, %c0_8, %c0_9], %12 {strides = array<i32>} : memref<1x4x256xf32, #tpu.memory_space<vmem>>, vector<1x4x256xf32>,
    %c256_i32 = arith.constant 256 : i32
    %13 = arith.muli %arg1, %c256_i32 : i32
    %14 = tpu.iota {dimensions = array<i32: 1>} : vector<4x256xi32>
    %15 = vector.broadcast %13 : i32 to vector<4x256xi32>
    %16 = arith.addi %15, %14 : vector<4x256xi32>
    %c256_i32_10 = arith.constant 256 : i32
    %17 = vector.broadcast %c256_i32_10 : i32 to vector<4x256xi32>
    %18 = arith.cmpi slt, %16, %17 : vector<4x256xi32>
    %cst_11 = arith.constant 0.000000e+00 : f32
    %19 = vector.broadcast %cst_11 : f32 to vector<4x256xf32>
    %20 = arith.select %18, %9, %19 : vector<4x256xi1>, vector<4x256xf32>
    %c0_12 = arith.constant 0 : index
    %c0_13 = arith.constant 0 : index
    %c0_14 = arith.constant 0 : index
    %21 = vector.load %arg6[%c0_12, %c0_13, %c0_14] : memref<1x4x1xf32, #tpu.memory_space<vmem>>, vector<1x4x1xf32>
    %22 = vector.shape_cast %21 : vector<1x4x1xf32> to vector<4x1xf32>
    %cst_15 = arith.constant dense<0.000000e+00> : vector<4xf32>
    %23 = vector.multi_reduction <add>, %20, %cst_15 [1] : vector<4x256xf32> to vector<4xf32>
    %24 = vector.shape_cast %23 : vector<4xf32> to vector<4x1xf32>
    %25 = arith.addf %22, %24 : vector<4x1xf32>
    %c0_16 = arith.constant 0 : index
    %c0_17 = arith.constant 0 : index
    %c0_18 = arith.constant 0 : index
    %26 = vector.load %arg6[%c0_16, %c0_17, %c0_18] : memref<1x4x1xf32, #tpu.memory_space<vmem>>, vector<1x4x1xf32>
    %27 = vector.shape_cast %26 : vector<1x4x1xf32> to vector<4x1xf32>
    %28 = vector.shape_cast %25 : vector<4x1xf32> to vector<1x4x1xf32>
    tpu.vector_store %arg6[%c0_16, %c0_17, %c0_18], %28 {strides = array<i32>} : memref<1x4x1xf32, #tpu.memory_space<vmem>>, vector<1x4x1xf32>,
    %c0_19 = arith.constant 0 : index
    %c0_20 = arith.constant 0 : index
    %c0_21 = arith.constant 0 : index
    %29 = vector.load %arg7[%c0_19, %c0_20, %c0_21] : memref<1x4x1xf32, #tpu.memory_space<vmem>>, vector<1x4x1xf32>
    %30 = vector.shape_cast %29 : vector<1x4x1xf32> to vector<4x1xf32>
    %31 = arith.mulf %20, %20 : vector<4x256xf32>
    %cst_22 = arith.constant dense<0.000000e+00> : vector<4xf32>
    %32 = vector.multi_reduction <add>, %31, %cst_22 [1] : vector<4x256xf32> to vector<4xf32>
    %33 = vector.shape_cast %32 : vector<4xf32> to vector<4x1xf32>
    %34 = arith.addf %30, %33 : vector<4x1xf32>
    %c0_23 = arith.constant 0 : index
    %c0_24 = arith.constant 0 : index
    %c0_25 = arith.constant 0 : index
    %35 = vector.load %arg7[%c0_23, %c0_24, %c0_25] : memref<1x4x1xf32, #tpu.memory_space<vmem>>, vector<1x4x1xf32>
    %36 = vector.shape_cast %35 : vector<1x4x1xf32> to vector<4x1xf32>
    %37 = vector.shape_cast %34 : vector<4x1xf32> to vector<1x4x1xf32>
    tpu.vector_store %arg7[%c0_23, %c0_24, %c0_25], %37 {strides = array<i32>} : memref<1x4x1xf32, #tpu.memory_space<vmem>>, vector<1x4x1xf32>,
    return
  }
  func.func @transform_0(%arg0: i32, %arg1: i32) -> (i32, i32) {
    %c0_i32 = arith.constant 0 : i32
    %c0_i32_0 = arith.constant 0 : i32
    %c0_i32_1 = arith.constant 0 : i32
    return %c0_i32, %c0_i32_0 : i32, i32
  }
  func.func @transform_1(%arg0: i32, %arg1: i32) -> (i32, i32, i32) {
    %c0_i32 = arith.constant 0 : i32
    %c0_i32_0 = arith.constant 0 : i32
    return %arg0, %c0_i32, %arg1 : i32, i32, i32
  }
  func.func @transform_2(%arg0: i32, %arg1: i32) -> (i32, i32) {
    %c0_i32 = arith.constant 0 : i32
    %c0_i32_0 = arith.constant 0 : i32
    %c0_i32_1 = arith.constant 0 : i32
    return %c0_i32, %c0_i32_0 : i32, i32
  }
  func.func @transform_3(%arg0: i32, %arg1: i32) -> (i32, i32, i32) {
    %c0_i32 = arith.constant 0 : i32
    %c0_i32_0 = arith.constant 0 : i32
    return %arg0, %c0_i32, %arg1 : i32, i32, i32
  }
  func.func @transform_4(%arg0: i32, %arg1: i32) -> (i32, i32, i32) {
    %c0_i32 = arith.constant 0 : i32
    %c0_i32_0 = arith.constant 0 : i32
    %c0_i32_1 = arith.constant 0 : i32
    return %arg0, %c0_i32, %c0_i32_0 : i32, i32, i32
  }
  func.func @transform_5(%arg0: i32, %arg1: i32) -> (i32, i32, i32) {
    %c0_i32 = arith.constant 0 : i32
    %c0_i32_0 = arith.constant 0 : i32
    %c0_i32_1 = arith.constant 0 : i32
    return %arg0, %c0_i32, %c0_i32_0 : i32, i32, i32
  }
}

module attributes {stable_mosaic.version = 11 : i64} {
  func.func @_mm_bias_kernel(%arg0: i32, %arg1: i32, %arg2: memref<2x4xbf16, #tpu.memory_space<vmem>>, %arg3: memref<1x4x256xbf16, #tpu.memory_space<vmem>>, %arg4: memref<2x1xf32, #tpu.memory_space<vmem>>, %arg5: memref<1x2x256xf32, #tpu.memory_space<vmem>>) attributes {dimension_semantics = [#tpu.dimension_semantics<parallel>, #tpu.dimension_semantics<parallel>], iteration_bounds = array<i64: 4, 1>, scalar_prefetch = 0 : i64, scratch_operands = 0 : i64, tpu.core_type = #tpu.core_type<tc>, window_params = [{pipeline_mode = #tpu.pipeline_mode<synchronous>, transform_indices = @transform_0, window_bounds = array<i64: 2, 4>}, {transform_indices = @transform_1, window_bounds = array<i64: 1, 4, 256>}, {pipeline_mode = #tpu.pipeline_mode<synchronous>, transform_indices = @transform_2, window_bounds = array<i64: 2, 1>}, {transform_indices = @transform_3, window_bounds = array<i64: 1, 2, 256>}]} {
    %c0 = arith.constant 0 : index
    %c0_0 = arith.constant 0 : index
    %0 = vector.load %arg2[%c0, %c0_0] : memref<2x4xbf16, #tpu.memory_space<vmem>>, vector<2x4xbf16>
    %c0_1 = arith.constant 0 : index
    %c0_2 = arith.constant 0 : index
    %c0_3 = arith.constant 0 : index
    %1 = vector.load %arg3[%c0_1, %c0_2, %c0_3] : memref<1x4x256xbf16, #tpu.memory_space<vmem>>, vector<1x4x256xbf16>
    %2 = vector.shape_cast %1 : vector<1x4x256xbf16> to vector<4x256xbf16>
    %cst = arith.constant dense<0.000000e+00> : vector<2x256xf32>
    %3 = tpu.matmul %0, %2, %cst {dimension_numbers = #tpu.dot_dimension_numbers<[1], [0], [0], [1], [0, 0, 1, 1], [], []>} : vector<2x4xbf16>, vector<4x256xbf16>, vector<2x256xf32> -> vector<2x256xf32>
    %c0_4 = arith.constant 0 : index
    %c0_5 = arith.constant 0 : index
    %4 = vector.load %arg4[%c0_4, %c0_5] : memref<2x1xf32, #tpu.memory_space<vmem>>, vector<2x1xf32>
    %5 = vector.broadcast %4 : vector<2x1xf32> to vector<2x256xf32>
    %6 = arith.addf %3, %5 : vector<2x256xf32>
    %c0_6 = arith.constant 0 : index
    %c0_7 = arith.constant 0 : index
    %c0_8 = arith.constant 0 : index
    %7 = vector.load %arg5[%c0_6, %c0_7, %c0_8] : memref<1x2x256xf32, #tpu.memory_space<vmem>>, vector<1x2x256xf32>
    %8 = vector.shape_cast %7 : vector<1x2x256xf32> to vector<2x256xf32>
    %9 = vector.shape_cast %6 : vector<2x256xf32> to vector<1x2x256xf32>
    tpu.vector_store %arg5[%c0_6, %c0_7, %c0_8], %9 {strides = array<i32>} : memref<1x2x256xf32, #tpu.memory_space<vmem>>, vector<1x2x256xf32>,
    return
  }
  func.func @transform_0(%arg0: i32, %arg1: i32) -> (i32, i32) {
    %c0_i32 = arith.constant 0 : i32
    %c0_i32_0 = arith.constant 0 : i32
    %c0_i32_1 = arith.constant 0 : i32
    return %c0_i32, %c0_i32_0 : i32, i32
  }
  func.func @transform_1(%arg0: i32, %arg1: i32) -> (i32, i32, i32) {
    %c0_i32 = arith.constant 0 : i32
    %c0_i32_0 = arith.constant 0 : i32
    return %arg0, %c0_i32, %arg1 : i32, i32, i32
  }
  func.func @transform_2(%arg0: i32, %arg1: i32) -> (i32, i32) {
    %c0_i32 = arith.constant 0 : i32
    %c0_i32_0 = arith.constant 0 : i32
    %c0_i32_1 = arith.constant 0 : i32
    return %c0_i32, %c0_i32_0 : i32, i32
  }
  func.func @transform_3(%arg0: i32, %arg1: i32) -> (i32, i32, i32) {
    %c0_i32 = arith.constant 0 : i32
    %c0_i32_0 = arith.constant 0 : i32
    return %arg0, %c0_i32, %arg1 : i32, i32, i32
  }
}

module attributes {stable_mosaic.version = 11 : i64} {
  func.func @_mm_bias_kernel(%arg0: i32, %arg1: i32, %arg2: memref<8x50xbf16, #tpu.memory_space<vmem>>, %arg3: memref<1x50x256xbf16, #tpu.memory_space<vmem>>, %arg4: memref<8x1xf32, #tpu.memory_space<vmem>>, %arg5: memref<1x8x256xf32, #tpu.memory_space<vmem>>) attributes {dimension_semantics = [#tpu.dimension_semantics<parallel>, #tpu.dimension_semantics<parallel>], iteration_bounds = array<i64: 1, 1>, scalar_prefetch = 0 : i64, scratch_operands = 0 : i64, tpu.core_type = #tpu.core_type<tc>, window_params = [{pipeline_mode = #tpu.pipeline_mode<synchronous>, transform_indices = @transform_0, window_bounds = array<i64: 8, 50>}, {transform_indices = @transform_1, window_bounds = array<i64: 1, 50, 256>}, {pipeline_mode = #tpu.pipeline_mode<synchronous>, transform_indices = @transform_2, window_bounds = array<i64: 8, 1>}, {transform_indices = @transform_3, window_bounds = array<i64: 1, 8, 256>}]} {
    %c0 = arith.constant 0 : index
    %c0_0 = arith.constant 0 : index
    %0 = vector.load %arg2[%c0, %c0_0] : memref<8x50xbf16, #tpu.memory_space<vmem>>, vector<8x50xbf16>
    %c0_1 = arith.constant 0 : index
    %c0_2 = arith.constant 0 : index
    %c0_3 = arith.constant 0 : index
    %1 = vector.load %arg3[%c0_1, %c0_2, %c0_3] : memref<1x50x256xbf16, #tpu.memory_space<vmem>>, vector<1x50x256xbf16>
    %2 = vector.shape_cast %1 : vector<1x50x256xbf16> to vector<50x256xbf16>
    %cst = arith.constant dense<0.000000e+00> : vector<8x256xf32>
    %3 = tpu.matmul %0, %2, %cst {dimension_numbers = #tpu.dot_dimension_numbers<[1], [0], [0], [1], [0, 0, 1, 1], [], []>} : vector<8x50xbf16>, vector<50x256xbf16>, vector<8x256xf32> -> vector<8x256xf32>
    %c0_4 = arith.constant 0 : index
    %c0_5 = arith.constant 0 : index
    %4 = vector.load %arg4[%c0_4, %c0_5] : memref<8x1xf32, #tpu.memory_space<vmem>>, vector<8x1xf32>
    %5 = vector.broadcast %4 : vector<8x1xf32> to vector<8x256xf32>
    %6 = arith.addf %3, %5 : vector<8x256xf32>
    %c0_6 = arith.constant 0 : index
    %c0_7 = arith.constant 0 : index
    %c0_8 = arith.constant 0 : index
    %7 = vector.load %arg5[%c0_6, %c0_7, %c0_8] : memref<1x8x256xf32, #tpu.memory_space<vmem>>, vector<1x8x256xf32>
    %8 = vector.shape_cast %7 : vector<1x8x256xf32> to vector<8x256xf32>
    %9 = vector.shape_cast %6 : vector<8x256xf32> to vector<1x8x256xf32>
    tpu.vector_store %arg5[%c0_6, %c0_7, %c0_8], %9 {strides = array<i32>} : memref<1x8x256xf32, #tpu.memory_space<vmem>>, vector<1x8x256xf32>,
    return
  }
  func.func @transform_0(%arg0: i32, %arg1: i32) -> (i32, i32) {
    %c0_i32 = arith.constant 0 : i32
    %c0_i32_0 = arith.constant 0 : i32
    %c0_i32_1 = arith.constant 0 : i32
    return %c0_i32, %c0_i32_0 : i32, i32
  }
  func.func @transform_1(%arg0: i32, %arg1: i32) -> (i32, i32, i32) {
    %c0_i32 = arith.constant 0 : i32
    %c0_i32_0 = arith.constant 0 : i32
    return %arg0, %c0_i32, %arg1 : i32, i32, i32
  }
  func.func @transform_2(%arg0: i32, %arg1: i32) -> (i32, i32) {
    %c0_i32 = arith.constant 0 : i32
    %c0_i32_0 = arith.constant 0 : i32
    %c0_i32_1 = arith.constant 0 : i32
    return %c0_i32, %c0_i32_0 : i32, i32
  }
  func.func @transform_3(%arg0: i32, %arg1: i32) -> (i32, i32, i32) {
    %c0_i32 = arith.constant 0 : i32
    %c0_i32_0 = arith.constant 0 : i32
    return %arg0, %c0_i32, %arg1 : i32, i32, i32
  }
}

module attributes {stable_mosaic.version = 11 : i64} {
  func.func @_stats_kernel(%arg0: i32, %arg1: i32, %arg2: memref<1x8x256xf32, #tpu.memory_space<vmem>>, %arg3: memref<1x8x1xf32, #tpu.memory_space<vmem>>, %arg4: memref<1x8x1xf32, #tpu.memory_space<vmem>>) attributes {dimension_semantics = [#tpu.dimension_semantics<parallel>, #tpu.dimension_semantics<arbitrary>], iteration_bounds = array<i64: 1, 1>, scalar_prefetch = 0 : i64, scratch_operands = 0 : i64, tpu.core_type = #tpu.core_type<tc>, window_params = [{transform_indices = @transform_0, window_bounds = array<i64: 1, 8, 256>}, {transform_indices = @transform_1, window_bounds = array<i64: 1, 8, 1>}, {transform_indices = @transform_2, window_bounds = array<i64: 1, 8, 1>}]} {
    %c0_i32 = arith.constant 0 : i32
    %0 = arith.cmpi eq, %arg1, %c0_i32 : i32
    %1 = arith.extui %0 : i1 to i32
    %c0_i32_0 = arith.constant 0 : i32
    %2 = arith.cmpi ne, %1, %c0_i32_0 : i32
    scf.if %2 {
      %cst_18 = arith.constant 0.000000e+00 : f32
      %30 = vector.broadcast %cst_18 : f32 to vector<1x8x1xf32>
      %c0_19 = arith.constant 0 : index
      %c0_20 = arith.constant 0 : index
      %c0_21 = arith.constant 0 : index
      %31 = vector.load %arg3[%c0_19, %c0_20, %c0_21] : memref<1x8x1xf32, #tpu.memory_space<vmem>>, vector<1x8x1xf32>
      tpu.vector_store %arg3[%c0_19, %c0_20, %c0_21], %30 {strides = array<i32>} : memref<1x8x1xf32, #tpu.memory_space<vmem>>, vector<1x8x1xf32>,
      %cst_22 = arith.constant 0.000000e+00 : f32
      %32 = vector.broadcast %cst_22 : f32 to vector<1x8x1xf32>
      %c0_23 = arith.constant 0 : index
      %c0_24 = arith.constant 0 : index
      %c0_25 = arith.constant 0 : index
      %33 = vector.load %arg4[%c0_23, %c0_24, %c0_25] : memref<1x8x1xf32, #tpu.memory_space<vmem>>, vector<1x8x1xf32>
      tpu.vector_store %arg4[%c0_23, %c0_24, %c0_25], %32 {strides = array<i32>} : memref<1x8x1xf32, #tpu.memory_space<vmem>>, vector<1x8x1xf32>,
    } else {
    }
    %c0 = arith.constant 0 : index
    %c0_1 = arith.constant 0 : index
    %c0_2 = arith.constant 0 : index
    %3 = vector.load %arg2[%c0, %c0_1, %c0_2] : memref<1x8x256xf32, #tpu.memory_space<vmem>>, vector<1x8x256xf32>
    %4 = vector.shape_cast %3 : vector<1x8x256xf32> to vector<8x256xf32>
    %c256_i32 = arith.constant 256 : i32
    %5 = arith.muli %arg1, %c256_i32 : i32
    %6 = tpu.iota {dimensions = array<i32: 1>} : vector<8x256xi32>
    %7 = vector.broadcast %5 : i32 to vector<8x256xi32>
    %8 = arith.addi %7, %6 : vector<8x256xi32>
    %c256_i32_3 = arith.constant 256 : i32
    %9 = vector.broadcast %c256_i32_3 : i32 to vector<8x256xi32>
    %10 = arith.cmpi slt, %8, %9 : vector<8x256xi32>
    %cst = arith.constant 0.000000e+00 : f32
    %11 = vector.broadcast %cst : f32 to vector<8x256xf32>
    %12 = arith.select %10, %4, %11 : vector<8x256xi1>, vector<8x256xf32>
    %c0_4 = arith.constant 0 : index
    %c0_5 = arith.constant 0 : index
    %c0_6 = arith.constant 0 : index
    %13 = vector.load %arg3[%c0_4, %c0_5, %c0_6] : memref<1x8x1xf32, #tpu.memory_space<vmem>>, vector<1x8x1xf32>
    %14 = vector.shape_cast %13 : vector<1x8x1xf32> to vector<8x1xf32>
    %cst_7 = arith.constant dense<0.000000e+00> : vector<8xf32>
    %15 = vector.multi_reduction <add>, %12, %cst_7 [1] : vector<8x256xf32> to vector<8xf32>
    %16 = vector.shape_cast %15 : vector<8xf32> to vector<8x1xf32>
    %17 = arith.addf %14, %16 : vector<8x1xf32>
    %c0_8 = arith.constant 0 : index
    %c0_9 = arith.constant 0 : index
    %c0_10 = arith.constant 0 : index
    %18 = vector.load %arg3[%c0_8, %c0_9, %c0_10] : memref<1x8x1xf32, #tpu.memory_space<vmem>>, vector<1x8x1xf32>
    %19 = vector.shape_cast %18 : vector<1x8x1xf32> to vector<8x1xf32>
    %20 = vector.shape_cast %17 : vector<8x1xf32> to vector<1x8x1xf32>
    tpu.vector_store %arg3[%c0_8, %c0_9, %c0_10], %20 {strides = array<i32>} : memref<1x8x1xf32, #tpu.memory_space<vmem>>, vector<1x8x1xf32>,
    %c0_11 = arith.constant 0 : index
    %c0_12 = arith.constant 0 : index
    %c0_13 = arith.constant 0 : index
    %21 = vector.load %arg4[%c0_11, %c0_12, %c0_13] : memref<1x8x1xf32, #tpu.memory_space<vmem>>, vector<1x8x1xf32>
    %22 = vector.shape_cast %21 : vector<1x8x1xf32> to vector<8x1xf32>
    %23 = arith.mulf %12, %12 : vector<8x256xf32>
    %cst_14 = arith.constant dense<0.000000e+00> : vector<8xf32>
    %24 = vector.multi_reduction <add>, %23, %cst_14 [1] : vector<8x256xf32> to vector<8xf32>
    %25 = vector.shape_cast %24 : vector<8xf32> to vector<8x1xf32>
    %26 = arith.addf %22, %25 : vector<8x1xf32>
    %c0_15 = arith.constant 0 : index
    %c0_16 = arith.constant 0 : index
    %c0_17 = arith.constant 0 : index
    %27 = vector.load %arg4[%c0_15, %c0_16, %c0_17] : memref<1x8x1xf32, #tpu.memory_space<vmem>>, vector<1x8x1xf32>
    %28 = vector.shape_cast %27 : vector<1x8x1xf32> to vector<8x1xf32>
    %29 = vector.shape_cast %26 : vector<8x1xf32> to vector<1x8x1xf32>
    tpu.vector_store %arg4[%c0_15, %c0_16, %c0_17], %29 {strides = array<i32>} : memref<1x8x1xf32, #tpu.memory_space<vmem>>, vector<1x8x1xf32>,
    return
  }
  func.func @transform_0(%arg0: i32, %arg1: i32) -> (i32, i32, i32) {
    %c0_i32 = arith.constant 0 : i32
    %c0_i32_0 = arith.constant 0 : i32
    return %arg0, %c0_i32, %arg1 : i32, i32, i32
  }
  func.func @transform_1(%arg0: i32, %arg1: i32) -> (i32, i32, i32) {
    %c0_i32 = arith.constant 0 : i32
    %c0_i32_0 = arith.constant 0 : i32
    %c0_i32_1 = arith.constant 0 : i32
    return %arg0, %c0_i32, %c0_i32_0 : i32, i32, i32
  }
  func.func @transform_2(%arg0: i32, %arg1: i32) -> (i32, i32, i32) {
    %c0_i32 = arith.constant 0 : i32
    %c0_i32_0 = arith.constant 0 : i32
    %c0_i32_1 = arith.constant 0 : i32
    return %arg0, %c0_i32, %c0_i32_0 : i32, i32, i32
  }
}

module attributes {stable_mosaic.version = 11 : i64} {
  func.func @_norm_act_kernel(%arg0: i32, %arg1: i32, %arg2: memref<1x8x256xf32, #tpu.memory_space<vmem>>, %arg3: memref<1x8x1xf32, #tpu.memory_space<vmem>>, %arg4: memref<1x8x1xf32, #tpu.memory_space<vmem>>, %arg5: memref<1x8x256xf32, #tpu.memory_space<vmem>>) attributes {dimension_semantics = [#tpu.dimension_semantics<parallel>, #tpu.dimension_semantics<parallel>], iteration_bounds = array<i64: 1, 1>, scalar_prefetch = 0 : i64, scratch_operands = 0 : i64, tpu.core_type = #tpu.core_type<tc>, window_params = [{transform_indices = @transform_0, window_bounds = array<i64: 1, 8, 256>}, {transform_indices = @transform_1, window_bounds = array<i64: 1, 8, 1>}, {transform_indices = @transform_2, window_bounds = array<i64: 1, 8, 1>}, {transform_indices = @transform_3, window_bounds = array<i64: 1, 8, 256>}]} {
    %c0 = arith.constant 0 : index
    %c0_0 = arith.constant 0 : index
    %c0_1 = arith.constant 0 : index
    %0 = vector.load %arg2[%c0, %c0_0, %c0_1] : memref<1x8x256xf32, #tpu.memory_space<vmem>>, vector<1x8x256xf32>
    %1 = vector.shape_cast %0 : vector<1x8x256xf32> to vector<8x256xf32>
    %c0_2 = arith.constant 0 : index
    %c0_3 = arith.constant 0 : index
    %c0_4 = arith.constant 0 : index
    %2 = vector.load %arg3[%c0_2, %c0_3, %c0_4] : memref<1x8x1xf32, #tpu.memory_space<vmem>>, vector<1x8x1xf32>
    %3 = vector.shape_cast %2 : vector<1x8x1xf32> to vector<8x1xf32>
    %4 = vector.broadcast %3 : vector<8x1xf32> to vector<8x256xf32>
    %5 = arith.subf %1, %4 : vector<8x256xf32>
    %c0_5 = arith.constant 0 : index
    %c0_6 = arith.constant 0 : index
    %c0_7 = arith.constant 0 : index
    %6 = vector.load %arg4[%c0_5, %c0_6, %c0_7] : memref<1x8x1xf32, #tpu.memory_space<vmem>>, vector<1x8x1xf32>
    %7 = vector.shape_cast %6 : vector<1x8x1xf32> to vector<8x1xf32>
    %8 = vector.broadcast %7 : vector<8x1xf32> to vector<8x256xf32>
    %9 = arith.mulf %5, %8 : vector<8x256xf32>
    %c0_8 = arith.constant 0 : index
    %c0_9 = arith.constant 0 : index
    %c0_10 = arith.constant 0 : index
    %10 = vector.load %arg5[%c0_8, %c0_9, %c0_10] : memref<1x8x256xf32, #tpu.memory_space<vmem>>, vector<1x8x256xf32>
    %11 = vector.shape_cast %10 : vector<1x8x256xf32> to vector<8x256xf32>
    %12 = vector.shape_cast %9 : vector<8x256xf32> to vector<1x8x256xf32>
    tpu.vector_store %arg5[%c0_8, %c0_9, %c0_10], %12 {strides = array<i32>} : memref<1x8x256xf32, #tpu.memory_space<vmem>>, vector<1x8x256xf32>,
    return
  }
  func.func @transform_0(%arg0: i32, %arg1: i32) -> (i32, i32, i32) {
    %c0_i32 = arith.constant 0 : i32
    %c0_i32_0 = arith.constant 0 : i32
    return %arg0, %c0_i32, %arg1 : i32, i32, i32
  }
  func.func @transform_1(%arg0: i32, %arg1: i32) -> (i32, i32, i32) {
    %c0_i32 = arith.constant 0 : i32
    %c0_i32_0 = arith.constant 0 : i32
    %c0_i32_1 = arith.constant 0 : i32
    return %arg0, %c0_i32, %c0_i32_0 : i32, i32, i32
  }
  func.func @transform_2(%arg0: i32, %arg1: i32) -> (i32, i32, i32) {
    %c0_i32 = arith.constant 0 : i32
    %c0_i32_0 = arith.constant 0 : i32
    %c0_i32_1 = arith.constant 0 : i32
    return %arg0, %c0_i32, %c0_i32_0 : i32, i32, i32
  }
  func.func @transform_3(%arg0: i32, %arg1: i32) -> (i32, i32, i32) {
    %c0_i32 = arith.constant 0 : i32
    %c0_i32_0 = arith.constant 0 : i32
    return %arg0, %c0_i32, %arg1 : i32, i32, i32
  }
}

module attributes {stable_mosaic.version = 11 : i64} {
  func.func @_mm_bias_kernel(%arg0: i32, %arg1: i32, %arg2: memref<2x200xbf16, #tpu.memory_space<vmem>>, %arg3: memref<1x200x256xbf16, #tpu.memory_space<vmem>>, %arg4: memref<2x1xf32, #tpu.memory_space<vmem>>, %arg5: memref<1x2x256xf32, #tpu.memory_space<vmem>>) attributes {dimension_semantics = [#tpu.dimension_semantics<parallel>, #tpu.dimension_semantics<parallel>], iteration_bounds = array<i64: 1, 1>, scalar_prefetch = 0 : i64, scratch_operands = 0 : i64, tpu.core_type = #tpu.core_type<tc>, window_params = [{pipeline_mode = #tpu.pipeline_mode<synchronous>, transform_indices = @transform_0, window_bounds = array<i64: 2, 200>}, {transform_indices = @transform_1, window_bounds = array<i64: 1, 200, 256>}, {pipeline_mode = #tpu.pipeline_mode<synchronous>, transform_indices = @transform_2, window_bounds = array<i64: 2, 1>}, {transform_indices = @transform_3, window_bounds = array<i64: 1, 2, 256>}]} {
    %c0 = arith.constant 0 : index
    %c0_0 = arith.constant 0 : index
    %0 = vector.load %arg2[%c0, %c0_0] : memref<2x200xbf16, #tpu.memory_space<vmem>>, vector<2x200xbf16>
    %c0_1 = arith.constant 0 : index
    %c0_2 = arith.constant 0 : index
    %c0_3 = arith.constant 0 : index
    %1 = vector.load %arg3[%c0_1, %c0_2, %c0_3] : memref<1x200x256xbf16, #tpu.memory_space<vmem>>, vector<1x200x256xbf16>
    %2 = vector.shape_cast %1 : vector<1x200x256xbf16> to vector<200x256xbf16>
    %cst = arith.constant dense<0.000000e+00> : vector<2x256xf32>
    %3 = tpu.matmul %0, %2, %cst {dimension_numbers = #tpu.dot_dimension_numbers<[1], [0], [0], [1], [0, 0, 1, 1], [], []>} : vector<2x200xbf16>, vector<200x256xbf16>, vector<2x256xf32> -> vector<2x256xf32>
    %c0_4 = arith.constant 0 : index
    %c0_5 = arith.constant 0 : index
    %4 = vector.load %arg4[%c0_4, %c0_5] : memref<2x1xf32, #tpu.memory_space<vmem>>, vector<2x1xf32>
    %5 = vector.broadcast %4 : vector<2x1xf32> to vector<2x256xf32>
    %6 = arith.addf %3, %5 : vector<2x256xf32>
    %c0_6 = arith.constant 0 : index
    %c0_7 = arith.constant 0 : index
    %c0_8 = arith.constant 0 : index
    %7 = vector.load %arg5[%c0_6, %c0_7, %c0_8] : memref<1x2x256xf32, #tpu.memory_space<vmem>>, vector<1x2x256xf32>
    %8 = vector.shape_cast %7 : vector<1x2x256xf32> to vector<2x256xf32>
    %9 = vector.shape_cast %6 : vector<2x256xf32> to vector<1x2x256xf32>
    tpu.vector_store %arg5[%c0_6, %c0_7, %c0_8], %9 {strides = array<i32>} : memref<1x2x256xf32, #tpu.memory_space<vmem>>, vector<1x2x256xf32>,
    return
  }
  func.func @transform_0(%arg0: i32, %arg1: i32) -> (i32, i32) {
    %c0_i32 = arith.constant 0 : i32
    %c0_i32_0 = arith.constant 0 : i32
    %c0_i32_1 = arith.constant 0 : i32
    return %c0_i32, %c0_i32_0 : i32, i32
  }
  func.func @transform_1(%arg0: i32, %arg1: i32) -> (i32, i32, i32) {
    %c0_i32 = arith.constant 0 : i32
    %c0_i32_0 = arith.constant 0 : i32
    return %arg0, %c0_i32, %arg1 : i32, i32, i32
  }
  func.func @transform_2(%arg0: i32, %arg1: i32) -> (i32, i32) {
    %c0_i32 = arith.constant 0 : i32
    %c0_i32_0 = arith.constant 0 : i32
    %c0_i32_1 = arith.constant 0 : i32
    return %c0_i32, %c0_i32_0 : i32, i32
  }
  func.func @transform_3(%arg0: i32, %arg1: i32) -> (i32, i32, i32) {
    %c0_i32 = arith.constant 0 : i32
    %c0_i32_0 = arith.constant 0 : i32
    return %arg0, %c0_i32, %arg1 : i32, i32, i32
  }
}

module attributes {stable_mosaic.version = 11 : i64} {
  func.func @_mm_bias_stats_kernel(%arg0: i32, %arg1: i32, %arg2: memref<8x72xbf16, #tpu.memory_space<vmem>>, %arg3: memref<1x72x256xbf16, #tpu.memory_space<vmem>>, %arg4: memref<8x1xf32, #tpu.memory_space<vmem>>, %arg5: memref<1x8x256xf32, #tpu.memory_space<vmem>>, %arg6: memref<1x8x1xf32, #tpu.memory_space<vmem>>, %arg7: memref<1x8x1xf32, #tpu.memory_space<vmem>>) attributes {dimension_semantics = [#tpu.dimension_semantics<parallel>, #tpu.dimension_semantics<arbitrary>], iteration_bounds = array<i64: 1, 1>, scalar_prefetch = 0 : i64, scratch_operands = 0 : i64, tpu.core_type = #tpu.core_type<tc>, window_params = [{pipeline_mode = #tpu.pipeline_mode<synchronous>, transform_indices = @transform_0, window_bounds = array<i64: 8, 72>}, {transform_indices = @transform_1, window_bounds = array<i64: 1, 72, 256>}, {pipeline_mode = #tpu.pipeline_mode<synchronous>, transform_indices = @transform_2, window_bounds = array<i64: 8, 1>}, {transform_indices = @transform_3, window_bounds = array<i64: 1, 8, 256>}, {transform_indices = @transform_4, window_bounds = array<i64: 1, 8, 1>}, {transform_indices = @transform_5, window_bounds = array<i64: 1, 8, 1>}]} {
    %c0_i32 = arith.constant 0 : i32
    %0 = arith.cmpi eq, %arg1, %c0_i32 : i32
    %1 = arith.extui %0 : i1 to i32
    %c0_i32_0 = arith.constant 0 : i32
    %2 = arith.cmpi ne, %1, %c0_i32_0 : i32
    scf.if %2 {
      %cst_26 = arith.constant 0.000000e+00 : f32
      %38 = vector.broadcast %cst_26 : f32 to vector<1x8x1xf32>
      %c0_27 = arith.constant 0 : index
      %c0_28 = arith.constant 0 : index
      %c0_29 = arith.constant 0 : index
      %39 = vector.load %arg6[%c0_27, %c0_28, %c0_29] : memref<1x8x1xf32, #tpu.memory_space<vmem>>, vector<1x8x1xf32>
      tpu.vector_store %arg6[%c0_27, %c0_28, %c0_29], %38 {strides = array<i32>} : memref<1x8x1xf32, #tpu.memory_space<vmem>>, vector<1x8x1xf32>,
      %cst_30 = arith.constant 0.000000e+00 : f32
      %40 = vector.broadcast %cst_30 : f32 to vector<1x8x1xf32>
      %c0_31 = arith.constant 0 : index
      %c0_32 = arith.constant 0 : index
      %c0_33 = arith.constant 0 : index
      %41 = vector.load %arg7[%c0_31, %c0_32, %c0_33] : memref<1x8x1xf32, #tpu.memory_space<vmem>>, vector<1x8x1xf32>
      tpu.vector_store %arg7[%c0_31, %c0_32, %c0_33], %40 {strides = array<i32>} : memref<1x8x1xf32, #tpu.memory_space<vmem>>, vector<1x8x1xf32>,
    } else {
    }
    %c0 = arith.constant 0 : index
    %c0_1 = arith.constant 0 : index
    %3 = vector.load %arg2[%c0, %c0_1] : memref<8x72xbf16, #tpu.memory_space<vmem>>, vector<8x72xbf16>
    %c0_2 = arith.constant 0 : index
    %c0_3 = arith.constant 0 : index
    %c0_4 = arith.constant 0 : index
    %4 = vector.load %arg3[%c0_2, %c0_3, %c0_4] : memref<1x72x256xbf16, #tpu.memory_space<vmem>>, vector<1x72x256xbf16>
    %5 = vector.shape_cast %4 : vector<1x72x256xbf16> to vector<72x256xbf16>
    %cst = arith.constant dense<0.000000e+00> : vector<8x256xf32>
    %6 = tpu.matmul %3, %5, %cst {dimension_numbers = #tpu.dot_dimension_numbers<[1], [0], [0], [1], [0, 0, 1, 1], [], []>} : vector<8x72xbf16>, vector<72x256xbf16>, vector<8x256xf32> -> vector<8x256xf32>
    %c0_5 = arith.constant 0 : index
    %c0_6 = arith.constant 0 : index
    %7 = vector.load %arg4[%c0_5, %c0_6] : memref<8x1xf32, #tpu.memory_space<vmem>>, vector<8x1xf32>
    %8 = vector.broadcast %7 : vector<8x1xf32> to vector<8x256xf32>
    %9 = arith.addf %6, %8 : vector<8x256xf32>
    %c0_7 = arith.constant 0 : index
    %c0_8 = arith.constant 0 : index
    %c0_9 = arith.constant 0 : index
    %10 = vector.load %arg5[%c0_7, %c0_8, %c0_9] : memref<1x8x256xf32, #tpu.memory_space<vmem>>, vector<1x8x256xf32>
    %11 = vector.shape_cast %10 : vector<1x8x256xf32> to vector<8x256xf32>
    %12 = vector.shape_cast %9 : vector<8x256xf32> to vector<1x8x256xf32>
    tpu.vector_store %arg5[%c0_7, %c0_8, %c0_9], %12 {strides = array<i32>} : memref<1x8x256xf32, #tpu.memory_space<vmem>>, vector<1x8x256xf32>,
    %c256_i32 = arith.constant 256 : i32
    %13 = arith.muli %arg1, %c256_i32 : i32
    %14 = tpu.iota {dimensions = array<i32: 1>} : vector<8x256xi32>
    %15 = vector.broadcast %13 : i32 to vector<8x256xi32>
    %16 = arith.addi %15, %14 : vector<8x256xi32>
    %c256_i32_10 = arith.constant 256 : i32
    %17 = vector.broadcast %c256_i32_10 : i32 to vector<8x256xi32>
    %18 = arith.cmpi slt, %16, %17 : vector<8x256xi32>
    %cst_11 = arith.constant 0.000000e+00 : f32
    %19 = vector.broadcast %cst_11 : f32 to vector<8x256xf32>
    %20 = arith.select %18, %9, %19 : vector<8x256xi1>, vector<8x256xf32>
    %c0_12 = arith.constant 0 : index
    %c0_13 = arith.constant 0 : index
    %c0_14 = arith.constant 0 : index
    %21 = vector.load %arg6[%c0_12, %c0_13, %c0_14] : memref<1x8x1xf32, #tpu.memory_space<vmem>>, vector<1x8x1xf32>
    %22 = vector.shape_cast %21 : vector<1x8x1xf32> to vector<8x1xf32>
    %cst_15 = arith.constant dense<0.000000e+00> : vector<8xf32>
    %23 = vector.multi_reduction <add>, %20, %cst_15 [1] : vector<8x256xf32> to vector<8xf32>
    %24 = vector.shape_cast %23 : vector<8xf32> to vector<8x1xf32>
    %25 = arith.addf %22, %24 : vector<8x1xf32>
    %c0_16 = arith.constant 0 : index
    %c0_17 = arith.constant 0 : index
    %c0_18 = arith.constant 0 : index
    %26 = vector.load %arg6[%c0_16, %c0_17, %c0_18] : memref<1x8x1xf32, #tpu.memory_space<vmem>>, vector<1x8x1xf32>
    %27 = vector.shape_cast %26 : vector<1x8x1xf32> to vector<8x1xf32>
    %28 = vector.shape_cast %25 : vector<8x1xf32> to vector<1x8x1xf32>
    tpu.vector_store %arg6[%c0_16, %c0_17, %c0_18], %28 {strides = array<i32>} : memref<1x8x1xf32, #tpu.memory_space<vmem>>, vector<1x8x1xf32>,
    %c0_19 = arith.constant 0 : index
    %c0_20 = arith.constant 0 : index
    %c0_21 = arith.constant 0 : index
    %29 = vector.load %arg7[%c0_19, %c0_20, %c0_21] : memref<1x8x1xf32, #tpu.memory_space<vmem>>, vector<1x8x1xf32>
    %30 = vector.shape_cast %29 : vector<1x8x1xf32> to vector<8x1xf32>
    %31 = arith.mulf %20, %20 : vector<8x256xf32>
    %cst_22 = arith.constant dense<0.000000e+00> : vector<8xf32>
    %32 = vector.multi_reduction <add>, %31, %cst_22 [1] : vector<8x256xf32> to vector<8xf32>
    %33 = vector.shape_cast %32 : vector<8xf32> to vector<8x1xf32>
    %34 = arith.addf %30, %33 : vector<8x1xf32>
    %c0_23 = arith.constant 0 : index
    %c0_24 = arith.constant 0 : index
    %c0_25 = arith.constant 0 : index
    %35 = vector.load %arg7[%c0_23, %c0_24, %c0_25] : memref<1x8x1xf32, #tpu.memory_space<vmem>>, vector<1x8x1xf32>
    %36 = vector.shape_cast %35 : vector<1x8x1xf32> to vector<8x1xf32>
    %37 = vector.shape_cast %34 : vector<8x1xf32> to vector<1x8x1xf32>
    tpu.vector_store %arg7[%c0_23, %c0_24, %c0_25], %37 {strides = array<i32>} : memref<1x8x1xf32, #tpu.memory_space<vmem>>, vector<1x8x1xf32>,
    return
  }
  func.func @transform_0(%arg0: i32, %arg1: i32) -> (i32, i32) {
    %c0_i32 = arith.constant 0 : i32
    %c0_i32_0 = arith.constant 0 : i32
    %c0_i32_1 = arith.constant 0 : i32
    return %c0_i32, %c0_i32_0 : i32, i32
  }
  func.func @transform_1(%arg0: i32, %arg1: i32) -> (i32, i32, i32) {
    %c0_i32 = arith.constant 0 : i32
    %c0_i32_0 = arith.constant 0 : i32
    return %arg0, %c0_i32, %arg1 : i32, i32, i32
  }
  func.func @transform_2(%arg0: i32, %arg1: i32) -> (i32, i32) {
    %c0_i32 = arith.constant 0 : i32
    %c0_i32_0 = arith.constant 0 : i32
    %c0_i32_1 = arith.constant 0 : i32
    return %c0_i32, %c0_i32_0 : i32, i32
  }
  func.func @transform_3(%arg0: i32, %arg1: i32) -> (i32, i32, i32) {
    %c0_i32 = arith.constant 0 : i32
    %c0_i32_0 = arith.constant 0 : i32
    return %arg0, %c0_i32, %arg1 : i32, i32, i32
  }
  func.func @transform_4(%arg0: i32, %arg1: i32) -> (i32, i32, i32) {
    %c0_i32 = arith.constant 0 : i32
    %c0_i32_0 = arith.constant 0 : i32
    %c0_i32_1 = arith.constant 0 : i32
    return %arg0, %c0_i32, %c0_i32_0 : i32, i32, i32
  }
  func.func @transform_5(%arg0: i32, %arg1: i32) -> (i32, i32, i32) {
    %c0_i32 = arith.constant 0 : i32
    %c0_i32_0 = arith.constant 0 : i32
    %c0_i32_1 = arith.constant 0 : i32
    return %arg0, %c0_i32, %c0_i32_0 : i32, i32, i32
  }
}

module attributes {stable_mosaic.version = 11 : i64} {
  func.func @_norm_act_kernel(%arg0: i32, %arg1: i32, %arg2: memref<1x8x256xf32, #tpu.memory_space<vmem>>, %arg3: memref<1x8x1xf32, #tpu.memory_space<vmem>>, %arg4: memref<1x8x1xf32, #tpu.memory_space<vmem>>, %arg5: memref<1x8x256xf32, #tpu.memory_space<vmem>>) attributes {dimension_semantics = [#tpu.dimension_semantics<parallel>, #tpu.dimension_semantics<parallel>], iteration_bounds = array<i64: 1, 1>, scalar_prefetch = 0 : i64, scratch_operands = 0 : i64, tpu.core_type = #tpu.core_type<tc>, window_params = [{transform_indices = @transform_0, window_bounds = array<i64: 1, 8, 256>}, {transform_indices = @transform_1, window_bounds = array<i64: 1, 8, 1>}, {transform_indices = @transform_2, window_bounds = array<i64: 1, 8, 1>}, {transform_indices = @transform_3, window_bounds = array<i64: 1, 8, 256>}]} {
    %c0 = arith.constant 0 : index
    %c0_0 = arith.constant 0 : index
    %c0_1 = arith.constant 0 : index
    %0 = vector.load %arg2[%c0, %c0_0, %c0_1] : memref<1x8x256xf32, #tpu.memory_space<vmem>>, vector<1x8x256xf32>
    %1 = vector.shape_cast %0 : vector<1x8x256xf32> to vector<8x256xf32>
    %c0_2 = arith.constant 0 : index
    %c0_3 = arith.constant 0 : index
    %c0_4 = arith.constant 0 : index
    %2 = vector.load %arg3[%c0_2, %c0_3, %c0_4] : memref<1x8x1xf32, #tpu.memory_space<vmem>>, vector<1x8x1xf32>
    %3 = vector.shape_cast %2 : vector<1x8x1xf32> to vector<8x1xf32>
    %4 = vector.broadcast %3 : vector<8x1xf32> to vector<8x256xf32>
    %5 = arith.subf %1, %4 : vector<8x256xf32>
    %c0_5 = arith.constant 0 : index
    %c0_6 = arith.constant 0 : index
    %c0_7 = arith.constant 0 : index
    %6 = vector.load %arg4[%c0_5, %c0_6, %c0_7] : memref<1x8x1xf32, #tpu.memory_space<vmem>>, vector<1x8x1xf32>
    %7 = vector.shape_cast %6 : vector<1x8x1xf32> to vector<8x1xf32>
    %8 = vector.broadcast %7 : vector<8x1xf32> to vector<8x256xf32>
    %9 = arith.mulf %5, %8 : vector<8x256xf32>
    %cst = arith.constant 0.000000e+00 : f32
    %10 = vector.broadcast %cst : f32 to vector<8x256xf32>
    %11 = arith.cmpf oge, %9, %10 : vector<8x256xf32>
    %cst_8 = arith.constant 2.000000e-01 : f32
    %12 = vector.broadcast %cst_8 : f32 to vector<8x256xf32>
    %13 = arith.mulf %12, %9 : vector<8x256xf32>
    %14 = arith.select %11, %9, %13 : vector<8x256xi1>, vector<8x256xf32>
    %c0_9 = arith.constant 0 : index
    %c0_10 = arith.constant 0 : index
    %c0_11 = arith.constant 0 : index
    %15 = vector.load %arg5[%c0_9, %c0_10, %c0_11] : memref<1x8x256xf32, #tpu.memory_space<vmem>>, vector<1x8x256xf32>
    %16 = vector.shape_cast %15 : vector<1x8x256xf32> to vector<8x256xf32>
    %17 = vector.shape_cast %14 : vector<8x256xf32> to vector<1x8x256xf32>
    tpu.vector_store %arg5[%c0_9, %c0_10, %c0_11], %17 {strides = array<i32>} : memref<1x8x256xf32, #tpu.memory_space<vmem>>, vector<1x8x256xf32>,
    return
  }
  func.func @transform_0(%arg0: i32, %arg1: i32) -> (i32, i32, i32) {
    %c0_i32 = arith.constant 0 : i32
    %c0_i32_0 = arith.constant 0 : i32
    return %arg0, %c0_i32, %arg1 : i32, i32, i32
  }
  func.func @transform_1(%arg0: i32, %arg1: i32) -> (i32, i32, i32) {
    %c0_i32 = arith.constant 0 : i32
    %c0_i32_0 = arith.constant 0 : i32
    %c0_i32_1 = arith.constant 0 : i32
    return %arg0, %c0_i32, %c0_i32_0 : i32, i32, i32
  }
  func.func @transform_2(%arg0: i32, %arg1: i32) -> (i32, i32, i32) {
    %c0_i32 = arith.constant 0 : i32
    %c0_i32_0 = arith.constant 0 : i32
    %c0_i32_1 = arith.constant 0 : i32
    return %arg0, %c0_i32, %c0_i32_0 : i32, i32, i32
  }
  func.func @transform_3(%arg0: i32, %arg1: i32) -> (i32, i32, i32) {
    %c0_i32 = arith.constant 0 : i32
    %c0_i32_0 = arith.constant 0 : i32
    return %arg0, %c0_i32, %arg1 : i32, i32, i32
  }
}

module attributes {stable_mosaic.version = 11 : i64} {
  func.func @_mm_bias_stats_kernel(%arg0: i32, %arg1: i32, %arg2: memref<16x72xbf16, #tpu.memory_space<vmem>>, %arg3: memref<1x72x128xbf16, #tpu.memory_space<vmem>>, %arg4: memref<16x1xf32, #tpu.memory_space<vmem>>, %arg5: memref<1x16x128xf32, #tpu.memory_space<vmem>>, %arg6: memref<1x16x1xf32, #tpu.memory_space<vmem>>, %arg7: memref<1x16x1xf32, #tpu.memory_space<vmem>>) attributes {dimension_semantics = [#tpu.dimension_semantics<parallel>, #tpu.dimension_semantics<arbitrary>], iteration_bounds = array<i64: 1, 1>, scalar_prefetch = 0 : i64, scratch_operands = 0 : i64, tpu.core_type = #tpu.core_type<tc>, window_params = [{pipeline_mode = #tpu.pipeline_mode<synchronous>, transform_indices = @transform_0, window_bounds = array<i64: 16, 72>}, {transform_indices = @transform_1, window_bounds = array<i64: 1, 72, 128>}, {pipeline_mode = #tpu.pipeline_mode<synchronous>, transform_indices = @transform_2, window_bounds = array<i64: 16, 1>}, {transform_indices = @transform_3, window_bounds = array<i64: 1, 16, 128>}, {transform_indices = @transform_4, window_bounds = array<i64: 1, 16, 1>}, {transform_indices = @transform_5, window_bounds = array<i64: 1, 16, 1>}]} {
    %c0_i32 = arith.constant 0 : i32
    %0 = arith.cmpi eq, %arg1, %c0_i32 : i32
    %1 = arith.extui %0 : i1 to i32
    %c0_i32_0 = arith.constant 0 : i32
    %2 = arith.cmpi ne, %1, %c0_i32_0 : i32
    scf.if %2 {
      %cst_25 = arith.constant 0.000000e+00 : f32
      %38 = vector.broadcast %cst_25 : f32 to vector<1x16x1xf32>
      %c0_26 = arith.constant 0 : index
      %c0_27 = arith.constant 0 : index
      %c0_28 = arith.constant 0 : index
      %39 = vector.load %arg6[%c0_26, %c0_27, %c0_28] : memref<1x16x1xf32, #tpu.memory_space<vmem>>, vector<1x16x1xf32>
      tpu.vector_store %arg6[%c0_26, %c0_27, %c0_28], %38 {strides = array<i32>} : memref<1x16x1xf32, #tpu.memory_space<vmem>>, vector<1x16x1xf32>,
      %cst_29 = arith.constant 0.000000e+00 : f32
      %40 = vector.broadcast %cst_29 : f32 to vector<1x16x1xf32>
      %c0_30 = arith.constant 0 : index
      %c0_31 = arith.constant 0 : index
      %c0_32 = arith.constant 0 : index
      %41 = vector.load %arg7[%c0_30, %c0_31, %c0_32] : memref<1x16x1xf32, #tpu.memory_space<vmem>>, vector<1x16x1xf32>
      tpu.vector_store %arg7[%c0_30, %c0_31, %c0_32], %40 {strides = array<i32>} : memref<1x16x1xf32, #tpu.memory_space<vmem>>, vector<1x16x1xf32>,
    } else {
    }
    %c0 = arith.constant 0 : index
    %c0_1 = arith.constant 0 : index
    %3 = vector.load %arg2[%c0, %c0_1] : memref<16x72xbf16, #tpu.memory_space<vmem>>, vector<16x72xbf16>
    %c0_2 = arith.constant 0 : index
    %c0_3 = arith.constant 0 : index
    %c0_4 = arith.constant 0 : index
    %4 = vector.load %arg3[%c0_2, %c0_3, %c0_4] : memref<1x72x128xbf16, #tpu.memory_space<vmem>>, vector<1x72x128xbf16>
    %5 = vector.shape_cast %4 : vector<1x72x128xbf16> to vector<72x128xbf16>
    %cst = arith.constant dense<0.000000e+00> : vector<16x128xf32>
    %6 = tpu.matmul %3, %5, %cst {dimension_numbers = #tpu.dot_dimension_numbers<[1], [0], [0], [1], [0, 0, 1, 1], [], []>} : vector<16x72xbf16>, vector<72x128xbf16>, vector<16x128xf32> -> vector<16x128xf32>
    %c0_5 = arith.constant 0 : index
    %c0_6 = arith.constant 0 : index
    %7 = vector.load %arg4[%c0_5, %c0_6] : memref<16x1xf32, #tpu.memory_space<vmem>>, vector<16x1xf32>
    %8 = vector.broadcast %7 : vector<16x1xf32> to vector<16x128xf32>
    %9 = arith.addf %6, %8 : vector<16x128xf32>
    %c0_7 = arith.constant 0 : index
    %c0_8 = arith.constant 0 : index
    %c0_9 = arith.constant 0 : index
    %10 = vector.load %arg5[%c0_7, %c0_8, %c0_9] : memref<1x16x128xf32, #tpu.memory_space<vmem>>, vector<1x16x128xf32>
    %11 = vector.shape_cast %10 : vector<1x16x128xf32> to vector<16x128xf32>
    %12 = vector.shape_cast %9 : vector<16x128xf32> to vector<1x16x128xf32>
    tpu.vector_store %arg5[%c0_7, %c0_8, %c0_9], %12 {strides = array<i32>} : memref<1x16x128xf32, #tpu.memory_space<vmem>>, vector<1x16x128xf32>,
    %c128_i32 = arith.constant 128 : i32
    %13 = arith.muli %arg1, %c128_i32 : i32
    %14 = tpu.iota {dimensions = array<i32: 1>} : vector<16x128xi32>
    %15 = vector.broadcast %13 : i32 to vector<16x128xi32>
    %16 = arith.addi %15, %14 : vector<16x128xi32>
    %c64_i32 = arith.constant 64 : i32
    %17 = vector.broadcast %c64_i32 : i32 to vector<16x128xi32>
    %18 = arith.cmpi slt, %16, %17 : vector<16x128xi32>
    %cst_10 = arith.constant 0.000000e+00 : f32
    %19 = vector.broadcast %cst_10 : f32 to vector<16x128xf32>
    %20 = arith.select %18, %9, %19 : vector<16x128xi1>, vector<16x128xf32>
    %c0_11 = arith.constant 0 : index
    %c0_12 = arith.constant 0 : index
    %c0_13 = arith.constant 0 : index
    %21 = vector.load %arg6[%c0_11, %c0_12, %c0_13] : memref<1x16x1xf32, #tpu.memory_space<vmem>>, vector<1x16x1xf32>
    %22 = vector.shape_cast %21 : vector<1x16x1xf32> to vector<16x1xf32>
    %cst_14 = arith.constant dense<0.000000e+00> : vector<16xf32>
    %23 = vector.multi_reduction <add>, %20, %cst_14 [1] : vector<16x128xf32> to vector<16xf32>
    %24 = vector.shape_cast %23 : vector<16xf32> to vector<16x1xf32>
    %25 = arith.addf %22, %24 : vector<16x1xf32>
    %c0_15 = arith.constant 0 : index
    %c0_16 = arith.constant 0 : index
    %c0_17 = arith.constant 0 : index
    %26 = vector.load %arg6[%c0_15, %c0_16, %c0_17] : memref<1x16x1xf32, #tpu.memory_space<vmem>>, vector<1x16x1xf32>
    %27 = vector.shape_cast %26 : vector<1x16x1xf32> to vector<16x1xf32>
    %28 = vector.shape_cast %25 : vector<16x1xf32> to vector<1x16x1xf32>
    tpu.vector_store %arg6[%c0_15, %c0_16, %c0_17], %28 {strides = array<i32>} : memref<1x16x1xf32, #tpu.memory_space<vmem>>, vector<1x16x1xf32>,
    %c0_18 = arith.constant 0 : index
    %c0_19 = arith.constant 0 : index
    %c0_20 = arith.constant 0 : index
    %29 = vector.load %arg7[%c0_18, %c0_19, %c0_20] : memref<1x16x1xf32, #tpu.memory_space<vmem>>, vector<1x16x1xf32>
    %30 = vector.shape_cast %29 : vector<1x16x1xf32> to vector<16x1xf32>
    %31 = arith.mulf %20, %20 : vector<16x128xf32>
    %cst_21 = arith.constant dense<0.000000e+00> : vector<16xf32>
    %32 = vector.multi_reduction <add>, %31, %cst_21 [1] : vector<16x128xf32> to vector<16xf32>
    %33 = vector.shape_cast %32 : vector<16xf32> to vector<16x1xf32>
    %34 = arith.addf %30, %33 : vector<16x1xf32>
    %c0_22 = arith.constant 0 : index
    %c0_23 = arith.constant 0 : index
    %c0_24 = arith.constant 0 : index
    %35 = vector.load %arg7[%c0_22, %c0_23, %c0_24] : memref<1x16x1xf32, #tpu.memory_space<vmem>>, vector<1x16x1xf32>
    %36 = vector.shape_cast %35 : vector<1x16x1xf32> to vector<16x1xf32>
    %37 = vector.shape_cast %34 : vector<16x1xf32> to vector<1x16x1xf32>
    tpu.vector_store %arg7[%c0_22, %c0_23, %c0_24], %37 {strides = array<i32>} : memref<1x16x1xf32, #tpu.memory_space<vmem>>, vector<1x16x1xf32>,
    return
  }
  func.func @transform_0(%arg0: i32, %arg1: i32) -> (i32, i32) {
    %c0_i32 = arith.constant 0 : i32
    %c0_i32_0 = arith.constant 0 : i32
    %c0_i32_1 = arith.constant 0 : i32
    return %c0_i32, %c0_i32_0 : i32, i32
  }
  func.func @transform_1(%arg0: i32, %arg1: i32) -> (i32, i32, i32) {
    %c0_i32 = arith.constant 0 : i32
    %c0_i32_0 = arith.constant 0 : i32
    return %arg0, %c0_i32, %arg1 : i32, i32, i32
  }
  func.func @transform_2(%arg0: i32, %arg1: i32) -> (i32, i32) {
    %c0_i32 = arith.constant 0 : i32
    %c0_i32_0 = arith.constant 0 : i32
    %c0_i32_1 = arith.constant 0 : i32
    return %c0_i32, %c0_i32_0 : i32, i32
  }
  func.func @transform_3(%arg0: i32, %arg1: i32) -> (i32, i32, i32) {
    %c0_i32 = arith.constant 0 : i32
    %c0_i32_0 = arith.constant 0 : i32
    return %arg0, %c0_i32, %arg1 : i32, i32, i32
  }
  func.func @transform_4(%arg0: i32, %arg1: i32) -> (i32, i32, i32) {
    %c0_i32 = arith.constant 0 : i32
    %c0_i32_0 = arith.constant 0 : i32
    %c0_i32_1 = arith.constant 0 : i32
    return %arg0, %c0_i32, %c0_i32_0 : i32, i32, i32
  }
  func.func @transform_5(%arg0: i32, %arg1: i32) -> (i32, i32, i32) {
    %c0_i32 = arith.constant 0 : i32
    %c0_i32_0 = arith.constant 0 : i32
    %c0_i32_1 = arith.constant 0 : i32
    return %arg0, %c0_i32, %c0_i32_0 : i32, i32, i32
  }
}

module attributes {stable_mosaic.version = 11 : i64} {
  func.func @_norm_act_kernel(%arg0: i32, %arg1: i32, %arg2: memref<1x16x128xf32, #tpu.memory_space<vmem>>, %arg3: memref<1x16x1xf32, #tpu.memory_space<vmem>>, %arg4: memref<1x16x1xf32, #tpu.memory_space<vmem>>, %arg5: memref<1x16x128xf32, #tpu.memory_space<vmem>>) attributes {dimension_semantics = [#tpu.dimension_semantics<parallel>, #tpu.dimension_semantics<parallel>], iteration_bounds = array<i64: 1, 1>, scalar_prefetch = 0 : i64, scratch_operands = 0 : i64, tpu.core_type = #tpu.core_type<tc>, window_params = [{transform_indices = @transform_0, window_bounds = array<i64: 1, 16, 128>}, {transform_indices = @transform_1, window_bounds = array<i64: 1, 16, 1>}, {transform_indices = @transform_2, window_bounds = array<i64: 1, 16, 1>}, {transform_indices = @transform_3, window_bounds = array<i64: 1, 16, 128>}]} {
    %c0 = arith.constant 0 : index
    %c0_0 = arith.constant 0 : index
    %c0_1 = arith.constant 0 : index
    %0 = vector.load %arg2[%c0, %c0_0, %c0_1] : memref<1x16x128xf32, #tpu.memory_space<vmem>>, vector<1x16x128xf32>
    %1 = vector.shape_cast %0 : vector<1x16x128xf32> to vector<16x128xf32>
    %c0_2 = arith.constant 0 : index
    %c0_3 = arith.constant 0 : index
    %c0_4 = arith.constant 0 : index
    %2 = vector.load %arg3[%c0_2, %c0_3, %c0_4] : memref<1x16x1xf32, #tpu.memory_space<vmem>>, vector<1x16x1xf32>
    %3 = vector.shape_cast %2 : vector<1x16x1xf32> to vector<16x1xf32>
    %4 = vector.broadcast %3 : vector<16x1xf32> to vector<16x128xf32>
    %5 = arith.subf %1, %4 : vector<16x128xf32>
    %c0_5 = arith.constant 0 : index
    %c0_6 = arith.constant 0 : index
    %c0_7 = arith.constant 0 : index
    %6 = vector.load %arg4[%c0_5, %c0_6, %c0_7] : memref<1x16x1xf32, #tpu.memory_space<vmem>>, vector<1x16x1xf32>
    %7 = vector.shape_cast %6 : vector<1x16x1xf32> to vector<16x1xf32>
    %8 = vector.broadcast %7 : vector<16x1xf32> to vector<16x128xf32>
    %9 = arith.mulf %5, %8 : vector<16x128xf32>
    %cst = arith.constant 0.000000e+00 : f32
    %10 = vector.broadcast %cst : f32 to vector<16x128xf32>
    %11 = arith.cmpf oge, %9, %10 : vector<16x128xf32>
    %cst_8 = arith.constant 2.000000e-01 : f32
    %12 = vector.broadcast %cst_8 : f32 to vector<16x128xf32>
    %13 = arith.mulf %12, %9 : vector<16x128xf32>
    %14 = arith.select %11, %9, %13 : vector<16x128xi1>, vector<16x128xf32>
    %c0_9 = arith.constant 0 : index
    %c0_10 = arith.constant 0 : index
    %c0_11 = arith.constant 0 : index
    %15 = vector.load %arg5[%c0_9, %c0_10, %c0_11] : memref<1x16x128xf32, #tpu.memory_space<vmem>>, vector<1x16x128xf32>
    %16 = vector.shape_cast %15 : vector<1x16x128xf32> to vector<16x128xf32>
    %17 = vector.shape_cast %14 : vector<16x128xf32> to vector<1x16x128xf32>
    tpu.vector_store %arg5[%c0_9, %c0_10, %c0_11], %17 {strides = array<i32>} : memref<1x16x128xf32, #tpu.memory_space<vmem>>, vector<1x16x128xf32>,
    return
  }
  func.func @transform_0(%arg0: i32, %arg1: i32) -> (i32, i32, i32) {
    %c0_i32 = arith.constant 0 : i32
    %c0_i32_0 = arith.constant 0 : i32
    return %arg0, %c0_i32, %arg1 : i32, i32, i32
  }
  func.func @transform_1(%arg0: i32, %arg1: i32) -> (i32, i32, i32) {
    %c0_i32 = arith.constant 0 : i32
    %c0_i32_0 = arith.constant 0 : i32
    %c0_i32_1 = arith.constant 0 : i32
    return %arg0, %c0_i32, %c0_i32_0 : i32, i32, i32
  }
  func.func @transform_2(%arg0: i32, %arg1: i32) -> (i32, i32, i32) {
    %c0_i32 = arith.constant 0 : i32
    %c0_i32_0 = arith.constant 0 : i32
    %c0_i32_1 = arith.constant 0 : i32
    return %arg0, %c0_i32, %c0_i32_0 : i32, i32, i32
  }
  func.func @transform_3(%arg0: i32, %arg1: i32) -> (i32, i32, i32) {
    %c0_i32 = arith.constant 0 : i32
    %c0_i32_0 = arith.constant 0 : i32
    return %arg0, %c0_i32, %arg1 : i32, i32, i32
  }
}

module attributes {stable_mosaic.version = 11 : i64} {
  func.func @_mm_bias_stats_kernel(%arg0: i32, %arg1: i32, %arg2: memref<16x144xbf16, #tpu.memory_space<vmem>>, %arg3: memref<1x144x128xbf16, #tpu.memory_space<vmem>>, %arg4: memref<16x1xf32, #tpu.memory_space<vmem>>, %arg5: memref<1x16x128xf32, #tpu.memory_space<vmem>>, %arg6: memref<1x16x1xf32, #tpu.memory_space<vmem>>, %arg7: memref<1x16x1xf32, #tpu.memory_space<vmem>>) attributes {dimension_semantics = [#tpu.dimension_semantics<parallel>, #tpu.dimension_semantics<arbitrary>], iteration_bounds = array<i64: 1, 1>, scalar_prefetch = 0 : i64, scratch_operands = 0 : i64, tpu.core_type = #tpu.core_type<tc>, window_params = [{pipeline_mode = #tpu.pipeline_mode<synchronous>, transform_indices = @transform_0, window_bounds = array<i64: 16, 144>}, {transform_indices = @transform_1, window_bounds = array<i64: 1, 144, 128>}, {pipeline_mode = #tpu.pipeline_mode<synchronous>, transform_indices = @transform_2, window_bounds = array<i64: 16, 1>}, {transform_indices = @transform_3, window_bounds = array<i64: 1, 16, 128>}, {transform_indices = @transform_4, window_bounds = array<i64: 1, 16, 1>}, {transform_indices = @transform_5, window_bounds = array<i64: 1, 16, 1>}]} {
    %c0_i32 = arith.constant 0 : i32
    %0 = arith.cmpi eq, %arg1, %c0_i32 : i32
    %1 = arith.extui %0 : i1 to i32
    %c0_i32_0 = arith.constant 0 : i32
    %2 = arith.cmpi ne, %1, %c0_i32_0 : i32
    scf.if %2 {
      %cst_25 = arith.constant 0.000000e+00 : f32
      %38 = vector.broadcast %cst_25 : f32 to vector<1x16x1xf32>
      %c0_26 = arith.constant 0 : index
      %c0_27 = arith.constant 0 : index
      %c0_28 = arith.constant 0 : index
      %39 = vector.load %arg6[%c0_26, %c0_27, %c0_28] : memref<1x16x1xf32, #tpu.memory_space<vmem>>, vector<1x16x1xf32>
      tpu.vector_store %arg6[%c0_26, %c0_27, %c0_28], %38 {strides = array<i32>} : memref<1x16x1xf32, #tpu.memory_space<vmem>>, vector<1x16x1xf32>,
      %cst_29 = arith.constant 0.000000e+00 : f32
      %40 = vector.broadcast %cst_29 : f32 to vector<1x16x1xf32>
      %c0_30 = arith.constant 0 : index
      %c0_31 = arith.constant 0 : index
      %c0_32 = arith.constant 0 : index
      %41 = vector.load %arg7[%c0_30, %c0_31, %c0_32] : memref<1x16x1xf32, #tpu.memory_space<vmem>>, vector<1x16x1xf32>
      tpu.vector_store %arg7[%c0_30, %c0_31, %c0_32], %40 {strides = array<i32>} : memref<1x16x1xf32, #tpu.memory_space<vmem>>, vector<1x16x1xf32>,
    } else {
    }
    %c0 = arith.constant 0 : index
    %c0_1 = arith.constant 0 : index
    %3 = vector.load %arg2[%c0, %c0_1] : memref<16x144xbf16, #tpu.memory_space<vmem>>, vector<16x144xbf16>
    %c0_2 = arith.constant 0 : index
    %c0_3 = arith.constant 0 : index
    %c0_4 = arith.constant 0 : index
    %4 = vector.load %arg3[%c0_2, %c0_3, %c0_4] : memref<1x144x128xbf16, #tpu.memory_space<vmem>>, vector<1x144x128xbf16>
    %5 = vector.shape_cast %4 : vector<1x144x128xbf16> to vector<144x128xbf16>
    %cst = arith.constant dense<0.000000e+00> : vector<16x128xf32>
    %6 = tpu.matmul %3, %5, %cst {dimension_numbers = #tpu.dot_dimension_numbers<[1], [0], [0], [1], [0, 0, 1, 1], [], []>} : vector<16x144xbf16>, vector<144x128xbf16>, vector<16x128xf32> -> vector<16x128xf32>
    %c0_5 = arith.constant 0 : index
    %c0_6 = arith.constant 0 : index
    %7 = vector.load %arg4[%c0_5, %c0_6] : memref<16x1xf32, #tpu.memory_space<vmem>>, vector<16x1xf32>
    %8 = vector.broadcast %7 : vector<16x1xf32> to vector<16x128xf32>
    %9 = arith.addf %6, %8 : vector<16x128xf32>
    %c0_7 = arith.constant 0 : index
    %c0_8 = arith.constant 0 : index
    %c0_9 = arith.constant 0 : index
    %10 = vector.load %arg5[%c0_7, %c0_8, %c0_9] : memref<1x16x128xf32, #tpu.memory_space<vmem>>, vector<1x16x128xf32>
    %11 = vector.shape_cast %10 : vector<1x16x128xf32> to vector<16x128xf32>
    %12 = vector.shape_cast %9 : vector<16x128xf32> to vector<1x16x128xf32>
    tpu.vector_store %arg5[%c0_7, %c0_8, %c0_9], %12 {strides = array<i32>} : memref<1x16x128xf32, #tpu.memory_space<vmem>>, vector<1x16x128xf32>,
    %c128_i32 = arith.constant 128 : i32
    %13 = arith.muli %arg1, %c128_i32 : i32
    %14 = tpu.iota {dimensions = array<i32: 1>} : vector<16x128xi32>
    %15 = vector.broadcast %13 : i32 to vector<16x128xi32>
    %16 = arith.addi %15, %14 : vector<16x128xi32>
    %c64_i32 = arith.constant 64 : i32
    %17 = vector.broadcast %c64_i32 : i32 to vector<16x128xi32>
    %18 = arith.cmpi slt, %16, %17 : vector<16x128xi32>
    %cst_10 = arith.constant 0.000000e+00 : f32
    %19 = vector.broadcast %cst_10 : f32 to vector<16x128xf32>
    %20 = arith.select %18, %9, %19 : vector<16x128xi1>, vector<16x128xf32>
    %c0_11 = arith.constant 0 : index
    %c0_12 = arith.constant 0 : index
    %c0_13 = arith.constant 0 : index
    %21 = vector.load %arg6[%c0_11, %c0_12, %c0_13] : memref<1x16x1xf32, #tpu.memory_space<vmem>>, vector<1x16x1xf32>
    %22 = vector.shape_cast %21 : vector<1x16x1xf32> to vector<16x1xf32>
    %cst_14 = arith.constant dense<0.000000e+00> : vector<16xf32>
    %23 = vector.multi_reduction <add>, %20, %cst_14 [1] : vector<16x128xf32> to vector<16xf32>
    %24 = vector.shape_cast %23 : vector<16xf32> to vector<16x1xf32>
    %25 = arith.addf %22, %24 : vector<16x1xf32>
    %c0_15 = arith.constant 0 : index
    %c0_16 = arith.constant 0 : index
    %c0_17 = arith.constant 0 : index
    %26 = vector.load %arg6[%c0_15, %c0_16, %c0_17] : memref<1x16x1xf32, #tpu.memory_space<vmem>>, vector<1x16x1xf32>
    %27 = vector.shape_cast %26 : vector<1x16x1xf32> to vector<16x1xf32>
    %28 = vector.shape_cast %25 : vector<16x1xf32> to vector<1x16x1xf32>
    tpu.vector_store %arg6[%c0_15, %c0_16, %c0_17], %28 {strides = array<i32>} : memref<1x16x1xf32, #tpu.memory_space<vmem>>, vector<1x16x1xf32>,
    %c0_18 = arith.constant 0 : index
    %c0_19 = arith.constant 0 : index
    %c0_20 = arith.constant 0 : index
    %29 = vector.load %arg7[%c0_18, %c0_19, %c0_20] : memref<1x16x1xf32, #tpu.memory_space<vmem>>, vector<1x16x1xf32>
    %30 = vector.shape_cast %29 : vector<1x16x1xf32> to vector<16x1xf32>
    %31 = arith.mulf %20, %20 : vector<16x128xf32>
    %cst_21 = arith.constant dense<0.000000e+00> : vector<16xf32>
    %32 = vector.multi_reduction <add>, %31, %cst_21 [1] : vector<16x128xf32> to vector<16xf32>
    %33 = vector.shape_cast %32 : vector<16xf32> to vector<16x1xf32>
    %34 = arith.addf %30, %33 : vector<16x1xf32>
    %c0_22 = arith.constant 0 : index
    %c0_23 = arith.constant 0 : index
    %c0_24 = arith.constant 0 : index
    %35 = vector.load %arg7[%c0_22, %c0_23, %c0_24] : memref<1x16x1xf32, #tpu.memory_space<vmem>>, vector<1x16x1xf32>
    %36 = vector.shape_cast %35 : vector<1x16x1xf32> to vector<16x1xf32>
    %37 = vector.shape_cast %34 : vector<16x1xf32> to vector<1x16x1xf32>
    tpu.vector_store %arg7[%c0_22, %c0_23, %c0_24], %37 {strides = array<i32>} : memref<1x16x1xf32, #tpu.memory_space<vmem>>, vector<1x16x1xf32>,
    return
  }
  func.func @transform_0(%arg0: i32, %arg1: i32) -> (i32, i32) {
    %c0_i32 = arith.constant 0 : i32
    %c0_i32_0 = arith.constant 0 : i32
    %c0_i32_1 = arith.constant 0 : i32
    return %c0_i32, %c0_i32_0 : i32, i32
  }
  func.func @transform_1(%arg0: i32, %arg1: i32) -> (i32, i32, i32) {
    %c0_i32 = arith.constant 0 : i32
    %c0_i32_0 = arith.constant 0 : i32
    return %arg0, %c0_i32, %arg1 : i32, i32, i32
  }
  func.func @transform_2(%arg0: i32, %arg1: i32) -> (i32, i32) {
    %c0_i32 = arith.constant 0 : i32
    %c0_i32_0 = arith.constant 0 : i32
    %c0_i32_1 = arith.constant 0 : i32
    return %c0_i32, %c0_i32_0 : i32, i32
  }
  func.func @transform_3(%arg0: i32, %arg1: i32) -> (i32, i32, i32) {
    %c0_i32 = arith.constant 0 : i32
    %c0_i32_0 = arith.constant 0 : i32
    return %arg0, %c0_i32, %arg1 : i32, i32, i32
  }
  func.func @transform_4(%arg0: i32, %arg1: i32) -> (i32, i32, i32) {
    %c0_i32 = arith.constant 0 : i32
    %c0_i32_0 = arith.constant 0 : i32
    %c0_i32_1 = arith.constant 0 : i32
    return %arg0, %c0_i32, %c0_i32_0 : i32, i32, i32
  }
  func.func @transform_5(%arg0: i32, %arg1: i32) -> (i32, i32, i32) {
    %c0_i32 = arith.constant 0 : i32
    %c0_i32_0 = arith.constant 0 : i32
    %c0_i32_1 = arith.constant 0 : i32
    return %arg0, %c0_i32, %c0_i32_0 : i32, i32, i32
  }
}

module attributes {stable_mosaic.version = 11 : i64} {
  func.func @_mm_bias_stats_kernel(%arg0: i32, %arg1: i32, %arg2: memref<32x144xbf16, #tpu.memory_space<vmem>>, %arg3: memref<1x144x128xbf16, #tpu.memory_space<vmem>>, %arg4: memref<32x1xf32, #tpu.memory_space<vmem>>, %arg5: memref<1x32x128xf32, #tpu.memory_space<vmem>>, %arg6: memref<1x32x1xf32, #tpu.memory_space<vmem>>, %arg7: memref<1x32x1xf32, #tpu.memory_space<vmem>>) attributes {dimension_semantics = [#tpu.dimension_semantics<parallel>, #tpu.dimension_semantics<arbitrary>], iteration_bounds = array<i64: 1, 1>, scalar_prefetch = 0 : i64, scratch_operands = 0 : i64, tpu.core_type = #tpu.core_type<tc>, window_params = [{pipeline_mode = #tpu.pipeline_mode<synchronous>, transform_indices = @transform_0, window_bounds = array<i64: 32, 144>}, {transform_indices = @transform_1, window_bounds = array<i64: 1, 144, 128>}, {pipeline_mode = #tpu.pipeline_mode<synchronous>, transform_indices = @transform_2, window_bounds = array<i64: 32, 1>}, {transform_indices = @transform_3, window_bounds = array<i64: 1, 32, 128>}, {transform_indices = @transform_4, window_bounds = array<i64: 1, 32, 1>}, {transform_indices = @transform_5, window_bounds = array<i64: 1, 32, 1>}]} {
    %c0_i32 = arith.constant 0 : i32
    %0 = arith.cmpi eq, %arg1, %c0_i32 : i32
    %1 = arith.extui %0 : i1 to i32
    %c0_i32_0 = arith.constant 0 : i32
    %2 = arith.cmpi ne, %1, %c0_i32_0 : i32
    scf.if %2 {
      %cst_25 = arith.constant 0.000000e+00 : f32
      %38 = vector.broadcast %cst_25 : f32 to vector<1x32x1xf32>
      %c0_26 = arith.constant 0 : index
      %c0_27 = arith.constant 0 : index
      %c0_28 = arith.constant 0 : index
      %39 = vector.load %arg6[%c0_26, %c0_27, %c0_28] : memref<1x32x1xf32, #tpu.memory_space<vmem>>, vector<1x32x1xf32>
      tpu.vector_store %arg6[%c0_26, %c0_27, %c0_28], %38 {strides = array<i32>} : memref<1x32x1xf32, #tpu.memory_space<vmem>>, vector<1x32x1xf32>,
      %cst_29 = arith.constant 0.000000e+00 : f32
      %40 = vector.broadcast %cst_29 : f32 to vector<1x32x1xf32>
      %c0_30 = arith.constant 0 : index
      %c0_31 = arith.constant 0 : index
      %c0_32 = arith.constant 0 : index
      %41 = vector.load %arg7[%c0_30, %c0_31, %c0_32] : memref<1x32x1xf32, #tpu.memory_space<vmem>>, vector<1x32x1xf32>
      tpu.vector_store %arg7[%c0_30, %c0_31, %c0_32], %40 {strides = array<i32>} : memref<1x32x1xf32, #tpu.memory_space<vmem>>, vector<1x32x1xf32>,
    } else {
    }
    %c0 = arith.constant 0 : index
    %c0_1 = arith.constant 0 : index
    %3 = vector.load %arg2[%c0, %c0_1] : memref<32x144xbf16, #tpu.memory_space<vmem>>, vector<32x144xbf16>
    %c0_2 = arith.constant 0 : index
    %c0_3 = arith.constant 0 : index
    %c0_4 = arith.constant 0 : index
    %4 = vector.load %arg3[%c0_2, %c0_3, %c0_4] : memref<1x144x128xbf16, #tpu.memory_space<vmem>>, vector<1x144x128xbf16>
    %5 = vector.shape_cast %4 : vector<1x144x128xbf16> to vector<144x128xbf16>
    %cst = arith.constant dense<0.000000e+00> : vector<32x128xf32>
    %6 = tpu.matmul %3, %5, %cst {dimension_numbers = #tpu.dot_dimension_numbers<[1], [0], [0], [1], [0, 0, 1, 1], [], []>} : vector<32x144xbf16>, vector<144x128xbf16>, vector<32x128xf32> -> vector<32x128xf32>
    %c0_5 = arith.constant 0 : index
    %c0_6 = arith.constant 0 : index
    %7 = vector.load %arg4[%c0_5, %c0_6] : memref<32x1xf32, #tpu.memory_space<vmem>>, vector<32x1xf32>
    %8 = vector.broadcast %7 : vector<32x1xf32> to vector<32x128xf32>
    %9 = arith.addf %6, %8 : vector<32x128xf32>
    %c0_7 = arith.constant 0 : index
    %c0_8 = arith.constant 0 : index
    %c0_9 = arith.constant 0 : index
    %10 = vector.load %arg5[%c0_7, %c0_8, %c0_9] : memref<1x32x128xf32, #tpu.memory_space<vmem>>, vector<1x32x128xf32>
    %11 = vector.shape_cast %10 : vector<1x32x128xf32> to vector<32x128xf32>
    %12 = vector.shape_cast %9 : vector<32x128xf32> to vector<1x32x128xf32>
    tpu.vector_store %arg5[%c0_7, %c0_8, %c0_9], %12 {strides = array<i32>} : memref<1x32x128xf32, #tpu.memory_space<vmem>>, vector<1x32x128xf32>,
    %c128_i32 = arith.constant 128 : i32
    %13 = arith.muli %arg1, %c128_i32 : i32
    %14 = tpu.iota {dimensions = array<i32: 1>} : vector<32x128xi32>
    %15 = vector.broadcast %13 : i32 to vector<32x128xi32>
    %16 = arith.addi %15, %14 : vector<32x128xi32>
    %c16_i32 = arith.constant 16 : i32
    %17 = vector.broadcast %c16_i32 : i32 to vector<32x128xi32>
    %18 = arith.cmpi slt, %16, %17 : vector<32x128xi32>
    %cst_10 = arith.constant 0.000000e+00 : f32
    %19 = vector.broadcast %cst_10 : f32 to vector<32x128xf32>
    %20 = arith.select %18, %9, %19 : vector<32x128xi1>, vector<32x128xf32>
    %c0_11 = arith.constant 0 : index
    %c0_12 = arith.constant 0 : index
    %c0_13 = arith.constant 0 : index
    %21 = vector.load %arg6[%c0_11, %c0_12, %c0_13] : memref<1x32x1xf32, #tpu.memory_space<vmem>>, vector<1x32x1xf32>
    %22 = vector.shape_cast %21 : vector<1x32x1xf32> to vector<32x1xf32>
    %cst_14 = arith.constant dense<0.000000e+00> : vector<32xf32>
    %23 = vector.multi_reduction <add>, %20, %cst_14 [1] : vector<32x128xf32> to vector<32xf32>
    %24 = vector.shape_cast %23 : vector<32xf32> to vector<32x1xf32>
    %25 = arith.addf %22, %24 : vector<32x1xf32>
    %c0_15 = arith.constant 0 : index
    %c0_16 = arith.constant 0 : index
    %c0_17 = arith.constant 0 : index
    %26 = vector.load %arg6[%c0_15, %c0_16, %c0_17] : memref<1x32x1xf32, #tpu.memory_space<vmem>>, vector<1x32x1xf32>
    %27 = vector.shape_cast %26 : vector<1x32x1xf32> to vector<32x1xf32>
    %28 = vector.shape_cast %25 : vector<32x1xf32> to vector<1x32x1xf32>
    tpu.vector_store %arg6[%c0_15, %c0_16, %c0_17], %28 {strides = array<i32>} : memref<1x32x1xf32, #tpu.memory_space<vmem>>, vector<1x32x1xf32>,
    %c0_18 = arith.constant 0 : index
    %c0_19 = arith.constant 0 : index
    %c0_20 = arith.constant 0 : index
    %29 = vector.load %arg7[%c0_18, %c0_19, %c0_20] : memref<1x32x1xf32, #tpu.memory_space<vmem>>, vector<1x32x1xf32>
    %30 = vector.shape_cast %29 : vector<1x32x1xf32> to vector<32x1xf32>
    %31 = arith.mulf %20, %20 : vector<32x128xf32>
    %cst_21 = arith.constant dense<0.000000e+00> : vector<32xf32>
    %32 = vector.multi_reduction <add>, %31, %cst_21 [1] : vector<32x128xf32> to vector<32xf32>
    %33 = vector.shape_cast %32 : vector<32xf32> to vector<32x1xf32>
    %34 = arith.addf %30, %33 : vector<32x1xf32>
    %c0_22 = arith.constant 0 : index
    %c0_23 = arith.constant 0 : index
    %c0_24 = arith.constant 0 : index
    %35 = vector.load %arg7[%c0_22, %c0_23, %c0_24] : memref<1x32x1xf32, #tpu.memory_space<vmem>>, vector<1x32x1xf32>
    %36 = vector.shape_cast %35 : vector<1x32x1xf32> to vector<32x1xf32>
    %37 = vector.shape_cast %34 : vector<32x1xf32> to vector<1x32x1xf32>
    tpu.vector_store %arg7[%c0_22, %c0_23, %c0_24], %37 {strides = array<i32>} : memref<1x32x1xf32, #tpu.memory_space<vmem>>, vector<1x32x1xf32>,
    return
  }
  func.func @transform_0(%arg0: i32, %arg1: i32) -> (i32, i32) {
    %c0_i32 = arith.constant 0 : i32
    %c0_i32_0 = arith.constant 0 : i32
    %c0_i32_1 = arith.constant 0 : i32
    return %c0_i32, %c0_i32_0 : i32, i32
  }
  func.func @transform_1(%arg0: i32, %arg1: i32) -> (i32, i32, i32) {
    %c0_i32 = arith.constant 0 : i32
    %c0_i32_0 = arith.constant 0 : i32
    return %arg0, %c0_i32, %arg1 : i32, i32, i32
  }
  func.func @transform_2(%arg0: i32, %arg1: i32) -> (i32, i32) {
    %c0_i32 = arith.constant 0 : i32
    %c0_i32_0 = arith.constant 0 : i32
    %c0_i32_1 = arith.constant 0 : i32
    return %c0_i32, %c0_i32_0 : i32, i32
  }
  func.func @transform_3(%arg0: i32, %arg1: i32) -> (i32, i32, i32) {
    %c0_i32 = arith.constant 0 : i32
    %c0_i32_0 = arith.constant 0 : i32
    return %arg0, %c0_i32, %arg1 : i32, i32, i32
  }
  func.func @transform_4(%arg0: i32, %arg1: i32) -> (i32, i32, i32) {
    %c0_i32 = arith.constant 0 : i32
    %c0_i32_0 = arith.constant 0 : i32
    %c0_i32_1 = arith.constant 0 : i32
    return %arg0, %c0_i32, %c0_i32_0 : i32, i32, i32
  }
  func.func @transform_5(%arg0: i32, %arg1: i32) -> (i32, i32, i32) {
    %c0_i32 = arith.constant 0 : i32
    %c0_i32_0 = arith.constant 0 : i32
    %c0_i32_1 = arith.constant 0 : i32
    return %arg0, %c0_i32, %c0_i32_0 : i32, i32, i32
  }
}

module attributes {stable_mosaic.version = 11 : i64} {
  func.func @_norm_act_kernel(%arg0: i32, %arg1: i32, %arg2: memref<1x32x128xf32, #tpu.memory_space<vmem>>, %arg3: memref<1x32x1xf32, #tpu.memory_space<vmem>>, %arg4: memref<1x32x1xf32, #tpu.memory_space<vmem>>, %arg5: memref<1x32x128xf32, #tpu.memory_space<vmem>>) attributes {dimension_semantics = [#tpu.dimension_semantics<parallel>, #tpu.dimension_semantics<parallel>], iteration_bounds = array<i64: 1, 1>, scalar_prefetch = 0 : i64, scratch_operands = 0 : i64, tpu.core_type = #tpu.core_type<tc>, window_params = [{transform_indices = @transform_0, window_bounds = array<i64: 1, 32, 128>}, {transform_indices = @transform_1, window_bounds = array<i64: 1, 32, 1>}, {transform_indices = @transform_2, window_bounds = array<i64: 1, 32, 1>}, {transform_indices = @transform_3, window_bounds = array<i64: 1, 32, 128>}]} {
    %c0 = arith.constant 0 : index
    %c0_0 = arith.constant 0 : index
    %c0_1 = arith.constant 0 : index
    %0 = vector.load %arg2[%c0, %c0_0, %c0_1] : memref<1x32x128xf32, #tpu.memory_space<vmem>>, vector<1x32x128xf32>
    %1 = vector.shape_cast %0 : vector<1x32x128xf32> to vector<32x128xf32>
    %c0_2 = arith.constant 0 : index
    %c0_3 = arith.constant 0 : index
    %c0_4 = arith.constant 0 : index
    %2 = vector.load %arg3[%c0_2, %c0_3, %c0_4] : memref<1x32x1xf32, #tpu.memory_space<vmem>>, vector<1x32x1xf32>
    %3 = vector.shape_cast %2 : vector<1x32x1xf32> to vector<32x1xf32>
    %4 = vector.broadcast %3 : vector<32x1xf32> to vector<32x128xf32>
    %5 = arith.subf %1, %4 : vector<32x128xf32>
    %c0_5 = arith.constant 0 : index
    %c0_6 = arith.constant 0 : index
    %c0_7 = arith.constant 0 : index
    %6 = vector.load %arg4[%c0_5, %c0_6, %c0_7] : memref<1x32x1xf32, #tpu.memory_space<vmem>>, vector<1x32x1xf32>
    %7 = vector.shape_cast %6 : vector<1x32x1xf32> to vector<32x1xf32>
    %8 = vector.broadcast %7 : vector<32x1xf32> to vector<32x128xf32>
    %9 = arith.mulf %5, %8 : vector<32x128xf32>
    %cst = arith.constant 0.000000e+00 : f32
    %10 = vector.broadcast %cst : f32 to vector<32x128xf32>
    %11 = arith.cmpf oge, %9, %10 : vector<32x128xf32>
    %cst_8 = arith.constant 2.000000e-01 : f32
    %12 = vector.broadcast %cst_8 : f32 to vector<32x128xf32>
    %13 = arith.mulf %12, %9 : vector<32x128xf32>
    %14 = arith.select %11, %9, %13 : vector<32x128xi1>, vector<32x128xf32>
    %c0_9 = arith.constant 0 : index
    %c0_10 = arith.constant 0 : index
    %c0_11 = arith.constant 0 : index
    %15 = vector.load %arg5[%c0_9, %c0_10, %c0_11] : memref<1x32x128xf32, #tpu.memory_space<vmem>>, vector<1x32x128xf32>
    %16 = vector.shape_cast %15 : vector<1x32x128xf32> to vector<32x128xf32>
    %17 = vector.shape_cast %14 : vector<32x128xf32> to vector<1x32x128xf32>
    tpu.vector_store %arg5[%c0_9, %c0_10, %c0_11], %17 {strides = array<i32>} : memref<1x32x128xf32, #tpu.memory_space<vmem>>, vector<1x32x128xf32>,
    return
  }
  func.func @transform_0(%arg0: i32, %arg1: i32) -> (i32, i32, i32) {
    %c0_i32 = arith.constant 0 : i32
    %c0_i32_0 = arith.constant 0 : i32
    return %arg0, %c0_i32, %arg1 : i32, i32, i32
  }
  func.func @transform_1(%arg0: i32, %arg1: i32) -> (i32, i32, i32) {
    %c0_i32 = arith.constant 0 : i32
    %c0_i32_0 = arith.constant 0 : i32
    %c0_i32_1 = arith.constant 0 : i32
    return %arg0, %c0_i32, %c0_i32_0 : i32, i32, i32
  }
  func.func @transform_2(%arg0: i32, %arg1: i32) -> (i32, i32, i32) {
    %c0_i32 = arith.constant 0 : i32
    %c0_i32_0 = arith.constant 0 : i32
    %c0_i32_1 = arith.constant 0 : i32
    return %arg0, %c0_i32, %c0_i32_0 : i32, i32, i32
  }
  func.func @transform_3(%arg0: i32, %arg1: i32) -> (i32, i32, i32) {
    %c0_i32 = arith.constant 0 : i32
    %c0_i32_0 = arith.constant 0 : i32
    return %arg0, %c0_i32, %arg1 : i32, i32, i32
  }
}

module attributes {stable_mosaic.version = 11 : i64} {
  func.func @_mm_bias_stats_kernel(%arg0: i32, %arg1: i32, %arg2: memref<32x288xbf16, #tpu.memory_space<vmem>>, %arg3: memref<1x288x128xbf16, #tpu.memory_space<vmem>>, %arg4: memref<32x1xf32, #tpu.memory_space<vmem>>, %arg5: memref<1x32x128xf32, #tpu.memory_space<vmem>>, %arg6: memref<1x32x1xf32, #tpu.memory_space<vmem>>, %arg7: memref<1x32x1xf32, #tpu.memory_space<vmem>>) attributes {dimension_semantics = [#tpu.dimension_semantics<parallel>, #tpu.dimension_semantics<arbitrary>], iteration_bounds = array<i64: 1, 1>, scalar_prefetch = 0 : i64, scratch_operands = 0 : i64, tpu.core_type = #tpu.core_type<tc>, window_params = [{pipeline_mode = #tpu.pipeline_mode<synchronous>, transform_indices = @transform_0, window_bounds = array<i64: 32, 288>}, {transform_indices = @transform_1, window_bounds = array<i64: 1, 288, 128>}, {pipeline_mode = #tpu.pipeline_mode<synchronous>, transform_indices = @transform_2, window_bounds = array<i64: 32, 1>}, {transform_indices = @transform_3, window_bounds = array<i64: 1, 32, 128>}, {transform_indices = @transform_4, window_bounds = array<i64: 1, 32, 1>}, {transform_indices = @transform_5, window_bounds = array<i64: 1, 32, 1>}]} {
    %c0_i32 = arith.constant 0 : i32
    %0 = arith.cmpi eq, %arg1, %c0_i32 : i32
    %1 = arith.extui %0 : i1 to i32
    %c0_i32_0 = arith.constant 0 : i32
    %2 = arith.cmpi ne, %1, %c0_i32_0 : i32
    scf.if %2 {
      %cst_25 = arith.constant 0.000000e+00 : f32
      %38 = vector.broadcast %cst_25 : f32 to vector<1x32x1xf32>
      %c0_26 = arith.constant 0 : index
      %c0_27 = arith.constant 0 : index
      %c0_28 = arith.constant 0 : index
      %39 = vector.load %arg6[%c0_26, %c0_27, %c0_28] : memref<1x32x1xf32, #tpu.memory_space<vmem>>, vector<1x32x1xf32>
      tpu.vector_store %arg6[%c0_26, %c0_27, %c0_28], %38 {strides = array<i32>} : memref<1x32x1xf32, #tpu.memory_space<vmem>>, vector<1x32x1xf32>,
      %cst_29 = arith.constant 0.000000e+00 : f32
      %40 = vector.broadcast %cst_29 : f32 to vector<1x32x1xf32>
      %c0_30 = arith.constant 0 : index
      %c0_31 = arith.constant 0 : index
      %c0_32 = arith.constant 0 : index
      %41 = vector.load %arg7[%c0_30, %c0_31, %c0_32] : memref<1x32x1xf32, #tpu.memory_space<vmem>>, vector<1x32x1xf32>
      tpu.vector_store %arg7[%c0_30, %c0_31, %c0_32], %40 {strides = array<i32>} : memref<1x32x1xf32, #tpu.memory_space<vmem>>, vector<1x32x1xf32>,
    } else {
    }
    %c0 = arith.constant 0 : index
    %c0_1 = arith.constant 0 : index
    %3 = vector.load %arg2[%c0, %c0_1] : memref<32x288xbf16, #tpu.memory_space<vmem>>, vector<32x288xbf16>
    %c0_2 = arith.constant 0 : index
    %c0_3 = arith.constant 0 : index
    %c0_4 = arith.constant 0 : index
    %4 = vector.load %arg3[%c0_2, %c0_3, %c0_4] : memref<1x288x128xbf16, #tpu.memory_space<vmem>>, vector<1x288x128xbf16>
    %5 = vector.shape_cast %4 : vector<1x288x128xbf16> to vector<288x128xbf16>
    %cst = arith.constant dense<0.000000e+00> : vector<32x128xf32>
    %6 = tpu.matmul %3, %5, %cst {dimension_numbers = #tpu.dot_dimension_numbers<[1], [0], [0], [1], [0, 0, 1, 1], [], []>} : vector<32x288xbf16>, vector<288x128xbf16>, vector<32x128xf32> -> vector<32x128xf32>
    %c0_5 = arith.constant 0 : index
    %c0_6 = arith.constant 0 : index
    %7 = vector.load %arg4[%c0_5, %c0_6] : memref<32x1xf32, #tpu.memory_space<vmem>>, vector<32x1xf32>
    %8 = vector.broadcast %7 : vector<32x1xf32> to vector<32x128xf32>
    %9 = arith.addf %6, %8 : vector<32x128xf32>
    %c0_7 = arith.constant 0 : index
    %c0_8 = arith.constant 0 : index
    %c0_9 = arith.constant 0 : index
    %10 = vector.load %arg5[%c0_7, %c0_8, %c0_9] : memref<1x32x128xf32, #tpu.memory_space<vmem>>, vector<1x32x128xf32>
    %11 = vector.shape_cast %10 : vector<1x32x128xf32> to vector<32x128xf32>
    %12 = vector.shape_cast %9 : vector<32x128xf32> to vector<1x32x128xf32>
    tpu.vector_store %arg5[%c0_7, %c0_8, %c0_9], %12 {strides = array<i32>} : memref<1x32x128xf32, #tpu.memory_space<vmem>>, vector<1x32x128xf32>,
    %c128_i32 = arith.constant 128 : i32
    %13 = arith.muli %arg1, %c128_i32 : i32
    %14 = tpu.iota {dimensions = array<i32: 1>} : vector<32x128xi32>
    %15 = vector.broadcast %13 : i32 to vector<32x128xi32>
    %16 = arith.addi %15, %14 : vector<32x128xi32>
    %c16_i32 = arith.constant 16 : i32
    %17 = vector.broadcast %c16_i32 : i32 to vector<32x128xi32>
    %18 = arith.cmpi slt, %16, %17 : vector<32x128xi32>
    %cst_10 = arith.constant 0.000000e+00 : f32
    %19 = vector.broadcast %cst_10 : f32 to vector<32x128xf32>
    %20 = arith.select %18, %9, %19 : vector<32x128xi1>, vector<32x128xf32>
    %c0_11 = arith.constant 0 : index
    %c0_12 = arith.constant 0 : index
    %c0_13 = arith.constant 0 : index
    %21 = vector.load %arg6[%c0_11, %c0_12, %c0_13] : memref<1x32x1xf32, #tpu.memory_space<vmem>>, vector<1x32x1xf32>
    %22 = vector.shape_cast %21 : vector<1x32x1xf32> to vector<32x1xf32>
    %cst_14 = arith.constant dense<0.000000e+00> : vector<32xf32>
    %23 = vector.multi_reduction <add>, %20, %cst_14 [1] : vector<32x128xf32> to vector<32xf32>
    %24 = vector.shape_cast %23 : vector<32xf32> to vector<32x1xf32>
    %25 = arith.addf %22, %24 : vector<32x1xf32>
    %c0_15 = arith.constant 0 : index
    %c0_16 = arith.constant 0 : index
    %c0_17 = arith.constant 0 : index
    %26 = vector.load %arg6[%c0_15, %c0_16, %c0_17] : memref<1x32x1xf32, #tpu.memory_space<vmem>>, vector<1x32x1xf32>
    %27 = vector.shape_cast %26 : vector<1x32x1xf32> to vector<32x1xf32>
    %28 = vector.shape_cast %25 : vector<32x1xf32> to vector<1x32x1xf32>
    tpu.vector_store %arg6[%c0_15, %c0_16, %c0_17], %28 {strides = array<i32>} : memref<1x32x1xf32, #tpu.memory_space<vmem>>, vector<1x32x1xf32>,
    %c0_18 = arith.constant 0 : index
    %c0_19 = arith.constant 0 : index
    %c0_20 = arith.constant 0 : index
    %29 = vector.load %arg7[%c0_18, %c0_19, %c0_20] : memref<1x32x1xf32, #tpu.memory_space<vmem>>, vector<1x32x1xf32>
    %30 = vector.shape_cast %29 : vector<1x32x1xf32> to vector<32x1xf32>
    %31 = arith.mulf %20, %20 : vector<32x128xf32>
    %cst_21 = arith.constant dense<0.000000e+00> : vector<32xf32>
    %32 = vector.multi_reduction <add>, %31, %cst_21 [1] : vector<32x128xf32> to vector<32xf32>
    %33 = vector.shape_cast %32 : vector<32xf32> to vector<32x1xf32>
    %34 = arith.addf %30, %33 : vector<32x1xf32>
    %c0_22 = arith.constant 0 : index
    %c0_23 = arith.constant 0 : index
    %c0_24 = arith.constant 0 : index
    %35 = vector.load %arg7[%c0_22, %c0_23, %c0_24] : memref<1x32x1xf32, #tpu.memory_space<vmem>>, vector<1x32x1xf32>
    %36 = vector.shape_cast %35 : vector<1x32x1xf32> to vector<32x1xf32>
    %37 = vector.shape_cast %34 : vector<32x1xf32> to vector<1x32x1xf32>
    tpu.vector_store %arg7[%c0_22, %c0_23, %c0_24], %37 {strides = array<i32>} : memref<1x32x1xf32, #tpu.memory_space<vmem>>, vector<1x32x1xf32>,
    return
  }
  func.func @transform_0(%arg0: i32, %arg1: i32) -> (i32, i32) {
    %c0_i32 = arith.constant 0 : i32
    %c0_i32_0 = arith.constant 0 : i32
    %c0_i32_1 = arith.constant 0 : i32
    return %c0_i32, %c0_i32_0 : i32, i32
  }
  func.func @transform_1(%arg0: i32, %arg1: i32) -> (i32, i32, i32) {
    %c0_i32 = arith.constant 0 : i32
    %c0_i32_0 = arith.constant 0 : i32
    return %arg0, %c0_i32, %arg1 : i32, i32, i32
  }
  func.func @transform_2(%arg0: i32, %arg1: i32) -> (i32, i32) {
    %c0_i32 = arith.constant 0 : i32
    %c0_i32_0 = arith.constant 0 : i32
    %c0_i32_1 = arith.constant 0 : i32
    return %c0_i32, %c0_i32_0 : i32, i32
  }
  func.func @transform_3(%arg0: i32, %arg1: i32) -> (i32, i32, i32) {
    %c0_i32 = arith.constant 0 : i32
    %c0_i32_0 = arith.constant 0 : i32
    return %arg0, %c0_i32, %arg1 : i32, i32, i32
  }
  func.func @transform_4(%arg0: i32, %arg1: i32) -> (i32, i32, i32) {
    %c0_i32 = arith.constant 0 : i32
    %c0_i32_0 = arith.constant 0 : i32
    %c0_i32_1 = arith.constant 0 : i32
    return %arg0, %c0_i32, %c0_i32_0 : i32, i32, i32
  }
  func.func @transform_5(%arg0: i32, %arg1: i32) -> (i32, i32, i32) {
    %c0_i32 = arith.constant 0 : i32
    %c0_i32_0 = arith.constant 0 : i32
    %c0_i32_1 = arith.constant 0 : i32
    return %arg0, %c0_i32, %c0_i32_0 : i32, i32, i32
  }
}

module attributes {stable_mosaic.version = 11 : i64} {
  func.func @_mm_bias_stats_kernel(%arg0: i32, %arg1: i32, %arg2: memref<64x32xbf16, #tpu.memory_space<vmem>>, %arg3: memref<1x32x128xbf16, #tpu.memory_space<vmem>>, %arg4: memref<64x1xf32, #tpu.memory_space<vmem>>, %arg5: memref<1x64x128xf32, #tpu.memory_space<vmem>>, %arg6: memref<1x64x1xf32, #tpu.memory_space<vmem>>, %arg7: memref<1x64x1xf32, #tpu.memory_space<vmem>>) attributes {dimension_semantics = [#tpu.dimension_semantics<parallel>, #tpu.dimension_semantics<arbitrary>], iteration_bounds = array<i64: 1, 1>, scalar_prefetch = 0 : i64, scratch_operands = 0 : i64, tpu.core_type = #tpu.core_type<tc>, window_params = [{pipeline_mode = #tpu.pipeline_mode<synchronous>, transform_indices = @transform_0, window_bounds = array<i64: 64, 32>}, {transform_indices = @transform_1, window_bounds = array<i64: 1, 32, 128>}, {pipeline_mode = #tpu.pipeline_mode<synchronous>, transform_indices = @transform_2, window_bounds = array<i64: 64, 1>}, {transform_indices = @transform_3, window_bounds = array<i64: 1, 64, 128>}, {transform_indices = @transform_4, window_bounds = array<i64: 1, 64, 1>}, {transform_indices = @transform_5, window_bounds = array<i64: 1, 64, 1>}]} {
    %c0_i32 = arith.constant 0 : i32
    %0 = arith.cmpi eq, %arg1, %c0_i32 : i32
    %1 = arith.extui %0 : i1 to i32
    %c0_i32_0 = arith.constant 0 : i32
    %2 = arith.cmpi ne, %1, %c0_i32_0 : i32
    scf.if %2 {
      %cst_25 = arith.constant 0.000000e+00 : f32
      %38 = vector.broadcast %cst_25 : f32 to vector<1x64x1xf32>
      %c0_26 = arith.constant 0 : index
      %c0_27 = arith.constant 0 : index
      %c0_28 = arith.constant 0 : index
      %39 = vector.load %arg6[%c0_26, %c0_27, %c0_28] : memref<1x64x1xf32, #tpu.memory_space<vmem>>, vector<1x64x1xf32>
      tpu.vector_store %arg6[%c0_26, %c0_27, %c0_28], %38 {strides = array<i32>} : memref<1x64x1xf32, #tpu.memory_space<vmem>>, vector<1x64x1xf32>,
      %cst_29 = arith.constant 0.000000e+00 : f32
      %40 = vector.broadcast %cst_29 : f32 to vector<1x64x1xf32>
      %c0_30 = arith.constant 0 : index
      %c0_31 = arith.constant 0 : index
      %c0_32 = arith.constant 0 : index
      %41 = vector.load %arg7[%c0_30, %c0_31, %c0_32] : memref<1x64x1xf32, #tpu.memory_space<vmem>>, vector<1x64x1xf32>
      tpu.vector_store %arg7[%c0_30, %c0_31, %c0_32], %40 {strides = array<i32>} : memref<1x64x1xf32, #tpu.memory_space<vmem>>, vector<1x64x1xf32>,
    } else {
    }
    %c0 = arith.constant 0 : index
    %c0_1 = arith.constant 0 : index
    %3 = vector.load %arg2[%c0, %c0_1] : memref<64x32xbf16, #tpu.memory_space<vmem>>, vector<64x32xbf16>
    %c0_2 = arith.constant 0 : index
    %c0_3 = arith.constant 0 : index
    %c0_4 = arith.constant 0 : index
    %4 = vector.load %arg3[%c0_2, %c0_3, %c0_4] : memref<1x32x128xbf16, #tpu.memory_space<vmem>>, vector<1x32x128xbf16>
    %5 = vector.shape_cast %4 : vector<1x32x128xbf16> to vector<32x128xbf16>
    %cst = arith.constant dense<0.000000e+00> : vector<64x128xf32>
    %6 = tpu.matmul %3, %5, %cst {dimension_numbers = #tpu.dot_dimension_numbers<[1], [0], [0], [1], [0, 0, 1, 1], [], []>} : vector<64x32xbf16>, vector<32x128xbf16>, vector<64x128xf32> -> vector<64x128xf32>
    %c0_5 = arith.constant 0 : index
    %c0_6 = arith.constant 0 : index
    %7 = vector.load %arg4[%c0_5, %c0_6] : memref<64x1xf32, #tpu.memory_space<vmem>>, vector<64x1xf32>
    %8 = vector.broadcast %7 : vector<64x1xf32> to vector<64x128xf32>
    %9 = arith.addf %6, %8 : vector<64x128xf32>
    %c0_7 = arith.constant 0 : index
    %c0_8 = arith.constant 0 : index
    %c0_9 = arith.constant 0 : index
    %10 = vector.load %arg5[%c0_7, %c0_8, %c0_9] : memref<1x64x128xf32, #tpu.memory_space<vmem>>, vector<1x64x128xf32>
    %11 = vector.shape_cast %10 : vector<1x64x128xf32> to vector<64x128xf32>
    %12 = vector.shape_cast %9 : vector<64x128xf32> to vector<1x64x128xf32>
    tpu.vector_store %arg5[%c0_7, %c0_8, %c0_9], %12 {strides = array<i32>} : memref<1x64x128xf32, #tpu.memory_space<vmem>>, vector<1x64x128xf32>,
    %c128_i32 = arith.constant 128 : i32
    %13 = arith.muli %arg1, %c128_i32 : i32
    %14 = tpu.iota {dimensions = array<i32: 1>} : vector<64x128xi32>
    %15 = vector.broadcast %13 : i32 to vector<64x128xi32>
    %16 = arith.addi %15, %14 : vector<64x128xi32>
    %c16_i32 = arith.constant 16 : i32
    %17 = vector.broadcast %c16_i32 : i32 to vector<64x128xi32>
    %18 = arith.cmpi slt, %16, %17 : vector<64x128xi32>
    %cst_10 = arith.constant 0.000000e+00 : f32
    %19 = vector.broadcast %cst_10 : f32 to vector<64x128xf32>
    %20 = arith.select %18, %9, %19 : vector<64x128xi1>, vector<64x128xf32>
    %c0_11 = arith.constant 0 : index
    %c0_12 = arith.constant 0 : index
    %c0_13 = arith.constant 0 : index
    %21 = vector.load %arg6[%c0_11, %c0_12, %c0_13] : memref<1x64x1xf32, #tpu.memory_space<vmem>>, vector<1x64x1xf32>
    %22 = vector.shape_cast %21 : vector<1x64x1xf32> to vector<64x1xf32>
    %cst_14 = arith.constant dense<0.000000e+00> : vector<64xf32>
    %23 = vector.multi_reduction <add>, %20, %cst_14 [1] : vector<64x128xf32> to vector<64xf32>
    %24 = vector.shape_cast %23 : vector<64xf32> to vector<64x1xf32>
    %25 = arith.addf %22, %24 : vector<64x1xf32>
    %c0_15 = arith.constant 0 : index
    %c0_16 = arith.constant 0 : index
    %c0_17 = arith.constant 0 : index
    %26 = vector.load %arg6[%c0_15, %c0_16, %c0_17] : memref<1x64x1xf32, #tpu.memory_space<vmem>>, vector<1x64x1xf32>
    %27 = vector.shape_cast %26 : vector<1x64x1xf32> to vector<64x1xf32>
    %28 = vector.shape_cast %25 : vector<64x1xf32> to vector<1x64x1xf32>
    tpu.vector_store %arg6[%c0_15, %c0_16, %c0_17], %28 {strides = array<i32>} : memref<1x64x1xf32, #tpu.memory_space<vmem>>, vector<1x64x1xf32>,
    %c0_18 = arith.constant 0 : index
    %c0_19 = arith.constant 0 : index
    %c0_20 = arith.constant 0 : index
    %29 = vector.load %arg7[%c0_18, %c0_19, %c0_20] : memref<1x64x1xf32, #tpu.memory_space<vmem>>, vector<1x64x1xf32>
    %30 = vector.shape_cast %29 : vector<1x64x1xf32> to vector<64x1xf32>
    %31 = arith.mulf %20, %20 : vector<64x128xf32>
    %cst_21 = arith.constant dense<0.000000e+00> : vector<64xf32>
    %32 = vector.multi_reduction <add>, %31, %cst_21 [1] : vector<64x128xf32> to vector<64xf32>
    %33 = vector.shape_cast %32 : vector<64xf32> to vector<64x1xf32>
    %34 = arith.addf %30, %33 : vector<64x1xf32>
    %c0_22 = arith.constant 0 : index
    %c0_23 = arith.constant 0 : index
    %c0_24 = arith.constant 0 : index
    %35 = vector.load %arg7[%c0_22, %c0_23, %c0_24] : memref<1x64x1xf32, #tpu.memory_space<vmem>>, vector<1x64x1xf32>
    %36 = vector.shape_cast %35 : vector<1x64x1xf32> to vector<64x1xf32>
    %37 = vector.shape_cast %34 : vector<64x1xf32> to vector<1x64x1xf32>
    tpu.vector_store %arg7[%c0_22, %c0_23, %c0_24], %37 {strides = array<i32>} : memref<1x64x1xf32, #tpu.memory_space<vmem>>, vector<1x64x1xf32>,
    return
  }
  func.func @transform_0(%arg0: i32, %arg1: i32) -> (i32, i32) {
    %c0_i32 = arith.constant 0 : i32
    %c0_i32_0 = arith.constant 0 : i32
    %c0_i32_1 = arith.constant 0 : i32
    return %c0_i32, %c0_i32_0 : i32, i32
  }
  func.func @transform_1(%arg0: i32, %arg1: i32) -> (i32, i32, i32) {
    %c0_i32 = arith.constant 0 : i32
    %c0_i32_0 = arith.constant 0 : i32
    return %arg0, %c0_i32, %arg1 : i32, i32, i32
  }
  func.func @transform_2(%arg0: i32, %arg1: i32) -> (i32, i32) {
    %c0_i32 = arith.constant 0 : i32
    %c0_i32_0 = arith.constant 0 : i32
    %c0_i32_1 = arith.constant 0 : i32
    return %c0_i32, %c0_i32_0 : i32, i32
  }
  func.func @transform_3(%arg0: i32, %arg1: i32) -> (i32, i32, i32) {
    %c0_i32 = arith.constant 0 : i32
    %c0_i32_0 = arith.constant 0 : i32
    return %arg0, %c0_i32, %arg1 : i32, i32, i32
  }
  func.func @transform_4(%arg0: i32, %arg1: i32) -> (i32, i32, i32) {
    %c0_i32 = arith.constant 0 : i32
    %c0_i32_0 = arith.constant 0 : i32
    %c0_i32_1 = arith.constant 0 : i32
    return %arg0, %c0_i32, %c0_i32_0 : i32, i32, i32
  }
  func.func @transform_5(%arg0: i32, %arg1: i32) -> (i32, i32, i32) {
    %c0_i32 = arith.constant 0 : i32
    %c0_i32_0 = arith.constant 0 : i32
    %c0_i32_1 = arith.constant 0 : i32
    return %arg0, %c0_i32, %c0_i32_0 : i32, i32, i32
  }
}

module attributes {stable_mosaic.version = 11 : i64} {
  func.func @_mm_bias_stats_kernel(%arg0: i32, %arg1: i32, %arg2: memref<32x16xbf16, #tpu.memory_space<vmem>>, %arg3: memref<1x16x128xbf16, #tpu.memory_space<vmem>>, %arg4: memref<32x1xf32, #tpu.memory_space<vmem>>, %arg5: memref<1x32x128xf32, #tpu.memory_space<vmem>>, %arg6: memref<1x32x1xf32, #tpu.memory_space<vmem>>, %arg7: memref<1x32x1xf32, #tpu.memory_space<vmem>>) attributes {dimension_semantics = [#tpu.dimension_semantics<parallel>, #tpu.dimension_semantics<arbitrary>], iteration_bounds = array<i64: 1, 1>, scalar_prefetch = 0 : i64, scratch_operands = 0 : i64, tpu.core_type = #tpu.core_type<tc>, window_params = [{pipeline_mode = #tpu.pipeline_mode<synchronous>, transform_indices = @transform_0, window_bounds = array<i64: 32, 16>}, {transform_indices = @transform_1, window_bounds = array<i64: 1, 16, 128>}, {pipeline_mode = #tpu.pipeline_mode<synchronous>, transform_indices = @transform_2, window_bounds = array<i64: 32, 1>}, {transform_indices = @transform_3, window_bounds = array<i64: 1, 32, 128>}, {transform_indices = @transform_4, window_bounds = array<i64: 1, 32, 1>}, {transform_indices = @transform_5, window_bounds = array<i64: 1, 32, 1>}]} {
    %c0_i32 = arith.constant 0 : i32
    %0 = arith.cmpi eq, %arg1, %c0_i32 : i32
    %1 = arith.extui %0 : i1 to i32
    %c0_i32_0 = arith.constant 0 : i32
    %2 = arith.cmpi ne, %1, %c0_i32_0 : i32
    scf.if %2 {
      %cst_25 = arith.constant 0.000000e+00 : f32
      %38 = vector.broadcast %cst_25 : f32 to vector<1x32x1xf32>
      %c0_26 = arith.constant 0 : index
      %c0_27 = arith.constant 0 : index
      %c0_28 = arith.constant 0 : index
      %39 = vector.load %arg6[%c0_26, %c0_27, %c0_28] : memref<1x32x1xf32, #tpu.memory_space<vmem>>, vector<1x32x1xf32>
      tpu.vector_store %arg6[%c0_26, %c0_27, %c0_28], %38 {strides = array<i32>} : memref<1x32x1xf32, #tpu.memory_space<vmem>>, vector<1x32x1xf32>,
      %cst_29 = arith.constant 0.000000e+00 : f32
      %40 = vector.broadcast %cst_29 : f32 to vector<1x32x1xf32>
      %c0_30 = arith.constant 0 : index
      %c0_31 = arith.constant 0 : index
      %c0_32 = arith.constant 0 : index
      %41 = vector.load %arg7[%c0_30, %c0_31, %c0_32] : memref<1x32x1xf32, #tpu.memory_space<vmem>>, vector<1x32x1xf32>
      tpu.vector_store %arg7[%c0_30, %c0_31, %c0_32], %40 {strides = array<i32>} : memref<1x32x1xf32, #tpu.memory_space<vmem>>, vector<1x32x1xf32>,
    } else {
    }
    %c0 = arith.constant 0 : index
    %c0_1 = arith.constant 0 : index
    %3 = vector.load %arg2[%c0, %c0_1] : memref<32x16xbf16, #tpu.memory_space<vmem>>, vector<32x16xbf16>
    %c0_2 = arith.constant 0 : index
    %c0_3 = arith.constant 0 : index
    %c0_4 = arith.constant 0 : index
    %4 = vector.load %arg3[%c0_2, %c0_3, %c0_4] : memref<1x16x128xbf16, #tpu.memory_space<vmem>>, vector<1x16x128xbf16>
    %5 = vector.shape_cast %4 : vector<1x16x128xbf16> to vector<16x128xbf16>
    %cst = arith.constant dense<0.000000e+00> : vector<32x128xf32>
    %6 = tpu.matmul %3, %5, %cst {dimension_numbers = #tpu.dot_dimension_numbers<[1], [0], [0], [1], [0, 0, 1, 1], [], []>} : vector<32x16xbf16>, vector<16x128xbf16>, vector<32x128xf32> -> vector<32x128xf32>
    %c0_5 = arith.constant 0 : index
    %c0_6 = arith.constant 0 : index
    %7 = vector.load %arg4[%c0_5, %c0_6] : memref<32x1xf32, #tpu.memory_space<vmem>>, vector<32x1xf32>
    %8 = vector.broadcast %7 : vector<32x1xf32> to vector<32x128xf32>
    %9 = arith.addf %6, %8 : vector<32x128xf32>
    %c0_7 = arith.constant 0 : index
    %c0_8 = arith.constant 0 : index
    %c0_9 = arith.constant 0 : index
    %10 = vector.load %arg5[%c0_7, %c0_8, %c0_9] : memref<1x32x128xf32, #tpu.memory_space<vmem>>, vector<1x32x128xf32>
    %11 = vector.shape_cast %10 : vector<1x32x128xf32> to vector<32x128xf32>
    %12 = vector.shape_cast %9 : vector<32x128xf32> to vector<1x32x128xf32>
    tpu.vector_store %arg5[%c0_7, %c0_8, %c0_9], %12 {strides = array<i32>} : memref<1x32x128xf32, #tpu.memory_space<vmem>>, vector<1x32x128xf32>,
    %c128_i32 = arith.constant 128 : i32
    %13 = arith.muli %arg1, %c128_i32 : i32
    %14 = tpu.iota {dimensions = array<i32: 1>} : vector<32x128xi32>
    %15 = vector.broadcast %13 : i32 to vector<32x128xi32>
    %16 = arith.addi %15, %14 : vector<32x128xi32>
    %c64_i32 = arith.constant 64 : i32
    %17 = vector.broadcast %c64_i32 : i32 to vector<32x128xi32>
    %18 = arith.cmpi slt, %16, %17 : vector<32x128xi32>
    %cst_10 = arith.constant 0.000000e+00 : f32
    %19 = vector.broadcast %cst_10 : f32 to vector<32x128xf32>
    %20 = arith.select %18, %9, %19 : vector<32x128xi1>, vector<32x128xf32>
    %c0_11 = arith.constant 0 : index
    %c0_12 = arith.constant 0 : index
    %c0_13 = arith.constant 0 : index
    %21 = vector.load %arg6[%c0_11, %c0_12, %c0_13] : memref<1x32x1xf32, #tpu.memory_space<vmem>>, vector<1x32x1xf32>
    %22 = vector.shape_cast %21 : vector<1x32x1xf32> to vector<32x1xf32>
    %cst_14 = arith.constant dense<0.000000e+00> : vector<32xf32>
    %23 = vector.multi_reduction <add>, %20, %cst_14 [1] : vector<32x128xf32> to vector<32xf32>
    %24 = vector.shape_cast %23 : vector<32xf32> to vector<32x1xf32>
    %25 = arith.addf %22, %24 : vector<32x1xf32>
    %c0_15 = arith.constant 0 : index
    %c0_16 = arith.constant 0 : index
    %c0_17 = arith.constant 0 : index
    %26 = vector.load %arg6[%c0_15, %c0_16, %c0_17] : memref<1x32x1xf32, #tpu.memory_space<vmem>>, vector<1x32x1xf32>
    %27 = vector.shape_cast %26 : vector<1x32x1xf32> to vector<32x1xf32>
    %28 = vector.shape_cast %25 : vector<32x1xf32> to vector<1x32x1xf32>
    tpu.vector_store %arg6[%c0_15, %c0_16, %c0_17], %28 {strides = array<i32>} : memref<1x32x1xf32, #tpu.memory_space<vmem>>, vector<1x32x1xf32>,
    %c0_18 = arith.constant 0 : index
    %c0_19 = arith.constant 0 : index
    %c0_20 = arith.constant 0 : index
    %29 = vector.load %arg7[%c0_18, %c0_19, %c0_20] : memref<1x32x1xf32, #tpu.memory_space<vmem>>, vector<1x32x1xf32>
    %30 = vector.shape_cast %29 : vector<1x32x1xf32> to vector<32x1xf32>
    %31 = arith.mulf %20, %20 : vector<32x128xf32>
    %cst_21 = arith.constant dense<0.000000e+00> : vector<32xf32>
    %32 = vector.multi_reduction <add>, %31, %cst_21 [1] : vector<32x128xf32> to vector<32xf32>
    %33 = vector.shape_cast %32 : vector<32xf32> to vector<32x1xf32>
    %34 = arith.addf %30, %33 : vector<32x1xf32>
    %c0_22 = arith.constant 0 : index
    %c0_23 = arith.constant 0 : index
    %c0_24 = arith.constant 0 : index
    %35 = vector.load %arg7[%c0_22, %c0_23, %c0_24] : memref<1x32x1xf32, #tpu.memory_space<vmem>>, vector<1x32x1xf32>
    %36 = vector.shape_cast %35 : vector<1x32x1xf32> to vector<32x1xf32>
    %37 = vector.shape_cast %34 : vector<32x1xf32> to vector<1x32x1xf32>
    tpu.vector_store %arg7[%c0_22, %c0_23, %c0_24], %37 {strides = array<i32>} : memref<1x32x1xf32, #tpu.memory_space<vmem>>, vector<1x32x1xf32>,
    return
  }
  func.func @transform_0(%arg0: i32, %arg1: i32) -> (i32, i32) {
    %c0_i32 = arith.constant 0 : i32
    %c0_i32_0 = arith.constant 0 : i32
    %c0_i32_1 = arith.constant 0 : i32
    return %c0_i32, %c0_i32_0 : i32, i32
  }
  func.func @transform_1(%arg0: i32, %arg1: i32) -> (i32, i32, i32) {
    %c0_i32 = arith.constant 0 : i32
    %c0_i32_0 = arith.constant 0 : i32
    return %arg0, %c0_i32, %arg1 : i32, i32, i32
  }
  func.func @transform_2(%arg0: i32, %arg1: i32) -> (i32, i32) {
    %c0_i32 = arith.constant 0 : i32
    %c0_i32_0 = arith.constant 0 : i32
    %c0_i32_1 = arith.constant 0 : i32
    return %c0_i32, %c0_i32_0 : i32, i32
  }
  func.func @transform_3(%arg0: i32, %arg1: i32) -> (i32, i32, i32) {
    %c0_i32 = arith.constant 0 : i32
    %c0_i32_0 = arith.constant 0 : i32
    return %arg0, %c0_i32, %arg1 : i32, i32, i32
  }
  func.func @transform_4(%arg0: i32, %arg1: i32) -> (i32, i32, i32) {
    %c0_i32 = arith.constant 0 : i32
    %c0_i32_0 = arith.constant 0 : i32
    %c0_i32_1 = arith.constant 0 : i32
    return %arg0, %c0_i32, %c0_i32_0 : i32, i32, i32
  }
  func.func @transform_5(%arg0: i32, %arg1: i32) -> (i32, i32, i32) {
    %c0_i32 = arith.constant 0 : i32
    %c0_i32_0 = arith.constant 0 : i32
    %c0_i32_1 = arith.constant 0 : i32
    return %arg0, %c0_i32, %c0_i32_0 : i32, i32, i32
  }
}

module attributes {stable_mosaic.version = 11 : i64} {
  func.func @_mm_bias_stats_kernel(%arg0: i32, %arg1: i32, %arg2: memref<16x288xbf16, #tpu.memory_space<vmem>>, %arg3: memref<1x288x128xbf16, #tpu.memory_space<vmem>>, %arg4: memref<16x1xf32, #tpu.memory_space<vmem>>, %arg5: memref<1x16x128xf32, #tpu.memory_space<vmem>>, %arg6: memref<1x16x1xf32, #tpu.memory_space<vmem>>, %arg7: memref<1x16x1xf32, #tpu.memory_space<vmem>>) attributes {dimension_semantics = [#tpu.dimension_semantics<parallel>, #tpu.dimension_semantics<arbitrary>], iteration_bounds = array<i64: 1, 1>, scalar_prefetch = 0 : i64, scratch_operands = 0 : i64, tpu.core_type = #tpu.core_type<tc>, window_params = [{pipeline_mode = #tpu.pipeline_mode<synchronous>, transform_indices = @transform_0, window_bounds = array<i64: 16, 288>}, {transform_indices = @transform_1, window_bounds = array<i64: 1, 288, 128>}, {pipeline_mode = #tpu.pipeline_mode<synchronous>, transform_indices = @transform_2, window_bounds = array<i64: 16, 1>}, {transform_indices = @transform_3, window_bounds = array<i64: 1, 16, 128>}, {transform_indices = @transform_4, window_bounds = array<i64: 1, 16, 1>}, {transform_indices = @transform_5, window_bounds = array<i64: 1, 16, 1>}]} {
    %c0_i32 = arith.constant 0 : i32
    %0 = arith.cmpi eq, %arg1, %c0_i32 : i32
    %1 = arith.extui %0 : i1 to i32
    %c0_i32_0 = arith.constant 0 : i32
    %2 = arith.cmpi ne, %1, %c0_i32_0 : i32
    scf.if %2 {
      %cst_25 = arith.constant 0.000000e+00 : f32
      %38 = vector.broadcast %cst_25 : f32 to vector<1x16x1xf32>
      %c0_26 = arith.constant 0 : index
      %c0_27 = arith.constant 0 : index
      %c0_28 = arith.constant 0 : index
      %39 = vector.load %arg6[%c0_26, %c0_27, %c0_28] : memref<1x16x1xf32, #tpu.memory_space<vmem>>, vector<1x16x1xf32>
      tpu.vector_store %arg6[%c0_26, %c0_27, %c0_28], %38 {strides = array<i32>} : memref<1x16x1xf32, #tpu.memory_space<vmem>>, vector<1x16x1xf32>,
      %cst_29 = arith.constant 0.000000e+00 : f32
      %40 = vector.broadcast %cst_29 : f32 to vector<1x16x1xf32>
      %c0_30 = arith.constant 0 : index
      %c0_31 = arith.constant 0 : index
      %c0_32 = arith.constant 0 : index
      %41 = vector.load %arg7[%c0_30, %c0_31, %c0_32] : memref<1x16x1xf32, #tpu.memory_space<vmem>>, vector<1x16x1xf32>
      tpu.vector_store %arg7[%c0_30, %c0_31, %c0_32], %40 {strides = array<i32>} : memref<1x16x1xf32, #tpu.memory_space<vmem>>, vector<1x16x1xf32>,
    } else {
    }
    %c0 = arith.constant 0 : index
    %c0_1 = arith.constant 0 : index
    %3 = vector.load %arg2[%c0, %c0_1] : memref<16x288xbf16, #tpu.memory_space<vmem>>, vector<16x288xbf16>
    %c0_2 = arith.constant 0 : index
    %c0_3 = arith.constant 0 : index
    %c0_4 = arith.constant 0 : index
    %4 = vector.load %arg3[%c0_2, %c0_3, %c0_4] : memref<1x288x128xbf16, #tpu.memory_space<vmem>>, vector<1x288x128xbf16>
    %5 = vector.shape_cast %4 : vector<1x288x128xbf16> to vector<288x128xbf16>
    %cst = arith.constant dense<0.000000e+00> : vector<16x128xf32>
    %6 = tpu.matmul %3, %5, %cst {dimension_numbers = #tpu.dot_dimension_numbers<[1], [0], [0], [1], [0, 0, 1, 1], [], []>} : vector<16x288xbf16>, vector<288x128xbf16>, vector<16x128xf32> -> vector<16x128xf32>
    %c0_5 = arith.constant 0 : index
    %c0_6 = arith.constant 0 : index
    %7 = vector.load %arg4[%c0_5, %c0_6] : memref<16x1xf32, #tpu.memory_space<vmem>>, vector<16x1xf32>
    %8 = vector.broadcast %7 : vector<16x1xf32> to vector<16x128xf32>
    %9 = arith.addf %6, %8 : vector<16x128xf32>
    %c0_7 = arith.constant 0 : index
    %c0_8 = arith.constant 0 : index
    %c0_9 = arith.constant 0 : index
    %10 = vector.load %arg5[%c0_7, %c0_8, %c0_9] : memref<1x16x128xf32, #tpu.memory_space<vmem>>, vector<1x16x128xf32>
    %11 = vector.shape_cast %10 : vector<1x16x128xf32> to vector<16x128xf32>
    %12 = vector.shape_cast %9 : vector<16x128xf32> to vector<1x16x128xf32>
    tpu.vector_store %arg5[%c0_7, %c0_8, %c0_9], %12 {strides = array<i32>} : memref<1x16x128xf32, #tpu.memory_space<vmem>>, vector<1x16x128xf32>,
    %c128_i32 = arith.constant 128 : i32
    %13 = arith.muli %arg1, %c128_i32 : i32
    %14 = tpu.iota {dimensions = array<i32: 1>} : vector<16x128xi32>
    %15 = vector.broadcast %13 : i32 to vector<16x128xi32>
    %16 = arith.addi %15, %14 : vector<16x128xi32>
    %c64_i32 = arith.constant 64 : i32
    %17 = vector.broadcast %c64_i32 : i32 to vector<16x128xi32>
    %18 = arith.cmpi slt, %16, %17 : vector<16x128xi32>
    %cst_10 = arith.constant 0.000000e+00 : f32
    %19 = vector.broadcast %cst_10 : f32 to vector<16x128xf32>
    %20 = arith.select %18, %9, %19 : vector<16x128xi1>, vector<16x128xf32>
    %c0_11 = arith.constant 0 : index
    %c0_12 = arith.constant 0 : index
    %c0_13 = arith.constant 0 : index
    %21 = vector.load %arg6[%c0_11, %c0_12, %c0_13] : memref<1x16x1xf32, #tpu.memory_space<vmem>>, vector<1x16x1xf32>
    %22 = vector.shape_cast %21 : vector<1x16x1xf32> to vector<16x1xf32>
    %cst_14 = arith.constant dense<0.000000e+00> : vector<16xf32>
    %23 = vector.multi_reduction <add>, %20, %cst_14 [1] : vector<16x128xf32> to vector<16xf32>
    %24 = vector.shape_cast %23 : vector<16xf32> to vector<16x1xf32>
    %25 = arith.addf %22, %24 : vector<16x1xf32>
    %c0_15 = arith.constant 0 : index
    %c0_16 = arith.constant 0 : index
    %c0_17 = arith.constant 0 : index
    %26 = vector.load %arg6[%c0_15, %c0_16, %c0_17] : memref<1x16x1xf32, #tpu.memory_space<vmem>>, vector<1x16x1xf32>
    %27 = vector.shape_cast %26 : vector<1x16x1xf32> to vector<16x1xf32>
    %28 = vector.shape_cast %25 : vector<16x1xf32> to vector<1x16x1xf32>
    tpu.vector_store %arg6[%c0_15, %c0_16, %c0_17], %28 {strides = array<i32>} : memref<1x16x1xf32, #tpu.memory_space<vmem>>, vector<1x16x1xf32>,
    %c0_18 = arith.constant 0 : index
    %c0_19 = arith.constant 0 : index
    %c0_20 = arith.constant 0 : index
    %29 = vector.load %arg7[%c0_18, %c0_19, %c0_20] : memref<1x16x1xf32, #tpu.memory_space<vmem>>, vector<1x16x1xf32>
    %30 = vector.shape_cast %29 : vector<1x16x1xf32> to vector<16x1xf32>
    %31 = arith.mulf %20, %20 : vector<16x128xf32>
    %cst_21 = arith.constant dense<0.000000e+00> : vector<16xf32>
    %32 = vector.multi_reduction <add>, %31, %cst_21 [1] : vector<16x128xf32> to vector<16xf32>
    %33 = vector.shape_cast %32 : vector<16xf32> to vector<16x1xf32>
    %34 = arith.addf %30, %33 : vector<16x1xf32>
    %c0_22 = arith.constant 0 : index
    %c0_23 = arith.constant 0 : index
    %c0_24 = arith.constant 0 : index
    %35 = vector.load %arg7[%c0_22, %c0_23, %c0_24] : memref<1x16x1xf32, #tpu.memory_space<vmem>>, vector<1x16x1xf32>
    %36 = vector.shape_cast %35 : vector<1x16x1xf32> to vector<16x1xf32>
    %37 = vector.shape_cast %34 : vector<16x1xf32> to vector<1x16x1xf32>
    tpu.vector_store %arg7[%c0_22, %c0_23, %c0_24], %37 {strides = array<i32>} : memref<1x16x1xf32, #tpu.memory_space<vmem>>, vector<1x16x1xf32>,
    return
  }
  func.func @transform_0(%arg0: i32, %arg1: i32) -> (i32, i32) {
    %c0_i32 = arith.constant 0 : i32
    %c0_i32_0 = arith.constant 0 : i32
    %c0_i32_1 = arith.constant 0 : i32
    return %c0_i32, %c0_i32_0 : i32, i32
  }
  func.func @transform_1(%arg0: i32, %arg1: i32) -> (i32, i32, i32) {
    %c0_i32 = arith.constant 0 : i32
    %c0_i32_0 = arith.constant 0 : i32
    return %arg0, %c0_i32, %arg1 : i32, i32, i32
  }
  func.func @transform_2(%arg0: i32, %arg1: i32) -> (i32, i32) {
    %c0_i32 = arith.constant 0 : i32
    %c0_i32_0 = arith.constant 0 : i32
    %c0_i32_1 = arith.constant 0 : i32
    return %c0_i32, %c0_i32_0 : i32, i32
  }
  func.func @transform_3(%arg0: i32, %arg1: i32) -> (i32, i32, i32) {
    %c0_i32 = arith.constant 0 : i32
    %c0_i32_0 = arith.constant 0 : i32
    return %arg0, %c0_i32, %arg1 : i32, i32, i32
  }
  func.func @transform_4(%arg0: i32, %arg1: i32) -> (i32, i32, i32) {
    %c0_i32 = arith.constant 0 : i32
    %c0_i32_0 = arith.constant 0 : i32
    %c0_i32_1 = arith.constant 0 : i32
    return %arg0, %c0_i32, %c0_i32_0 : i32, i32, i32
  }
  func.func @transform_5(%arg0: i32, %arg1: i32) -> (i32, i32, i32) {
    %c0_i32 = arith.constant 0 : i32
    %c0_i32_0 = arith.constant 0 : i32
    %c0_i32_1 = arith.constant 0 : i32
    return %arg0, %c0_i32, %c0_i32_0 : i32, i32, i32
  }
}

module attributes {stable_mosaic.version = 11 : i64} {
  func.func @_mm_bias_stats_kernel(%arg0: i32, %arg1: i32, %arg2: memref<8x144xbf16, #tpu.memory_space<vmem>>, %arg3: memref<1x144x256xbf16, #tpu.memory_space<vmem>>, %arg4: memref<8x1xf32, #tpu.memory_space<vmem>>, %arg5: memref<1x8x256xf32, #tpu.memory_space<vmem>>, %arg6: memref<1x8x1xf32, #tpu.memory_space<vmem>>, %arg7: memref<1x8x1xf32, #tpu.memory_space<vmem>>) attributes {dimension_semantics = [#tpu.dimension_semantics<parallel>, #tpu.dimension_semantics<arbitrary>], iteration_bounds = array<i64: 1, 1>, scalar_prefetch = 0 : i64, scratch_operands = 0 : i64, tpu.core_type = #tpu.core_type<tc>, window_params = [{pipeline_mode = #tpu.pipeline_mode<synchronous>, transform_indices = @transform_0, window_bounds = array<i64: 8, 144>}, {transform_indices = @transform_1, window_bounds = array<i64: 1, 144, 256>}, {pipeline_mode = #tpu.pipeline_mode<synchronous>, transform_indices = @transform_2, window_bounds = array<i64: 8, 1>}, {transform_indices = @transform_3, window_bounds = array<i64: 1, 8, 256>}, {transform_indices = @transform_4, window_bounds = array<i64: 1, 8, 1>}, {transform_indices = @transform_5, window_bounds = array<i64: 1, 8, 1>}]} {
    %c0_i32 = arith.constant 0 : i32
    %0 = arith.cmpi eq, %arg1, %c0_i32 : i32
    %1 = arith.extui %0 : i1 to i32
    %c0_i32_0 = arith.constant 0 : i32
    %2 = arith.cmpi ne, %1, %c0_i32_0 : i32
    scf.if %2 {
      %cst_26 = arith.constant 0.000000e+00 : f32
      %38 = vector.broadcast %cst_26 : f32 to vector<1x8x1xf32>
      %c0_27 = arith.constant 0 : index
      %c0_28 = arith.constant 0 : index
      %c0_29 = arith.constant 0 : index
      %39 = vector.load %arg6[%c0_27, %c0_28, %c0_29] : memref<1x8x1xf32, #tpu.memory_space<vmem>>, vector<1x8x1xf32>
      tpu.vector_store %arg6[%c0_27, %c0_28, %c0_29], %38 {strides = array<i32>} : memref<1x8x1xf32, #tpu.memory_space<vmem>>, vector<1x8x1xf32>,
      %cst_30 = arith.constant 0.000000e+00 : f32
      %40 = vector.broadcast %cst_30 : f32 to vector<1x8x1xf32>
      %c0_31 = arith.constant 0 : index
      %c0_32 = arith.constant 0 : index
      %c0_33 = arith.constant 0 : index
      %41 = vector.load %arg7[%c0_31, %c0_32, %c0_33] : memref<1x8x1xf32, #tpu.memory_space<vmem>>, vector<1x8x1xf32>
      tpu.vector_store %arg7[%c0_31, %c0_32, %c0_33], %40 {strides = array<i32>} : memref<1x8x1xf32, #tpu.memory_space<vmem>>, vector<1x8x1xf32>,
    } else {
    }
    %c0 = arith.constant 0 : index
    %c0_1 = arith.constant 0 : index
    %3 = vector.load %arg2[%c0, %c0_1] : memref<8x144xbf16, #tpu.memory_space<vmem>>, vector<8x144xbf16>
    %c0_2 = arith.constant 0 : index
    %c0_3 = arith.constant 0 : index
    %c0_4 = arith.constant 0 : index
    %4 = vector.load %arg3[%c0_2, %c0_3, %c0_4] : memref<1x144x256xbf16, #tpu.memory_space<vmem>>, vector<1x144x256xbf16>
    %5 = vector.shape_cast %4 : vector<1x144x256xbf16> to vector<144x256xbf16>
    %cst = arith.constant dense<0.000000e+00> : vector<8x256xf32>
    %6 = tpu.matmul %3, %5, %cst {dimension_numbers = #tpu.dot_dimension_numbers<[1], [0], [0], [1], [0, 0, 1, 1], [], []>} : vector<8x144xbf16>, vector<144x256xbf16>, vector<8x256xf32> -> vector<8x256xf32>
    %c0_5 = arith.constant 0 : index
    %c0_6 = arith.constant 0 : index
    %7 = vector.load %arg4[%c0_5, %c0_6] : memref<8x1xf32, #tpu.memory_space<vmem>>, vector<8x1xf32>
    %8 = vector.broadcast %7 : vector<8x1xf32> to vector<8x256xf32>
    %9 = arith.addf %6, %8 : vector<8x256xf32>
    %c0_7 = arith.constant 0 : index
    %c0_8 = arith.constant 0 : index
    %c0_9 = arith.constant 0 : index
    %10 = vector.load %arg5[%c0_7, %c0_8, %c0_9] : memref<1x8x256xf32, #tpu.memory_space<vmem>>, vector<1x8x256xf32>
    %11 = vector.shape_cast %10 : vector<1x8x256xf32> to vector<8x256xf32>
    %12 = vector.shape_cast %9 : vector<8x256xf32> to vector<1x8x256xf32>
    tpu.vector_store %arg5[%c0_7, %c0_8, %c0_9], %12 {strides = array<i32>} : memref<1x8x256xf32, #tpu.memory_space<vmem>>, vector<1x8x256xf32>,
    %c256_i32 = arith.constant 256 : i32
    %13 = arith.muli %arg1, %c256_i32 : i32
    %14 = tpu.iota {dimensions = array<i32: 1>} : vector<8x256xi32>
    %15 = vector.broadcast %13 : i32 to vector<8x256xi32>
    %16 = arith.addi %15, %14 : vector<8x256xi32>
    %c256_i32_10 = arith.constant 256 : i32
    %17 = vector.broadcast %c256_i32_10 : i32 to vector<8x256xi32>
    %18 = arith.cmpi slt, %16, %17 : vector<8x256xi32>
    %cst_11 = arith.constant 0.000000e+00 : f32
    %19 = vector.broadcast %cst_11 : f32 to vector<8x256xf32>
    %20 = arith.select %18, %9, %19 : vector<8x256xi1>, vector<8x256xf32>
    %c0_12 = arith.constant 0 : index
    %c0_13 = arith.constant 0 : index
    %c0_14 = arith.constant 0 : index
    %21 = vector.load %arg6[%c0_12, %c0_13, %c0_14] : memref<1x8x1xf32, #tpu.memory_space<vmem>>, vector<1x8x1xf32>
    %22 = vector.shape_cast %21 : vector<1x8x1xf32> to vector<8x1xf32>
    %cst_15 = arith.constant dense<0.000000e+00> : vector<8xf32>
    %23 = vector.multi_reduction <add>, %20, %cst_15 [1] : vector<8x256xf32> to vector<8xf32>
    %24 = vector.shape_cast %23 : vector<8xf32> to vector<8x1xf32>
    %25 = arith.addf %22, %24 : vector<8x1xf32>
    %c0_16 = arith.constant 0 : index
    %c0_17 = arith.constant 0 : index
    %c0_18 = arith.constant 0 : index
    %26 = vector.load %arg6[%c0_16, %c0_17, %c0_18] : memref<1x8x1xf32, #tpu.memory_space<vmem>>, vector<1x8x1xf32>
    %27 = vector.shape_cast %26 : vector<1x8x1xf32> to vector<8x1xf32>
    %28 = vector.shape_cast %25 : vector<8x1xf32> to vector<1x8x1xf32>
    tpu.vector_store %arg6[%c0_16, %c0_17, %c0_18], %28 {strides = array<i32>} : memref<1x8x1xf32, #tpu.memory_space<vmem>>, vector<1x8x1xf32>,
    %c0_19 = arith.constant 0 : index
    %c0_20 = arith.constant 0 : index
    %c0_21 = arith.constant 0 : index
    %29 = vector.load %arg7[%c0_19, %c0_20, %c0_21] : memref<1x8x1xf32, #tpu.memory_space<vmem>>, vector<1x8x1xf32>
    %30 = vector.shape_cast %29 : vector<1x8x1xf32> to vector<8x1xf32>
    %31 = arith.mulf %20, %20 : vector<8x256xf32>
    %cst_22 = arith.constant dense<0.000000e+00> : vector<8xf32>
    %32 = vector.multi_reduction <add>, %31, %cst_22 [1] : vector<8x256xf32> to vector<8xf32>
    %33 = vector.shape_cast %32 : vector<8xf32> to vector<8x1xf32>
    %34 = arith.addf %30, %33 : vector<8x1xf32>
    %c0_23 = arith.constant 0 : index
    %c0_24 = arith.constant 0 : index
    %c0_25 = arith.constant 0 : index
    %35 = vector.load %arg7[%c0_23, %c0_24, %c0_25] : memref<1x8x1xf32, #tpu.memory_space<vmem>>, vector<1x8x1xf32>
    %36 = vector.shape_cast %35 : vector<1x8x1xf32> to vector<8x1xf32>
    %37 = vector.shape_cast %34 : vector<8x1xf32> to vector<1x8x1xf32>
    tpu.vector_store %arg7[%c0_23, %c0_24, %c0_25], %37 {strides = array<i32>} : memref<1x8x1xf32, #tpu.memory_space<vmem>>, vector<1x8x1xf32>,
    return
  }
  func.func @transform_0(%arg0: i32, %arg1: i32) -> (i32, i32) {
    %c0_i32 = arith.constant 0 : i32
    %c0_i32_0 = arith.constant 0 : i32
    %c0_i32_1 = arith.constant 0 : i32
    return %c0_i32, %c0_i32_0 : i32, i32
  }
  func.func @transform_1(%arg0: i32, %arg1: i32) -> (i32, i32, i32) {
    %c0_i32 = arith.constant 0 : i32
    %c0_i32_0 = arith.constant 0 : i32
    return %arg0, %c0_i32, %arg1 : i32, i32, i32
  }
  func.func @transform_2(%arg0: i32, %arg1: i32) -> (i32, i32) {
    %c0_i32 = arith.constant 0 : i32
    %c0_i32_0 = arith.constant 0 : i32
    %c0_i32_1 = arith.constant 0 : i32
    return %c0_i32, %c0_i32_0 : i32, i32
  }
  func.func @transform_3(%arg0: i32, %arg1: i32) -> (i32, i32, i32) {
    %c0_i32 = arith.constant 0 : i32
    %c0_i32_0 = arith.constant 0 : i32
    return %arg0, %c0_i32, %arg1 : i32, i32, i32
  }
  func.func @transform_4(%arg0: i32, %arg1: i32) -> (i32, i32, i32) {
    %c0_i32 = arith.constant 0 : i32
    %c0_i32_0 = arith.constant 0 : i32
    %c0_i32_1 = arith.constant 0 : i32
    return %arg0, %c0_i32, %c0_i32_0 : i32, i32, i32
  }
  func.func @transform_5(%arg0: i32, %arg1: i32) -> (i32, i32, i32) {
    %c0_i32 = arith.constant 0 : i32
    %c0_i32_0 = arith.constant 0 : i32
    %c0_i32_1 = arith.constant 0 : i32
    return %arg0, %c0_i32, %c0_i32_0 : i32, i32, i32
  }
}

module attributes {stable_mosaic.version = 11 : i64} {
  func.func @_mm_bias_kernel(%arg0: i32, %arg1: i32, %arg2: memref<8x8xbf16, #tpu.memory_space<vmem>>, %arg3: memref<1x8x256xbf16, #tpu.memory_space<vmem>>, %arg4: memref<8x1xf32, #tpu.memory_space<vmem>>, %arg5: memref<1x8x256xf32, #tpu.memory_space<vmem>>) attributes {dimension_semantics = [#tpu.dimension_semantics<parallel>, #tpu.dimension_semantics<parallel>], iteration_bounds = array<i64: 1, 1>, scalar_prefetch = 0 : i64, scratch_operands = 0 : i64, tpu.core_type = #tpu.core_type<tc>, window_params = [{pipeline_mode = #tpu.pipeline_mode<synchronous>, transform_indices = @transform_0, window_bounds = array<i64: 8, 8>}, {transform_indices = @transform_1, window_bounds = array<i64: 1, 8, 256>}, {pipeline_mode = #tpu.pipeline_mode<synchronous>, transform_indices = @transform_2, window_bounds = array<i64: 8, 1>}, {transform_indices = @transform_3, window_bounds = array<i64: 1, 8, 256>}]} {
    %c0 = arith.constant 0 : index
    %c0_0 = arith.constant 0 : index
    %0 = vector.load %arg2[%c0, %c0_0] : memref<8x8xbf16, #tpu.memory_space<vmem>>, vector<8x8xbf16>
    %c0_1 = arith.constant 0 : index
    %c0_2 = arith.constant 0 : index
    %c0_3 = arith.constant 0 : index
    %1 = vector.load %arg3[%c0_1, %c0_2, %c0_3] : memref<1x8x256xbf16, #tpu.memory_space<vmem>>, vector<1x8x256xbf16>
    %2 = vector.shape_cast %1 : vector<1x8x256xbf16> to vector<8x256xbf16>
    %cst = arith.constant dense<0.000000e+00> : vector<8x256xf32>
    %3 = tpu.matmul %0, %2, %cst {dimension_numbers = #tpu.dot_dimension_numbers<[1], [0], [0], [1], [0, 0, 1, 1], [], []>} : vector<8x8xbf16>, vector<8x256xbf16>, vector<8x256xf32> -> vector<8x256xf32>
    %c0_4 = arith.constant 0 : index
    %c0_5 = arith.constant 0 : index
    %4 = vector.load %arg4[%c0_4, %c0_5] : memref<8x1xf32, #tpu.memory_space<vmem>>, vector<8x1xf32>
    %5 = vector.broadcast %4 : vector<8x1xf32> to vector<8x256xf32>
    %6 = arith.addf %3, %5 : vector<8x256xf32>
    %c0_6 = arith.constant 0 : index
    %c0_7 = arith.constant 0 : index
    %c0_8 = arith.constant 0 : index
    %7 = vector.load %arg5[%c0_6, %c0_7, %c0_8] : memref<1x8x256xf32, #tpu.memory_space<vmem>>, vector<1x8x256xf32>
    %8 = vector.shape_cast %7 : vector<1x8x256xf32> to vector<8x256xf32>
    %9 = vector.shape_cast %6 : vector<8x256xf32> to vector<1x8x256xf32>
    tpu.vector_store %arg5[%c0_6, %c0_7, %c0_8], %9 {strides = array<i32>} : memref<1x8x256xf32, #tpu.memory_space<vmem>>, vector<1x8x256xf32>,
    return
  }
  func.func @transform_0(%arg0: i32, %arg1: i32) -> (i32, i32) {
    %c0_i32 = arith.constant 0 : i32
    %c0_i32_0 = arith.constant 0 : i32
    %c0_i32_1 = arith.constant 0 : i32
    return %c0_i32, %c0_i32_0 : i32, i32
  }
  func.func @transform_1(%arg0: i32, %arg1: i32) -> (i32, i32, i32) {
    %c0_i32 = arith.constant 0 : i32
    %c0_i32_0 = arith.constant 0 : i32
    return %arg0, %c0_i32, %arg1 : i32, i32, i32
  }
  func.func @transform_2(%arg0: i32, %arg1: i32) -> (i32, i32) {
    %c0_i32 = arith.constant 0 : i32
    %c0_i32_0 = arith.constant 0 : i32
    %c0_i32_1 = arith.constant 0 : i32
    return %c0_i32, %c0_i32_0 : i32, i32
  }
  func.func @transform_3(%arg0: i32, %arg1: i32) -> (i32, i32, i32) {
    %c0_i32 = arith.constant 0 : i32
    %c0_i32_0 = arith.constant 0 : i32
    return %arg0, %c0_i32, %arg1 : i32, i32, i32
  }
}

module attributes {stable_mosaic.version = 11 : i64} {
  func.func @_mm_bias_stats_kernel(%arg0: i32, %arg1: i32, %arg2: memref<8x200xbf16, #tpu.memory_space<vmem>>, %arg3: memref<1x200x256xbf16, #tpu.memory_space<vmem>>, %arg4: memref<8x1xf32, #tpu.memory_space<vmem>>, %arg5: memref<1x8x256xf32, #tpu.memory_space<vmem>>, %arg6: memref<1x8x1xf32, #tpu.memory_space<vmem>>, %arg7: memref<1x8x1xf32, #tpu.memory_space<vmem>>) attributes {dimension_semantics = [#tpu.dimension_semantics<parallel>, #tpu.dimension_semantics<arbitrary>], iteration_bounds = array<i64: 1, 1>, scalar_prefetch = 0 : i64, scratch_operands = 0 : i64, tpu.core_type = #tpu.core_type<tc>, window_params = [{pipeline_mode = #tpu.pipeline_mode<synchronous>, transform_indices = @transform_0, window_bounds = array<i64: 8, 200>}, {transform_indices = @transform_1, window_bounds = array<i64: 1, 200, 256>}, {pipeline_mode = #tpu.pipeline_mode<synchronous>, transform_indices = @transform_2, window_bounds = array<i64: 8, 1>}, {transform_indices = @transform_3, window_bounds = array<i64: 1, 8, 256>}, {transform_indices = @transform_4, window_bounds = array<i64: 1, 8, 1>}, {transform_indices = @transform_5, window_bounds = array<i64: 1, 8, 1>}]} {
    %c0_i32 = arith.constant 0 : i32
    %0 = arith.cmpi eq, %arg1, %c0_i32 : i32
    %1 = arith.extui %0 : i1 to i32
    %c0_i32_0 = arith.constant 0 : i32
    %2 = arith.cmpi ne, %1, %c0_i32_0 : i32
    scf.if %2 {
      %cst_26 = arith.constant 0.000000e+00 : f32
      %38 = vector.broadcast %cst_26 : f32 to vector<1x8x1xf32>
      %c0_27 = arith.constant 0 : index
      %c0_28 = arith.constant 0 : index
      %c0_29 = arith.constant 0 : index
      %39 = vector.load %arg6[%c0_27, %c0_28, %c0_29] : memref<1x8x1xf32, #tpu.memory_space<vmem>>, vector<1x8x1xf32>
      tpu.vector_store %arg6[%c0_27, %c0_28, %c0_29], %38 {strides = array<i32>} : memref<1x8x1xf32, #tpu.memory_space<vmem>>, vector<1x8x1xf32>,
      %cst_30 = arith.constant 0.000000e+00 : f32
      %40 = vector.broadcast %cst_30 : f32 to vector<1x8x1xf32>
      %c0_31 = arith.constant 0 : index
      %c0_32 = arith.constant 0 : index
      %c0_33 = arith.constant 0 : index
      %41 = vector.load %arg7[%c0_31, %c0_32, %c0_33] : memref<1x8x1xf32, #tpu.memory_space<vmem>>, vector<1x8x1xf32>
      tpu.vector_store %arg7[%c0_31, %c0_32, %c0_33], %40 {strides = array<i32>} : memref<1x8x1xf32, #tpu.memory_space<vmem>>, vector<1x8x1xf32>,
    } else {
    }
    %c0 = arith.constant 0 : index
    %c0_1 = arith.constant 0 : index
    %3 = vector.load %arg2[%c0, %c0_1] : memref<8x200xbf16, #tpu.memory_space<vmem>>, vector<8x200xbf16>
    %c0_2 = arith.constant 0 : index
    %c0_3 = arith.constant 0 : index
    %c0_4 = arith.constant 0 : index
    %4 = vector.load %arg3[%c0_2, %c0_3, %c0_4] : memref<1x200x256xbf16, #tpu.memory_space<vmem>>, vector<1x200x256xbf16>
    %5 = vector.shape_cast %4 : vector<1x200x256xbf16> to vector<200x256xbf16>
    %cst = arith.constant dense<0.000000e+00> : vector<8x256xf32>
    %6 = tpu.matmul %3, %5, %cst {dimension_numbers = #tpu.dot_dimension_numbers<[1], [0], [0], [1], [0, 0, 1, 1], [], []>} : vector<8x200xbf16>, vector<200x256xbf16>, vector<8x256xf32> -> vector<8x256xf32>
    %c0_5 = arith.constant 0 : index
    %c0_6 = arith.constant 0 : index
    %7 = vector.load %arg4[%c0_5, %c0_6] : memref<8x1xf32, #tpu.memory_space<vmem>>, vector<8x1xf32>
    %8 = vector.broadcast %7 : vector<8x1xf32> to vector<8x256xf32>
    %9 = arith.addf %6, %8 : vector<8x256xf32>
    %c0_7 = arith.constant 0 : index
    %c0_8 = arith.constant 0 : index
    %c0_9 = arith.constant 0 : index
    %10 = vector.load %arg5[%c0_7, %c0_8, %c0_9] : memref<1x8x256xf32, #tpu.memory_space<vmem>>, vector<1x8x256xf32>
    %11 = vector.shape_cast %10 : vector<1x8x256xf32> to vector<8x256xf32>
    %12 = vector.shape_cast %9 : vector<8x256xf32> to vector<1x8x256xf32>
    tpu.vector_store %arg5[%c0_7, %c0_8, %c0_9], %12 {strides = array<i32>} : memref<1x8x256xf32, #tpu.memory_space<vmem>>, vector<1x8x256xf32>,
    %c256_i32 = arith.constant 256 : i32
    %13 = arith.muli %arg1, %c256_i32 : i32
    %14 = tpu.iota {dimensions = array<i32: 1>} : vector<8x256xi32>
    %15 = vector.broadcast %13 : i32 to vector<8x256xi32>
    %16 = arith.addi %15, %14 : vector<8x256xi32>
    %c256_i32_10 = arith.constant 256 : i32
    %17 = vector.broadcast %c256_i32_10 : i32 to vector<8x256xi32>
    %18 = arith.cmpi slt, %16, %17 : vector<8x256xi32>
    %cst_11 = arith.constant 0.000000e+00 : f32
    %19 = vector.broadcast %cst_11 : f32 to vector<8x256xf32>
    %20 = arith.select %18, %9, %19 : vector<8x256xi1>, vector<8x256xf32>
    %c0_12 = arith.constant 0 : index
    %c0_13 = arith.constant 0 : index
    %c0_14 = arith.constant 0 : index
    %21 = vector.load %arg6[%c0_12, %c0_13, %c0_14] : memref<1x8x1xf32, #tpu.memory_space<vmem>>, vector<1x8x1xf32>
    %22 = vector.shape_cast %21 : vector<1x8x1xf32> to vector<8x1xf32>
    %cst_15 = arith.constant dense<0.000000e+00> : vector<8xf32>
    %23 = vector.multi_reduction <add>, %20, %cst_15 [1] : vector<8x256xf32> to vector<8xf32>
    %24 = vector.shape_cast %23 : vector<8xf32> to vector<8x1xf32>
    %25 = arith.addf %22, %24 : vector<8x1xf32>
    %c0_16 = arith.constant 0 : index
    %c0_17 = arith.constant 0 : index
    %c0_18 = arith.constant 0 : index
    %26 = vector.load %arg6[%c0_16, %c0_17, %c0_18] : memref<1x8x1xf32, #tpu.memory_space<vmem>>, vector<1x8x1xf32>
    %27 = vector.shape_cast %26 : vector<1x8x1xf32> to vector<8x1xf32>
    %28 = vector.shape_cast %25 : vector<8x1xf32> to vector<1x8x1xf32>
    tpu.vector_store %arg6[%c0_16, %c0_17, %c0_18], %28 {strides = array<i32>} : memref<1x8x1xf32, #tpu.memory_space<vmem>>, vector<1x8x1xf32>,
    %c0_19 = arith.constant 0 : index
    %c0_20 = arith.constant 0 : index
    %c0_21 = arith.constant 0 : index
    %29 = vector.load %arg7[%c0_19, %c0_20, %c0_21] : memref<1x8x1xf32, #tpu.memory_space<vmem>>, vector<1x8x1xf32>
    %30 = vector.shape_cast %29 : vector<1x8x1xf32> to vector<8x1xf32>
    %31 = arith.mulf %20, %20 : vector<8x256xf32>
    %cst_22 = arith.constant dense<0.000000e+00> : vector<8xf32>
    %32 = vector.multi_reduction <add>, %31, %cst_22 [1] : vector<8x256xf32> to vector<8xf32>
    %33 = vector.shape_cast %32 : vector<8xf32> to vector<8x1xf32>
    %34 = arith.addf %30, %33 : vector<8x1xf32>
    %c0_23 = arith.constant 0 : index
    %c0_24 = arith.constant 0 : index
    %c0_25 = arith.constant 0 : index
    %35 = vector.load %arg7[%c0_23, %c0_24, %c0_25] : memref<1x8x1xf32, #tpu.memory_space<vmem>>, vector<1x8x1xf32>
    %36 = vector.shape_cast %35 : vector<1x8x1xf32> to vector<8x1xf32>
    %37 = vector.shape_cast %34 : vector<8x1xf32> to vector<1x8x1xf32>
    tpu.vector_store %arg7[%c0_23, %c0_24, %c0_25], %37 {strides = array<i32>} : memref<1x8x1xf32, #tpu.memory_space<vmem>>, vector<1x8x1xf32>,
    return
  }
  func.func @transform_0(%arg0: i32, %arg1: i32) -> (i32, i32) {
    %c0_i32 = arith.constant 0 : i32
    %c0_i32_0 = arith.constant 0 : i32
    %c0_i32_1 = arith.constant 0 : i32
    return %c0_i32, %c0_i32_0 : i32, i32
  }
  func.func @transform_1(%arg0: i32, %arg1: i32) -> (i32, i32, i32) {
    %c0_i32 = arith.constant 0 : i32
    %c0_i32_0 = arith.constant 0 : i32
    return %arg0, %c0_i32, %arg1 : i32, i32, i32
  }
  func.func @transform_2(%arg0: i32, %arg1: i32) -> (i32, i32) {
    %c0_i32 = arith.constant 0 : i32
    %c0_i32_0 = arith.constant 0 : i32
    %c0_i32_1 = arith.constant 0 : i32
    return %c0_i32, %c0_i32_0 : i32, i32
  }
  func.func @transform_3(%arg0: i32, %arg1: i32) -> (i32, i32, i32) {
    %c0_i32 = arith.constant 0 : i32
    %c0_i32_0 = arith.constant 0 : i32
    return %arg0, %c0_i32, %arg1 : i32, i32, i32
  }
  func.func @transform_4(%arg0: i32, %arg1: i32) -> (i32, i32, i32) {
    %c0_i32 = arith.constant 0 : i32
    %c0_i32_0 = arith.constant 0 : i32
    %c0_i32_1 = arith.constant 0 : i32
    return %arg0, %c0_i32, %c0_i32_0 : i32, i32, i32
  }
  func.func @transform_5(%arg0: i32, %arg1: i32) -> (i32, i32, i32) {
    %c0_i32 = arith.constant 0 : i32
    %c0_i32_0 = arith.constant 0 : i32
    %c0_i32_1 = arith.constant 0 : i32
    return %arg0, %c0_i32, %c0_i32_0 : i32, i32, i32
  }
}

module attributes {stable_mosaic.version = 11 : i64} {
  func.func @_norm_act_kernel(%arg0: i32, %arg1: i32, %arg2: memref<1x8x256xf32, #tpu.memory_space<vmem>>, %arg3: memref<1x8x1xf32, #tpu.memory_space<vmem>>, %arg4: memref<1x8x1xf32, #tpu.memory_space<vmem>>, %arg5: memref<1x8x256xf32, #tpu.memory_space<vmem>>) attributes {dimension_semantics = [#tpu.dimension_semantics<parallel>, #tpu.dimension_semantics<parallel>], iteration_bounds = array<i64: 1, 1>, scalar_prefetch = 0 : i64, scratch_operands = 0 : i64, tpu.core_type = #tpu.core_type<tc>, window_params = [{transform_indices = @transform_0, window_bounds = array<i64: 1, 8, 256>}, {transform_indices = @transform_1, window_bounds = array<i64: 1, 8, 1>}, {transform_indices = @transform_2, window_bounds = array<i64: 1, 8, 1>}, {transform_indices = @transform_3, window_bounds = array<i64: 1, 8, 256>}]} {
    %c0 = arith.constant 0 : index
    %c0_0 = arith.constant 0 : index
    %c0_1 = arith.constant 0 : index
    %0 = vector.load %arg2[%c0, %c0_0, %c0_1] : memref<1x8x256xf32, #tpu.memory_space<vmem>>, vector<1x8x256xf32>
    %1 = vector.shape_cast %0 : vector<1x8x256xf32> to vector<8x256xf32>
    %c0_2 = arith.constant 0 : index
    %c0_3 = arith.constant 0 : index
    %c0_4 = arith.constant 0 : index
    %2 = vector.load %arg3[%c0_2, %c0_3, %c0_4] : memref<1x8x1xf32, #tpu.memory_space<vmem>>, vector<1x8x1xf32>
    %3 = vector.shape_cast %2 : vector<1x8x1xf32> to vector<8x1xf32>
    %4 = vector.broadcast %3 : vector<8x1xf32> to vector<8x256xf32>
    %5 = arith.subf %1, %4 : vector<8x256xf32>
    %c0_5 = arith.constant 0 : index
    %c0_6 = arith.constant 0 : index
    %c0_7 = arith.constant 0 : index
    %6 = vector.load %arg4[%c0_5, %c0_6, %c0_7] : memref<1x8x1xf32, #tpu.memory_space<vmem>>, vector<1x8x1xf32>
    %7 = vector.shape_cast %6 : vector<1x8x1xf32> to vector<8x1xf32>
    %8 = vector.broadcast %7 : vector<8x1xf32> to vector<8x256xf32>
    %9 = arith.mulf %5, %8 : vector<8x256xf32>
    %cst = arith.constant 0.000000e+00 : f32
    %10 = vector.broadcast %cst : f32 to vector<8x256xf32>
    %11 = arith.cmpf oge, %9, %10 : vector<8x256xf32>
    %cst_8 = arith.constant 2.500000e-01 : f32
    %12 = vector.broadcast %cst_8 : f32 to vector<8x256xf32>
    %13 = arith.mulf %12, %9 : vector<8x256xf32>
    %14 = arith.select %11, %9, %13 : vector<8x256xi1>, vector<8x256xf32>
    %c0_9 = arith.constant 0 : index
    %c0_10 = arith.constant 0 : index
    %c0_11 = arith.constant 0 : index
    %15 = vector.load %arg5[%c0_9, %c0_10, %c0_11] : memref<1x8x256xf32, #tpu.memory_space<vmem>>, vector<1x8x256xf32>
    %16 = vector.shape_cast %15 : vector<1x8x256xf32> to vector<8x256xf32>
    %17 = vector.shape_cast %14 : vector<8x256xf32> to vector<1x8x256xf32>
    tpu.vector_store %arg5[%c0_9, %c0_10, %c0_11], %17 {strides = array<i32>} : memref<1x8x256xf32, #tpu.memory_space<vmem>>, vector<1x8x256xf32>,
    return
  }
  func.func @transform_0(%arg0: i32, %arg1: i32) -> (i32, i32, i32) {
    %c0_i32 = arith.constant 0 : i32
    %c0_i32_0 = arith.constant 0 : i32
    return %arg0, %c0_i32, %arg1 : i32, i32, i32
  }
  func.func @transform_1(%arg0: i32, %arg1: i32) -> (i32, i32, i32) {
    %c0_i32 = arith.constant 0 : i32
    %c0_i32_0 = arith.constant 0 : i32
    %c0_i32_1 = arith.constant 0 : i32
    return %arg0, %c0_i32, %c0_i32_0 : i32, i32, i32
  }
  func.func @transform_2(%arg0: i32, %arg1: i32) -> (i32, i32, i32) {
    %c0_i32 = arith.constant 0 : i32
    %c0_i32_0 = arith.constant 0 : i32
    %c0_i32_1 = arith.constant 0 : i32
    return %arg0, %c0_i32, %c0_i32_0 : i32, i32, i32
  }
  func.func @transform_3(%arg0: i32, %arg1: i32) -> (i32, i32, i32) {
    %c0_i32 = arith.constant 0 : i32
    %c0_i32_0 = arith.constant 0 : i32
    return %arg0, %c0_i32, %arg1 : i32, i32, i32
  }
}

module attributes {stable_mosaic.version = 11 : i64} {
  func.func @_mm_bias_kernel(%arg0: i32, %arg1: i32, %arg2: memref<2x8xbf16, #tpu.memory_space<vmem>>, %arg3: memref<1x8x256xbf16, #tpu.memory_space<vmem>>, %arg4: memref<2x1xf32, #tpu.memory_space<vmem>>, %arg5: memref<1x2x256xf32, #tpu.memory_space<vmem>>) attributes {dimension_semantics = [#tpu.dimension_semantics<parallel>, #tpu.dimension_semantics<parallel>], iteration_bounds = array<i64: 1, 1>, scalar_prefetch = 0 : i64, scratch_operands = 0 : i64, tpu.core_type = #tpu.core_type<tc>, window_params = [{pipeline_mode = #tpu.pipeline_mode<synchronous>, transform_indices = @transform_0, window_bounds = array<i64: 2, 8>}, {transform_indices = @transform_1, window_bounds = array<i64: 1, 8, 256>}, {pipeline_mode = #tpu.pipeline_mode<synchronous>, transform_indices = @transform_2, window_bounds = array<i64: 2, 1>}, {transform_indices = @transform_3, window_bounds = array<i64: 1, 2, 256>}]} {
    %c0 = arith.constant 0 : index
    %c0_0 = arith.constant 0 : index
    %0 = vector.load %arg2[%c0, %c0_0] : memref<2x8xbf16, #tpu.memory_space<vmem>>, vector<2x8xbf16>
    %c0_1 = arith.constant 0 : index
    %c0_2 = arith.constant 0 : index
    %c0_3 = arith.constant 0 : index
    %1 = vector.load %arg3[%c0_1, %c0_2, %c0_3] : memref<1x8x256xbf16, #tpu.memory_space<vmem>>, vector<1x8x256xbf16>
    %2 = vector.shape_cast %1 : vector<1x8x256xbf16> to vector<8x256xbf16>
    %cst = arith.constant dense<0.000000e+00> : vector<2x256xf32>
    %3 = tpu.matmul %0, %2, %cst {dimension_numbers = #tpu.dot_dimension_numbers<[1], [0], [0], [1], [0, 0, 1, 1], [], []>} : vector<2x8xbf16>, vector<8x256xbf16>, vector<2x256xf32> -> vector<2x256xf32>
    %c0_4 = arith.constant 0 : index
    %c0_5 = arith.constant 0 : index
    %4 = vector.load %arg4[%c0_4, %c0_5] : memref<2x1xf32, #tpu.memory_space<vmem>>, vector<2x1xf32>
    %5 = vector.broadcast %4 : vector<2x1xf32> to vector<2x256xf32>
    %6 = arith.addf %3, %5 : vector<2x256xf32>
    %c0_6 = arith.constant 0 : index
    %c0_7 = arith.constant 0 : index
    %c0_8 = arith.constant 0 : index
    %7 = vector.load %arg5[%c0_6, %c0_7, %c0_8] : memref<1x2x256xf32, #tpu.memory_space<vmem>>, vector<1x2x256xf32>
    %8 = vector.shape_cast %7 : vector<1x2x256xf32> to vector<2x256xf32>
    %9 = vector.shape_cast %6 : vector<2x256xf32> to vector<1x2x256xf32>
    tpu.vector_store %arg5[%c0_6, %c0_7, %c0_8], %9 {strides = array<i32>} : memref<1x2x256xf32, #tpu.memory_space<vmem>>, vector<1x2x256xf32>,
    return
  }
  func.func @transform_0(%arg0: i32, %arg1: i32) -> (i32, i32) {
    %c0_i32 = arith.constant 0 : i32
    %c0_i32_0 = arith.constant 0 : i32
    %c0_i32_1 = arith.constant 0 : i32
    return %c0_i32, %c0_i32_0 : i32, i32
  }
  func.func @transform_1(%arg0: i32, %arg1: i32) -> (i32, i32, i32) {
    %c0_i32 = arith.constant 0 : i32
    %c0_i32_0 = arith.constant 0 : i32
    return %arg0, %c0_i32, %arg1 : i32, i32, i32
  }
  func.func @transform_2(%arg0: i32, %arg1: i32) -> (i32, i32) {
    %c0_i32 = arith.constant 0 : i32
    %c0_i32_0 = arith.constant 0 : i32
    %c0_i32_1 = arith.constant 0 : i32
    return %c0_i32, %c0_i32_0 : i32, i32
  }
  func.func @transform_3(%arg0: i32, %arg1: i32) -> (i32, i32, i32) {
    %c0_i32 = arith.constant 0 : i32
    %c0_i32_0 = arith.constant 0 : i32
    return %arg0, %c0_i32, %arg1 : i32, i32, i32
  }
}

module attributes {stable_mosaic.version = 11 : i64} {
  func.func @_mm_bias_stats_kernel(%arg0: i32, %arg1: i32, %arg2: memref<8x18xbf16, #tpu.memory_space<vmem>>, %arg3: memref<1x18x256xbf16, #tpu.memory_space<vmem>>, %arg4: memref<8x1xf32, #tpu.memory_space<vmem>>, %arg5: memref<1x8x256xf32, #tpu.memory_space<vmem>>, %arg6: memref<1x8x1xf32, #tpu.memory_space<vmem>>, %arg7: memref<1x8x1xf32, #tpu.memory_space<vmem>>) attributes {dimension_semantics = [#tpu.dimension_semantics<parallel>, #tpu.dimension_semantics<arbitrary>], iteration_bounds = array<i64: 1, 1>, scalar_prefetch = 0 : i64, scratch_operands = 0 : i64, tpu.core_type = #tpu.core_type<tc>, window_params = [{pipeline_mode = #tpu.pipeline_mode<synchronous>, transform_indices = @transform_0, window_bounds = array<i64: 8, 18>}, {transform_indices = @transform_1, window_bounds = array<i64: 1, 18, 256>}, {pipeline_mode = #tpu.pipeline_mode<synchronous>, transform_indices = @transform_2, window_bounds = array<i64: 8, 1>}, {transform_indices = @transform_3, window_bounds = array<i64: 1, 8, 256>}, {transform_indices = @transform_4, window_bounds = array<i64: 1, 8, 1>}, {transform_indices = @transform_5, window_bounds = array<i64: 1, 8, 1>}]} {
    %c0_i32 = arith.constant 0 : i32
    %0 = arith.cmpi eq, %arg1, %c0_i32 : i32
    %1 = arith.extui %0 : i1 to i32
    %c0_i32_0 = arith.constant 0 : i32
    %2 = arith.cmpi ne, %1, %c0_i32_0 : i32
    scf.if %2 {
      %cst_26 = arith.constant 0.000000e+00 : f32
      %38 = vector.broadcast %cst_26 : f32 to vector<1x8x1xf32>
      %c0_27 = arith.constant 0 : index
      %c0_28 = arith.constant 0 : index
      %c0_29 = arith.constant 0 : index
      %39 = vector.load %arg6[%c0_27, %c0_28, %c0_29] : memref<1x8x1xf32, #tpu.memory_space<vmem>>, vector<1x8x1xf32>
      tpu.vector_store %arg6[%c0_27, %c0_28, %c0_29], %38 {strides = array<i32>} : memref<1x8x1xf32, #tpu.memory_space<vmem>>, vector<1x8x1xf32>,
      %cst_30 = arith.constant 0.000000e+00 : f32
      %40 = vector.broadcast %cst_30 : f32 to vector<1x8x1xf32>
      %c0_31 = arith.constant 0 : index
      %c0_32 = arith.constant 0 : index
      %c0_33 = arith.constant 0 : index
      %41 = vector.load %arg7[%c0_31, %c0_32, %c0_33] : memref<1x8x1xf32, #tpu.memory_space<vmem>>, vector<1x8x1xf32>
      tpu.vector_store %arg7[%c0_31, %c0_32, %c0_33], %40 {strides = array<i32>} : memref<1x8x1xf32, #tpu.memory_space<vmem>>, vector<1x8x1xf32>,
    } else {
    }
    %c0 = arith.constant 0 : index
    %c0_1 = arith.constant 0 : index
    %3 = vector.load %arg2[%c0, %c0_1] : memref<8x18xbf16, #tpu.memory_space<vmem>>, vector<8x18xbf16>
    %c0_2 = arith.constant 0 : index
    %c0_3 = arith.constant 0 : index
    %c0_4 = arith.constant 0 : index
    %4 = vector.load %arg3[%c0_2, %c0_3, %c0_4] : memref<1x18x256xbf16, #tpu.memory_space<vmem>>, vector<1x18x256xbf16>
    %5 = vector.shape_cast %4 : vector<1x18x256xbf16> to vector<18x256xbf16>
    %cst = arith.constant dense<0.000000e+00> : vector<8x256xf32>
    %6 = tpu.matmul %3, %5, %cst {dimension_numbers = #tpu.dot_dimension_numbers<[1], [0], [0], [1], [0, 0, 1, 1], [], []>} : vector<8x18xbf16>, vector<18x256xbf16>, vector<8x256xf32> -> vector<8x256xf32>
    %c0_5 = arith.constant 0 : index
    %c0_6 = arith.constant 0 : index
    %7 = vector.load %arg4[%c0_5, %c0_6] : memref<8x1xf32, #tpu.memory_space<vmem>>, vector<8x1xf32>
    %8 = vector.broadcast %7 : vector<8x1xf32> to vector<8x256xf32>
    %9 = arith.addf %6, %8 : vector<8x256xf32>
    %c0_7 = arith.constant 0 : index
    %c0_8 = arith.constant 0 : index
    %c0_9 = arith.constant 0 : index
    %10 = vector.load %arg5[%c0_7, %c0_8, %c0_9] : memref<1x8x256xf32, #tpu.memory_space<vmem>>, vector<1x8x256xf32>
    %11 = vector.shape_cast %10 : vector<1x8x256xf32> to vector<8x256xf32>
    %12 = vector.shape_cast %9 : vector<8x256xf32> to vector<1x8x256xf32>
    tpu.vector_store %arg5[%c0_7, %c0_8, %c0_9], %12 {strides = array<i32>} : memref<1x8x256xf32, #tpu.memory_space<vmem>>, vector<1x8x256xf32>,
    %c256_i32 = arith.constant 256 : i32
    %13 = arith.muli %arg1, %c256_i32 : i32
    %14 = tpu.iota {dimensions = array<i32: 1>} : vector<8x256xi32>
    %15 = vector.broadcast %13 : i32 to vector<8x256xi32>
    %16 = arith.addi %15, %14 : vector<8x256xi32>
    %c256_i32_10 = arith.constant 256 : i32
    %17 = vector.broadcast %c256_i32_10 : i32 to vector<8x256xi32>
    %18 = arith.cmpi slt, %16, %17 : vector<8x256xi32>
    %cst_11 = arith.constant 0.000000e+00 : f32
    %19 = vector.broadcast %cst_11 : f32 to vector<8x256xf32>
    %20 = arith.select %18, %9, %19 : vector<8x256xi1>, vector<8x256xf32>
    %c0_12 = arith.constant 0 : index
    %c0_13 = arith.constant 0 : index
    %c0_14 = arith.constant 0 : index
    %21 = vector.load %arg6[%c0_12, %c0_13, %c0_14] : memref<1x8x1xf32, #tpu.memory_space<vmem>>, vector<1x8x1xf32>
    %22 = vector.shape_cast %21 : vector<1x8x1xf32> to vector<8x1xf32>
    %cst_15 = arith.constant dense<0.000000e+00> : vector<8xf32>
    %23 = vector.multi_reduction <add>, %20, %cst_15 [1] : vector<8x256xf32> to vector<8xf32>
    %24 = vector.shape_cast %23 : vector<8xf32> to vector<8x1xf32>
    %25 = arith.addf %22, %24 : vector<8x1xf32>
    %c0_16 = arith.constant 0 : index
    %c0_17 = arith.constant 0 : index
    %c0_18 = arith.constant 0 : index
    %26 = vector.load %arg6[%c0_16, %c0_17, %c0_18] : memref<1x8x1xf32, #tpu.memory_space<vmem>>, vector<1x8x1xf32>
    %27 = vector.shape_cast %26 : vector<1x8x1xf32> to vector<8x1xf32>
    %28 = vector.shape_cast %25 : vector<8x1xf32> to vector<1x8x1xf32>
    tpu.vector_store %arg6[%c0_16, %c0_17, %c0_18], %28 {strides = array<i32>} : memref<1x8x1xf32, #tpu.memory_space<vmem>>, vector<1x8x1xf32>,
    %c0_19 = arith.constant 0 : index
    %c0_20 = arith.constant 0 : index
    %c0_21 = arith.constant 0 : index
    %29 = vector.load %arg7[%c0_19, %c0_20, %c0_21] : memref<1x8x1xf32, #tpu.memory_space<vmem>>, vector<1x8x1xf32>
    %30 = vector.shape_cast %29 : vector<1x8x1xf32> to vector<8x1xf32>
    %31 = arith.mulf %20, %20 : vector<8x256xf32>
    %cst_22 = arith.constant dense<0.000000e+00> : vector<8xf32>
    %32 = vector.multi_reduction <add>, %31, %cst_22 [1] : vector<8x256xf32> to vector<8xf32>
    %33 = vector.shape_cast %32 : vector<8xf32> to vector<8x1xf32>
    %34 = arith.addf %30, %33 : vector<8x1xf32>
    %c0_23 = arith.constant 0 : index
    %c0_24 = arith.constant 0 : index
    %c0_25 = arith.constant 0 : index
    %35 = vector.load %arg7[%c0_23, %c0_24, %c0_25] : memref<1x8x1xf32, #tpu.memory_space<vmem>>, vector<1x8x1xf32>
    %36 = vector.shape_cast %35 : vector<1x8x1xf32> to vector<8x1xf32>
    %37 = vector.shape_cast %34 : vector<8x1xf32> to vector<1x8x1xf32>
    tpu.vector_store %arg7[%c0_23, %c0_24, %c0_25], %37 {strides = array<i32>} : memref<1x8x1xf32, #tpu.memory_space<vmem>>, vector<1x8x1xf32>,
    return
  }
  func.func @transform_0(%arg0: i32, %arg1: i32) -> (i32, i32) {
    %c0_i32 = arith.constant 0 : i32
    %c0_i32_0 = arith.constant 0 : i32
    %c0_i32_1 = arith.constant 0 : i32
    return %c0_i32, %c0_i32_0 : i32, i32
  }
  func.func @transform_1(%arg0: i32, %arg1: i32) -> (i32, i32, i32) {
    %c0_i32 = arith.constant 0 : i32
    %c0_i32_0 = arith.constant 0 : i32
    return %arg0, %c0_i32, %arg1 : i32, i32, i32
  }
  func.func @transform_2(%arg0: i32, %arg1: i32) -> (i32, i32) {
    %c0_i32 = arith.constant 0 : i32
    %c0_i32_0 = arith.constant 0 : i32
    %c0_i32_1 = arith.constant 0 : i32
    return %c0_i32, %c0_i32_0 : i32, i32
  }
  func.func @transform_3(%arg0: i32, %arg1: i32) -> (i32, i32, i32) {
    %c0_i32 = arith.constant 0 : i32
    %c0_i32_0 = arith.constant 0 : i32
    return %arg0, %c0_i32, %arg1 : i32, i32, i32
  }
  func.func @transform_4(%arg0: i32, %arg1: i32) -> (i32, i32, i32) {
    %c0_i32 = arith.constant 0 : i32
    %c0_i32_0 = arith.constant 0 : i32
    %c0_i32_1 = arith.constant 0 : i32
    return %arg0, %c0_i32, %c0_i32_0 : i32, i32, i32
  }
  func.func @transform_5(%arg0: i32, %arg1: i32) -> (i32, i32, i32) {
    %c0_i32 = arith.constant 0 : i32
    %c0_i32_0 = arith.constant 0 : i32
    %c0_i32_1 = arith.constant 0 : i32
    return %arg0, %c0_i32, %c0_i32_0 : i32, i32, i32
  }
}

</mosaic_0001>

<bundles_post_ra>
// kernel: _lambda_.86
= control target key start
LH: loop header
LB: loop body
LE: loop exit
PB: predicated region body
PF: predicated region fallthrough
CT: control target
= control target key end

     0   :  { %s470_s12 = smov 0   ;;  %s472_s13 = smov 0   ;;  %s509_s0 = inlined_call_operand.vmem [shape: f32[4,4,256], index: 0, kind: input, shape index: {}]   ;;  %s510_s1 = inlined_call_operand.vmem [shape: f32[4,4,1], index: 1, kind: input, shape index: {}]   ;;  %s511_s2 = inlined_call_operand.vmem [shape: f32[4,4,1], index: 2, kind: input, shape index: {}]   ;;  %s512_s3 = inlined_call_operand.vmem [shape: f32[4,4,256], index: 3, kind: output, shape index: {}]  }
   0x1   :  { %s474_s14 = smov 0  }
   0x2 LB: > { %s25_s15 = sadd.s32 1, %s442_s13  ;;  %p386_p0 = scmp.ge.s32.totalorder %s446_s14, 1  ;;  %s446_s14 = sphi %s474_s14, %s13_s14   ;;  %s442_s13 = sphi %s472_s13, %s514_s13   ;;  %s438_s12 = sphi %s470_s12, %s513_s12  }
   0x3   : > { %p27_p1 = scmp.ge.s32.totalorder %s25_s15, 4  ;;  %p176_p2 = scmp.lt.s32.totalorder %s446_s14, 5 }
   0x5   : > { %s516_s15 = smov (%p27_p1, %s25_s15), 0  ;;  %p177_p3 = pnand %p386_p0, %p176_p2 }
   0x6   : > { %p217_p4 = scmp.lt.s32.totalorder (!%p177_p3), %s438_s12, 3 }
   0x7   : > { %180 = sbr.rel (%p177_p3) target bundleno = 147 (0x93), region = 32 }
   0xc   : > { %v448_v0 = vmov 0   ;;  %s518_s12 = smov (!%p217_p4, %s438_s12), 3  ;;  %v449_v3 = vmov 839922192  }
   0xd   : > { %423 = vset.pattern.permute.xlu0 %v448_v0  ;;  %s389_s16 = sshll.u32 %s518_s12, 2  ;;  %v251_v4 = vunpack.c.l.s4 %v449_v3  ;;  %s395_s23 = sshll.u32 %s518_s12, 3 }
   0xe   : > { %s229_s19 = scalar_lea.vmem %s510_s1, %s389_s16  ;;  %s233_s22 = scalar_lea.vmem %s511_s2, %s389_s16 }
   0xf   : > { %v245_v1 = vld [vmem:[%s229_s19] sm:$0xf]  ;;  %v252_v6 = vunpack.c.0.s8 %v251_v4  ;;  %s224_s26 = scalar_lea.vmem %s509_s0, %s395_s23  ;;  %s242_s29 = scalar_lea.vmem %s512_s3, %s395_s23 }
  0x10   : > { %248 = vperm.xlu0 %423, %v245_v1   ;;  %v256_v2 = vld [vmem:[%s233_s22] sm:$0xf] }
  0x11   : > { %v244_v8 = vld [vmem:[%s224_s26] sm:$0xff] }
  0x18   : > { %259 = vperm.xlu0 %423, %v256_v2  }
  0x82   : > { %v249_v5 = vpop.permute.xlu0 %248 }
  0x83   : > { %v253_v7 = vperm.slane %v249_v5, %v252_v6 }
  0x85   : > { %v255_v10 = vsub.f32 %v244_v8, %v253_v7 }
  0x8a   : > { %v260_v9 = vpop.permute.xlu0 %259 }
  0x8b   : > { %v264_v11 = vperm.slane %v260_v9, %v252_v6 }
  0x8d   : > { %v266_v12 = vmul.f32 %v264_v11, %v255_v10 }
  0x8f   : > { %vm267_vm0 = vcmp.ge.f32.partialorder %v266_v12, 0.0  ;;  %v268_v13 = vmul.f32 0.2, %v266_v12 }
  0x91   : > { %v269_v14 = vsel %vm267_vm0, %v266_v12, %v268_v13 }
  0x92   : > { %270 = vst [vmem:[%s242_s29] sm:$0xff] %v269_v14 }
  0x93 PF: > { %s13_s14 = sadd.s32 1, %s446_s14   ;;  %s513_s12 = smov %s442_s13 }
  0x94   : > { %p10_p5 = scmp.ge.s32.totalorder %s13_s14, 6   ;;  %s514_s13 = smov %s516_s15 }
  0x96   :  { %12 = sbr.rel (!%p10_p5) target bundleno = 2 (0x2), region = 68 }

// kernel: _lambda_.85
= control target key start
LH: loop header
LB: loop body
LE: loop exit
PB: predicated region body
PF: predicated region fallthrough
CT: control target
= control target key end

     0   :  { %s650_s18 = smov 0   ;;  %s652_s19 = smov 0   ;;  %s714_s0 = inlined_call_operand.vmem [shape: bf16[4,18], index: 0, kind: input, shape index: {}]   ;;  %s715_s1 = inlined_call_operand.vmem [shape: bf16[4,18,256], index: 1, kind: input, shape index: {}]   ;;  %s716_s2 = inlined_call_operand.vmem [shape: f32[4,1], index: 2, kind: input, shape index: {}]   ;;  %s717_s3 = inlined_call_operand.vmem [shape: f32[4,4,256], index: 3, kind: output, shape index: {0}]   ;;  %s718_s4 = inlined_call_operand.vmem [shape: f32[4,4,1], index: 4, kind: output, shape index: {1}]   ;;  %s719_s5 = inlined_call_operand.vmem [shape: f32[4,4,1], index: 5, kind: output, shape index: {2}]  }
   0x1   :  { %s654_s20 = smov 0  }
   0x2 LB: > { %s28_s21 = sadd.s32 1, %s612_s19  ;;  %p545_p0 = scmp.ge.s32.totalorder %s616_s20, 1  ;;  %s616_s20 = sphi %s654_s20, %s16_s20   ;;  %s612_s19 = sphi %s652_s19, %s721_s19   ;;  %s608_s18 = sphi %s650_s18, %s720_s18  }
   0x3   : > { %p30_p1 = scmp.ge.s32.totalorder %s28_s21, 4  ;;  %p213_p2 = scmp.lt.s32.totalorder %s616_s20, 5 }
   0x5   : > { %s723_s21 = smov (%p30_p1, %s28_s21), 0  ;;  %p214_p3 = pnand %p545_p0, %p213_p2 }
   0x6   : > { %p258_p4 = scmp.lt.s32.totalorder (!%p214_p3), %s608_s18, 3 }
   0x7   : > { %217 = sbr.rel (%p214_p3) target bundleno = 282 (0x11a), region = 32 }
   0xc   : > { %v618_v0 = vmov 0   ;;  %v297_v1 = vld [vmem:[%s716_s2] sm:$0xf]  ;;  %s725_s18 = smov (!%p258_p4, %s608_s18), 3  ;;  %vm322_vm0 = vcmask 1040384   ;;  %vm318_vm1 = vcmask 146432  }
   0xd   : > { %593 = vset.pattern.permute.xlu0 %v618_v0  ;;  %s566_s24 = smul.u32 24, %s725_s18  ;;  %v293_v15 = vld [vmem:[%s714_s0] sm:$0x3]  ;;  %s549_s30 = sshll.u32 %s725_s18, 2  ;;  %vm290_vm2 = vcmask 3072   ;;  %v619_v16 = vmov 0.0  }
   0xe   : > { %300 = vperm.xlu0 %593, %v297_v1   ;;  %s684_s8 = scalar_lea.vmem %s718_s4, %s549_s30  ;;  %s691_s11 = scalar_lea.vmem %s719_s5, %s549_s30  ;;  %vm358_vm3 = vcmask 1043456  }
   0xf   : > { %s265_s27 = scalar_lea.vmem %s715_s1, %s566_s24  ;;  %291 = vst.msk [vmem:[%s684_s8] sm:$0xf] %vm290_vm2, %v619_v16  ;;  %s563_s12 = sshll.u32 %s725_s18, 3 }
  0x10   : > { %v296_v2 = vld [vmem:[%s265_s27 + $0x10] sm:$0x11]  ;;  %v553_v5 = vld [vmem:[%s265_s27] sm:$0xf]  ;;  %v565_v8 = vld [vmem:[%s265_s27 + $0x4] sm:$0xf0]  ;;  %s275_s15 = scalar_lea.vmem %s717_s3, %s563_s12 }
  0x11   : > { %v310_v3 = vunpack.c.l.b16 %v296_v2  ;;  %v311_v4 = vunpack.c.h.b16 %v296_v2  ;;  %v564_v9 = vld [vmem:[%s265_s27 + $0x4] sm:$0xf]  ;;  %v555_v10 = vld [vmem:[%s265_s27 + $0x8] sm:$0xf0]  ;;  %v554_v13 = vor.u32 %v565_v8, %v553_v5  ;;  %292 = vst.msk [vmem:[%s691_s11] sm:$0xf] %vm290_vm2, %v619_v16 }
  0x12   : > { %v558_v14 = vor.u32 %v564_v9, %v555_v10 }
  0x13   : > { %v314_v6 = vpack.c.b16 %v310_v3, %v310_v3  ;;  %v315_v7 = vpack.c.b16 %v311_v4, %v311_v4 }
  0x15   : > { %v324_v11 = vsel %vm322_vm0, %v314_v6, 0  ;;  %v327_v12 = vsel %vm322_vm0, %v315_v7, 0 }
  0x16   : > { %335 = vmatpush.bf16.msra.mxu0 %v324_v11  ;;  %348 = vmatpush.bf16.msra.mxu1 %v327_v12  ;;  %v373_v34 = vld [vmem:[%s684_s8] sm:$0xf] }
  0x18   : > { %v382_v37 = vld [vmem:[%s691_s11] sm:$0xf] }
  0x1a   : > { %336 = vmatpush.bf16.msra.mxu0 %v554_v13  ;;  %349 = vmatpush.bf16.msra.mxu1 %v558_v14 }
  0x1d   : > { %559 = vmatmul.msk.bf16.vlgmr.msra.gmra.mxu0 %vm318_vm1, %v293_v15  ;;  %560 = vmatmul.msk.bf16.vlgmr.msra.gmra.mxu1 %vm318_vm1, %v293_v15 }
  0x80   : > { %v301_v17 = vpop.permute.xlu0 %300 }
  0x9a   : > { %v338_v18 = vpop.f32.mrf.mxu0  ;;  %v351_v19 = vpop.f32.mrf.mxu1 }
  0x9b   : > { %v339_v20 = vadd.f32 %v338_v18, %v301_v17  ;;  %v352_v21 = vadd.f32 %v351_v19, %v301_v17 }
  0x9d   : > { %v357_v22 = vrot.slane %v352_v21, 4  ;;  %v374_v23 = vsel %vm358_vm3, %v339_v20, 0.0  ;;  %v375_v24 = vsel %vm358_vm3, %v352_v21, 0.0  ;;  %v383_v25 = vmul.f32 %v339_v20, %v339_v20 }
  0x9e   : > { %v376_v26 = vadd.f32 %v375_v24, %v374_v23  ;;  %v384_v27 = vmul.f32 %v352_v21, %v352_v21 }
  0x9f   : > { %v359_v28 = vsel %vm358_vm3, %v339_v20, %v357_v22  ;;  %v385_v29 = vsel %vm358_vm3, %v383_v25, 0.0 }
  0xa0   : > { %377 = vadd.xlane.f32.xlu0 %v376_v26  ;;  %361 = vst [vmem:[%s275_s15] sm:$0xff] %v359_v28  ;;  %v386_v30 = vsel %vm358_vm3, %v384_v27, 0.0 }
  0xa1   : > { %v387_v31 = vadd.f32 %v386_v30, %v385_v29 }
  0xa2   : > { %v340_v32 = vpop.f32.mrf.mxu0  ;;  %v353_v33 = vpop.f32.mrf.mxu1 }
  0xa3   : > { %388 = vadd.xlane.f32.xlu1 %v387_v31 }
 0x113   : > { %v378_v35 = vpop.xlane.xlu0 %377 }
 0x114   : > { %v379_v36 = vadd.f32 %v378_v35, %v373_v34 }
 0x116   : > { %381 = vst.msk [vmem:[%s684_s8] sm:$0xf] %vm290_vm2, %v379_v36  ;;  %v389_v38 = vpop.xlane.xlu1 %388 }
 0x117   : > { %v390_v39 = vadd.f32 %v389_v38, %v382_v37 }
 0x119   : > { %391 = vst.msk [vmem:[%s691_s11] sm:$0xf] %vm290_vm2, %v390_v39 }
 0x11a PF: > { %s16_s20 = sadd.s32 1, %s616_s20   ;;  %s720_s18 = smov %s612_s19 }
 0x11b   : > { %p13_p5 = scmp.ge.s32.totalorder %s16_s20, 6   ;;  %s721_s19 = smov %s723_s21 }
 0x11d   :  { %15 = sbr.rel (!%p13_p5) target bundleno = 2 (0x2), region = 90 }

// kernel: _lambda_.87
= control target key start
LH: loop header
LB: loop body
LE: loop exit
PB: predicated region body
PF: predicated region fallthrough
CT: control target
= control target key end

     0   :  { %s672_s18 = smov 0   ;;  %s674_s19 = smov 0   ;;  %s736_s0 = inlined_call_operand.vmem [shape: bf16[4,36], index: 0, kind: input, shape index: {}]   ;;  %s737_s1 = inlined_call_operand.vmem [shape: bf16[4,36,256], index: 1, kind: input, shape index: {}]   ;;  %s738_s2 = inlined_call_operand.vmem [shape: f32[4,1], index: 2, kind: input, shape index: {}]   ;;  %s739_s3 = inlined_call_operand.vmem [shape: f32[4,4,256], index: 3, kind: output, shape index: {0}]   ;;  %s740_s4 = inlined_call_operand.vmem [shape: f32[4,4,1], index: 4, kind: output, shape index: {1}]   ;;  %s741_s5 = inlined_call_operand.vmem [shape: f32[4,4,1], index: 5, kind: output, shape index: {2}]  }
   0x1   :  { %s676_s20 = smov 0  }
   0x2 LB: > { %s28_s21 = sadd.s32 1, %s634_s19  ;;  %p557_p0 = scmp.ge.s32.totalorder %s638_s20, 1  ;;  %s638_s20 = sphi %s676_s20, %s16_s20   ;;  %s634_s19 = sphi %s674_s19, %s743_s19   ;;  %s630_s18 = sphi %s672_s18, %s742_s18  }
   0x3   : > { %p30_p1 = scmp.ge.s32.totalorder %s28_s21, 4  ;;  %p213_p2 = scmp.lt.s32.totalorder %s638_s20, 5 }
   0x5   : > { %s745_s21 = smov (%p30_p1, %s28_s21), 0  ;;  %p214_p3 = pnand %p557_p0, %p213_p2 }
   0x6   : > { %p258_p4 = scmp.lt.s32.totalorder (!%p214_p3), %s630_s18, 3 }
   0x7   : > { %217 = sbr.rel (%p214_p3) target bundleno = 286 (0x11e), region = 32 }
   0xc   : > { %v640_v0 = vmov 0   ;;  %v299_v1 = vld [vmem:[%s738_s2] sm:$0xf]  ;;  %s747_s18 = smov (!%p258_p4, %s630_s18), 3  ;;  %vm334_vm0 = vcmask 1041408   ;;  %vm330_vm1 = vcmask 293888  }
   0xd   : > { %615 = vset.pattern.permute.xlu0 %v640_v0  ;;  %s588_s24 = smul.u32 40, %s747_s18  ;;  %v293_v21 = vld [vmem:[%s736_s0] sm:$0x3]  ;;  %s561_s30 = sshll.u32 %s747_s18, 2  ;;  %vm290_vm2 = vcmask 3072   ;;  %v641_v22 = vmov 0.0  }
   0xe   : > { %302 = vperm.xlu0 %615, %v299_v1   ;;  %s706_s8 = scalar_lea.vmem %s740_s4, %s561_s30  ;;  %s713_s11 = scalar_lea.vmem %s741_s5, %s561_s30  ;;  %vm370_vm3 = vcmask 1043456  }
   0xf   : > { %s265_s27 = scalar_lea.vmem %s737_s1, %s588_s24  ;;  %291 = vst.msk [vmem:[%s706_s8] sm:$0xf] %vm290_vm2, %v641_v22  ;;  %s583_s12 = sshll.u32 %s747_s18, 3 }
  0x10   : > { %v298_v2 = vld [vmem:[%s265_s27 + $0x20] sm:$0x33]  ;;  %v573_v5 = vld [vmem:[%s265_s27 + $0x10] sm:$0xf]  ;;  %v587_v8 = vld [vmem:[%s265_s27 + $0x14] sm:$0xf0]  ;;  %s275_s15 = scalar_lea.vmem %s739_s3, %s583_s12 }
  0x11   : > { %v318_v3 = vunpack.c.l.b16 %v298_v2  ;;  %v319_v4 = vunpack.c.h.b16 %v298_v2  ;;  %v586_v9 = vld [vmem:[%s265_s27 + $0x14] sm:$0xf]  ;;  %v575_v10 = vld [vmem:[%s265_s27 + $0x18] sm:$0xf0]  ;;  %v574_v13 = vor.u32 %v587_v8, %v573_v5  ;;  %v565_v15 = vld [vmem:[%s265_s27] sm:$0xf] }
  0x12   : > { %v578_v14 = vor.u32 %v586_v9, %v575_v10  ;;  %v585_v16 = vld [vmem:[%s265_s27 + $0x4] sm:$0xf0]  ;;  %v584_v17 = vld [vmem:[%s265_s27 + $0x4] sm:$0xf]  ;;  %v567_v18 = vld [vmem:[%s265_s27 + $0x8] sm:$0xf0] }
  0x13   : > { %v324_v6 = vpack.c.b16 %v318_v3, %v318_v3  ;;  %v325_v7 = vpack.c.b16 %v319_v4, %v319_v4  ;;  %v566_v19 = vor.u32 %v585_v16, %v565_v15  ;;  %v570_v20 = vor.u32 %v584_v17, %v567_v18  ;;  %292 = vst.msk [vmem:[%s713_s11] sm:$0xf] %vm290_vm2, %v641_v22 }
  0x15   : > { %v336_v11 = vsel %vm334_vm0, %v324_v6, 0  ;;  %v339_v12 = vsel %vm334_vm0, %v325_v7, 0 }
  0x16   : > { %346 = vmatpush.bf16.msra.mxu0 %v336_v11  ;;  %359 = vmatpush.bf16.msra.mxu1 %v339_v12  ;;  %v385_v40 = vld [vmem:[%s706_s8] sm:$0xf] }
  0x1a   : > { %347 = vmatpush.bf16.msra.mxu0 %v574_v13  ;;  %360 = vmatpush.bf16.msra.mxu1 %v578_v14  ;;  %v394_v43 = vld [vmem:[%s713_s11] sm:$0xf] }
  0x1e   : > { %348 = vmatpush.bf16.msra.mxu0 %v566_v19  ;;  %361 = vmatpush.bf16.msra.mxu1 %v570_v20 }
  0x21   : > { %579 = vmatmul.msk.bf16.vlgmr.msra.gmra.mxu0 %vm330_vm1, %v293_v21  ;;  %580 = vmatmul.msk.bf16.vlgmr.msra.gmra.mxu1 %vm330_vm1, %v293_v21 }
  0x80   : > { %v303_v23 = vpop.permute.xlu0 %302 }
  0x9e   : > { %v350_v24 = vpop.f32.mrf.mxu0  ;;  %v363_v25 = vpop.f32.mrf.mxu1 }
  0x9f   : > { %v351_v26 = vadd.f32 %v350_v24, %v303_v23  ;;  %v364_v27 = vadd.f32 %v363_v25, %v303_v23 }
  0xa1   : > { %v369_v28 = vrot.slane %v364_v27, 4  ;;  %v386_v29 = vsel %vm370_vm3, %v351_v26, 0.0  ;;  %v387_v30 = vsel %vm370_vm3, %v364_v27, 0.0  ;;  %v395_v31 = vmul.f32 %v351_v26, %v351_v26 }
  0xa2   : > { %v388_v32 = vadd.f32 %v387_v30, %v386_v29  ;;  %v396_v33 = vmul.f32 %v364_v27, %v364_v27 }
  0xa3   : > { %v371_v34 = vsel %vm370_vm3, %v351_v26, %v369_v28  ;;  %v397_v35 = vsel %vm370_vm3, %v395_v31, 0.0 }
  0xa4   : > { %389 = vadd.xlane.f32.xlu0 %v388_v32  ;;  %373 = vst [vmem:[%s275_s15] sm:$0xff] %v371_v34  ;;  %v398_v36 = vsel %vm370_vm3, %v396_v33, 0.0 }
  0xa5   : > { %v399_v37 = vadd.f32 %v398_v36, %v397_v35 }
  0xa6   : > { %v352_v38 = vpop.f32.mrf.mxu0  ;;  %v365_v39 = vpop.f32.mrf.mxu1 }
  0xa7   : > { %400 = vadd.xlane.f32.xlu1 %v399_v37 }
 0x117   : > { %v390_v41 = vpop.xlane.xlu0 %389 }
 0x118   : > { %v391_v42 = vadd.f32 %v390_v41, %v385_v40 }
 0x11a   : > { %393 = vst.msk [vmem:[%s706_s8] sm:$0xf] %vm290_vm2, %v391_v42  ;;  %v401_v44 = vpop.xlane.xlu1 %400 }
 0x11b   : > { %v402_v45 = vadd.f32 %v401_v44, %v394_v43 }
 0x11d   : > { %403 = vst.msk [vmem:[%s713_s11] sm:$0xf] %vm290_vm2, %v402_v45 }
 0x11e PF: > { %s16_s20 = sadd.s32 1, %s638_s20   ;;  %s742_s18 = smov %s634_s19 }
 0x11f   : > { %p13_p5 = scmp.ge.s32.totalorder %s16_s20, 6   ;;  %s743_s19 = smov %s745_s21 }
 0x121   :  { %15 = sbr.rel (!%p13_p5) target bundleno = 2 (0x2), region = 90 }

// kernel: _lambda_.89
= control target key start
LH: loop header
LB: loop body
LE: loop exit
PB: predicated region body
PF: predicated region fallthrough
CT: control target
= control target key end

     0   :  { %s596_s18 = smov 0   ;;  %s598_s19 = smov 0   ;;  %s645_s0 = inlined_call_operand.vmem [shape: bf16[8,36], index: 0, kind: input, shape index: {}]   ;;  %s646_s1 = inlined_call_operand.vmem [shape: bf16[4,36,128], index: 1, kind: input, shape index: {}]   ;;  %s647_s2 = inlined_call_operand.vmem [shape: f32[8,1], index: 2, kind: input, shape index: {}]   ;;  %s648_s3 = inlined_call_operand.vmem [shape: f32[4,8,128], index: 3, kind: output, shape index: {0}]   ;;  %s649_s4 = inlined_call_operand.vmem [shape: f32[4,8,1], index: 4, kind: output, shape index: {1}]   ;;  %s650_s5 = inlined_call_operand.vmem [shape: f32[4,8,1], index: 5, kind: output, shape index: {2}]  }
   0x1   :  { %s600_s20 = smov 0  }
   0x2 LB: > { %s28_s21 = sadd.s32 1, %s558_s19  ;;  %p494_p0 = scmp.ge.s32.totalorder %s562_s20, 1  ;;  %s562_s20 = sphi %s600_s20, %s16_s20   ;;  %s558_s19 = sphi %s598_s19, %s652_s19   ;;  %s554_s18 = sphi %s596_s18, %s651_s18  }
   0x3   : > { %p30_p1 = scmp.ge.s32.totalorder %s28_s21, 4  ;;  %p211_p2 = scmp.lt.s32.totalorder %s562_s20, 5 }
   0x5   : > { %s654_s21 = smov (%p30_p1, %s28_s21), 0  ;;  %p212_p3 = pnand %p494_p0, %p211_p2 }
   0x6   : > { %p252_p4 = scmp.lt.s32.totalorder (!%p212_p3), %s554_s18, 3 }
   0x7   : > { %215 = sbr.rel (%p212_p3) target bundleno = 283 (0x11b), region = 32 }
   0xc   : > { %v564_v0 = vmov 0   ;;  %v289_v1 = vld [vmem:[%s647_s2] sm:$0xff]  ;;  %s656_s18 = smov (!%p252_p4, %s554_s18), 3  ;;  %vm314_vm0 = vcmask 1041408   ;;  %vm310_vm1 = vcmask 293888   ;;  %vm280_vm2 = vcmask 7168  }
   0xd   : > { %539 = vset.pattern.permute.xlu0 %v564_v0  ;;  %s512_s24 = smul.u32 20, %s656_s18  ;;  %v283_v8 = vld [vmem:[%s645_s0] sm:$0xf]  ;;  %s496_s30 = sshll.u32 %s656_s18, 3  ;;  %v565_v9 = vmov 0.0   ;;  %v333_v10 = vlaneseq }
   0xe   : > { %292 = vperm.xlu0 %539, %v289_v1   ;;  %s270_s8 = scalar_lea.vmem %s649_s4, %s496_s30  ;;  %s274_s11 = scalar_lea.vmem %s650_s5, %s496_s30 }
   0xf   : > { %s259_s27 = scalar_lea.vmem %s646_s1, %s512_s24  ;;  %281 = vst.msk [vmem:[%s270_s8] sm:$0xff] %vm280_vm2, %v565_v9  ;;  %v334_v11 = vand.u32 127, %v333_v10  ;;  %s266_s14 = scalar_lea.vmem %s648_s3, %s496_s30 }
  0x10   : > { %v288_v2 = vld [vmem:[%s259_s27 + $0x10] sm:$0x3]  ;;  %v511_v6 = vld [vmem:[%s259_s27 + $0x8] sm:$0xff]  ;;  %v510_v7 = vld [vmem:[%s259_s27] sm:$0xff]  ;;  %282 = vst.msk [vmem:[%s274_s11] sm:$0xff] %vm280_vm2, %v565_v9 }
  0x11   : > { %v304_v3 = vunpack.c.l.b16 %v288_v2  ;;  %vm337_vm3 = vcmp.lt.s32.totalorder %v334_v11, 64 }
  0x13   : > { %v307_v4 = vpack.c.b16 %v304_v3, %v304_v3 }
  0x15   : > { %v316_v5 = vsel %vm314_vm0, %v307_v4, 0 }
  0x16   : > { %323 = vmatpush.bf16.msra.mxu0 %v316_v5  ;;  %v339_v18 = vld [vmem:[%s270_s8] sm:$0xff] }
  0x17   : > { %v345_v20 = vld [vmem:[%s274_s11] sm:$0xff] }
  0x1a   : > { %324 = vmatpush.bf16.msra.mxu0 %v511_v6 }
  0x1e   : > { %325 = vmatpush.bf16.msra.mxu0 %v510_v7 }
  0x21   : > { %507 = vmatmul.msk.bf16.vlgmr.msra.gmra.mxu0 %vm310_vm1, %v283_v8 }
  0x80   : > { %v293_v12 = vpop.permute.xlu0 %292 }
  0x9e   : > { %v327_v13 = vpop.f32.mrf.mxu0 }
  0x9f   : > { %v328_v14 = vadd.f32 %v327_v13, %v293_v12 }
  0xa1   : > { %331 = vst [vmem:[%s266_s14] sm:$0xff] %v328_v14  ;;  %v338_v15 = vsel %vm337_vm3, %v328_v14, 0.0 }
  0xa2   : > { %340 = vadd.xlane.f32.xlu0 %v338_v15  ;;  %v346_v16 = vmul.f32 %v338_v15, %v338_v15 }
  0xa4   : > { %347 = vadd.xlane.f32.xlu1 %v346_v16 }
  0xa6   : > { %v329_v17 = vpop.f32.mrf.mxu0 }
 0x115   : > { %v341_v19 = vpop.xlane.xlu0 %340 }
 0x116   : > { %v342_v21 = vadd.f32 %v341_v19, %v339_v18 }
 0x117   : > { %v348_v22 = vpop.xlane.xlu1 %347 }
 0x118   : > { %344 = vst.msk [vmem:[%s270_s8] sm:$0xff] %vm280_vm2, %v342_v21  ;;  %v349_v23 = vadd.f32 %v348_v22, %v345_v20 }
 0x11a   : > { %350 = vst.msk [vmem:[%s274_s11] sm:$0xff] %vm280_vm2, %v349_v23 }
 0x11b PF: > { %s16_s20 = sadd.s32 1, %s562_s20   ;;  %s651_s18 = smov %s558_s19 }
 0x11c   : > { %p13_p5 = scmp.ge.s32.totalorder %s16_s20, 6   ;;  %s652_s19 = smov %s654_s21 }
 0x11e   :  { %15 = sbr.rel (!%p13_p5) target bundleno = 2 (0x2), region = 90 }

// kernel: _lambda_.90
= control target key start
LH: loop header
LB: loop body
LE: loop exit
PB: predicated region body
PF: predicated region fallthrough
CT: control target
= control target key end

     0   :  { %s430_s12 = smov 0   ;;  %s432_s13 = smov 0   ;;  %s466_s0 = inlined_call_operand.vmem [shape: f32[4,8,128], index: 0, kind: input, shape index: {}]   ;;  %s467_s1 = inlined_call_operand.vmem [shape: f32[4,8,1], index: 1, kind: input, shape index: {}]   ;;  %s468_s2 = inlined_call_operand.vmem [shape: f32[4,8,1], index: 2, kind: input, shape index: {}]   ;;  %s469_s3 = inlined_call_operand.vmem [shape: f32[4,8,128], index: 3, kind: output, shape index: {}]  }
   0x1   :  { %s434_s14 = smov 0  }
   0x2 LB: > { %s25_s15 = sadd.s32 1, %s403_s13  ;;  %p352_p0 = scmp.ge.s32.totalorder %s407_s14, 1  ;;  %s407_s14 = sphi %s434_s14, %s13_s14   ;;  %s403_s13 = sphi %s432_s13, %s471_s13   ;;  %s399_s12 = sphi %s430_s12, %s470_s12  }
   0x3   : > { %p27_p1 = scmp.ge.s32.totalorder %s25_s15, 4  ;;  %p173_p2 = scmp.lt.s32.totalorder %s407_s14, 5 }
   0x5   : > { %s473_s15 = smov (%p27_p1, %s25_s15), 0  ;;  %p174_p3 = pnand %p352_p0, %p173_p2 }
   0x6   : > { %p209_p4 = scmp.lt.s32.totalorder (!%p174_p3), %s399_s12, 3 }
   0x7   : > { %177 = sbr.rel (%p174_p3) target bundleno = 145 (0x91), region = 32 }
   0xc   : > { %v409_v0 = vmov 0   ;;  %s475_s12 = smov (!%p209_p4, %s399_s12), 3 }
   0xd   : > { %384 = vset.pattern.permute.xlu0 %v409_v0  ;;  %s353_s16 = sshll.u32 %s475_s12, 3 }
   0xe   : > { %s219_s19 = scalar_lea.vmem %s467_s1, %s353_s16  ;;  %s223_s22 = scalar_lea.vmem %s468_s2, %s353_s16 }
   0xf   : > { %v232_v1 = vld [vmem:[%s219_s19] sm:$0xff]  ;;  %s215_s25 = scalar_lea.vmem %s466_s0, %s353_s16  ;;  %s230_s28 = scalar_lea.vmem %s469_s3, %s353_s16 }
  0x10   : > { %235 = vperm.xlu0 %384, %v232_v1   ;;  %v239_v2 = vld [vmem:[%s223_s22] sm:$0xff] }
  0x11   : > { %v231_v4 = vld [vmem:[%s215_s25] sm:$0xff] }
  0x18   : > { %242 = vperm.xlu0 %384, %v239_v2  }
  0x82   : > { %v236_v3 = vpop.permute.xlu0 %235 }
  0x83   : > { %v238_v5 = vsub.f32 %v231_v4, %v236_v3 }
  0x8a   : > { %v243_v6 = vpop.permute.xlu0 %242 }
  0x8b   : > { %v245_v7 = vmul.f32 %v243_v6, %v238_v5 }
  0x8d   : > { %vm246_vm0 = vcmp.ge.f32.partialorder %v245_v7, 0.0  ;;  %v247_v8 = vmul.f32 0.2, %v245_v7 }
  0x8f   : > { %v248_v9 = vsel %vm246_vm0, %v245_v7, %v247_v8 }
  0x90   : > { %249 = vst [vmem:[%s230_s28] sm:$0xff] %v248_v9 }
  0x91 PF: > { %s13_s14 = sadd.s32 1, %s407_s14   ;;  %s470_s12 = smov %s403_s13 }
  0x92   : > { %p10_p5 = scmp.ge.s32.totalorder %s13_s14, 6   ;;  %s471_s13 = smov %s473_s15 }
  0x94   :  { %12 = sbr.rel (!%p10_p5) target bundleno = 2 (0x2), region = 68 }

// kernel: _lambda_.91
= control target key start
LH: loop header
LB: loop body
LE: loop exit
PB: predicated region body
PF: predicated region fallthrough
CT: control target
= control target key end

     0   :  { %s622_s18 = smov 0   ;;  %s624_s19 = smov 0   ;;  %s671_s0 = inlined_call_operand.vmem [shape: bf16[8,72], index: 0, kind: input, shape index: {}]   ;;  %s672_s1 = inlined_call_operand.vmem [shape: bf16[4,72,128], index: 1, kind: input, shape index: {}]   ;;  %s673_s2 = inlined_call_operand.vmem [shape: f32[8,1], index: 2, kind: input, shape index: {}]   ;;  %s674_s3 = inlined_call_operand.vmem [shape: f32[4,8,128], index: 3, kind: output, shape index: {0}]   ;;  %s675_s4 = inlined_call_operand.vmem [shape: f32[4,8,1], index: 4, kind: output, shape index: {1}]   ;;  %s676_s5 = inlined_call_operand.vmem [shape: f32[4,8,1], index: 5, kind: output, shape index: {2}]  }
   0x1   :  { %s626_s20 = smov 0  }
   0x2 LB: > { %s28_s21 = sadd.s32 1, %s584_s19  ;;  %p510_p0 = scmp.ge.s32.totalorder %s588_s20, 1  ;;  %s588_s20 = sphi %s626_s20, %s16_s20   ;;  %s584_s19 = sphi %s624_s19, %s678_s19   ;;  %s580_s18 = sphi %s622_s18, %s677_s18  }
   0x3   : > { %p30_p1 = scmp.ge.s32.totalorder %s28_s21, 4  ;;  %p211_p2 = scmp.lt.s32.totalorder %s588_s20, 5 }
   0x5   : > { %s680_s21 = smov (%p30_p1, %s28_s21), 0  ;;  %p212_p3 = pnand %p510_p0, %p211_p2 }
   0x6   : > { %p252_p4 = scmp.lt.s32.totalorder (!%p212_p3), %s580_s18, 3 }
   0x7   : > { %215 = sbr.rel (%p212_p3) target bundleno = 291 (0x123), region = 32 }
   0xc   : > { %v590_v0 = vmov 0   ;;  %v293_v1 = vld [vmem:[%s673_s2] sm:$0xff]  ;;  %s682_s18 = smov (!%p252_p4, %s580_s18), 3  ;;  %vm330_vm0 = vcmask 1043456   ;;  %vm326_vm1 = vcmask 588800   ;;  %vm280_vm2 = vcmask 7168  }
   0xd   : > { %565 = vset.pattern.permute.xlu0 %v590_v0  ;;  %s538_s24 = smul.u32 36, %s682_s18  ;;  %v283_v10 = vld [vmem:[%s671_s0] sm:$0xf]  ;;  %s512_s30 = sshll.u32 %s682_s18, 3  ;;  %v591_v11 = vmov 0.0   ;;  %v349_v12 = vlaneseq }
   0xe   : > { %296 = vperm.xlu0 %565, %v293_v1   ;;  %s270_s8 = scalar_lea.vmem %s675_s4, %s512_s30  ;;  %s274_s11 = scalar_lea.vmem %s676_s5, %s512_s30 }
   0xf   : > { %s259_s27 = scalar_lea.vmem %s672_s1, %s538_s24  ;;  %281 = vst.msk [vmem:[%s270_s8] sm:$0xff] %vm280_vm2, %v591_v11  ;;  %v350_v13 = vand.u32 127, %v349_v12  ;;  %s266_s14 = scalar_lea.vmem %s674_s3, %s512_s30 }
  0x10   : > { %v292_v2 = vld [vmem:[%s259_s27 + $0x20] sm:$0xf]  ;;  %v537_v6 = vld [vmem:[%s259_s27 + $0x18] sm:$0xff]  ;;  %v536_v7 = vld [vmem:[%s259_s27 + $0x10] sm:$0xff]  ;;  %282 = vst.msk [vmem:[%s274_s11] sm:$0xff] %vm280_vm2, %v591_v11 }
  0x11   : > { %v316_v3 = vunpack.c.l.b16 %v292_v2  ;;  %v535_v8 = vld [vmem:[%s259_s27 + $0x8] sm:$0xff]  ;;  %v534_v9 = vld [vmem:[%s259_s27] sm:$0xff]  ;;  %vm353_vm3 = vcmp.lt.s32.totalorder %v350_v13, 64 }
  0x13   : > { %v321_v4 = vpack.c.b16 %v316_v3, %v316_v3 }
  0x15   : > { %v332_v5 = vsel %vm330_vm0, %v321_v4, 0 }
  0x16   : > { %337 = vmatpush.bf16.msra.mxu0 %v332_v5  ;;  %v355_v20 = vld [vmem:[%s270_s8] sm:$0xff] }
  0x17   : > { %v361_v22 = vld [vmem:[%s274_s11] sm:$0xff] }
  0x1a   : > { %338 = vmatpush.bf16.msra.mxu0 %v537_v6 }
  0x1e   : > { %339 = vmatpush.bf16.msra.mxu0 %v536_v7 }
  0x22   : > { %340 = vmatpush.bf16.msra.mxu0 %v535_v8 }
  0x26   : > { %341 = vmatpush.bf16.msra.mxu0 %v534_v9 }
  0x29   : > { %531 = vmatmul.msk.bf16.vlgmr.msra.gmra.mxu0 %vm326_vm1, %v283_v10 }
  0x80   : > { %v297_v14 = vpop.permute.xlu0 %296 }
  0xa6   : > { %v343_v15 = vpop.f32.mrf.mxu0 }
  0xa7   : > { %v344_v16 = vadd.f32 %v343_v15, %v297_v14 }
  0xa9   : > { %347 = vst [vmem:[%s266_s14] sm:$0xff] %v344_v16  ;;  %v354_v17 = vsel %vm353_vm3, %v344_v16, 0.0 }
  0xaa   : > { %356 = vadd.xlane.f32.xlu0 %v354_v17  ;;  %v362_v18 = vmul.f32 %v354_v17, %v354_v17 }
  0xac   : > { %363 = vadd.xlane.f32.xlu1 %v362_v18 }
  0xae   : > { %v345_v19 = vpop.f32.mrf.mxu0 }
 0x11d   : > { %v357_v21 = vpop.xlane.xlu0 %356 }
 0x11e   : > { %v358_v23 = vadd.f32 %v357_v21, %v355_v20 }
 0x11f   : > { %v364_v24 = vpop.xlane.xlu1 %363 }
 0x120   : > { %360 = vst.msk [vmem:[%s270_s8] sm:$0xff] %vm280_vm2, %v358_v23  ;;  %v365_v25 = vadd.f32 %v364_v24, %v361_v22 }
 0x122   : > { %366 = vst.msk [vmem:[%s274_s11] sm:$0xff] %vm280_vm2, %v365_v25 }
 0x123 PF: > { %s16_s20 = sadd.s32 1, %s588_s20   ;;  %s677_s18 = smov %s584_s19 }
 0x124   : > { %p13_p5 = scmp.ge.s32.totalorder %s16_s20, 6   ;;  %s678_s19 = smov %s680_s21 }
 0x126   :  { %15 = sbr.rel (!%p13_p5) target bundleno = 2 (0x2), region = 90 }

// kernel: _lambda_.93
= control target key start
LH: loop header
LB: loop body
LE: loop exit
PB: predicated region body
PF: predicated region fallthrough
CT: control target
= control target key end

     0   :  { %s677_s18 = smov 0   ;;  %s679_s19 = smov 0   ;;  %s749_s0 = inlined_call_operand.vmem [shape: bf16[16,72], index: 0, kind: input, shape index: {}]   ;;  %s750_s1 = inlined_call_operand.vmem [shape: bf16[4,72,128], index: 1, kind: input, shape index: {}]   ;;  %s751_s2 = inlined_call_operand.vmem [shape: f32[16,1], index: 2, kind: input, shape index: {}]   ;;  %s752_s3 = inlined_call_operand.vmem [shape: f32[4,16,128], index: 3, kind: output, shape index: {0}]   ;;  %s753_s4 = inlined_call_operand.vmem [shape: f32[4,16,1], index: 4, kind: output, shape index: {1}]   ;;  %s754_s5 = inlined_call_operand.vmem [shape: f32[4,16,1], index: 5, kind: output, shape index: {2}]  }
   0x1   :  { %s681_s20 = smov 0  }
   0x2 LB: > { %s28_s21 = sadd.s32 1, %s639_s19  ;;  %p554_p0 = scmp.ge.s32.totalorder %s643_s20, 1  ;;  %s643_s20 = sphi %s681_s20, %s16_s20   ;;  %s639_s19 = sphi %s679_s19, %s756_s19   ;;  %s635_s18 = sphi %s677_s18, %s755_s18  }
   0x3   : > { %p30_p1 = scmp.ge.s32.totalorder %s28_s21, 4  ;;  %p211_p2 = scmp.lt.s32.totalorder %s643_s20, 5 }
   0x5   : > { %s758_s21 = smov (%p30_p1, %s28_s21), 0  ;;  %p212_p3 = pnand %p554_p0, %p211_p2 }
   0x6   : > { %p255_p4 = scmp.lt.s32.totalorder (!%p212_p3), %s635_s18, 3 }
   0x7   : > { %215 = sbr.rel (%p212_p3) target bundleno = 299 (0x12b), region = 32 }
   0xc   : > { %v302_v0 = vld [vmem:[%s751_s2] sm:$0xff]  ;;  %v645_v1 = vmov 0   ;;  %s760_s18 = smov (!%p255_p4, %s635_s18), 3  ;;  %v303_v3 = vld [vmem:[%s751_s2 + $0x8] sm:$0xff]  ;;  %vm350_vm0 = vcmask 1043456   ;;  %vm346_vm1 = vcmask 588800   ;;  %v371_v13 = vlaneseq }
   0xd   : > { %620 = vset.pattern.permute.xlu0 %v645_v1  ;;  %s593_s24 = smul.u32 36, %s760_s18  ;;  %v588_v11 = vld [vmem:[%s749_s0] sm:$0xff]  ;;  %s585_s7 = sshll.u32 %s760_s18, 4  ;;  %vm286_vm2 = vcmask 7168   ;;  %v646_v12 = vmov 0.0  }
   0xe   : > { %306 = vperm.xlu0 %620, %v302_v0   ;;  %s710_s10 = scalar_lea.vmem %s753_s4, %s585_s7  ;;  %s715_s13 = scalar_lea.vmem %s754_s5, %s585_s7  ;;  %v372_v14 = vand.u32 127, %v371_v13 }
   0xf   : > { %s262_s27 = scalar_lea.vmem %s750_s1, %s593_s24  ;;  %287 = vst.msk [vmem:[%s710_s10] sm:$0xff] %vm286_vm2, %v646_v12  ;;  %s270_s16 = scalar_lea.vmem %s752_s3, %s585_s7 }
  0x10   : > { %v301_v2 = vld [vmem:[%s262_s27 + $0x20] sm:$0xf]  ;;  %v592_v7 = vld [vmem:[%s262_s27 + $0x18] sm:$0xff]  ;;  %v591_v8 = vld [vmem:[%s262_s27 + $0x10] sm:$0xff]  ;;  %288 = vst.msk [vmem:[%s710_s10 + $0x8] sm:$0xff] %vm286_vm2, %v646_v12  ;;  %vm375_vm3 = vcmp.lt.s32.totalorder %v372_v14, 16 }
  0x11   : > { %v336_v4 = vunpack.c.l.b16 %v301_v2  ;;  %v590_v9 = vld [vmem:[%s262_s27 + $0x8] sm:$0xff]  ;;  %v589_v10 = vld [vmem:[%s262_s27] sm:$0xff]  ;;  %289 = vst.msk [vmem:[%s715_s13] sm:$0xff] %vm286_vm2, %v646_v12 }
  0x12   : > { %290 = vst.msk [vmem:[%s715_s13 + $0x8] sm:$0xff] %vm286_vm2, %v646_v12 }
  0x13   : > { %v341_v5 = vpack.c.b16 %v336_v4, %v336_v4 }
  0x15   : > { %v352_v6 = vsel %vm350_vm0, %v341_v5, 0 }
  0x16   : > { %311 = vperm.xlu0 %620, %v303_v3   ;;  %357 = vmatpush.bf16.msra.mxu0 %v352_v6  ;;  %v378_v25 = vld [vmem:[%s710_s10] sm:$0xff] }
  0x17   : > { %v379_v31 = vld [vmem:[%s710_s10 + $0x8] sm:$0xff] }
  0x18   : > { %v389_v27 = vld [vmem:[%s715_s13] sm:$0xff] }
  0x19   : > { %v390_v33 = vld [vmem:[%s715_s13 + $0x8] sm:$0xff] }
  0x1a   : > { %358 = vmatpush.bf16.msra.mxu0 %v592_v7 }
  0x1e   : > { %359 = vmatpush.bf16.msra.mxu0 %v591_v8 }
  0x22   : > { %360 = vmatpush.bf16.msra.mxu0 %v590_v9 }
  0x26   : > { %361 = vmatpush.bf16.msra.mxu0 %v589_v10 }
  0x29   : > { %582 = vmatmul.msk.bf16.vlgmr.msra.gmra.mxu0 %vm346_vm1, %v588_v11 }
  0x80   : > { %v307_v15 = vpop.permute.xlu0 %306 }
  0x88   : > { %v312_v20 = vpop.permute.xlu0 %311 }
  0xa6   : > { %v363_v16 = vpop.f32.mrf.mxu0 }
  0xa7   : > { %v364_v17 = vadd.f32 %v363_v16, %v307_v15 }
  0xa9   : > { %368 = vst [vmem:[%s270_s16] sm:$0xff] %v364_v17  ;;  %v376_v18 = vsel %vm375_vm3, %v364_v17, 0.0 }
  0xaa   : > { %380 = vadd.xlane.f32.xlu1 %v376_v18  ;;  %v391_v19 = vmul.f32 %v376_v18, %v376_v18 }
  0xac   : > { %393 = vadd.xlane.f32.xlu2 %v391_v19 }
  0xae   : > { %v365_v21 = vpop.f32.mrf.mxu0 }
  0xaf   : > { %v366_v22 = vadd.f32 %v365_v21, %v312_v20 }
  0xb1   : > { %369 = vst [vmem:[%s270_s16 + $0x8] sm:$0xff] %v366_v22  ;;  %v377_v23 = vsel %vm375_vm3, %v366_v22, 0.0 }
  0xb2   : > { %382 = vadd.xlane.f32.xlu1 %v377_v23  ;;  %v392_v24 = vmul.f32 %v377_v23, %v377_v23 }
  0xb4   : > { %395 = vadd.xlane.f32.xlu2 %v392_v24 }
 0x11d   : > { %v381_v26 = vpop.xlane.xlu1 %380 }
 0x11e   : > { %v384_v28 = vadd.f32 %v381_v26, %v378_v25 }
 0x11f   : > { %v394_v29 = vpop.xlane.xlu2 %393 }
 0x120   : > { %387 = vst.msk [vmem:[%s710_s10] sm:$0xff] %vm286_vm2, %v384_v28  ;;  %v397_v30 = vadd.f32 %v394_v29, %v389_v27 }
 0x122   : > { %399 = vst.msk [vmem:[%s715_s13] sm:$0xff] %vm286_vm2, %v397_v30 }
 0x125   : > { %v383_v32 = vpop.xlane.xlu1 %382 }
 0x126   : > { %v385_v34 = vadd.f32 %v383_v32, %v379_v31 }
 0x127   : > { %v396_v35 = vpop.xlane.xlu2 %395 }
 0x128   : > { %388 = vst.msk [vmem:[%s710_s10 + $0x8] sm:$0xff] %vm286_vm2, %v385_v34  ;;  %v398_v36 = vadd.f32 %v396_v35, %v390_v33 }
 0x12a   : > { %400 = vst.msk [vmem:[%s715_s13 + $0x8] sm:$0xff] %vm286_vm2, %v398_v36 }
 0x12b PF: > { %s16_s20 = sadd.s32 1, %s643_s20   ;;  %s755_s18 = smov %s639_s19 }
 0x12c   : > { %p13_p5 = scmp.ge.s32.totalorder %s16_s20, 6   ;;  %s756_s19 = smov %s758_s21 }
 0x12e   :  { %15 = sbr.rel (!%p13_p5) target bundleno = 2 (0x2), region = 90 }

// kernel: _lambda_.94
= control target key start
LH: loop header
LB: loop body
LE: loop exit
PB: predicated region body
PF: predicated region fallthrough
CT: control target
= control target key end

     0   :  { %s478_s12 = smov 0   ;;  %s480_s13 = smov 0   ;;  %s517_s0 = inlined_call_operand.vmem [shape: f32[4,16,128], index: 0, kind: input, shape index: {}]   ;;  %s518_s1 = inlined_call_operand.vmem [shape: f32[4,16,1], index: 1, kind: input, shape index: {}]   ;;  %s519_s2 = inlined_call_operand.vmem [shape: f32[4,16,1], index: 2, kind: input, shape index: {}]   ;;  %s520_s3 = inlined_call_operand.vmem [shape: f32[4,16,128], index: 3, kind: output, shape index: {}]  }
   0x1   :  { %s482_s14 = smov 0  }
   0x2 LB: > { %s25_s15 = sadd.s32 1, %s451_s13  ;;  %p391_p0 = scmp.ge.s32.totalorder %s455_s14, 1  ;;  %s455_s14 = sphi %s482_s14, %s13_s14   ;;  %s451_s13 = sphi %s480_s13, %s522_s13   ;;  %s447_s12 = sphi %s478_s12, %s521_s12  }
   0x3   : > { %p27_p1 = scmp.ge.s32.totalorder %s25_s15, 4  ;;  %p176_p2 = scmp.lt.s32.totalorder %s455_s14, 5 }
   0x5   : > { %s524_s15 = smov (%p27_p1, %s25_s15), 0  ;;  %p177_p3 = pnand %p391_p0, %p176_p2 }
   0x6   : > { %p216_p4 = scmp.lt.s32.totalorder (!%p177_p3), %s447_s12, 3 }
   0x7   : > { %180 = sbr.rel (%p177_p3) target bundleno = 148 (0x94), region = 32 }
   0xc   : > { %v457_v0 = vmov 0   ;;  %s526_s12 = smov (!%p216_p4, %s447_s12), 3 }
   0xd   : > { %432 = vset.pattern.permute.xlu1 %v457_v0  ;;  %431 = vset.pattern.permute.xlu0 %v457_v0  ;;  %s402_s16 = sshll.u32 %s526_s12, 4 }
   0xe   : > { %s233_s19 = scalar_lea.vmem %s519_s2, %s402_s16  ;;  %s228_s22 = scalar_lea.vmem %s518_s1, %s402_s16 }
   0xf   : > { %v258_v1 = vld [vmem:[%s233_s19] sm:$0xff]  ;;  %v259_v3 = vld [vmem:[%s233_s19 + $0x8] sm:$0xff]  ;;  %s223_s25 = scalar_lea.vmem %s517_s0, %s402_s16  ;;  %s241_s28 = scalar_lea.vmem %s520_s3, %s402_s16 }
  0x10   : > { %v244_v2 = vld [vmem:[%s228_s22] sm:$0xff]  ;;  %262 = vperm.xlu1 %432, %v258_v1   ;;  %v245_v4 = vld [vmem:[%s228_s22 + $0x8] sm:$0xff] }
  0x11   : > { %248 = vperm.xlu0 %431, %v244_v2   ;;  %v242_v5 = vld [vmem:[%s223_s25] sm:$0xff]  ;;  %v243_v11 = vld [vmem:[%s223_s25 + $0x8] sm:$0xff] }
  0x18   : > { %267 = vperm.xlu1 %432, %v259_v3  }
  0x19   : > { %253 = vperm.xlu0 %431, %v245_v4  }
  0x82   : > { %v263_v6 = vpop.permute.xlu1 %262 }
  0x83   : > { %v249_v7 = vpop.permute.xlu0 %248 }
  0x84   : > { %v256_v8 = vsub.f32 %v242_v5, %v249_v7 }
  0x86   : > { %v270_v9 = vmul.f32 %v263_v6, %v256_v8 }
  0x88   : > { %vm272_vm0 = vcmp.ge.f32.partialorder %v270_v9, 0.0  ;;  %v274_v10 = vmul.f32 0.2, %v270_v9 }
  0x8a   : > { %v276_v12 = vsel %vm272_vm0, %v270_v9, %v274_v10  ;;  %v268_v15 = vpop.permute.xlu1 %267 }
  0x8b   : > { %278 = vst [vmem:[%s241_s28] sm:$0xff] %v276_v12  ;;  %v254_v13 = vpop.permute.xlu0 %253 }
  0x8c   : > { %v257_v14 = vsub.f32 %v243_v11, %v254_v13 }
  0x8e   : > { %v271_v16 = vmul.f32 %v268_v15, %v257_v14 }
  0x90   : > { %vm273_vm1 = vcmp.ge.f32.partialorder %v271_v16, 0.0  ;;  %v275_v17 = vmul.f32 0.2, %v271_v16 }
  0x92   : > { %v277_v18 = vsel %vm273_vm1, %v271_v16, %v275_v17 }
  0x93   : > { %279 = vst [vmem:[%s241_s28 + $0x8] sm:$0xff] %v277_v18 }
  0x94 PF: > { %s13_s14 = sadd.s32 1, %s455_s14   ;;  %s521_s12 = smov %s451_s13 }
  0x95   : > { %p10_p5 = scmp.ge.s32.totalorder %s13_s14, 6   ;;  %s522_s13 = smov %s524_s15 }
  0x97   :  { %12 = sbr.rel (!%p10_p5) target bundleno = 2 (0x2), region = 68 }

// kernel: _lambda_.95
= control target key start
LH: loop header
LB: loop body
LE: loop exit
PB: predicated region body
PF: predicated region fallthrough
CT: control target
= control target key end

     0   :  { %s757_s18 = smov 0   ;;  %s759_s19 = smov 0   ;;  %s842_s0 = inlined_call_operand.vmem [shape: bf16[16,144], index: 0, kind: input, shape index: {}]   ;;  %s843_s1 = inlined_call_operand.vmem [shape: bf16[4,144,128], index: 1, kind: input, shape index: {}]   ;;  %s844_s2 = inlined_call_operand.vmem [shape: f32[16,1], index: 2, kind: input, shape index: {}]   ;;  %s845_s3 = inlined_call_operand.vmem [shape: f32[4,16,128], index: 3, kind: output, shape index: {0}]   ;;  %s846_s4 = inlined_call_operand.vmem [shape: f32[4,16,1], index: 4, kind: output, shape index: {1}]   ;;  %s847_s5 = inlined_call_operand.vmem [shape: f32[4,16,1], index: 5, kind: output, shape index: {2}]  }
   0x1   :  { %s761_s20 = smov 0  }
   0x2 LB: > { %s28_s21 = sadd.s32 1, %s719_s19  ;;  %p604_p0 = scmp.ge.s32.totalorder %s723_s20, 1  ;;  %s723_s20 = sphi %s761_s20, %s16_s20   ;;  %s719_s19 = sphi %s759_s19, %s849_s19   ;;  %s715_s18 = sphi %s757_s18, %s848_s18  }
   0x3   : > { %p30_p1 = scmp.ge.s32.totalorder %s28_s21, 4  ;;  %p211_p2 = scmp.lt.s32.totalorder %s723_s20, 5 }
   0x5   : > { %s851_s21 = smov (%p30_p1, %s28_s21), 0  ;;  %p212_p3 = pnand %p604_p0, %p211_p2 }
   0x6   : > { %p255_p4 = scmp.lt.s32.totalorder (!%p212_p3), %s715_s18, 3 }
   0x7   : > { %215 = sbr.rel (%p212_p3) target bundleno = 308 (0x134), region = 32 }
   0xc   : > { %s853_s18 = smov (!%p255_p4, %s715_s18), 3  ;;  %v662_v1 = vld [vmem:[%s842_s0 + $0x4] sm:$0xf]  ;;  %v616_v2 = vld [vmem:[%s842_s0 + $0x8] sm:$0xf0]  ;;  %v725_v5 = vmov 0   ;;  %v421_v19 = vlaneseq }
   0xd   : > { %s673_s22 = smul.u32 72, %s853_s18  ;;  %700 = vset.pattern.permute.xlu0 %v725_v5  ;;  %v619_v6 = vor.u32 %v662_v1, %v616_v2  ;;  %v311_v7 = vld [vmem:[%s844_s2] sm:$0xff]  ;;  %vm386_vm0 = vcmask 130048   ;;  %v312_v9 = vld [vmem:[%s844_s2 + $0x8] sm:$0xff]  ;;  %s659_s13 = sshll.u32 %s853_s18, 4  ;;  %vm286_vm1 = vcmask 7168  }
   0xe   : > { %315 = vperm.xlu0 %700, %v311_v7   ;;  %v614_v15 = vld [vmem:[%s842_s0] sm:$0xf]  ;;  %v663_v16 = vld [vmem:[%s842_s0 + $0x4] sm:$0xf0]  ;;  %s803_s16 = scalar_lea.vmem %s846_s4, %s659_s13  ;;  %s808_s23 = scalar_lea.vmem %s847_s5, %s659_s13  ;;  %v726_v18 = vmov 0.0   ;;  %v422_v21 = vand.u32 127, %v421_v19 }
   0xf   : > { %s262_s25 = scalar_lea.vmem %s843_s1, %s673_s22  ;;  %v615_v17 = vor.u32 %v663_v16, %v614_v15  ;;  %287 = vst.msk [vmem:[%s803_s16] sm:$0xff] %vm286_vm1, %v726_v18 }
  0x10   : > { %v671_v0 = vld [vmem:[%s262_s25 + $0x38] sm:$0xff]  ;;  %v670_v3 = vld [vmem:[%s262_s25 + $0x30] sm:$0xff]  ;;  %v672_v4 = vld [vmem:[%s262_s25 + $0x40] sm:$0xff]  ;;  %288 = vst.msk [vmem:[%s803_s16 + $0x8] sm:$0xff] %vm286_vm1, %v726_v18  ;;  %vm425_vm2 = vcmp.lt.s32.totalorder %v422_v21, 16 }
  0x11   : > { %390 = vmatpush.bf16.msra.mxu0 %v671_v0  ;;  %411 = vmatpush.bf16.msra.mxu1 %v672_v4  ;;  %v669_v8 = vld [vmem:[%s262_s25 + $0x28] sm:$0xff]  ;;  %v668_v10 = vld [vmem:[%s262_s25 + $0x20] sm:$0xff]  ;;  %v667_v11 = vld [vmem:[%s262_s25 + $0x18] sm:$0xff]  ;;  %289 = vst.msk [vmem:[%s808_s23] sm:$0xff] %vm286_vm1, %v726_v18 }
  0x12   : > { %v666_v12 = vld [vmem:[%s262_s25 + $0x10] sm:$0xff]  ;;  %v665_v13 = vld [vmem:[%s262_s25 + $0x8] sm:$0xff]  ;;  %v664_v14 = vld [vmem:[%s262_s25] sm:$0xff]  ;;  %290 = vst.msk [vmem:[%s808_s23 + $0x8] sm:$0xff] %vm286_vm1, %v726_v18  ;;  %s270_s25 = scalar_lea.vmem %s845_s3, %s659_s13 }
  0x14   : > { %656 = vmatmul.msk.bf16.vlgmr.msra.gmra.mxu1 %vm386_vm0, %v619_v6 }
  0x15   : > { %391 = vmatpush.bf16.msra.mxu0 %v670_v3 }
  0x16   : > { %320 = vperm.xlu0 %700, %v312_v9   ;;  %v428_v35 = vld [vmem:[%s803_s16] sm:$0xff] }
  0x17   : > { %v429_v41 = vld [vmem:[%s803_s16 + $0x8] sm:$0xff] }
  0x18   : > { %v439_v37 = vld [vmem:[%s808_s23] sm:$0xff] }
  0x19   : > { %392 = vmatpush.bf16.msra.mxu0 %v669_v8  ;;  %v440_v43 = vld [vmem:[%s808_s23 + $0x8] sm:$0xff] }
  0x1d   : > { %393 = vmatpush.bf16.msra.mxu0 %v668_v10 }
  0x21   : > { %394 = vmatpush.bf16.msra.mxu0 %v667_v11 }
  0x25   : > { %395 = vmatpush.bf16.msra.mxu0 %v666_v12 }
  0x29   : > { %396 = vmatpush.bf16.msra.mxu0 %v665_v13 }
  0x2d   : > { %397 = vmatpush.bf16.msra.mxu0 %v664_v14 }
  0x30   : > { %398 = vmatmul.bf16.vlgmr.msra.gmra.mxu0 %v615_v17 }
  0x80   : > { %v316_v20 = vpop.permute.xlu0 %315 }
  0x88   : > { %v321_v28 = vpop.permute.xlu0 %320 }
  0x91   : > { %v413_v22 = vpop.f32.mrf.mxu1 }
  0x99   : > { %v415_v31 = vpop.f32.mrf.mxu1 }
  0xad   : > { %v399_v23 = vpop.f32.mrf.mxu0 }
  0xae   : > { %v400_v24 = vadd.f32 %v399_v23, %v316_v20 }
  0xb0   : > { %v414_v25 = vadd.f32 %v413_v22, %v400_v24 }
  0xb2   : > { %v426_v26 = vsel %vm425_vm2, %v414_v25, 0.0  ;;  %418 = vst [vmem:[%s270_s25] sm:$0xff] %v414_v25 }
  0xb3   : > { %430 = vadd.xlane.f32.xlu1 %v426_v26  ;;  %v441_v27 = vmul.f32 %v426_v26, %v426_v26 }
  0xb5   : > { %v401_v29 = vpop.f32.mrf.mxu0  ;;  %443 = vadd.xlane.f32.xlu2 %v441_v27 }
  0xb6   : > { %v402_v30 = vadd.f32 %v401_v29, %v321_v28 }
  0xb8   : > { %v416_v32 = vadd.f32 %v415_v31, %v402_v30 }
  0xba   : > { %419 = vst [vmem:[%s270_s25 + $0x8] sm:$0xff] %v416_v32  ;;  %v427_v33 = vsel %vm425_vm2, %v416_v32, 0.0 }
  0xbb   : > { %432 = vadd.xlane.f32.xlu1 %v427_v33  ;;  %v442_v34 = vmul.f32 %v427_v33, %v427_v33 }
  0xbd   : > { %445 = vadd.xlane.f32.xlu2 %v442_v34 }
 0x126   : > { %v431_v36 = vpop.xlane.xlu1 %430 }
 0x127   : > { %v434_v38 = vadd.f32 %v431_v36, %v428_v35 }
 0x128   : > { %v444_v39 = vpop.xlane.xlu2 %443 }
 0x129   : > { %437 = vst.msk [vmem:[%s803_s16] sm:$0xff] %vm286_vm1, %v434_v38  ;;  %v447_v40 = vadd.f32 %v444_v39, %v439_v37 }
 0x12b   : > { %449 = vst.msk [vmem:[%s808_s23] sm:$0xff] %vm286_vm1, %v447_v40 }
 0x12e   : > { %v433_v42 = vpop.xlane.xlu1 %432 }
 0x12f   : > { %v435_v44 = vadd.f32 %v433_v42, %v429_v41 }
 0x130   : > { %v446_v45 = vpop.xlane.xlu2 %445 }
 0x131   : > { %438 = vst.msk [vmem:[%s803_s16 + $0x8] sm:$0xff] %vm286_vm1, %v435_v44  ;;  %v448_v46 = vadd.f32 %v446_v45, %v440_v43 }
 0x133   : > { %450 = vst.msk [vmem:[%s808_s23 + $0x8] sm:$0xff] %vm286_vm1, %v448_v46 }
 0x134 PF: > { %s16_s20 = sadd.s32 1, %s723_s20   ;;  %s848_s18 = smov %s719_s19 }
 0x135   : > { %p13_p5 = scmp.ge.s32.totalorder %s16_s20, 6   ;;  %s849_s19 = smov %s851_s21 }
 0x137   :  { %15 = sbr.rel (!%p13_p5) target bundleno = 2 (0x2), region = 90 }

// kernel: squeeze.58
= control target key start
LH: loop header
LB: loop body
LE: loop exit
PB: predicated region body
PF: predicated region fallthrough
CT: control target
= control target key end

     0   :  { %s58_s8 = smov 104   ;;  %s59_s9 = smov 112   ;;  %vm7_vm0 = vcmask 64512   ;;  %s85_s0 = inlined_call_operand.vmem [shape: f32[4,32], index: 0, kind: input, shape index: {}]   ;;  %s86_s1 = inlined_call_operand.vmem [shape: f32[4,4,8], index: 1, kind: output, shape index: {}]  }
   0x1   :  { %v4_v0 = vld [vmem:[%s85_s0] sm:$0xf]  ;;  %s57_s0 = smov 120  }
   0x2   :  { %5 = vst [vmem:[#allocation1] sm:$0xf] %v4_v0 }
   0x9   :  { %v9_v1 = vld [vmem:[#allocation1] sm:$0xf]  }
   0xa   :  { %v21_v2 = vld [vmem:[#allocation1] sm:$0xf]   ;;  %10 = vrot.lane.b32.xlu0 %v9_v1, %s57_s0 }
   0xb   :  { %22 = vrot.lane.b32.xlu1 %v21_v2, %s58_s8  ;;  %v15_v3 = vld [vmem:[#allocation1] sm:$0xf]  }
   0xc   :  { %v6_v4 = vld [vmem:[#allocation1] sm:$0xf]  }
   0xd   :  { %8 = vst.msk [vmem:[#allocation0] ss:$8 sm:$0xf] %vm7_vm0, %v6_v4  }
  0x12   :  { %16 = vrot.lane.b32.xlu0 %v15_v3, %s59_s9 }
  0x7c   :  { %v11_v5 = vpop.permute.xlu0 %10  }
  0x7d   :  { %v23_v6 = vpop.permute.xlu1 %22   ;;  %14 = vst.msk [vmem:[#allocation0 + $0x1] ss:$8 sm:$0xf] %vm7_vm0, %v11_v5  }
  0x7e   :  { %26 = vst.msk [vmem:[#allocation0 + $0x3] ss:$8 sm:$0xf] %vm7_vm0, %v23_v6  }
  0x84   :  { %v17_v7 = vpop.permute.xlu0 %16  }
  0x85   :  { %20 = vst.msk [vmem:[#allocation0 + $0x2] ss:$8 sm:$0xf] %vm7_vm0, %v17_v7  }
  0x8c   :  { %v29_v8 = vld [vmem:[#allocation0] sm:$0xf]  ;;  %v34_v9 = vld [vmem:[#allocation0 + $0x8] sm:$0xf]  ;;  %v40_v10 = vld [vmem:[#allocation0 + $0x10] sm:$0xf] }
  0x8d   :  { %32 = vst [vmem:[%s86_s1] sm:$0xf] %v29_v8  ;;  %v46_v11 = vld [vmem:[#allocation0 + $0x18] sm:$0xf] }
  0x8e   :  { %51 = vst [vmem:[%s86_s1 + $0x4] sm:$0xf] %v34_v9 }
  0x8f   :  { %52 = vst [vmem:[%s86_s1 + $0x8] sm:$0xf] %v40_v10 }
  0x90   :  { %53 = vst [vmem:[%s86_s1 + $0xc] sm:$0xf] %v46_v11 }

// kernel: _lambda_.97
= control target key start
LH: loop header
LB: loop body
LE: loop exit
PB: predicated region body
PF: predicated region fallthrough
CT: control target
= control target key end

     0   :  { %s696_s18 = smov 0   ;;  %s698_s19 = smov 0   ;;  %s806_s0 = inlined_call_operand.vmem [shape: bf16[32,16], index: 0, kind: input, shape index: {}]   ;;  %s807_s1 = inlined_call_operand.vmem [shape: bf16[4,16,128], index: 1, kind: input, shape index: {}]   ;;  %s808_s2 = inlined_call_operand.vmem [shape: f32[32,1], index: 2, kind: input, shape index: {}]   ;;  %s809_s3 = inlined_call_operand.vmem [shape: f32[4,32,128], index: 3, kind: output, shape index: {0}]   ;;  %s810_s4 = inlined_call_operand.vmem [shape: f32[4,32,1], index: 4, kind: output, shape index: {1}]   ;;  %s811_s5 = inlined_call_operand.vmem [shape: f32[4,32,1], index: 5, kind: output, shape index: {2}]  }
   0x1   :  { %s700_s20 = smov 0  }
   0x2 LB: > { %s28_s21 = sadd.s32 1, %s658_s19  ;;  %p579_p0 = scmp.ge.s32.totalorder %s662_s20, 1  ;;  %s662_s20 = sphi %s700_s20, %s16_s20   ;;  %s658_s19 = sphi %s698_s19, %s813_s19   ;;  %s654_s18 = sphi %s696_s18, %s812_s18  }
   0x3   : > { %p30_p1 = scmp.ge.s32.totalorder %s28_s21, 4  ;;  %p211_p2 = scmp.lt.s32.totalorder %s662_s20, 5 }
   0x5   : > { %s815_s21 = smov (%p30_p1, %s28_s21), 0  ;;  %p212_p3 = pnand %p579_p0, %p211_p2 }
   0x6   : > { %p255_p4 = scmp.lt.s32.totalorder (!%p212_p3), %s654_s18, 3 }
   0x7   : > { %215 = sbr.rel (%p212_p3) target bundleno = 307 (0x133), region = 32 }
   0xc   : > { %v301_v0 = vld [vmem:[%s808_s2] sm:$0xff]  ;;  %v664_v1 = vmov 0   ;;  %v303_v2 = vld [vmem:[%s808_s2 + $0x10] sm:$0xff]  ;;  %s817_s18 = smov (!%p255_p4, %s654_s18), 3  ;;  %v302_v5 = vld [vmem:[%s808_s2 + $0x8] sm:$0xff]  ;;  %vm341_vm0 = vcmask 130048   ;;  %v372_v8 = vlaneseq }
   0xd   : > { %638 = vset.pattern.permute.xlu0 %v664_v1  ;;  %639 = vset.pattern.permute.xlu1 %v664_v1  ;;  %s604_s26 = sshll.u32 %s817_s18, 3  ;;  %v608_v4 = vld [vmem:[%s806_s0] sm:$0xff]  ;;  %v609_v6 = vld [vmem:[%s806_s0 + $0x8] sm:$0xff]  ;;  %v304_v7 = vld [vmem:[%s808_s2 + $0x18] sm:$0xff]  ;;  %s735_s13 = sshll.u32 %s817_s18, 5  ;;  %vm286_vm2 = vcmask 7168  }
   0xe   : > { %307 = vperm.xlu0 %638, %v301_v0   ;;  %317 = vperm.xlu1 %639, %v303_v2   ;;  %s262_s29 = scalar_lea.vmem %s807_s1, %s604_s26  ;;  %v373_v9 = vand.u32 127, %v372_v8  ;;  %s270_s16 = scalar_lea.vmem %s809_s3, %s735_s13  ;;  %v665_v26 = vmov 0.0  }
   0xf   : > { %v610_v3 = vld [vmem:[%s262_s29] sm:$0xff]  ;;  %s747_s22 = scalar_lea.vmem %s810_s4, %s735_s13  ;;  %s757_s25 = scalar_lea.vmem %s811_s5, %s735_s13 }
  0x10   : > { %355 = vmatpush.bf16.msra.mxu0 %v610_v3  ;;  %611 = vmatpush.bf16.msra.mxu1 %v610_v3  ;;  %vm376_vm1 = vcmp.lt.s32.totalorder %v373_v9, 16  ;;  %287 = vst.msk [vmem:[%s747_s22] sm:$0xff] %vm286_vm2, %v665_v26 }
  0x11   : > { %288 = vst.msk [vmem:[%s747_s22 + $0x8] sm:$0xff] %vm286_vm2, %v665_v26 }
  0x12   : > { %289 = vst.msk [vmem:[%s747_s22 + $0x10] sm:$0xff] %vm286_vm2, %v665_v26 }
  0x13   : > { %600 = vmatmul.msk.bf16.vlgmr.msra.gmra.mxu0 %vm341_vm0, %v608_v4  ;;  %601 = vmatmul.msk.bf16.vlgmr.msra.gmra.mxu1 %vm341_vm0, %v609_v6  ;;  %290 = vst.msk [vmem:[%s747_s22 + $0x18] sm:$0xff] %vm286_vm2, %v665_v26 }
  0x14   : > { %291 = vst.msk [vmem:[%s757_s25] sm:$0xff] %vm286_vm2, %v665_v26 }
  0x15   : > { %292 = vst.msk [vmem:[%s757_s25 + $0x8] sm:$0xff] %vm286_vm2, %v665_v26 }
  0x16   : > { %312 = vperm.xlu0 %638, %v302_v5   ;;  %322 = vperm.xlu1 %639, %v304_v7   ;;  %293 = vst.msk [vmem:[%s757_s25 + $0x10] sm:$0xff] %vm286_vm2, %v665_v26 }
  0x17   : > { %294 = vst.msk [vmem:[%s757_s25 + $0x18] sm:$0xff] %vm286_vm2, %v665_v26  ;;  %v381_v31 = vld [vmem:[%s747_s22] sm:$0xff] }
  0x18   : > { %v382_v37 = vld [vmem:[%s747_s22 + $0x8] sm:$0xff] }
  0x19   : > { %v383_v32 = vld [vmem:[%s747_s22 + $0x10] sm:$0xff] }
  0x1a   : > { %v384_v38 = vld [vmem:[%s747_s22 + $0x18] sm:$0xff] }
  0x1b   : > { %v402_v43 = vld [vmem:[%s757_s25] sm:$0xff] }
  0x1c   : > { %v403_v49 = vld [vmem:[%s757_s25 + $0x8] sm:$0xff] }
  0x1d   : > { %v404_v46 = vld [vmem:[%s757_s25 + $0x10] sm:$0xff] }
  0x1e   : > { %v405_v52 = vld [vmem:[%s757_s25 + $0x18] sm:$0xff] }
  0x80   : > { %v318_v10 = vpop.permute.xlu1 %317  ;;  %v308_v11 = vpop.permute.xlu0 %307 }
  0x88   : > { %v323_v18 = vpop.permute.xlu1 %322  ;;  %v313_v19 = vpop.permute.xlu0 %312 }
  0x90   : > { %v357_v12 = vpop.f32.mrf.mxu0  ;;  %v362_v13 = vpop.f32.mrf.mxu1 }
  0x91   : > { %v358_v14 = vadd.f32 %v357_v12, %v308_v11  ;;  %v363_v15 = vadd.f32 %v362_v13, %v318_v10 }
  0x93   : > { %367 = vst [vmem:[%s270_s16] sm:$0xff] %v358_v14  ;;  %v377_v16 = vsel %vm376_vm1, %v358_v14, 0.0  ;;  %v379_v17 = vsel %vm376_vm1, %v363_v15, 0.0 }
  0x94   : > { %385 = vadd.xlane.f32.xlu2 %v377_v16  ;;  %369 = vst [vmem:[%s270_s16 + $0x10] sm:$0xff] %v363_v15  ;;  %389 = vadd.xlane.f32.xlu0 %v379_v17  ;;  %v406_v27 = vmul.f32 %v377_v16, %v377_v16  ;;  %v408_v28 = vmul.f32 %v379_v17, %v379_v17 }
  0x98   : > { %v359_v20 = vpop.f32.mrf.mxu0  ;;  %v364_v21 = vpop.f32.mrf.mxu1 }
  0x99   : > { %v360_v22 = vadd.f32 %v359_v20, %v313_v19  ;;  %v365_v23 = vadd.f32 %v364_v21, %v323_v18 }
  0x9b   : > { %368 = vst [vmem:[%s270_s16 + $0x8] sm:$0xff] %v360_v22  ;;  %v378_v24 = vsel %vm376_vm1, %v360_v22, 0.0  ;;  %v380_v25 = vsel %vm376_vm1, %v365_v23, 0.0 }
  0x9c   : > { %387 = vadd.xlane.f32.xlu2 %v378_v24  ;;  %370 = vst [vmem:[%s270_s16 + $0x18] sm:$0xff] %v365_v23  ;;  %391 = vadd.xlane.f32.xlu1 %v380_v25  ;;  %v407_v29 = vmul.f32 %v378_v24, %v378_v24  ;;  %v409_v30 = vmul.f32 %v380_v25, %v380_v25 }
  0xa4   : > { %410 = vadd.xlane.f32.xlu2 %v406_v27 }
  0xac   : > { %414 = vadd.xlane.f32.xlu2 %v408_v28 }
  0xb4   : > { %412 = vadd.xlane.f32.xlu2 %v407_v29 }
  0xbc   : > { %416 = vadd.xlane.f32.xlu2 %v409_v30 }
 0x107   : > { %v386_v33 = vpop.xlane.xlu2 %385  ;;  %v390_v34 = vpop.xlane.xlu0 %389 }
 0x108   : > { %v393_v35 = vadd.f32 %v386_v33, %v381_v31  ;;  %v395_v36 = vadd.f32 %v390_v34, %v383_v32 }
 0x10a   : > { %398 = vst.msk [vmem:[%s747_s22] sm:$0xff] %vm286_vm2, %v393_v35 }
 0x10b   : > { %400 = vst.msk [vmem:[%s747_s22 + $0x10] sm:$0xff] %vm286_vm2, %v395_v36 }
 0x10f   : > { %v388_v39 = vpop.xlane.xlu2 %387  ;;  %v392_v40 = vpop.xlane.xlu1 %391 }
 0x110   : > { %v394_v41 = vadd.f32 %v388_v39, %v382_v37  ;;  %v396_v42 = vadd.f32 %v392_v40, %v384_v38 }
 0x112   : > { %399 = vst.msk [vmem:[%s747_s22 + $0x8] sm:$0xff] %vm286_vm2, %v394_v41 }
 0x113   : > { %401 = vst.msk [vmem:[%s747_s22 + $0x18] sm:$0xff] %vm286_vm2, %v396_v42 }
 0x117   : > { %v411_v44 = vpop.xlane.xlu2 %410 }
 0x118   : > { %v418_v45 = vadd.f32 %v411_v44, %v402_v43 }
 0x11a   : > { %422 = vst.msk [vmem:[%s757_s25] sm:$0xff] %vm286_vm2, %v418_v45 }
 0x11f   : > { %v415_v47 = vpop.xlane.xlu2 %414 }
 0x120   : > { %v420_v48 = vadd.f32 %v415_v47, %v404_v46 }
 0x122   : > { %424 = vst.msk [vmem:[%s757_s25 + $0x10] sm:$0xff] %vm286_vm2, %v420_v48 }
 0x127   : > { %v413_v50 = vpop.xlane.xlu2 %412 }
 0x128   : > { %v419_v51 = vadd.f32 %v413_v50, %v403_v49 }
 0x12a   : > { %423 = vst.msk [vmem:[%s757_s25 + $0x8] sm:$0xff] %vm286_vm2, %v419_v51 }
 0x12f   : > { %v417_v53 = vpop.xlane.xlu2 %416 }
 0x130   : > { %v421_v54 = vadd.f32 %v417_v53, %v405_v52 }
 0x132   : > { %425 = vst.msk [vmem:[%s757_s25 + $0x18] sm:$0xff] %vm286_vm2, %v421_v54 }
 0x133 PF: > { %s16_s20 = sadd.s32 1, %s662_s20   ;;  %s812_s18 = smov %s658_s19 }
 0x134   : > { %p13_p5 = scmp.ge.s32.totalorder %s16_s20, 6   ;;  %s813_s19 = smov %s815_s21 }
 0x136   :  { %15 = sbr.rel (!%p13_p5) target bundleno = 2 (0x2), region = 90 }

// kernel: _lambda_.103
= control target key start
LH: loop header
LB: loop body
LE: loop exit
PB: predicated region body
PF: predicated region fallthrough
CT: control target
= control target key end

     0   :  { %s615_s18 = smov 0   ;;  %s617_s19 = smov 0   ;;  %s687_s0 = inlined_call_operand.vmem [shape: bf16[16,8], index: 0, kind: input, shape index: {}]   ;;  %s688_s1 = inlined_call_operand.vmem [shape: bf16[4,8,128], index: 1, kind: input, shape index: {}]   ;;  %s689_s2 = inlined_call_operand.vmem [shape: f32[16,1], index: 2, kind: input, shape index: {}]   ;;  %s690_s3 = inlined_call_operand.vmem [shape: f32[4,16,128], index: 3, kind: output, shape index: {0}]   ;;  %s691_s4 = inlined_call_operand.vmem [shape: f32[4,16,1], index: 4, kind: output, shape index: {1}]   ;;  %s692_s5 = inlined_call_operand.vmem [shape: f32[4,16,1], index: 5, kind: output, shape index: {2}]  }
   0x1   :  { %s619_s20 = smov 0  }
   0x2 LB: > { %s28_s21 = sadd.s32 1, %s577_s19  ;;  %p513_p0 = scmp.ge.s32.totalorder %s581_s20, 1  ;;  %s581_s20 = sphi %s619_s20, %s16_s20   ;;  %s577_s19 = sphi %s617_s19, %s694_s19   ;;  %s573_s18 = sphi %s615_s18, %s693_s18  }
   0x3   : > { %p30_p1 = scmp.ge.s32.totalorder %s28_s21, 4  ;;  %p210_p2 = scmp.lt.s32.totalorder %s581_s20, 5 }
   0x5   : > { %s696_s21 = smov (%p30_p1, %s28_s21), 0  ;;  %p211_p3 = pnand %p513_p0, %p210_p2 }
   0x6   : > { %p253_p4 = scmp.lt.s32.totalorder (!%p211_p3), %s573_s18, 3 }
   0x7   : > { %214 = sbr.rel (%p211_p3) target bundleno = 278 (0x116), region = 32 }
   0xc   : > { %v291_v0 = vld [vmem:[%s689_s2] sm:$0xff]  ;;  %v583_v1 = vmov 0   ;;  %s698_s18 = smov (!%p253_p4, %s573_s18), 3  ;;  %vm312_vm0 = vcmask 1043456   ;;  %v292_v5 = vld [vmem:[%s689_s2 + $0x8] sm:$0xff]  ;;  %vm308_vm1 = vcmask 64512   ;;  %v333_v7 = vlaneseq }
   0xd   : > { %558 = vset.pattern.permute.xlu0 %v583_v1  ;;  %s514_s24 = sshll.u32 %s698_s18, 2  ;;  %v531_v4 = vld [vmem:[%s687_s0] sm:$0xff]  ;;  %s528_s7 = sshll.u32 %s698_s18, 4  ;;  %vm283_vm2 = vcmask 7168   ;;  %v584_v6 = vmov 0.0  }
   0xe   : > { %295 = vperm.xlu0 %558, %v291_v0   ;;  %s259_s27 = scalar_lea.vmem %s688_s1, %s514_s24  ;;  %s648_s10 = scalar_lea.vmem %s691_s4, %s528_s7  ;;  %v334_v8 = vand.u32 127, %v333_v7 }
   0xf   : > { %v290_v2 = vld [vmem:[%s259_s27] sm:$0xf]  ;;  %s653_s13 = scalar_lea.vmem %s692_s5, %s528_s7  ;;  %284 = vst.msk [vmem:[%s648_s10] sm:$0xff] %vm283_vm2, %v584_v6  ;;  %s267_s16 = scalar_lea.vmem %s690_s3, %s528_s7 }
  0x10   : > { %v314_v3 = vsel %vm312_vm0, %v290_v2, 0  ;;  %285 = vst.msk [vmem:[%s648_s10 + $0x8] sm:$0xff] %vm283_vm2, %v584_v6  ;;  %vm337_vm3 = vcmp.lt.s32.totalorder %v334_v8, 64 }
  0x11   : > { %323 = vmatpush.bf16.msra.mxu0 %v314_v3  ;;  %286 = vst.msk [vmem:[%s653_s13] sm:$0xff] %vm283_vm2, %v584_v6 }
  0x12   : > { %287 = vst.msk [vmem:[%s653_s13 + $0x8] sm:$0xff] %vm283_vm2, %v584_v6 }
  0x14   : > { %525 = vmatmul.msk.bf16.vlgmr.msra.gmra.mxu0 %vm308_vm1, %v531_v4 }
  0x16   : > { %300 = vperm.xlu0 %558, %v292_v5   ;;  %v340_v19 = vld [vmem:[%s648_s10] sm:$0xff] }
  0x17   : > { %v341_v25 = vld [vmem:[%s648_s10 + $0x8] sm:$0xff] }
  0x18   : > { %v351_v21 = vld [vmem:[%s653_s13] sm:$0xff] }
  0x19   : > { %v352_v27 = vld [vmem:[%s653_s13 + $0x8] sm:$0xff] }
  0x80   : > { %v296_v9 = vpop.permute.xlu0 %295 }
  0x88   : > { %v301_v14 = vpop.permute.xlu0 %300 }
  0x91   : > { %v325_v10 = vpop.f32.mrf.mxu0 }
  0x92   : > { %v326_v11 = vadd.f32 %v325_v10, %v296_v9 }
  0x94   : > { %330 = vst [vmem:[%s267_s16] sm:$0xff] %v326_v11  ;;  %v338_v12 = vsel %vm337_vm3, %v326_v11, 0.0 }
  0x95   : > { %342 = vadd.xlane.f32.xlu1 %v338_v12  ;;  %v353_v13 = vmul.f32 %v338_v12, %v338_v12 }
  0x97   : > { %355 = vadd.xlane.f32.xlu2 %v353_v13 }
  0x99   : > { %v327_v15 = vpop.f32.mrf.mxu0 }
  0x9a   : > { %v328_v16 = vadd.f32 %v327_v15, %v301_v14 }
  0x9c   : > { %331 = vst [vmem:[%s267_s16 + $0x8] sm:$0xff] %v328_v16  ;;  %v339_v17 = vsel %vm337_vm3, %v328_v16, 0.0 }
  0x9d   : > { %344 = vadd.xlane.f32.xlu1 %v339_v17  ;;  %v354_v18 = vmul.f32 %v339_v17, %v339_v17 }
  0x9f   : > { %357 = vadd.xlane.f32.xlu2 %v354_v18 }
 0x108   : > { %v343_v20 = vpop.xlane.xlu1 %342 }
 0x109   : > { %v346_v22 = vadd.f32 %v343_v20, %v340_v19 }
 0x10a   : > { %v356_v23 = vpop.xlane.xlu2 %355 }
 0x10b   : > { %349 = vst.msk [vmem:[%s648_s10] sm:$0xff] %vm283_vm2, %v346_v22  ;;  %v359_v24 = vadd.f32 %v356_v23, %v351_v21 }
 0x10d   : > { %361 = vst.msk [vmem:[%s653_s13] sm:$0xff] %vm283_vm2, %v359_v24 }
 0x110   : > { %v345_v26 = vpop.xlane.xlu1 %344 }
 0x111   : > { %v347_v28 = vadd.f32 %v345_v26, %v341_v25 }
 0x112   : > { %v358_v29 = vpop.xlane.xlu2 %357 }
 0x113   : > { %350 = vst.msk [vmem:[%s648_s10 + $0x8] sm:$0xff] %vm283_vm2, %v347_v28  ;;  %v360_v30 = vadd.f32 %v358_v29, %v352_v27 }
 0x115   : > { %362 = vst.msk [vmem:[%s653_s13 + $0x8] sm:$0xff] %vm283_vm2, %v360_v30 }
 0x116 PF: > { %s16_s20 = sadd.s32 1, %s581_s20   ;;  %s693_s18 = smov %s577_s19 }
 0x117   : > { %p13_p5 = scmp.ge.s32.totalorder %s16_s20, 6   ;;  %s694_s19 = smov %s696_s21 }
 0x119   :  { %15 = sbr.rel (!%p13_p5) target bundleno = 2 (0x2), region = 90 }

// kernel: _lambda_.99
= control target key start
LH: loop header
LB: loop body
LE: loop exit
PB: predicated region body
PF: predicated region fallthrough
CT: control target
= control target key end

     0   :  { %s698_s18 = smov 0   ;;  %s700_s19 = smov 0   ;;  %s751_s0 = inlined_call_operand.vmem [shape: bf16[8,144], index: 0, kind: input, shape index: {}]   ;;  %s752_s1 = inlined_call_operand.vmem [shape: bf16[4,144,128], index: 1, kind: input, shape index: {}]   ;;  %s753_s2 = inlined_call_operand.vmem [shape: f32[8,1], index: 2, kind: input, shape index: {}]   ;;  %s754_s3 = inlined_call_operand.vmem [shape: f32[4,8,128], index: 3, kind: output, shape index: {0}]   ;;  %s755_s4 = inlined_call_operand.vmem [shape: f32[4,8,1], index: 4, kind: output, shape index: {1}]   ;;  %s756_s5 = inlined_call_operand.vmem [shape: f32[4,8,1], index: 5, kind: output, shape index: {2}]  }
   0x1   :  { %s702_s20 = smov 0  }
   0x2 LB: > { %s28_s21 = sadd.s32 1, %s660_s19  ;;  %p561_p0 = scmp.ge.s32.totalorder %s664_s20, 1  ;;  %s664_s20 = sphi %s702_s20, %s16_s20   ;;  %s660_s19 = sphi %s700_s19, %s758_s19   ;;  %s656_s18 = sphi %s698_s18, %s757_s18  }
   0x3   : > { %p30_p1 = scmp.ge.s32.totalorder %s28_s21, 4  ;;  %p211_p2 = scmp.lt.s32.totalorder %s664_s20, 5 }
   0x5   : > { %s760_s21 = smov (%p30_p1, %s28_s21), 0  ;;  %p212_p3 = pnand %p561_p0, %p211_p2 }
   0x6   : > { %p252_p4 = scmp.lt.s32.totalorder (!%p212_p3), %s656_s18, 3 }
   0x7   : > { %215 = sbr.rel (%p212_p3) target bundleno = 300 (0x12c), region = 32 }
   0xc   : > { %s762_s18 = smov (!%p252_p4, %s656_s18), 3  ;;  %v283_v0 = vld [vmem:[%s751_s0] sm:$0xff]  ;;  %v666_v5 = vmov 0   ;;  %vm368_vm0 = vcmask 130048   ;;  %vm280_vm1 = vcmask 7168   ;;  %v667_v17 = vmov 0.0  }
   0xd   : > { %s614_s24 = smul.u32 72, %s762_s18  ;;  %v310_v1 = vunpack.c.h.b16 %v283_v0  ;;  %641 = vset.pattern.permute.xlu0 %v666_v5  ;;  %v302_v7 = vld [vmem:[%s753_s2] sm:$0xff]  ;;  %v309_v13 = vunpack.c.l.b16 %v283_v0  ;;  %s563_s30 = sshll.u32 %s762_s18, 3  ;;  %v400_v19 = vlaneseq }
   0xe   : > { %305 = vperm.xlu0 %641, %v302_v7   ;;  %s270_s8 = scalar_lea.vmem %s755_s4, %s563_s30  ;;  %s274_s11 = scalar_lea.vmem %s756_s5, %s563_s30 }
   0xf   : > { %s259_s27 = scalar_lea.vmem %s752_s1, %s614_s24  ;;  %v312_v6 = vpack.c.b16 %v310_v1, %v310_v1  ;;  %v311_v15 = vpack.c.b16 %v309_v13, %v309_v13  ;;  %281 = vst.msk [vmem:[%s270_s8] sm:$0xff] %vm280_vm1, %v667_v17  ;;  %v401_v21 = vand.u32 127, %v400_v19  ;;  %s266_s14 = scalar_lea.vmem %s754_s3, %s563_s30 }
  0x10   : > { %v612_v2 = vld [vmem:[%s259_s27 + $0x38] sm:$0xff]  ;;  %v611_v3 = vld [vmem:[%s259_s27 + $0x30] sm:$0xff]  ;;  %v613_v4 = vld [vmem:[%s259_s27 + $0x40] sm:$0xff]  ;;  %282 = vst.msk [vmem:[%s274_s11] sm:$0xff] %vm280_vm1, %v667_v17 }
  0x11   : > { %372 = vmatpush.bf16.msra.mxu0 %v612_v2  ;;  %392 = vmatpush.bf16.msra.mxu1 %v613_v4  ;;  %v610_v8 = vld [vmem:[%s259_s27 + $0x28] sm:$0xff]  ;;  %v609_v9 = vld [vmem:[%s259_s27 + $0x20] sm:$0xff]  ;;  %v608_v10 = vld [vmem:[%s259_s27 + $0x18] sm:$0xff]  ;;  %vm404_vm2 = vcmp.lt.s32.totalorder %v401_v21, 64 }
  0x12   : > { %v607_v11 = vld [vmem:[%s259_s27 + $0x10] sm:$0xff]  ;;  %v606_v12 = vld [vmem:[%s259_s27 + $0x8] sm:$0xff]  ;;  %v605_v14 = vld [vmem:[%s259_s27] sm:$0xff] }
  0x14   : > { %602 = vmatmul.msk.bf16.vlgmr.msra.gmra.mxu1 %vm368_vm0, %v312_v6 }
  0x15   : > { %373 = vmatpush.bf16.msra.mxu0 %v611_v3 }
  0x16   : > { %v406_v28 = vld [vmem:[%s270_s8] sm:$0xff] }
  0x17   : > { %v412_v30 = vld [vmem:[%s274_s11] sm:$0xff] }
  0x19   : > { %374 = vmatpush.bf16.msra.mxu0 %v610_v8 }
  0x1d   : > { %375 = vmatpush.bf16.msra.mxu0 %v609_v9 }
  0x21   : > { %376 = vmatpush.bf16.msra.mxu0 %v608_v10 }
  0x25   : > { %377 = vmatpush.bf16.msra.mxu0 %v607_v11 }
  0x29   : > { %378 = vmatpush.bf16.msra.mxu0 %v606_v12 }
  0x2d   : > { %379 = vmatpush.bf16.msra.mxu0 %v605_v14 }
  0x30   : > { %380 = vmatmul.bf16.vlgmr.msra.gmra.mxu0 %v311_v15 }
  0x80   : > { %v306_v20 = vpop.permute.xlu0 %305 }
  0x91   : > { %v394_v16 = vpop.f32.mrf.mxu1 }
  0x99   : > { %v396_v18 = vpop.f32.mrf.mxu1 }
  0xad   : > { %v381_v22 = vpop.f32.mrf.mxu0 }
  0xae   : > { %v382_v23 = vadd.f32 %v381_v22, %v306_v20 }
  0xb0   : > { %v395_v24 = vadd.f32 %v394_v16, %v382_v23 }
  0xb2   : > { %v405_v25 = vsel %vm404_vm2, %v395_v24, 0.0  ;;  %398 = vst [vmem:[%s266_s14] sm:$0xff] %v395_v24 }
  0xb3   : > { %407 = vadd.xlane.f32.xlu0 %v405_v25  ;;  %v413_v26 = vmul.f32 %v405_v25, %v405_v25 }
  0xb5   : > { %v383_v27 = vpop.f32.mrf.mxu0  ;;  %414 = vadd.xlane.f32.xlu1 %v413_v26 }
 0x126   : > { %v408_v29 = vpop.xlane.xlu0 %407 }
 0x127   : > { %v409_v31 = vadd.f32 %v408_v29, %v406_v28 }
 0x128   : > { %v415_v32 = vpop.xlane.xlu1 %414 }
 0x129   : > { %411 = vst.msk [vmem:[%s270_s8] sm:$0xff] %vm280_vm1, %v409_v31  ;;  %v416_v33 = vadd.f32 %v415_v32, %v412_v30 }
 0x12b   : > { %417 = vst.msk [vmem:[%s274_s11] sm:$0xff] %vm280_vm1, %v416_v33 }
 0x12c PF: > { %s16_s20 = sadd.s32 1, %s664_s20   ;;  %s757_s18 = smov %s660_s19 }
 0x12d   : > { %p13_p5 = scmp.ge.s32.totalorder %s16_s20, 6   ;;  %s758_s19 = smov %s760_s21 }
 0x12f   :  { %15 = sbr.rel (!%p13_p5) target bundleno = 2 (0x2), region = 90 }

// kernel: squeeze.60
= control target key start
LH: loop header
LB: loop body
LE: loop exit
PB: predicated region body
PF: predicated region fallthrough
CT: control target
= control target key end

     0   :  { %s58_s8 = smov 116   ;;  %s59_s9 = smov 120   ;;  %vm7_vm0 = vcmask 31744   ;;  %s85_s0 = inlined_call_operand.vmem [shape: f32[4,16], index: 0, kind: input, shape index: {}]   ;;  %s86_s1 = inlined_call_operand.vmem [shape: f32[4,4,4], index: 1, kind: output, shape index: {}]  }
   0x1   :  { %v4_v0 = vld [vmem:[%s85_s0] sm:$0xf]  ;;  %s57_s0 = smov 124  }
   0x2   :  { %5 = vst [vmem:[#allocation1] sm:$0xf] %v4_v0 }
   0x9   :  { %v9_v1 = vld [vmem:[#allocation1] sm:$0xf]  }
   0xa   :  { %v21_v2 = vld [vmem:[#allocation1] sm:$0xf]   ;;  %10 = vrot.lane.b32.xlu0 %v9_v1, %s57_s0 }
   0xb   :  { %22 = vrot.lane.b32.xlu1 %v21_v2, %s58_s8  ;;  %v15_v3 = vld [vmem:[#allocation1] sm:$0xf]  }
   0xc   :  { %v6_v4 = vld [vmem:[#allocation1] sm:$0xf]  }
   0xd   :  { %8 = vst.msk [vmem:[#allocation0] ss:$8 sm:$0xf] %vm7_vm0, %v6_v4  }
  0x12   :  { %16 = vrot.lane.b32.xlu0 %v15_v3, %s59_s9 }
  0x7c   :  { %v11_v5 = vpop.permute.xlu0 %10  }
  0x7d   :  { %v23_v6 = vpop.permute.xlu1 %22   ;;  %14 = vst.msk [vmem:[#allocation0 + $0x1] ss:$8 sm:$0xf] %vm7_vm0, %v11_v5  }
  0x7e   :  { %26 = vst.msk [vmem:[#allocation0 + $0x3] ss:$8 sm:$0xf] %vm7_vm0, %v23_v6  }
  0x84   :  { %v17_v7 = vpop.permute.xlu0 %16  }
  0x85   :  { %20 = vst.msk [vmem:[#allocation0 + $0x2] ss:$8 sm:$0xf] %vm7_vm0, %v17_v7  }
  0x8c   :  { %v29_v8 = vld [vmem:[#allocation0] sm:$0xf]  ;;  %v34_v9 = vld [vmem:[#allocation0 + $0x8] sm:$0xf]  ;;  %v40_v10 = vld [vmem:[#allocation0 + $0x10] sm:$0xf] }
  0x8d   :  { %32 = vst [vmem:[%s86_s1] sm:$0xf] %v29_v8  ;;  %v46_v11 = vld [vmem:[#allocation0 + $0x18] sm:$0xf] }
  0x8e   :  { %51 = vst [vmem:[%s86_s1 + $0x4] sm:$0xf] %v34_v9 }
  0x8f   :  { %52 = vst [vmem:[%s86_s1 + $0x8] sm:$0xf] %v40_v10 }
  0x90   :  { %53 = vst [vmem:[%s86_s1 + $0xc] sm:$0xf] %v46_v11 }

// kernel: _lambda_.105
= control target key start
LH: loop header
LB: loop body
LE: loop exit
PB: predicated region body
PF: predicated region fallthrough
CT: control target
= control target key end

     0   :  { %s715_s18 = smov 0   ;;  %s717_s19 = smov 0   ;;  %s805_s0 = inlined_call_operand.vmem [shape: bf16[4,72], index: 0, kind: input, shape index: {}]   ;;  %s806_s1 = inlined_call_operand.vmem [shape: bf16[4,72,256], index: 1, kind: input, shape index: {}]   ;;  %s807_s2 = inlined_call_operand.vmem [shape: f32[4,1], index: 2, kind: input, shape index: {}]   ;;  %s808_s3 = inlined_call_operand.vmem [shape: f32[4,4,256], index: 3, kind: output, shape index: {0}]   ;;  %s809_s4 = inlined_call_operand.vmem [shape: f32[4,4,1], index: 4, kind: output, shape index: {1}]   ;;  %s810_s5 = inlined_call_operand.vmem [shape: f32[4,4,1], index: 5, kind: output, shape index: {2}]  }
   0x1   :  { %s719_s20 = smov 0  }
   0x2 LB: > { %s28_s21 = sadd.s32 1, %s677_s19  ;;  %p580_p0 = scmp.ge.s32.totalorder %s681_s20, 1  ;;  %s681_s20 = sphi %s719_s20, %s16_s20   ;;  %s677_s19 = sphi %s717_s19, %s812_s19   ;;  %s673_s18 = sphi %s715_s18, %s811_s18  }
   0x3   : > { %p30_p1 = scmp.ge.s32.totalorder %s28_s21, 4  ;;  %p213_p2 = scmp.lt.s32.totalorder %s681_s20, 5 }
   0x5   : > { %s814_s21 = smov (%p30_p1, %s28_s21), 0  ;;  %p214_p3 = pnand %p580_p0, %p213_p2 }
   0x6   : > { %p258_p4 = scmp.lt.s32.totalorder (!%p214_p3), %s673_s18, 3 }
   0x7   : > { %217 = sbr.rel (%p214_p3) target bundleno = 294 (0x126), region = 32 }
   0xc   : > { %v683_v0 = vmov 0   ;;  %v303_v1 = vld [vmem:[%s807_s2] sm:$0xf]  ;;  %s816_s18 = smov (!%p258_p4, %s673_s18), 3  ;;  %vm358_vm0 = vcmask 1043456   ;;  %vm354_vm1 = vcmask 588800  }
   0xd   : > { %658 = vset.pattern.permute.xlu0 %v683_v0  ;;  %s631_s24 = smul.u32 72, %s816_s18  ;;  %v293_v33 = vld [vmem:[%s805_s0] sm:$0x3]  ;;  %s584_s30 = sshll.u32 %s816_s18, 2  ;;  %vm290_vm2 = vcmask 3072   ;;  %v684_v34 = vmov 0.0  }
   0xe   : > { %306 = vperm.xlu0 %658, %v303_v1   ;;  %s770_s8 = scalar_lea.vmem %s809_s4, %s584_s30  ;;  %s777_s11 = scalar_lea.vmem %s810_s5, %s584_s30 }
   0xf   : > { %s742_s27 = scalar_lea.vmem %s806_s1, %s631_s24  ;;  %291 = vst.msk [vmem:[%s770_s8] sm:$0xf] %vm290_vm2, %v684_v34  ;;  %s622_s12 = sshll.u32 %s816_s18, 3 }
  0x10   : > { %v302_v2 = vld [vmem:[%s742_s27 + $0x40] sm:$0xff]  ;;  %v612_v5 = vld [vmem:[%s742_s27 + $0x30] sm:$0xf]  ;;  %v630_v8 = vld [vmem:[%s742_s27 + $0x34] sm:$0xf0]  ;;  %s275_s15 = scalar_lea.vmem %s808_s3, %s622_s12 }
  0x11   : > { %v334_v3 = vunpack.c.l.b16 %v302_v2  ;;  %v335_v4 = vunpack.c.h.b16 %v302_v2  ;;  %v629_v9 = vld [vmem:[%s742_s27 + $0x34] sm:$0xf]  ;;  %v614_v10 = vld [vmem:[%s742_s27 + $0x38] sm:$0xf0]  ;;  %v613_v13 = vor.u32 %v630_v8, %v612_v5  ;;  %v604_v15 = vld [vmem:[%s742_s27 + $0x20] sm:$0xf] }
  0x12   : > { %v617_v14 = vor.u32 %v629_v9, %v614_v10  ;;  %v628_v16 = vld [vmem:[%s742_s27 + $0x24] sm:$0xf0]  ;;  %v627_v17 = vld [vmem:[%s742_s27 + $0x24] sm:$0xf]  ;;  %v606_v18 = vld [vmem:[%s742_s27 + $0x28] sm:$0xf0] }
  0x13   : > { %v344_v6 = vpack.c.b16 %v334_v3, %v334_v3  ;;  %v345_v7 = vpack.c.b16 %v335_v4, %v335_v4  ;;  %v605_v19 = vor.u32 %v628_v16, %v604_v15  ;;  %v609_v20 = vor.u32 %v627_v17, %v606_v18  ;;  %v596_v21 = vld [vmem:[%s742_s27 + $0x10] sm:$0xf]  ;;  %v626_v22 = vld [vmem:[%s742_s27 + $0x14] sm:$0xf0]  ;;  %v625_v23 = vld [vmem:[%s742_s27 + $0x14] sm:$0xf] }
  0x14   : > { %v598_v24 = vld [vmem:[%s742_s27 + $0x18] sm:$0xf0]  ;;  %v597_v25 = vor.u32 %v626_v22, %v596_v21  ;;  %v588_v27 = vld [vmem:[%s742_s27] sm:$0xf]  ;;  %v624_v28 = vld [vmem:[%s742_s27 + $0x4] sm:$0xf0] }
  0x15   : > { %v360_v11 = vsel %vm358_vm0, %v344_v6, 0  ;;  %v363_v12 = vsel %vm358_vm0, %v345_v7, 0  ;;  %v601_v26 = vor.u32 %v625_v23, %v598_v24  ;;  %v623_v29 = vld [vmem:[%s742_s27 + $0x4] sm:$0xf]  ;;  %v590_v30 = vld [vmem:[%s742_s27 + $0x8] sm:$0xf0]  ;;  %v589_v31 = vor.u32 %v624_v28, %v588_v27 }
  0x16   : > { %368 = vmatpush.bf16.msra.mxu0 %v360_v11  ;;  %381 = vmatpush.bf16.msra.mxu1 %v363_v12  ;;  %v593_v32 = vor.u32 %v623_v29, %v590_v30  ;;  %292 = vst.msk [vmem:[%s777_s11] sm:$0xf] %vm290_vm2, %v684_v34  ;;  %v408_v52 = vld [vmem:[%s770_s8] sm:$0xf] }
  0x1a   : > { %369 = vmatpush.bf16.msra.mxu0 %v613_v13  ;;  %382 = vmatpush.bf16.msra.mxu1 %v617_v14 }
  0x1d   : > { %v417_v55 = vld [vmem:[%s777_s11] sm:$0xf] }
  0x1e   : > { %370 = vmatpush.bf16.msra.mxu0 %v605_v19  ;;  %383 = vmatpush.bf16.msra.mxu1 %v609_v20 }
  0x22   : > { %371 = vmatpush.bf16.msra.mxu0 %v597_v25  ;;  %384 = vmatpush.bf16.msra.mxu1 %v601_v26 }
  0x26   : > { %372 = vmatpush.bf16.msra.mxu0 %v589_v31  ;;  %385 = vmatpush.bf16.msra.mxu1 %v593_v32 }
  0x29   : > { %618 = vmatmul.msk.bf16.vlgmr.msra.gmra.mxu0 %vm354_vm1, %v293_v33  ;;  %619 = vmatmul.msk.bf16.vlgmr.msra.gmra.mxu1 %vm354_vm1, %v293_v33 }
  0x80   : > { %v307_v35 = vpop.permute.xlu0 %306 }
  0xa6   : > { %v374_v36 = vpop.f32.mrf.mxu0  ;;  %v387_v37 = vpop.f32.mrf.mxu1 }
  0xa7   : > { %v375_v38 = vadd.f32 %v374_v36, %v307_v35  ;;  %v388_v39 = vadd.f32 %v387_v37, %v307_v35 }
  0xa9   : > { %v393_v40 = vrot.slane %v388_v39, 4  ;;  %v409_v41 = vsel %vm358_vm0, %v375_v38, 0.0  ;;  %v410_v42 = vsel %vm358_vm0, %v388_v39, 0.0  ;;  %v418_v43 = vmul.f32 %v375_v38, %v375_v38 }
  0xaa   : > { %v411_v44 = vadd.f32 %v410_v42, %v409_v41  ;;  %v419_v45 = vmul.f32 %v388_v39, %v388_v39 }
  0xab   : > { %v394_v46 = vsel %vm358_vm0, %v375_v38, %v393_v40  ;;  %v420_v47 = vsel %vm358_vm0, %v418_v43, 0.0 }
  0xac   : > { %396 = vst [vmem:[%s275_s15] sm:$0xff] %v394_v46  ;;  %412 = vadd.xlane.f32.xlu0 %v411_v44  ;;  %v421_v48 = vsel %vm358_vm0, %v419_v45, 0.0 }
  0xad   : > { %v422_v49 = vadd.f32 %v421_v48, %v420_v47 }
  0xae   : > { %v376_v50 = vpop.f32.mrf.mxu0  ;;  %v389_v51 = vpop.f32.mrf.mxu1 }
  0xaf   : > { %423 = vadd.xlane.f32.xlu1 %v422_v49 }
 0x11f   : > { %v413_v53 = vpop.xlane.xlu0 %412 }
 0x120   : > { %v414_v54 = vadd.f32 %v413_v53, %v408_v52 }
 0x122   : > { %416 = vst.msk [vmem:[%s770_s8] sm:$0xf] %vm290_vm2, %v414_v54  ;;  %v424_v56 = vpop.xlane.xlu1 %423 }
 0x123   : > { %v425_v57 = vadd.f32 %v424_v56, %v417_v55 }
 0x125   : > { %426 = vst.msk [vmem:[%s777_s11] sm:$0xf] %vm290_vm2, %v425_v57 }
 0x126 PF: > { %s16_s20 = sadd.s32 1, %s681_s20   ;;  %s811_s18 = smov %s677_s19 }
 0x127   : > { %p13_p5 = scmp.ge.s32.totalorder %s16_s20, 6   ;;  %s812_s19 = smov %s814_s21 }
 0x129   :  { %15 = sbr.rel (!%p13_p5) target bundleno = 2 (0x2), region = 90 }

// kernel: _lambda_.109
= control target key start
LH: loop header
LB: loop body
LE: loop exit
PB: predicated region body
PF: predicated region fallthrough
CT: control target
= control target key end

     0   :  { %s437_s12 = smov 0   ;;  %s439_s13 = smov 0   ;;  %s479_s0 = inlined_call_operand.vmem [shape: bf16[2,4], index: 0, kind: input, shape index: {}]   ;;  %s480_s1 = inlined_call_operand.vmem [shape: bf16[4,4,256], index: 1, kind: input, shape index: {}]   ;;  %s481_s2 = inlined_call_operand.vmem [shape: f32[2,1], index: 2, kind: input, shape index: {}]   ;;  %s482_s3 = inlined_call_operand.vmem [shape: f32[4,2,256], index: 3, kind: output, shape index: {}]  }
   0x1   :  { %s441_s14 = smov 0  }
   0x2 LB: > { %s25_s15 = sadd.s32 1, %s410_s13  ;;  %p355_p0 = scmp.ge.s32.totalorder %s414_s14, 1  ;;  %s414_s14 = sphi %s441_s14, %s13_s14   ;;  %s410_s13 = sphi %s439_s13, %s484_s13   ;;  %s406_s12 = sphi %s437_s12, %s483_s12  }
   0x3   : > { %p27_p1 = scmp.ge.s32.totalorder %s25_s15, 4  ;;  %p158_p2 = scmp.lt.s32.totalorder %s414_s14, 5 }
   0x5   : > { %s486_s15 = smov (%p27_p1, %s25_s15), 0  ;;  %p159_p3 = pnand %p355_p0, %p158_p2 }
   0x6   : > { %p191_p4 = scmp.lt.s32.totalorder (!%p159_p3), %s406_s12, 3 }
   0x7   : > { %162 = sbr.rel (%p159_p3) target bundleno = 162 (0xa2), region = 32 }
   0xc   : > { %v416_v0 = vmov 0   ;;  %v213_v1 = vld [vmem:[%s481_s2] sm:$0x3]  ;;  %s488_s12 = smov (!%p191_p4, %s406_s12), 3  ;;  %vm227_vm0 = vcmask 1041408   ;;  %vm223_vm1 = vcmask 31744  }
   0xd   : > { %391 = vset.pattern.permute.xlu0 %v416_v0  ;;  %s364_s18 = sshll.u32 %s488_s12, 2  ;;  %v211_v7 = vld [vmem:[%s479_s0] sm:$0x1] }
   0xe   : > { %216 = vperm.xlu0 %391, %v213_v1   ;;  %s198_s21 = scalar_lea.vmem %s480_s1, %s364_s18  ;;  %s208_s26 = scalar_lea.vmem %s482_s3, %s364_s18 }
   0xf   : > { %v212_v2 = vld [vmem:[%s198_s21] sm:$0xf] }
  0x10   : > { %220 = vst [vmem:[#allocation1] ss:$4 sm:$0xff] %v212_v2 }
  0x17   : > { %v221_v3 = vld.sshfl [vmem:[#allocation1] sm:$0xff pattern:$0x73625140]  ;;  %v222_v4 = vld.sshfl [vmem:[#allocation1 + $0x8] sm:$0xff pattern:$0x73625140] }
  0x18   : > { %v228_v5 = vsel %vm227_vm0, %v221_v3, 0  ;;  %v230_v6 = vsel %vm227_vm0, %v222_v4, 0 }
  0x19   : > { %239 = vmatpush.bf16.msra.mxu0 %v228_v5  ;;  %252 = vmatpush.bf16.msra.mxu1 %v230_v6 }
  0x1c   : > { %360 = vmatmul.msk.bf16.vlgmr.msra.gmra.mxu0 %vm223_vm1, %v211_v7  ;;  %361 = vmatmul.msk.bf16.vlgmr.msra.gmra.mxu1 %vm223_vm1, %v211_v7 }
  0x80   : > { %v217_v8 = vpop.permute.xlu0 %216 }
  0x99   : > { %v241_v9 = vpop.f32.mrf.mxu0  ;;  %v254_v10 = vpop.f32.mrf.mxu1 }
  0x9a   : > { %v255_v11 = vadd.f32 %v254_v10, %v217_v8  ;;  %v242_v12 = vadd.f32 %v241_v9, %v217_v8 }
  0x9c   : > { %v260_v13 = vrot.slane %v255_v11, 6 }
  0x9e   : > { %v261_v14 = vsel %vm227_vm0, %v242_v12, %v260_v13 }
  0x9f   : > { %263 = vst [vmem:[%s208_s26] sm:$0xf] %v261_v14 }
  0xa1   : > { %v243_v15 = vpop.f32.mrf.mxu0  ;;  %v256_v16 = vpop.f32.mrf.mxu1 }
  0xa2 PF: > { %s13_s14 = sadd.s32 1, %s414_s14   ;;  %s483_s12 = smov %s410_s13 }
  0xa3   : > { %p10_p5 = scmp.ge.s32.totalorder %s13_s14, 6   ;;  %s484_s13 = smov %s486_s15 }
  0xa5   :  { %12 = sbr.rel (!%p10_p5) target bundleno = 2 (0x2), region = 62 }

// kernel: _lambda_.110
= control target key start
LH: loop header
LB: loop body
LE: loop exit
PB: predicated region body
PF: predicated region fallthrough
CT: control target
= control target key end

     0   :  { %v141_v1 = vmov 0   ;;  %vm68_vm0 = vcmask 1040384   ;;  %vm64_vm1 = vcmask 408576   ;;  %s213_s1 = inlined_call_operand.vmem [shape: bf16[1,50,256], index: 1, kind: input, shape index: {}]   ;;  %s214_s2 = inlined_call_operand.vmem [shape: f32[8,1], index: 2, kind: input, shape index: {}]   ;;  %s215_s0 = inlined_call_operand.vmem [shape: bf16[8,50], index: 0, kind: input, shape index: {}]   ;;  %s216_s3 = inlined_call_operand.vmem [shape: f32[1,8,256], index: 3, kind: output, shape index: {}]  }
   0x1   :  { %v22_v0 = vld [vmem:[%s213_s1 + $0x30] sm:$0x11]  ;;  %140 = vset.pattern.permute.xlu0 %v141_v1  ;;  %v125_v4 = vld [vmem:[%s213_s1 + $0x20] sm:$0xf]  ;;  %v138_v7 = vld [vmem:[%s213_s1 + $0x24] sm:$0xf0] }
   0x2   :  { %v48_v2 = vunpack.c.l.b16 %v22_v0  ;;  %v49_v3 = vunpack.c.h.b16 %v22_v0  ;;  %v137_v8 = vld [vmem:[%s213_s1 + $0x24] sm:$0xf]  ;;  %v127_v9 = vld [vmem:[%s213_s1 + $0x28] sm:$0xf0]  ;;  %v126_v13 = vor.u32 %v138_v7, %v125_v4  ;;  %v117_v15 = vld [vmem:[%s213_s1 + $0x10] sm:$0xf] }
   0x3   :  { %v23_v10 = vld [vmem:[%s214_s2] sm:$0xff]  ;;  %v130_v14 = vor.u32 %v137_v8, %v127_v9  ;;  %v136_v16 = vld [vmem:[%s213_s1 + $0x14] sm:$0xf0]  ;;  %v135_v17 = vld [vmem:[%s213_s1 + $0x14] sm:$0xf] }
   0x4   :  { %v56_v5 = vpack.c.b16 %v48_v2, %v48_v2  ;;  %v57_v6 = vpack.c.b16 %v49_v3, %v49_v3  ;;  %26 = vperm.xlu0 %140, %v23_v10   ;;  %v119_v18 = vld [vmem:[%s213_s1 + $0x18] sm:$0xf0]  ;;  %v118_v19 = vor.u32 %v136_v16, %v117_v15  ;;  %v109_v21 = vld [vmem:[%s213_s1] sm:$0xf]  ;;  %v134_v22 = vld [vmem:[%s213_s1 + $0x4] sm:$0xf0] }
   0x5   :  { %v122_v20 = vor.u32 %v135_v17, %v119_v18  ;;  %v133_v23 = vld [vmem:[%s213_s1 + $0x4] sm:$0xf]  ;;  %v111_v24 = vld [vmem:[%s213_s1 + $0x8] sm:$0xf0]  ;;  %v110_v25 = vor.u32 %v134_v22, %v109_v21  ;;  %v15_v27 = vld [vmem:[%s215_s0] sm:$0xf] }
   0x6   :  { %v70_v11 = vsel %vm68_vm0, %v56_v5, 0  ;;  %v73_v12 = vsel %vm68_vm0, %v57_v6, 0  ;;  %v114_v26 = vor.u32 %v133_v23, %v111_v24 }
   0x7   :  { %79 = vmatpush.bf16.msra.mxu0 %v70_v11  ;;  %92 = vmatpush.bf16.msra.mxu1 %v73_v12 }
   0xb   :  { %80 = vmatpush.bf16.msra.mxu0 %v126_v13  ;;  %93 = vmatpush.bf16.msra.mxu1 %v130_v14 }
   0xf   :  { %81 = vmatpush.bf16.msra.mxu0 %v118_v19  ;;  %94 = vmatpush.bf16.msra.mxu1 %v122_v20 }
  0x13   :  { %82 = vmatpush.bf16.msra.mxu0 %v110_v25  ;;  %95 = vmatpush.bf16.msra.mxu1 %v114_v26 }
  0x16   :  { %131 = vmatmul.msk.bf16.vlgmr.msra.gmra.mxu0 %vm64_vm1, %v15_v27  ;;  %132 = vmatmul.msk.bf16.vlgmr.msra.gmra.mxu1 %vm64_vm1, %v15_v27 }
  0x76   :  { %v27_v28 = vpop.permute.xlu0 %26 }
  0x93   :  { %v84_v29 = vpop.f32.mrf.mxu0  ;;  %v97_v30 = vpop.f32.mrf.mxu1 }
  0x94   :  { %v85_v31 = vadd.f32 %v84_v29, %v27_v28  ;;  %v98_v32 = vadd.f32 %v97_v30, %v27_v28 }
  0x96   :  { %101 = vst [vmem:[%s216_s3] sm:$0xff] %v85_v31 }
  0x97   :  { %102 = vst [vmem:[%s216_s3 + $0x8] sm:$0xff] %v98_v32 }
  0x9b   :  { %v86_v33 = vpop.f32.mrf.mxu0  ;;  %v99_v34 = vpop.f32.mrf.mxu1 }

// kernel: _lambda_.111
= control target key start
LH: loop header
LB: loop body
LE: loop exit
PB: predicated region body
PF: predicated region fallthrough
CT: control target
= control target key end

     0   :  { %vm14_vm0 = vcmask 7168   ;;  %v54_v2 = vmov 0.0   ;;  %s98_s0 = inlined_call_operand.vmem [shape: f32[1,8,256], index: 0, kind: input, shape index: {}]   ;;  %s99_s1 = inlined_call_operand.vmem [shape: f32[1,8,1], index: 1, kind: output, shape index: {0}]   ;;  %s100_s2 = inlined_call_operand.vmem [shape: f32[1,8,1], index: 2, kind: output, shape index: {1}]  }
   0x1   :  { %v17_v0 = vld [vmem:[%s98_s0] sm:$0xff]  ;;  %v18_v1 = vld [vmem:[%s98_s0 + $0x8] sm:$0xff]  ;;  %15 = vst.msk [vmem:[%s99_s1] sm:$0xff] %vm14_vm0, %v54_v2 }
   0x2   :  { %v31_v3 = vadd.f32 %v18_v1, %v17_v0  ;;  %16 = vst.msk [vmem:[%s100_s2] sm:$0xff] %vm14_vm0, %v54_v2  ;;  %v38_v4 = vmul.f32 %v17_v0, %v17_v0  ;;  %v39_v5 = vmul.f32 %v18_v1, %v18_v1 }
   0x4   :  { %32 = vadd.xlane.f32.xlu0 %v31_v3  ;;  %v40_v6 = vadd.f32 %v39_v5, %v38_v4 }
   0x8   :  { %v30_v7 = vld [vmem:[%s99_s1] sm:$0xff] }
   0x9   :  { %v37_v10 = vld [vmem:[%s100_s2] sm:$0xff] }
   0xc   :  { %41 = vadd.xlane.f32.xlu0 %v40_v6 }
  0x77   :  { %v33_v8 = vpop.xlane.xlu0 %32 }
  0x78   :  { %v34_v9 = vadd.f32 %v33_v8, %v30_v7 }
  0x7a   :  { %36 = vst.msk [vmem:[%s99_s1] sm:$0xff] %vm14_vm0, %v34_v9 }
  0x7f   :  { %v42_v11 = vpop.xlane.xlu0 %41 }
  0x80   :  { %v43_v12 = vadd.f32 %v42_v11, %v37_v10 }
  0x82   :  { %44 = vst.msk [vmem:[%s100_s2] sm:$0xff] %vm14_vm0, %v43_v12 }

// kernel: _lambda_.112
= control target key start
LH: loop header
LB: loop body
LE: loop exit
PB: predicated region body
PF: predicated region fallthrough
CT: control target
= control target key end

     0   :  { %v40_v0 = vmov 0   ;;  %s79_s1 = inlined_call_operand.vmem [shape: f32[1,8,1], index: 1, kind: input, shape index: {}]   ;;  %s80_s2 = inlined_call_operand.vmem [shape: f32[1,8,1], index: 2, kind: input, shape index: {}]   ;;  %s81_s0 = inlined_call_operand.vmem [shape: f32[1,8,256], index: 0, kind: input, shape index: {}]   ;;  %s82_s3 = inlined_call_operand.vmem [shape: f32[1,8,256], index: 3, kind: output, shape index: {}]  }
   0x1   :  { %39 = vset.pattern.permute.xlu0 %v40_v0  ;;  %v16_v1 = vld [vmem:[%s79_s1] sm:$0xff]  ;;  %v15_v5 = vld [vmem:[%s81_s0 + $0x8] sm:$0xff] }
   0x2   :  { %19 = vperm.xlu0 %39, %v16_v1   ;;  %v24_v2 = vld [vmem:[%s80_s2] sm:$0xff] }
   0x3   :  { %v14_v4 = vld [vmem:[%s81_s0] sm:$0xff] }
   0xa   :  { %27 = vperm.xlu0 %39, %v24_v2  }
  0x74   :  { %v20_v3 = vpop.permute.xlu0 %19 }
  0x75   :  { %v22_v6 = vsub.f32 %v14_v4, %v20_v3  ;;  %v23_v7 = vsub.f32 %v15_v5, %v20_v3 }
  0x7c   :  { %v28_v8 = vpop.permute.xlu0 %27 }
  0x7d   :  { %v30_v9 = vmul.f32 %v28_v8, %v22_v6  ;;  %v31_v10 = vmul.f32 %v28_v8, %v23_v7 }
  0x7f   :  { %32 = vst [vmem:[%s82_s3] sm:$0xff] %v30_v9 }
  0x80   :  { %33 = vst [vmem:[%s82_s3 + $0x8] sm:$0xff] %v31_v10 }

// kernel: _lambda_.113
= control target key start
LH: loop header
LB: loop body
LE: loop exit
PB: predicated region body
PF: predicated region fallthrough
CT: control target
= control target key end

     0   :  { %vm180_vm0 = vcmask 1043456   ;;  %vm177_vm1 = vcmask 588800   ;;  %vm242_vm2 = vcmask 1041408   ;;  %s551_s1 = inlined_call_operand.vmem [shape: bf16[1,200,256], index: 1, kind: input, shape index: {}]   ;;  %s552_s0 = inlined_call_operand.vmem [shape: bf16[2,200], index: 0, kind: input, shape index: {}]   ;;  %s553_s2 = inlined_call_operand.vmem [shape: f32[2,1], index: 2, kind: input, shape index: {}]   ;;  %s554_s3 = inlined_call_operand.vmem [shape: f32[1,2,256], index: 3, kind: output, shape index: {}]  }
   0x1   :  { %v308_v0 = vld [vmem:[%s551_s1 + $0x70] sm:$0xf]  ;;  %v363_v1 = vld [vmem:[%s551_s1 + $0x74] sm:$0xf0]  ;;  %v362_v2 = vld [vmem:[%s551_s1 + $0x74] sm:$0xf] }
   0x2   :  { %v309_v3 = vor.u32 %v363_v1, %v308_v0  ;;  %v310_v4 = vld [vmem:[%s551_s1 + $0x78] sm:$0xf0]  ;;  %v300_v5 = vld [vmem:[%s551_s1 + $0x60] sm:$0xf]  ;;  %v361_v6 = vld [vmem:[%s551_s1 + $0x64] sm:$0xf0] }
   0x3   :  { %v313_v7 = vor.u32 %v362_v2, %v310_v4  ;;  %v360_v8 = vld [vmem:[%s551_s1 + $0x64] sm:$0xf]  ;;  %v302_v9 = vld [vmem:[%s551_s1 + $0x68] sm:$0xf0]  ;;  %v301_v11 = vor.u32 %v361_v6, %v300_v5  ;;  %v292_v15 = vld [vmem:[%s551_s1 + $0x50] sm:$0xf] }
   0x4   :  { %v40_v10 = vld [vmem:[%s551_s1 + $0xc0] sm:$0xff]  ;;  %187 = vmatpush.bf16.msra.mxu0 %v309_v3  ;;  %v305_v14 = vor.u32 %v360_v8, %v302_v9  ;;  %v359_v16 = vld [vmem:[%s551_s1 + $0x54] sm:$0xf0]  ;;  %v358_v17 = vld [vmem:[%s551_s1 + $0x54] sm:$0xf]  ;;  %v374_v1 = vmov 0  }
   0x5   :  { %v126_v12 = vunpack.c.h.b16 %v40_v10  ;;  %v125_v13 = vunpack.c.l.b16 %v40_v10  ;;  %213 = vmatpush.bf16.msra.mxu2 %v313_v7  ;;  %v294_v19 = vld [vmem:[%s551_s1 + $0x58] sm:$0xf0]  ;;  %v370_v20 = vld [vmem:[%s551_s1 + $0xb4] sm:$0xf]  ;;  %v293_v24 = vor.u32 %v359_v16, %v292_v15  ;;  %v340_v26 = vld [vmem:[%s551_s1 + $0xb0] sm:$0xf]  ;;  %373 = vset.pattern.permute.xlu0 %v374_v1 }
   0x6   :  { %v342_v21 = vld [vmem:[%s551_s1 + $0xb8] sm:$0xf0]  ;;  %v371_v27 = vld [vmem:[%s551_s1 + $0xb4] sm:$0xf0]  ;;  %v297_v28 = vor.u32 %v358_v17, %v294_v19  ;;  %v284_v30 = vld [vmem:[%s551_s1 + $0x40] sm:$0xf] }
   0x7   :  { %v152_v18 = vpack.c.b16 %v126_v12, %v126_v12  ;;  %v151_v22 = vpack.c.b16 %v125_v13, %v125_v13  ;;  %v345_v29 = vor.u32 %v370_v20, %v342_v21  ;;  %v357_v31 = vld [vmem:[%s551_s1 + $0x44] sm:$0xf0]  ;;  %v356_v32 = vld [vmem:[%s551_s1 + $0x44] sm:$0xf]  ;;  %v286_v33 = vld [vmem:[%s551_s1 + $0x48] sm:$0xf0]  ;;  %v341_v36 = vor.u32 %v371_v27, %v340_v26 }
   0x8   :  { %188 = vmatpush.bf16.msra.mxu0 %v301_v11  ;;  %v368_v34 = vld [vmem:[%s551_s1 + $0xa4] sm:$0xf]  ;;  %v334_v35 = vld [vmem:[%s551_s1 + $0xa8] sm:$0xf0]  ;;  %v332_v37 = vld [vmem:[%s551_s1 + $0xa0] sm:$0xf]  ;;  %v285_v39 = vor.u32 %v357_v31, %v284_v30  ;;  %v289_v41 = vor.u32 %v356_v32, %v286_v33 }
   0x9   :  { %v185_v23 = vsel %vm180_vm0, %v152_v18, 0  ;;  %v182_v25 = vsel %vm180_vm0, %v151_v22, 0  ;;  %214 = vmatpush.bf16.msra.mxu2 %v305_v14  ;;  %v369_v38 = vld [vmem:[%s551_s1 + $0xa4] sm:$0xf0]  ;;  %v276_v40 = vld [vmem:[%s551_s1 + $0x30] sm:$0xf]  ;;  %v337_v42 = vor.u32 %v368_v34, %v334_v35 }
   0xa   :  { %229 = vmatpush.bf16.msra.mxu3 %v185_v23  ;;  %203 = vmatpush.bf16.msra.mxu1 %v182_v25  ;;  %v355_v43 = vld [vmem:[%s551_s1 + $0x34] sm:$0xf0]  ;;  %v354_v44 = vld [vmem:[%s551_s1 + $0x34] sm:$0xf]  ;;  %v278_v45 = vld [vmem:[%s551_s1 + $0x38] sm:$0xf0]  ;;  %v333_v48 = vor.u32 %v369_v38, %v332_v37 }
   0xb   :  { %v366_v46 = vld [vmem:[%s551_s1 + $0x94] sm:$0xf]  ;;  %v326_v47 = vld [vmem:[%s551_s1 + $0x98] sm:$0xf0]  ;;  %v15_v49 = vld [vmem:[%s552_s0] sm:$0x3]  ;;  %v277_v52 = vor.u32 %v355_v43, %v276_v40  ;;  %v281_v55 = vor.u32 %v354_v44, %v278_v45 }
   0xc   :  { %189 = vmatpush.bf16.msra.mxu0 %v293_v24  ;;  %v324_v50 = vld [vmem:[%s551_s1 + $0x90] sm:$0xf]  ;;  %v367_v51 = vld [vmem:[%s551_s1 + $0x94] sm:$0xf0]  ;;  %48 = vst [vmem:[#allocation1] ss:$9 sm:$0xff] %v15_v49  ;;  %v329_v56 = vor.u32 %v366_v46, %v326_v47 }
   0xd   :  { %215 = vmatpush.bf16.msra.mxu2 %v297_v28  ;;  %v268_v53 = vld [vmem:[%s551_s1 + $0x20] sm:$0xf]  ;;  %v353_v54 = vld [vmem:[%s551_s1 + $0x24] sm:$0xf0]  ;;  %v352_v57 = vld [vmem:[%s551_s1 + $0x24] sm:$0xf]  ;;  %v325_v61 = vor.u32 %v367_v51, %v324_v50 }
   0xe   :  { %230 = vmatpush.bf16.msra.mxu3 %v345_v29  ;;  %204 = vmatpush.bf16.msra.mxu1 %v341_v36  ;;  %v270_v58 = vld [vmem:[%s551_s1 + $0x28] sm:$0xf0]  ;;  %v364_v59 = vld [vmem:[%s551_s1 + $0x84] sm:$0xf]  ;;  %v41_v62 = vld [vmem:[%s553_s2] sm:$0x3]  ;;  %v269_v2 = vor.u32 %v353_v54, %v268_v53 }
   0xf   :  { %v318_v60 = vld [vmem:[%s551_s1 + $0x88] sm:$0xf0]  ;;  %v316_v63 = vld [vmem:[%s551_s1 + $0x80] sm:$0xf]  ;;  %v365_v0 = vld [vmem:[%s551_s1 + $0x84] sm:$0xf0]  ;;  %44 = vperm.xlu0 %373, %v41_v62   ;;  %v273_v3 = vor.u32 %v352_v57, %v270_v58 }
  0x10   :  { %190 = vmatpush.bf16.msra.mxu0 %v285_v39  ;;  %v321_v4 = vor.u32 %v364_v59, %v318_v60  ;;  %v260_v5 = vld [vmem:[%s551_s1 + $0x10] sm:$0xf]  ;;  %v351_v6 = vld [vmem:[%s551_s1 + $0x14] sm:$0xf0]  ;;  %v350_v7 = vld [vmem:[%s551_s1 + $0x14] sm:$0xf]  ;;  %v317_v9 = vor.u32 %v365_v0, %v316_v63 }
  0x11   :  { %216 = vmatpush.bf16.msra.mxu2 %v289_v41  ;;  %v262_v8 = vld [vmem:[%s551_s1 + $0x18] sm:$0xf0]  ;;  %v261_v10 = vor.u32 %v351_v6, %v260_v5  ;;  %v252_v13 = vld [vmem:[%s551_s1] sm:$0xf]  ;;  %v349_v14 = vld [vmem:[%s551_s1 + $0x4] sm:$0xf0] }
  0x12   :  { %231 = vmatpush.bf16.msra.mxu3 %v337_v42  ;;  %205 = vmatpush.bf16.msra.mxu1 %v333_v48  ;;  %v265_v12 = vor.u32 %v350_v7, %v262_v8  ;;  %v348_v15 = vld [vmem:[%s551_s1 + $0x4] sm:$0xf]  ;;  %v254_v16 = vld [vmem:[%s551_s1 + $0x8] sm:$0xf0]  ;;  %v253_v17 = vor.u32 %v349_v14, %v252_v13 }
  0x13   :  { %v50_v11 = vld [vmem:[#allocation1 + $0x9] sm:$0xff]  ;;  %v257_v18 = vor.u32 %v348_v15, %v254_v16  ;;  %v49_v19 = vld [vmem:[#allocation1] sm:$0xff] }
  0x14   :  { %191 = vmatpush.bf16.msra.mxu0 %v277_v52 }
  0x15   :  { %217 = vmatpush.bf16.msra.mxu2 %v281_v55 }
  0x16   :  { %232 = vmatpush.bf16.msra.mxu3 %v329_v56  ;;  %206 = vmatpush.bf16.msra.mxu1 %v325_v61 }
  0x18   :  { %192 = vmatpush.bf16.msra.mxu0 %v269_v2 }
  0x19   :  { %218 = vmatpush.bf16.msra.mxu2 %v273_v3 }
  0x1a   :  { %233 = vmatpush.bf16.msra.mxu3 %v321_v4  ;;  %207 = vmatpush.bf16.msra.mxu1 %v317_v9 }
  0x1c   :  { %193 = vmatpush.bf16.msra.mxu0 %v261_v10 }
  0x1d   :  { %347 = vmatmul.msk.bf16.vlgmr.msra.gmra.mxu3 %vm177_vm1, %v50_v11  ;;  %219 = vmatpush.bf16.msra.mxu2 %v265_v12 }
  0x1e   :  { %346 = vmatmul.msk.bf16.vlgmr.msra.gmra.mxu1 %vm177_vm1, %v50_v11 }
  0x20   :  { %194 = vmatpush.bf16.msra.mxu0 %v253_v17 }
  0x21   :  { %220 = vmatpush.bf16.msra.mxu2 %v257_v18 }
  0x23   :  { %195 = vmatmul.bf16.vlgmr.msra.gmra.mxu0 %v49_v19 }
  0x24   :  { %221 = vmatmul.bf16.vlgmr.msra.gmra.mxu2 %v49_v19 }
  0x81   :  { %v45_v24 = vpop.permute.xlu0 %44 }
  0x9b   :  { %v209_v20 = vpop.f32.mrf.mxu1 }
  0xa0   :  { %v235_v21 = vpop.f32.mrf.mxu3  ;;  %v196_v22 = vpop.f32.mrf.mxu0 }
  0xa1   :  { %v197_v27 = vadd.f32 %v196_v22, %v45_v24 }
  0xa3   :  { %v211_v23 = vpop.f32.mrf.mxu1  ;;  %v210_v31 = vadd.f32 %v209_v20, %v197_v27 }
  0xa7   :  { %v222_v25 = vpop.f32.mrf.mxu2 }
  0xa8   :  { %v237_v26 = vpop.f32.mrf.mxu3  ;;  %v223_v28 = vadd.f32 %v222_v25, %v45_v24  ;;  %v198_v29 = vpop.f32.mrf.mxu0 }
  0xaa   :  { %v236_v30 = vadd.f32 %v235_v21, %v223_v28 }
  0xac   :  { %v241_v32 = vrot.slane %v236_v30, 6 }
  0xae   :  { %v243_v33 = vsel %vm242_vm2, %v210_v31, %v241_v32 }
  0xaf   :  { %245 = vst [vmem:[%s554_s3] sm:$0xf] %v243_v33  ;;  %v224_v34 = vpop.f32.mrf.mxu2 }

// kernel: _lambda_.115
= control target key start
LH: loop header
LB: loop body
LE: loop exit
PB: predicated region body
PF: predicated region fallthrough
CT: control target
= control target key end

     0   :  { %v208_v1 = vmov 0   ;;  %vm90_vm0 = vcmask 1043456   ;;  %vm86_vm1 = vcmask 588800   ;;  %vm22_vm2 = vcmask 7168   ;;  %s325_s1 = inlined_call_operand.vmem [shape: bf16[1,72,256], index: 1, kind: input, shape index: {}]   ;;  %s326_s2 = inlined_call_operand.vmem [shape: f32[8,1], index: 2, kind: input, shape index: {}]   ;;  %s327_s0 = inlined_call_operand.vmem [shape: bf16[8,72], index: 0, kind: input, shape index: {}]   ;;  %s328_s4 = inlined_call_operand.vmem [shape: f32[1,8,1], index: 4, kind: output, shape index: {1}]   ;;  %s329_s5 = inlined_call_operand.vmem [shape: f32[1,8,1], index: 5, kind: output, shape index: {2}]   ;;  %s330_s3 = inlined_call_operand.vmem [shape: f32[1,8,256], index: 3, kind: output, shape index: {0}]  }
   0x1   :  { %v34_v0 = vld [vmem:[%s325_s1 + $0x40] sm:$0xff]  ;;  %207 = vset.pattern.permute.xlu0 %v208_v1  ;;  %v189_v4 = vld [vmem:[%s325_s1 + $0x30] sm:$0xf]  ;;  %v204_v7 = vld [vmem:[%s325_s1 + $0x34] sm:$0xf0]  ;;  %v209_v34 = vmov 0.0  }
   0x2   :  { %v66_v2 = vunpack.c.l.b16 %v34_v0  ;;  %v67_v3 = vunpack.c.h.b16 %v34_v0  ;;  %v203_v8 = vld [vmem:[%s325_s1 + $0x34] sm:$0xf]  ;;  %v191_v9 = vld [vmem:[%s325_s1 + $0x38] sm:$0xf0]  ;;  %v190_v12 = vor.u32 %v204_v7, %v189_v4  ;;  %v181_v14 = vld [vmem:[%s325_s1 + $0x20] sm:$0xf] }
   0x3   :  { %v194_v13 = vor.u32 %v203_v8, %v191_v9  ;;  %v35_v15 = vld [vmem:[%s326_s2] sm:$0xff]  ;;  %v202_v16 = vld [vmem:[%s325_s1 + $0x24] sm:$0xf0]  ;;  %v183_v18 = vld [vmem:[%s325_s1 + $0x28] sm:$0xf0]  ;;  %23 = vst.msk [vmem:[%s328_s4] sm:$0xff] %vm22_vm2, %v209_v34 }
   0x4   :  { %v76_v5 = vpack.c.b16 %v66_v2, %v66_v2  ;;  %v77_v6 = vpack.c.b16 %v67_v3, %v67_v3  ;;  %v201_v17 = vld [vmem:[%s325_s1 + $0x24] sm:$0xf]  ;;  %38 = vperm.xlu0 %207, %v35_v15   ;;  %v182_v19 = vor.u32 %v202_v16, %v181_v14  ;;  %v173_v21 = vld [vmem:[%s325_s1 + $0x10] sm:$0xf]  ;;  %v200_v22 = vld [vmem:[%s325_s1 + $0x14] sm:$0xf0] }
   0x5   :  { %v186_v20 = vor.u32 %v201_v17, %v183_v18  ;;  %v199_v23 = vld [vmem:[%s325_s1 + $0x14] sm:$0xf]  ;;  %v175_v24 = vld [vmem:[%s325_s1 + $0x18] sm:$0xf0]  ;;  %v174_v25 = vor.u32 %v200_v22, %v173_v21  ;;  %v165_v27 = vld [vmem:[%s325_s1] sm:$0xf] }
   0x6   :  { %v92_v10 = vsel %vm90_vm0, %v76_v5, 0  ;;  %v95_v11 = vsel %vm90_vm0, %v77_v6, 0  ;;  %v178_v26 = vor.u32 %v199_v23, %v175_v24  ;;  %v198_v28 = vld [vmem:[%s325_s1 + $0x4] sm:$0xf0]  ;;  %v197_v29 = vld [vmem:[%s325_s1 + $0x4] sm:$0xf] }
   0x7   :  { %100 = vmatpush.bf16.msra.mxu0 %v92_v10  ;;  %113 = vmatpush.bf16.msra.mxu1 %v95_v11  ;;  %v167_v30 = vld [vmem:[%s325_s1 + $0x8] sm:$0xf0]  ;;  %v166_v31 = vor.u32 %v198_v28, %v165_v27  ;;  %v25_v33 = vld [vmem:[%s327_s0] sm:$0xf]  ;;  %24 = vst.msk [vmem:[%s329_s5] sm:$0xff] %vm22_vm2, %v209_v34 }
   0x8   :  { %v170_v32 = vor.u32 %v197_v29, %v167_v30 }
   0xa   :  { %v136_v46 = vld [vmem:[%s328_s4] sm:$0xff] }
   0xb   :  { %101 = vmatpush.bf16.msra.mxu0 %v190_v12  ;;  %114 = vmatpush.bf16.msra.mxu1 %v194_v13 }
   0xe   :  { %v143_v48 = vld [vmem:[%s329_s5] sm:$0xff] }
   0xf   :  { %102 = vmatpush.bf16.msra.mxu0 %v182_v19  ;;  %115 = vmatpush.bf16.msra.mxu1 %v186_v20 }
  0x13   :  { %103 = vmatpush.bf16.msra.mxu0 %v174_v25  ;;  %116 = vmatpush.bf16.msra.mxu1 %v178_v26 }
  0x17   :  { %104 = vmatpush.bf16.msra.mxu0 %v166_v31  ;;  %117 = vmatpush.bf16.msra.mxu1 %v170_v32 }
  0x1a   :  { %195 = vmatmul.msk.bf16.vlgmr.msra.gmra.mxu0 %vm86_vm1, %v25_v33  ;;  %196 = vmatmul.msk.bf16.vlgmr.msra.gmra.mxu1 %vm86_vm1, %v25_v33 }
  0x76   :  { %v39_v35 = vpop.permute.xlu0 %38 }
  0x97   :  { %v106_v36 = vpop.f32.mrf.mxu0  ;;  %v119_v37 = vpop.f32.mrf.mxu1 }
  0x98   :  { %v107_v38 = vadd.f32 %v106_v36, %v39_v35  ;;  %v120_v39 = vadd.f32 %v119_v37, %v39_v35 }
  0x9a   :  { %123 = vst [vmem:[%s330_s3] sm:$0xff] %v107_v38  ;;  %v137_v40 = vadd.f32 %v120_v39, %v107_v38  ;;  %v144_v41 = vmul.f32 %v107_v38, %v107_v38  ;;  %v145_v42 = vmul.f32 %v120_v39, %v120_v39 }
  0x9b   :  { %124 = vst [vmem:[%s330_s3 + $0x8] sm:$0xff] %v120_v39 }
  0x9c   :  { %138 = vadd.xlane.f32.xlu0 %v137_v40  ;;  %v146_v43 = vadd.f32 %v145_v42, %v144_v41 }
  0x9e   :  { %147 = vadd.xlane.f32.xlu1 %v146_v43 }
  0x9f   :  { %v108_v44 = vpop.f32.mrf.mxu0  ;;  %v121_v45 = vpop.f32.mrf.mxu1 }
 0x10f   :  { %v139_v47 = vpop.xlane.xlu0 %138 }
 0x110   :  { %v140_v49 = vadd.f32 %v139_v47, %v136_v46 }
 0x111   :  { %v148_v50 = vpop.xlane.xlu1 %147 }
 0x112   :  { %142 = vst.msk [vmem:[%s328_s4] sm:$0xff] %vm22_vm2, %v140_v49  ;;  %v149_v51 = vadd.f32 %v148_v50, %v143_v48 }
 0x114   :  { %150 = vst.msk [vmem:[%s329_s5] sm:$0xff] %vm22_vm2, %v149_v51 }

// kernel: _lambda_.116
= control target key start
LH: loop header
LB: loop body
LE: loop exit
PB: predicated region body
PF: predicated region fallthrough
CT: control target
= control target key end

     0   :  { %v46_v0 = vmov 0   ;;  %s85_s1 = inlined_call_operand.vmem [shape: f32[1,8,1], index: 1, kind: input, shape index: {}]   ;;  %s86_s2 = inlined_call_operand.vmem [shape: f32[1,8,1], index: 2, kind: input, shape index: {}]   ;;  %s87_s0 = inlined_call_operand.vmem [shape: f32[1,8,256], index: 0, kind: input, shape index: {}]   ;;  %s88_s3 = inlined_call_operand.vmem [shape: f32[1,8,256], index: 3, kind: output, shape index: {}]  }
   0x1   :  { %45 = vset.pattern.permute.xlu0 %v46_v0  ;;  %v16_v1 = vld [vmem:[%s85_s1] sm:$0xff]  ;;  %v15_v5 = vld [vmem:[%s87_s0 + $0x8] sm:$0xff] }
   0x2   :  { %19 = vperm.xlu0 %45, %v16_v1   ;;  %v24_v2 = vld [vmem:[%s86_s2] sm:$0xff] }
   0x3   :  { %v14_v4 = vld [vmem:[%s87_s0] sm:$0xff] }
   0xa   :  { %27 = vperm.xlu0 %45, %v24_v2  }
  0x74   :  { %v20_v3 = vpop.permute.xlu0 %19 }
  0x75   :  { %v22_v6 = vsub.f32 %v14_v4, %v20_v3  ;;  %v23_v7 = vsub.f32 %v15_v5, %v20_v3 }
  0x7c   :  { %v28_v8 = vpop.permute.xlu0 %27 }
  0x7d   :  { %v30_v9 = vmul.f32 %v28_v8, %v22_v6  ;;  %v31_v10 = vmul.f32 %v28_v8, %v23_v7 }
  0x7f   :  { %vm32_vm0 = vcmp.ge.f32.partialorder %v30_v9, 0.0  ;;  %vm33_vm1 = vcmp.ge.f32.partialorder %v31_v10, 0.0  ;;  %v34_v11 = vmul.f32 0.2, %v30_v9  ;;  %v35_v12 = vmul.f32 0.2, %v31_v10 }
  0x81   :  { %v36_v13 = vsel %vm32_vm0, %v30_v9, %v34_v11  ;;  %v37_v14 = vsel %vm33_vm1, %v31_v10, %v35_v12 }
  0x82   :  { %38 = vst [vmem:[%s88_s3] sm:$0xff] %v36_v13 }
  0x83   :  { %39 = vst [vmem:[%s88_s3 + $0x8] sm:$0xff] %v37_v14 }

// kernel: _lambda_.119
= control target key start
LH: loop header
LB: loop body
LE: loop exit
PB: predicated region body
PF: predicated region fallthrough
CT: control target
= control target key end

     0   :  { %v178_v1 = vmov 0   ;;  %vm86_vm0 = vcmask 1043456   ;;  %vm82_vm1 = vcmask 588800   ;;  %vm22_vm2 = vcmask 7168   ;;  %s284_s1 = inlined_call_operand.vmem [shape: bf16[1,72,128], index: 1, kind: input, shape index: {}]   ;;  %s285_s2 = inlined_call_operand.vmem [shape: f32[16,1], index: 2, kind: input, shape index: {}]   ;;  %s286_s0 = inlined_call_operand.vmem [shape: bf16[16,72], index: 0, kind: input, shape index: {}]   ;;  %s287_s4 = inlined_call_operand.vmem [shape: f32[1,16,1], index: 4, kind: output, shape index: {1}]   ;;  %s288_s5 = inlined_call_operand.vmem [shape: f32[1,16,1], index: 5, kind: output, shape index: {2}]   ;;  %s289_s3 = inlined_call_operand.vmem [shape: f32[1,16,128], index: 3, kind: output, shape index: {0}]  }
   0x1   :  { %v37_v0 = vld [vmem:[%s284_s1 + $0x20] sm:$0xf]  ;;  %177 = vset.pattern.permute.xlu0 %v178_v1  ;;  %v174_v6 = vld [vmem:[%s284_s1 + $0x18] sm:$0xff]  ;;  %v39_v7 = vld [vmem:[%s285_s2 + $0x8] sm:$0xff]  ;;  %v179_v12 = vmov 0.0   ;;  %v107_v13 = vlaneseq }
   0x2   :  { %v72_v2 = vunpack.c.l.b16 %v37_v0  ;;  %v38_v3 = vld [vmem:[%s285_s2] sm:$0xff]  ;;  %v173_v8 = vld [vmem:[%s284_s1 + $0x10] sm:$0xff]  ;;  %v172_v9 = vld [vmem:[%s284_s1 + $0x8] sm:$0xff]  ;;  %23 = vst.msk [vmem:[%s287_s4] sm:$0xff] %vm22_vm2, %v179_v12 }
   0x3   :  { %42 = vperm.xlu0 %177, %v38_v3   ;;  %v171_v10 = vld [vmem:[%s284_s1] sm:$0xff]  ;;  %24 = vst.msk [vmem:[%s287_s4 + $0x8] sm:$0xff] %vm22_vm2, %v179_v12  ;;  %v108_v14 = vand.u32 127, %v107_v13 }
   0x4   :  { %v77_v4 = vpack.c.b16 %v72_v2, %v72_v2  ;;  %v170_v11 = vld [vmem:[%s286_s0] sm:$0xff]  ;;  %25 = vst.msk [vmem:[%s288_s5] sm:$0xff] %vm22_vm2, %v179_v12 }
   0x5   :  { %26 = vst.msk [vmem:[%s288_s5 + $0x8] sm:$0xff] %vm22_vm2, %v179_v12  ;;  %vm111_vm3 = vcmp.lt.s32.totalorder %v108_v14, 64 }
   0x6   :  { %v88_v5 = vsel %vm86_vm0, %v77_v4, 0 }
   0x7   :  { %93 = vmatpush.bf16.msra.mxu0 %v88_v5 }
   0x9   :  { %v114_v25 = vld [vmem:[%s287_s4] sm:$0xff] }
   0xa   :  { %v115_v31 = vld [vmem:[%s287_s4 + $0x8] sm:$0xff] }
   0xb   :  { %94 = vmatpush.bf16.msra.mxu0 %v174_v6  ;;  %47 = vperm.xlu0 %177, %v39_v7   ;;  %v125_v27 = vld [vmem:[%s288_s5] sm:$0xff] }
   0xc   :  { %v126_v33 = vld [vmem:[%s288_s5 + $0x8] sm:$0xff] }
   0xf   :  { %95 = vmatpush.bf16.msra.mxu0 %v173_v8 }
  0x13   :  { %96 = vmatpush.bf16.msra.mxu0 %v172_v9 }
  0x17   :  { %97 = vmatpush.bf16.msra.mxu0 %v171_v10 }
  0x1a   :  { %169 = vmatmul.msk.bf16.vlgmr.msra.gmra.mxu0 %vm82_vm1, %v170_v11 }
  0x75   :  { %v43_v15 = vpop.permute.xlu0 %42 }
  0x7d   :  { %v48_v20 = vpop.permute.xlu0 %47 }
  0x97   :  { %v99_v16 = vpop.f32.mrf.mxu0 }
  0x98   :  { %v100_v17 = vadd.f32 %v99_v16, %v43_v15 }
  0x9a   :  { %104 = vst [vmem:[%s289_s3] sm:$0xff] %v100_v17  ;;  %v112_v18 = vsel %vm111_vm3, %v100_v17, 0.0 }
  0x9b   :  { %116 = vadd.xlane.f32.xlu1 %v112_v18  ;;  %v127_v19 = vmul.f32 %v112_v18, %v112_v18 }
  0x9d   :  { %129 = vadd.xlane.f32.xlu2 %v127_v19 }
  0x9f   :  { %v101_v21 = vpop.f32.mrf.mxu0 }
  0xa0   :  { %v102_v22 = vadd.f32 %v101_v21, %v48_v20 }
  0xa2   :  { %105 = vst [vmem:[%s289_s3 + $0x8] sm:$0xff] %v102_v22  ;;  %v113_v23 = vsel %vm111_vm3, %v102_v22, 0.0 }
  0xa3   :  { %118 = vadd.xlane.f32.xlu1 %v113_v23  ;;  %v128_v24 = vmul.f32 %v113_v23, %v113_v23 }
  0xa5   :  { %131 = vadd.xlane.f32.xlu2 %v128_v24 }
 0x10e   :  { %v117_v26 = vpop.xlane.xlu1 %116 }
 0x10f   :  { %v120_v28 = vadd.f32 %v117_v26, %v114_v25 }
 0x110   :  { %v130_v29 = vpop.xlane.xlu2 %129 }
 0x111   :  { %123 = vst.msk [vmem:[%s287_s4] sm:$0xff] %vm22_vm2, %v120_v28  ;;  %v133_v30 = vadd.f32 %v130_v29, %v125_v27 }
 0x113   :  { %135 = vst.msk [vmem:[%s288_s5] sm:$0xff] %vm22_vm2, %v133_v30 }
 0x116   :  { %v119_v32 = vpop.xlane.xlu1 %118 }
 0x117   :  { %v121_v34 = vadd.f32 %v119_v32, %v115_v31 }
 0x118   :  { %v132_v35 = vpop.xlane.xlu2 %131 }
 0x119   :  { %124 = vst.msk [vmem:[%s287_s4 + $0x8] sm:$0xff] %vm22_vm2, %v121_v34  ;;  %v134_v36 = vadd.f32 %v132_v35, %v126_v33 }
 0x11b   :  { %136 = vst.msk [vmem:[%s288_s5 + $0x8] sm:$0xff] %vm22_vm2, %v134_v36 }

// kernel: _lambda_.120
= control target key start
LH: loop header
LB: loop body
LE: loop exit
PB: predicated region body
PF: predicated region fallthrough
CT: control target
= control target key end

     0   :  { %v59_v0 = vmov 0   ;;  %s104_s2 = inlined_call_operand.vmem [shape: f32[1,16,1], index: 2, kind: input, shape index: {}]   ;;  %s105_s1 = inlined_call_operand.vmem [shape: f32[1,16,1], index: 1, kind: input, shape index: {}]   ;;  %s106_s0 = inlined_call_operand.vmem [shape: f32[1,16,128], index: 0, kind: input, shape index: {}]   ;;  %s107_s3 = inlined_call_operand.vmem [shape: f32[1,16,128], index: 3, kind: output, shape index: {}]  }
   0x1   :  { %58 = vset.pattern.permute.xlu1 %v59_v0  ;;  %57 = vset.pattern.permute.xlu0 %v59_v0  ;;  %v30_v1 = vld [vmem:[%s104_s2] sm:$0xff]  ;;  %v31_v3 = vld [vmem:[%s104_s2 + $0x8] sm:$0xff] }
   0x2   :  { %v16_v2 = vld [vmem:[%s105_s1] sm:$0xff]  ;;  %34 = vperm.xlu1 %58, %v30_v1   ;;  %v17_v4 = vld [vmem:[%s105_s1 + $0x8] sm:$0xff] }
   0x3   :  { %20 = vperm.xlu0 %57, %v16_v2   ;;  %v14_v5 = vld [vmem:[%s106_s0] sm:$0xff]  ;;  %v15_v11 = vld [vmem:[%s106_s0 + $0x8] sm:$0xff] }
   0xa   :  { %39 = vperm.xlu1 %58, %v31_v3  }
   0xb   :  { %25 = vperm.xlu0 %57, %v17_v4  }
  0x74   :  { %v35_v6 = vpop.permute.xlu1 %34 }
  0x75   :  { %v21_v7 = vpop.permute.xlu0 %20 }
  0x76   :  { %v28_v8 = vsub.f32 %v14_v5, %v21_v7 }
  0x78   :  { %v42_v9 = vmul.f32 %v35_v6, %v28_v8 }
  0x7a   :  { %vm44_vm0 = vcmp.ge.f32.partialorder %v42_v9, 0.0  ;;  %v46_v10 = vmul.f32 0.2, %v42_v9 }
  0x7c   :  { %v48_v12 = vsel %vm44_vm0, %v42_v9, %v46_v10  ;;  %v40_v15 = vpop.permute.xlu1 %39 }
  0x7d   :  { %50 = vst [vmem:[%s107_s3] sm:$0xff] %v48_v12  ;;  %v26_v13 = vpop.permute.xlu0 %25 }
  0x7e   :  { %v29_v14 = vsub.f32 %v15_v11, %v26_v13 }
  0x80   :  { %v43_v16 = vmul.f32 %v40_v15, %v29_v14 }
  0x82   :  { %vm45_vm1 = vcmp.ge.f32.partialorder %v43_v16, 0.0  ;;  %v47_v17 = vmul.f32 0.2, %v43_v16 }
  0x84   :  { %v49_v18 = vsel %vm45_vm1, %v43_v16, %v47_v17 }
  0x85   :  { %51 = vst [vmem:[%s107_s3 + $0x8] sm:$0xff] %v49_v18 }

// kernel: _lambda_.121
= control target key start
LH: loop header
LB: loop body
LE: loop exit
PB: predicated region body
PF: predicated region fallthrough
CT: control target
= control target key end

     0   :  { %v258_v4 = vmov 0   ;;  %vm122_vm0 = vcmask 130048   ;;  %vm22_vm1 = vcmask 7168   ;;  %v259_v18 = vmov 0.0   ;;  %s385_s1 = inlined_call_operand.vmem [shape: bf16[1,144,128], index: 1, kind: input, shape index: {}]   ;;  %s386_s0 = inlined_call_operand.vmem [shape: bf16[16,144], index: 0, kind: input, shape index: {}]   ;;  %s387_s2 = inlined_call_operand.vmem [shape: f32[16,1], index: 2, kind: input, shape index: {}]   ;;  %s388_s4 = inlined_call_operand.vmem [shape: f32[1,16,1], index: 4, kind: output, shape index: {1}]   ;;  %s389_s5 = inlined_call_operand.vmem [shape: f32[1,16,1], index: 5, kind: output, shape index: {2}]   ;;  %s390_s3 = inlined_call_operand.vmem [shape: f32[1,16,128], index: 3, kind: output, shape index: {0}]  }
   0x1   :  { %v253_v0 = vld [vmem:[%s385_s1 + $0x38] sm:$0xff]  ;;  %v252_v1 = vld [vmem:[%s385_s1 + $0x30] sm:$0xff]  ;;  %v254_v2 = vld [vmem:[%s385_s1 + $0x40] sm:$0xff]  ;;  %257 = vset.pattern.permute.xlu0 %v258_v4  ;;  %23 = vst.msk [vmem:[%s388_s4] sm:$0xff] %vm22_vm1, %v259_v18  ;;  %v157_v19 = vlaneseq }
   0x2   :  { %126 = vmatpush.bf16.msra.mxu0 %v253_v0  ;;  %v244_v3 = vld [vmem:[%s386_s0 + $0x4] sm:$0xf]  ;;  %v203_v5 = vld [vmem:[%s386_s0 + $0x8] sm:$0xf0]  ;;  %147 = vmatpush.bf16.msra.mxu1 %v254_v2  ;;  %v249_v11 = vld [vmem:[%s385_s1 + $0x18] sm:$0xff]  ;;  %24 = vst.msk [vmem:[%s388_s4 + $0x8] sm:$0xff] %vm22_vm1, %v259_v18 }
   0x3   :  { %v206_v6 = vor.u32 %v244_v3, %v203_v5  ;;  %v47_v7 = vld [vmem:[%s387_s2] sm:$0xff]  ;;  %v251_v8 = vld [vmem:[%s385_s1 + $0x28] sm:$0xff]  ;;  %v248_v12 = vld [vmem:[%s385_s1 + $0x10] sm:$0xff]  ;;  %25 = vst.msk [vmem:[%s389_s5] sm:$0xff] %vm22_vm1, %v259_v18  ;;  %v158_v21 = vand.u32 127, %v157_v19 }
   0x4   :  { %51 = vperm.xlu0 %257, %v47_v7   ;;  %v250_v9 = vld [vmem:[%s385_s1 + $0x20] sm:$0xff]  ;;  %v48_v10 = vld [vmem:[%s387_s2 + $0x8] sm:$0xff]  ;;  %26 = vst.msk [vmem:[%s389_s5 + $0x8] sm:$0xff] %vm22_vm1, %v259_v18 }
   0x5   :  { %243 = vmatmul.msk.bf16.vlgmr.msra.gmra.mxu1 %vm122_vm0, %v206_v6  ;;  %v247_v13 = vld [vmem:[%s385_s1 + $0x8] sm:$0xff]  ;;  %v246_v14 = vld [vmem:[%s385_s1] sm:$0xff]  ;;  %vm161_vm2 = vcmp.lt.s32.totalorder %v158_v21, 64 }
   0x6   :  { %127 = vmatpush.bf16.msra.mxu0 %v252_v1  ;;  %v201_v15 = vld [vmem:[%s386_s0] sm:$0xf]  ;;  %v245_v16 = vld [vmem:[%s386_s0 + $0x4] sm:$0xf0] }
   0x7   :  { %v202_v17 = vor.u32 %v245_v16, %v201_v15 }
   0x8   :  { %v164_v35 = vld [vmem:[%s388_s4] sm:$0xff] }
   0x9   :  { %v165_v41 = vld [vmem:[%s388_s4 + $0x8] sm:$0xff] }
   0xa   :  { %128 = vmatpush.bf16.msra.mxu0 %v251_v8  ;;  %v175_v37 = vld [vmem:[%s389_s5] sm:$0xff] }
   0xb   :  { %v176_v43 = vld [vmem:[%s389_s5 + $0x8] sm:$0xff] }
   0xc   :  { %56 = vperm.xlu0 %257, %v48_v10  }
   0xe   :  { %129 = vmatpush.bf16.msra.mxu0 %v250_v9 }
  0x12   :  { %130 = vmatpush.bf16.msra.mxu0 %v249_v11 }
  0x16   :  { %131 = vmatpush.bf16.msra.mxu0 %v248_v12 }
  0x1a   :  { %132 = vmatpush.bf16.msra.mxu0 %v247_v13 }
  0x1e   :  { %133 = vmatpush.bf16.msra.mxu0 %v246_v14 }
  0x21   :  { %134 = vmatmul.bf16.vlgmr.msra.gmra.mxu0 %v202_v17 }
  0x76   :  { %v52_v20 = vpop.permute.xlu0 %51 }
  0x7e   :  { %v57_v28 = vpop.permute.xlu0 %56 }
  0x82   :  { %v149_v22 = vpop.f32.mrf.mxu1 }
  0x8a   :  { %v151_v31 = vpop.f32.mrf.mxu1 }
  0x9e   :  { %v135_v23 = vpop.f32.mrf.mxu0 }
  0x9f   :  { %v136_v24 = vadd.f32 %v135_v23, %v52_v20 }
  0xa1   :  { %v150_v25 = vadd.f32 %v149_v22, %v136_v24 }
  0xa3   :  { %v162_v26 = vsel %vm161_vm2, %v150_v25, 0.0  ;;  %154 = vst [vmem:[%s390_s3] sm:$0xff] %v150_v25 }
  0xa4   :  { %166 = vadd.xlane.f32.xlu1 %v162_v26  ;;  %v177_v27 = vmul.f32 %v162_v26, %v162_v26 }
  0xa6   :  { %v137_v29 = vpop.f32.mrf.mxu0  ;;  %179 = vadd.xlane.f32.xlu2 %v177_v27 }
  0xa7   :  { %v138_v30 = vadd.f32 %v137_v29, %v57_v28 }
  0xa9   :  { %v152_v32 = vadd.f32 %v151_v31, %v138_v30 }
  0xab   :  { %155 = vst [vmem:[%s390_s3 + $0x8] sm:$0xff] %v152_v32  ;;  %v163_v33 = vsel %vm161_vm2, %v152_v32, 0.0 }
  0xac   :  { %168 = vadd.xlane.f32.xlu1 %v163_v33  ;;  %v178_v34 = vmul.f32 %v163_v33, %v163_v33 }
  0xae   :  { %181 = vadd.xlane.f32.xlu2 %v178_v34 }
 0x117   :  { %v167_v36 = vpop.xlane.xlu1 %166 }
 0x118   :  { %v170_v38 = vadd.f32 %v167_v36, %v164_v35 }
 0x119   :  { %v180_v39 = vpop.xlane.xlu2 %179 }
 0x11a   :  { %173 = vst.msk [vmem:[%s388_s4] sm:$0xff] %vm22_vm1, %v170_v38  ;;  %v183_v40 = vadd.f32 %v180_v39, %v175_v37 }
 0x11c   :  { %185 = vst.msk [vmem:[%s389_s5] sm:$0xff] %vm22_vm1, %v183_v40 }
 0x11f   :  { %v169_v42 = vpop.xlane.xlu1 %168 }
 0x120   :  { %v171_v44 = vadd.f32 %v169_v42, %v165_v41 }
 0x121   :  { %v182_v45 = vpop.xlane.xlu2 %181 }
 0x122   :  { %174 = vst.msk [vmem:[%s388_s4 + $0x8] sm:$0xff] %vm22_vm1, %v171_v44  ;;  %v184_v46 = vadd.f32 %v182_v45, %v176_v43 }
 0x124   :  { %186 = vst.msk [vmem:[%s389_s5 + $0x8] sm:$0xff] %vm22_vm1, %v184_v46 }

// kernel: _lambda_.123
= control target key start
LH: loop header
LB: loop body
LE: loop exit
PB: predicated region body
PF: predicated region fallthrough
CT: control target
= control target key end

     0   :  { %v344_v5 = vmov 0   ;;  %vm149_vm0 = vcmask 130048   ;;  %v199_v27 = vlaneseq  ;;  %vm22_vm2 = vcmask 7168   ;;  %s545_s1 = inlined_call_operand.vmem [shape: bf16[1,144,128], index: 1, kind: input, shape index: {}]   ;;  %s546_s0 = inlined_call_operand.vmem [shape: bf16[32,144], index: 0, kind: input, shape index: {}]   ;;  %s547_s2 = inlined_call_operand.vmem [shape: f32[32,1], index: 2, kind: input, shape index: {}]   ;;  %s548_s3 = inlined_call_operand.vmem [shape: f32[1,32,128], index: 3, kind: output, shape index: {0}]   ;;  %s549_s4 = inlined_call_operand.vmem [shape: f32[1,32,1], index: 4, kind: output, shape index: {1}]   ;;  %s550_s5 = inlined_call_operand.vmem [shape: f32[1,32,1], index: 5, kind: output, shape index: {2}]  }
   0x1   :  { %v330_v0 = vld [vmem:[%s545_s1 + $0x38] sm:$0xff]  ;;  %v329_v1 = vld [vmem:[%s545_s1 + $0x30] sm:$0xff]  ;;  %v331_v2 = vld [vmem:[%s545_s1 + $0x40] sm:$0xff]  ;;  %342 = vset.pattern.permute.xlu0 %v344_v5  ;;  %343 = vset.pattern.permute.xlu1 %v344_v5  ;;  %v345_v50 = vmov 0.0  }
   0x2   :  { %156 = vmatpush.bf16.msra.mxu0 %v330_v0  ;;  %332 = vmatpush.bf16.msra.mxu2 %v330_v0  ;;  %v319_v3 = vld [vmem:[%s546_s0 + $0x4] sm:$0xf]  ;;  %v269_v4 = vld [vmem:[%s546_s0 + $0x8] sm:$0xf0]  ;;  %v55_v9 = vld [vmem:[%s547_s2 + $0x10] sm:$0xff]  ;;  %v200_v30 = vand.u32 127, %v199_v27 }
   0x3   :  { %182 = vmatpush.bf16.msra.mxu1 %v331_v2  ;;  %v272_v6 = vor.u32 %v319_v3, %v269_v4  ;;  %v53_v7 = vld [vmem:[%s547_s2] sm:$0xff]  ;;  %v328_v8 = vld [vmem:[%s545_s1 + $0x28] sm:$0xff]  ;;  %69 = vperm.xlu1 %343, %v55_v9   ;;  %v56_v12 = vld [vmem:[%s547_s2 + $0x18] sm:$0xff]  ;;  %23 = vst.msk [vmem:[%s549_s4] sm:$0xff] %vm22_vm2, %v345_v50 }
   0x4   :  { %59 = vperm.xlu0 %342, %v53_v7   ;;  %v327_v10 = vld [vmem:[%s545_s1 + $0x20] sm:$0xff]  ;;  %v54_v11 = vld [vmem:[%s547_s2 + $0x8] sm:$0xff]  ;;  %v326_v13 = vld [vmem:[%s545_s1 + $0x18] sm:$0xff]  ;;  %vm203_vm1 = vcmp.lt.s32.totalorder %v200_v30, 16  ;;  %24 = vst.msk [vmem:[%s549_s4 + $0x8] sm:$0xff] %vm22_vm2, %v345_v50 }
   0x5   :  { %v321_v14 = vld [vmem:[%s546_s0 + $0x14] sm:$0xf]  ;;  %v277_v15 = vld [vmem:[%s546_s0 + $0x18] sm:$0xf0]  ;;  %v324_v18 = vld [vmem:[%s545_s1 + $0x8] sm:$0xff]  ;;  %25 = vst.msk [vmem:[%s549_s4 + $0x10] sm:$0xff] %vm22_vm2, %v345_v50 }
   0x6   :  { %157 = vmatpush.bf16.msra.mxu0 %v329_v1  ;;  %333 = vmatpush.bf16.msra.mxu2 %v329_v1  ;;  %v325_v16 = vld [vmem:[%s545_s1 + $0x10] sm:$0xff]  ;;  %v280_v17 = vor.u32 %v321_v14, %v277_v15  ;;  %v323_v19 = vld [vmem:[%s545_s1] sm:$0xff]  ;;  %v320_v21 = vld [vmem:[%s546_s0 + $0x4] sm:$0xf0]  ;;  %26 = vst.msk [vmem:[%s549_s4 + $0x18] sm:$0xff] %vm22_vm2, %v345_v50 }
   0x7   :  { %317 = vmatmul.msk.bf16.vlgmr.msra.gmra.mxu1 %vm149_vm0, %v272_v6  ;;  %v267_v20 = vld [vmem:[%s546_s0] sm:$0xf]  ;;  %v275_v22 = vld [vmem:[%s546_s0 + $0x10] sm:$0xf]  ;;  %v322_v23 = vld [vmem:[%s546_s0 + $0x14] sm:$0xf0] }
   0x8   :  { %v268_v24 = vor.u32 %v320_v21, %v267_v20  ;;  %v276_v25 = vor.u32 %v322_v23, %v275_v22  ;;  %27 = vst.msk [vmem:[%s550_s5] sm:$0xff] %vm22_vm2, %v345_v50 }
   0x9   :  { %28 = vst.msk [vmem:[%s550_s5 + $0x8] sm:$0xff] %vm22_vm2, %v345_v50 }
   0xa   :  { %158 = vmatpush.bf16.msra.mxu0 %v328_v8  ;;  %334 = vmatpush.bf16.msra.mxu2 %v328_v8  ;;  %29 = vst.msk [vmem:[%s550_s5 + $0x10] sm:$0xff] %vm22_vm2, %v345_v50  ;;  %v208_v57 = vld [vmem:[%s549_s4] sm:$0xff] }
   0xb   :  { %74 = vperm.xlu1 %343, %v56_v12   ;;  %30 = vst.msk [vmem:[%s550_s5 + $0x18] sm:$0xff] %vm22_vm2, %v345_v50  ;;  %v209_v61 = vld [vmem:[%s549_s4 + $0x8] sm:$0xff] }
   0xc   :  { %64 = vperm.xlu0 %342, %v54_v11   ;;  %v210_v60 = vld [vmem:[%s549_s4 + $0x10] sm:$0xff] }
   0xd   :  { %v211_v2 = vld [vmem:[%s549_s4 + $0x18] sm:$0xff] }
   0xe   :  { %159 = vmatpush.bf16.msra.mxu0 %v327_v10  ;;  %335 = vmatpush.bf16.msra.mxu2 %v327_v10 }
   0xf   :  { %v229_v3 = vld [vmem:[%s550_s5] sm:$0xff] }
  0x10   :  { %v230_v8 = vld [vmem:[%s550_s5 + $0x8] sm:$0xff] }
  0x11   :  { %v231_v11 = vld [vmem:[%s550_s5 + $0x10] sm:$0xff] }
  0x12   :  { %160 = vmatpush.bf16.msra.mxu0 %v326_v13  ;;  %336 = vmatpush.bf16.msra.mxu2 %v326_v13  ;;  %v232_v14 = vld [vmem:[%s550_s5 + $0x18] sm:$0xff] }
  0x16   :  { %161 = vmatpush.bf16.msra.mxu0 %v325_v16  ;;  %337 = vmatpush.bf16.msra.mxu2 %v325_v16 }
  0x17   :  { %318 = vmatmul.msk.bf16.gmra.mxu1 %vm149_vm0, %v280_v17 }
  0x1a   :  { %162 = vmatpush.bf16.msra.mxu0 %v324_v18  ;;  %338 = vmatpush.bf16.msra.mxu2 %v324_v18 }
  0x1e   :  { %163 = vmatpush.bf16.msra.mxu0 %v323_v19  ;;  %339 = vmatpush.bf16.msra.mxu2 %v323_v19 }
  0x21   :  { %164 = vmatmul.bf16.vlgmr.msra.gmra.mxu0 %v268_v24  ;;  %169 = vmatmul.bf16.vlgmr.msra.gmra.mxu2 %v276_v25 }
  0x75   :  { %v70_v33 = vpop.permute.xlu1 %69 }
  0x76   :  { %v60_v29 = vpop.permute.xlu0 %59 }
  0x7d   :  { %v75_v45 = vpop.permute.xlu1 %74 }
  0x7e   :  { %v65_v39 = vpop.permute.xlu0 %64 }
  0x84   :  { %v184_v26 = vpop.f32.mrf.mxu1 }
  0x8c   :  { %v186_v28 = vpop.f32.mrf.mxu1 }
  0x94   :  { %v189_v35 = vpop.f32.mrf.mxu1 }
  0x9c   :  { %v191_v48 = vpop.f32.mrf.mxu1 }
  0x9e   :  { %v165_v31 = vpop.f32.mrf.mxu0 }
  0x9f   :  { %v166_v32 = vadd.f32 %v165_v31, %v60_v29 }
  0xa1   :  { %v185_v34 = vadd.f32 %v184_v26, %v166_v32 }
  0xa3   :  { %v204_v36 = vsel %vm203_vm1, %v185_v34, 0.0  ;;  %194 = vst [vmem:[%s548_s3] sm:$0xff] %v185_v34 }
  0xa4   :  { %212 = vadd.xlane.f32.xlu2 %v204_v36  ;;  %v170_v37 = vpop.f32.mrf.mxu2  ;;  %v233_v53 = vmul.f32 %v204_v36, %v204_v36 }
  0xa5   :  { %v171_v38 = vadd.f32 %v170_v37, %v70_v33 }
  0xa6   :  { %v167_v40 = vpop.f32.mrf.mxu0 }
  0xa7   :  { %v168_v41 = vadd.f32 %v167_v40, %v65_v39  ;;  %v190_v42 = vadd.f32 %v189_v35, %v171_v38 }
  0xa9   :  { %v187_v43 = vadd.f32 %v186_v28, %v168_v41  ;;  %196 = vst [vmem:[%s548_s3 + $0x10] sm:$0xff] %v190_v42  ;;  %v206_v44 = vsel %vm203_vm1, %v190_v42, 0.0 }
  0xaa   :  { %216 = vadd.xlane.f32.xlu0 %v206_v44  ;;  %v235_v55 = vmul.f32 %v206_v44, %v206_v44 }
  0xab   :  { %195 = vst [vmem:[%s548_s3 + $0x8] sm:$0xff] %v187_v43  ;;  %v205_v46 = vsel %vm203_vm1, %v187_v43, 0.0 }
  0xac   :  { %214 = vadd.xlane.f32.xlu2 %v205_v46  ;;  %v172_v47 = vpop.f32.mrf.mxu2  ;;  %v234_v54 = vmul.f32 %v205_v46, %v205_v46 }
  0xad   :  { %v173_v49 = vadd.f32 %v172_v47, %v75_v45 }
  0xaf   :  { %v192_v51 = vadd.f32 %v191_v48, %v173_v49 }
  0xb1   :  { %197 = vst [vmem:[%s548_s3 + $0x18] sm:$0xff] %v192_v51  ;;  %v207_v52 = vsel %vm203_vm1, %v192_v51, 0.0 }
  0xb2   :  { %218 = vadd.xlane.f32.xlu1 %v207_v52  ;;  %v236_v56 = vmul.f32 %v207_v52, %v207_v52 }
  0xb4   :  { %237 = vadd.xlane.f32.xlu2 %v233_v53 }
  0xbc   :  { %239 = vadd.xlane.f32.xlu2 %v234_v54 }
  0xc4   :  { %241 = vadd.xlane.f32.xlu2 %v235_v55 }
  0xcc   :  { %243 = vadd.xlane.f32.xlu2 %v236_v56 }
 0x117   :  { %v213_v58 = vpop.xlane.xlu2 %212 }
 0x118   :  { %v220_v59 = vadd.f32 %v213_v58, %v208_v57 }
 0x11a   :  { %225 = vst.msk [vmem:[%s549_s4] sm:$0xff] %vm22_vm2, %v220_v59 }
 0x11d   :  { %v217_v62 = vpop.xlane.xlu0 %216 }
 0x11e   :  { %v222_v63 = vadd.f32 %v217_v62, %v210_v60 }
 0x11f   :  { %v215_v0 = vpop.xlane.xlu2 %214 }
 0x120   :  { %v221_v1 = vadd.f32 %v215_v0, %v209_v61  ;;  %227 = vst.msk [vmem:[%s549_s4 + $0x10] sm:$0xff] %vm22_vm2, %v222_v63 }
 0x122   :  { %226 = vst.msk [vmem:[%s549_s4 + $0x8] sm:$0xff] %vm22_vm2, %v221_v1 }
 0x125   :  { %v219_v4 = vpop.xlane.xlu1 %218 }
 0x126   :  { %v223_v5 = vadd.f32 %v219_v4, %v211_v2 }
 0x127   :  { %v238_v6 = vpop.xlane.xlu2 %237 }
 0x128   :  { %v245_v7 = vadd.f32 %v238_v6, %v229_v3  ;;  %228 = vst.msk [vmem:[%s549_s4 + $0x18] sm:$0xff] %vm22_vm2, %v223_v5 }
 0x12a   :  { %249 = vst.msk [vmem:[%s550_s5] sm:$0xff] %vm22_vm2, %v245_v7 }
 0x12f   :  { %v240_v9 = vpop.xlane.xlu2 %239 }
 0x130   :  { %v246_v10 = vadd.f32 %v240_v9, %v230_v8 }
 0x132   :  { %250 = vst.msk [vmem:[%s550_s5 + $0x8] sm:$0xff] %vm22_vm2, %v246_v10 }
 0x137   :  { %v242_v12 = vpop.xlane.xlu2 %241 }
 0x138   :  { %v247_v13 = vadd.f32 %v242_v12, %v231_v11 }
 0x13a   :  { %251 = vst.msk [vmem:[%s550_s5 + $0x10] sm:$0xff] %vm22_vm2, %v247_v13 }
 0x13f   :  { %v244_v15 = vpop.xlane.xlu2 %243 }
 0x140   :  { %v248_v16 = vadd.f32 %v244_v15, %v232_v14 }
 0x142   :  { %252 = vst.msk [vmem:[%s550_s5 + $0x18] sm:$0xff] %vm22_vm2, %v248_v16 }

// kernel: _lambda_.124
= control target key start
LH: loop header
LB: loop body
LE: loop exit
PB: predicated region body
PF: predicated region fallthrough
CT: control target
= control target key end

     0   :  { %v98_v0 = vmov 0   ;;  %s167_s1 = inlined_call_operand.vmem [shape: f32[1,32,1], index: 1, kind: input, shape index: {}]   ;;  %s168_s2 = inlined_call_operand.vmem [shape: f32[1,32,1], index: 2, kind: input, shape index: {}]   ;;  %s169_s0 = inlined_call_operand.vmem [shape: f32[1,32,128], index: 0, kind: input, shape index: {}]   ;;  %s170_s3 = inlined_call_operand.vmem [shape: f32[1,32,128], index: 3, kind: output, shape index: {}]  }
   0x1   :  { %96 = vset.pattern.permute.xlu1 %v98_v0  ;;  %95 = vset.pattern.permute.xlu0 %v98_v0  ;;  %v20_v1 = vld [vmem:[%s167_s1 + $0x10] sm:$0xff]  ;;  %v18_v2 = vld [vmem:[%s167_s1] sm:$0xff]  ;;  %v21_v4 = vld [vmem:[%s167_s1 + $0x18] sm:$0xff] }
   0x2   :  { %34 = vperm.xlu1 %96, %v20_v1   ;;  %24 = vperm.xlu0 %95, %v18_v2   ;;  %v46_v3 = vld [vmem:[%s168_s2] sm:$0xff]  ;;  %v19_v5 = vld [vmem:[%s167_s1 + $0x8] sm:$0xff]  ;;  %v49_v7 = vld [vmem:[%s168_s2 + $0x18] sm:$0xff] }
   0x3   :  { %97 = vset.pattern.permute.xlu2 %v98_v0  ;;  %v47_v6 = vld [vmem:[%s168_s2 + $0x8] sm:$0xff]  ;;  %v48_v8 = vld [vmem:[%s168_s2 + $0x10] sm:$0xff]  ;;  %v14_v9 = vld [vmem:[%s169_s0] sm:$0xff] }
   0x4   :  { %52 = vperm.xlu2 %97, %v46_v3   ;;  %v15_v16 = vld [vmem:[%s169_s0 + $0x8] sm:$0xff]  ;;  %v16_v23 = vld [vmem:[%s169_s0 + $0x10] sm:$0xff]  ;;  %v17_v24 = vld [vmem:[%s169_s0 + $0x18] sm:$0xff] }
   0xa   :  { %39 = vperm.xlu1 %96, %v21_v4   ;;  %29 = vperm.xlu0 %95, %v19_v5  }
   0xc   :  { %57 = vperm.xlu2 %97, %v47_v6  }
  0x12   :  { %67 = vperm.xlu1 %96, %v49_v7   ;;  %62 = vperm.xlu0 %95, %v48_v8  }
  0x5e   :  { %v53_v10 = vpop.permute.xlu2 %52 }
  0x66   :  { %v58_v21 = vpop.permute.xlu2 %57 }
  0x74   :  { %v35_v11 = vpop.permute.xlu1 %34  ;;  %v25_v12 = vpop.permute.xlu0 %24 }
  0x75   :  { %v42_v13 = vsub.f32 %v14_v9, %v25_v12  ;;  %v44_v26 = vsub.f32 %v16_v23, %v35_v11 }
  0x77   :  { %v70_v14 = vmul.f32 %v53_v10, %v42_v13 }
  0x79   :  { %vm74_vm0 = vcmp.ge.f32.partialorder %v70_v14, 0.0  ;;  %v78_v15 = vmul.f32 0.2, %v70_v14 }
  0x7b   :  { %v82_v17 = vsel %vm74_vm0, %v70_v14, %v78_v15 }
  0x7c   :  { %86 = vst [vmem:[%s170_s3] sm:$0xff] %v82_v17  ;;  %v40_v18 = vpop.permute.xlu1 %39  ;;  %v30_v19 = vpop.permute.xlu0 %29 }
  0x7d   :  { %v43_v20 = vsub.f32 %v15_v16, %v30_v19  ;;  %v45_v27 = vsub.f32 %v17_v24, %v40_v18 }
  0x7f   :  { %v71_v22 = vmul.f32 %v58_v21, %v43_v20 }
  0x81   :  { %vm75_vm1 = vcmp.ge.f32.partialorder %v71_v22, 0.0  ;;  %v79_v25 = vmul.f32 0.2, %v71_v22 }
  0x83   :  { %v83_v28 = vsel %vm75_vm1, %v71_v22, %v79_v25 }
  0x84   :  { %87 = vst [vmem:[%s170_s3 + $0x8] sm:$0xff] %v83_v28  ;;  %v68_v29 = vpop.permute.xlu1 %67  ;;  %v63_v30 = vpop.permute.xlu0 %62 }
  0x85   :  { %v73_v31 = vmul.f32 %v68_v29, %v45_v27  ;;  %v72_v32 = vmul.f32 %v63_v30, %v44_v26 }
  0x87   :  { %vm77_vm2 = vcmp.ge.f32.partialorder %v73_v31, 0.0  ;;  %v81_v33 = vmul.f32 0.2, %v73_v31  ;;  %vm76_vm3 = vcmp.ge.f32.partialorder %v72_v32, 0.0  ;;  %v80_v34 = vmul.f32 0.2, %v72_v32 }
  0x89   :  { %v85_v35 = vsel %vm77_vm2, %v73_v31, %v81_v33  ;;  %v84_v36 = vsel %vm76_vm3, %v72_v32, %v80_v34 }
  0x8a   :  { %89 = vst [vmem:[%s170_s3 + $0x18] sm:$0xff] %v85_v35 }
  0x8b   :  { %88 = vst [vmem:[%s170_s3 + $0x10] sm:$0xff] %v84_v36 }

// kernel: squeeze.82
= control target key start
LH: loop header
LB: loop body
LE: loop exit
PB: predicated region body
PF: predicated region fallthrough
CT: control target
= control target key end

     0   :  { %s37_s8 = smov 80   ;;  %s38_s9 = smov 96   ;;  %vm7_vm0 = vcmask 130048   ;;  %s55_s0 = inlined_call_operand.vmem [shape: f32[64], index: 0, kind: input, shape index: {}]   ;;  %s56_s1 = inlined_call_operand.vmem [shape: f32[4,16], index: 1, kind: output, shape index: {}]  }
   0x1   :  { %v4_v0 = vld [vmem:[%s55_s0] sm:$0x1]  ;;  %s36_s0 = smov 112  }
   0x2   :  { %5 = vst [vmem:[#allocation1] sm:$0x1] %v4_v0 }
   0x9   :  { %v9_v1 = vld [vmem:[#allocation1] sm:$0x1]  }
   0xa   :  { %v21_v2 = vld [vmem:[#allocation1] sm:$0x1]   ;;  %10 = vrot.lane.b32.xlu0 %v9_v1, %s36_s0 }
   0xb   :  { %22 = vrot.lane.b32.xlu1 %v21_v2, %s37_s8  ;;  %v15_v3 = vld [vmem:[#allocation1] sm:$0x1]  }
   0xc   :  { %v6_v4 = vld [vmem:[#allocation1] sm:$0x1]  }
   0xd   :  { %8 = vst.msk [vmem:[#allocation0] sm:$0x1] %vm7_vm0, %v6_v4  }
  0x12   :  { %16 = vrot.lane.b32.xlu0 %v15_v3, %s38_s9 }
  0x7c   :  { %v11_v5 = vpop.permute.xlu0 %10  }
  0x7d   :  { %v23_v6 = vpop.permute.xlu1 %22   ;;  %14 = vst.msk [vmem:[#allocation0 + $0x1] sm:$0x1] %vm7_vm0, %v11_v5  }
  0x7e   :  { %26 = vst.msk [vmem:[#allocation0 + $0x3] sm:$0x1] %vm7_vm0, %v23_v6  }
  0x84   :  { %v17_v7 = vpop.permute.xlu0 %16  }
  0x85   :  { %20 = vst.msk [vmem:[#allocation0 + $0x2] sm:$0x1] %vm7_vm0, %v17_v7  }
  0x8c   :  { %v29_v8 = vld [vmem:[#allocation0] sm:$0xf] }
  0x8d   :  { %32 = vst [vmem:[%s56_s1] sm:$0xf] %v29_v8 }

// kernel: _lambda_.125
= control target key start
LH: loop header
LB: loop body
LE: loop exit
PB: predicated region body
PF: predicated region fallthrough
CT: control target
= control target key end

     0   :  { %v506_v5 = vmov 0   ;;  %vm237_vm0 = vcmask 261120   ;;  %v306_v43 = vlaneseq  ;;  %vm22_vm2 = vcmask 7168   ;;  %s746_s1 = inlined_call_operand.vmem [shape: bf16[1,288,128], index: 1, kind: input, shape index: {}]   ;;  %s747_s0 = inlined_call_operand.vmem [shape: bf16[32,288], index: 0, kind: input, shape index: {}]   ;;  %s748_s2 = inlined_call_operand.vmem [shape: f32[32,1], index: 2, kind: input, shape index: {}]   ;;  %s749_s3 = inlined_call_operand.vmem [shape: f32[1,32,128], index: 3, kind: output, shape index: {0}]   ;;  %s750_s4 = inlined_call_operand.vmem [shape: f32[1,32,1], index: 4, kind: output, shape index: {1}]   ;;  %s751_s5 = inlined_call_operand.vmem [shape: f32[1,32,1], index: 5, kind: output, shape index: {2}]  }
   0x1   :  { %v483_v0 = vld [vmem:[%s746_s1 + $0x38] sm:$0xff]  ;;  %v482_v2 = vld [vmem:[%s746_s1 + $0x30] sm:$0xff]  ;;  %v493_v4 = vld [vmem:[%s746_s1 + $0x88] sm:$0xff]  ;;  %504 = vset.pattern.permute.xlu0 %v506_v5  ;;  %505 = vset.pattern.permute.xlu1 %v506_v5 }
   0x2   :  { %v491_v1 = vld [vmem:[%s746_s1 + $0x78] sm:$0xff]  ;;  %244 = vmatpush.bf16.msra.mxu0 %v483_v0  ;;  %v490_v3 = vld [vmem:[%s746_s1 + $0x70] sm:$0xff]  ;;  %494 = vmatpush.bf16.msra.mxu3 %v483_v0  ;;  %v492_v6 = vld [vmem:[%s746_s1 + $0x80] sm:$0xff]  ;;  %v307_v46 = vand.u32 127, %v306_v43 }
   0x3   :  { %263 = vmatpush.bf16.msra.mxu1 %v491_v1  ;;  %288 = vmatpush.bf16.msra.mxu2 %v493_v4  ;;  %v382_v7 = vld [vmem:[%s747_s0 + $0x8] sm:$0xf]  ;;  %v472_v8 = vld [vmem:[%s747_s0 + $0x10] sm:$0xf0]  ;;  %v75_v12 = vld [vmem:[%s748_s2] sm:$0xff]  ;;  %v507_v1 = vmov 0.0  }
   0x4   :  { %v481_v9 = vld [vmem:[%s746_s1 + $0x28] sm:$0xff]  ;;  %v383_v11 = vor.u32 %v472_v8, %v382_v7  ;;  %81 = vperm.xlu0 %504, %v75_v12   ;;  %v480_v13 = vld [vmem:[%s746_s1 + $0x20] sm:$0xff]  ;;  %v479_v15 = vld [vmem:[%s746_s1 + $0x18] sm:$0xff]  ;;  %vm310_vm1 = vcmp.lt.s32.totalorder %v307_v46, 16  ;;  %23 = vst.msk [vmem:[%s750_s4] sm:$0xff] %vm22_vm2, %v507_v1 }
   0x5   :  { %v489_v10 = vld [vmem:[%s746_s1 + $0x68] sm:$0xff]  ;;  %v488_v14 = vld [vmem:[%s746_s1 + $0x60] sm:$0xff]  ;;  %v487_v16 = vld [vmem:[%s746_s1 + $0x58] sm:$0xff]  ;;  %24 = vst.msk [vmem:[%s750_s4 + $0x8] sm:$0xff] %vm22_vm2, %v507_v1 }
   0x6   :  { %245 = vmatpush.bf16.msra.mxu0 %v482_v2  ;;  %495 = vmatpush.bf16.msra.mxu3 %v482_v2  ;;  %v76_v17 = vld [vmem:[%s748_s2 + $0x8] sm:$0xff]  ;;  %v77_v18 = vld [vmem:[%s748_s2 + $0x10] sm:$0xff]  ;;  %v394_v21 = vld [vmem:[%s747_s0 + $0x20] sm:$0xf]  ;;  %25 = vst.msk [vmem:[%s750_s4 + $0x10] sm:$0xff] %vm22_vm2, %v507_v1 }
   0x7   :  { %264 = vmatpush.bf16.msra.mxu1 %v490_v3  ;;  %289 = vmatpush.bf16.msra.mxu2 %v492_v6  ;;  %v478_v19 = vld [vmem:[%s746_s1 + $0x10] sm:$0xff]  ;;  %v475_v22 = vld [vmem:[%s747_s0 + $0x28] sm:$0xf0]  ;;  %v476_v26 = vld [vmem:[%s746_s1] sm:$0xff]  ;;  %26 = vst.msk [vmem:[%s750_s4 + $0x18] sm:$0xff] %vm22_vm2, %v507_v1 }
   0x8   :  { %v486_v20 = vld [vmem:[%s746_s1 + $0x50] sm:$0xff]  ;;  %91 = vperm.xlu1 %505, %v77_v18   ;;  %v477_v23 = vld [vmem:[%s746_s1 + $0x8] sm:$0xff]  ;;  %v395_v25 = vor.u32 %v475_v22, %v394_v21  ;;  %v484_v27 = vld [vmem:[%s746_s1 + $0x40] sm:$0xff]  ;;  %27 = vst.msk [vmem:[%s751_s5] sm:$0xff] %vm22_vm2, %v507_v1 }
   0x9   :  { %v485_v24 = vld [vmem:[%s746_s1 + $0x48] sm:$0xff]  ;;  %v374_v28 = vld [vmem:[%s747_s0] sm:$0xf]  ;;  %v78_v29 = vld [vmem:[%s748_s2 + $0x18] sm:$0xff]  ;;  %28 = vst.msk [vmem:[%s751_s5 + $0x8] sm:$0xff] %vm22_vm2, %v507_v1 }
   0xa   :  { %246 = vmatpush.bf16.msra.mxu0 %v481_v9  ;;  %468 = vmatmul.msk.bf16.vlgmr.msra.gmra.mxu2 %vm237_vm0, %v383_v11  ;;  %v471_v30 = vld [vmem:[%s747_s0 + $0x8] sm:$0xf0]  ;;  %v470_v31 = vld [vmem:[%s747_s0 + $0x4] sm:$0xf]  ;;  %v376_v32 = vld [vmem:[%s747_s0 + $0xc] sm:$0xf0] }
   0xb   :  { %265 = vmatpush.bf16.msra.mxu1 %v489_v10  ;;  %496 = vmatpush.bf16.msra.mxu3 %v481_v9  ;;  %v386_v33 = vld [vmem:[%s747_s0 + $0x18] sm:$0xf]  ;;  %v474_v34 = vld [vmem:[%s747_s0 + $0x20] sm:$0xf0]  ;;  %v375_v35 = vor.u32 %v471_v30, %v374_v28  ;;  %v379_v36 = vor.u32 %v470_v31, %v376_v32  ;;  %v473_v38 = vld [vmem:[%s747_s0 + $0x1c] sm:$0xf] }
   0xc   :  { %86 = vperm.xlu0 %504, %v76_v17   ;;  %v387_v37 = vor.u32 %v474_v34, %v386_v33  ;;  %v388_v39 = vld [vmem:[%s747_s0 + $0x24] sm:$0xf0]  ;;  %29 = vst.msk [vmem:[%s751_s5 + $0x10] sm:$0xff] %vm22_vm2, %v507_v1 }
   0xd   :  { %v391_v40 = vor.u32 %v473_v38, %v388_v39  ;;  %30 = vst.msk [vmem:[%s751_s5 + $0x18] sm:$0xff] %vm22_vm2, %v507_v1  ;;  %v317_v22 = vld [vmem:[%s750_s4 + $0x10] sm:$0xff] }
   0xe   :  { %247 = vmatpush.bf16.msra.mxu0 %v480_v13  ;;  %v318_v28 = vld [vmem:[%s750_s4 + $0x18] sm:$0xff] }
   0xf   :  { %266 = vmatpush.bf16.msra.mxu1 %v488_v14  ;;  %497 = vmatpush.bf16.msra.mxu3 %v480_v13 }
  0x10   :  { %96 = vperm.xlu1 %505, %v78_v29   ;;  %v337_v29 = vld [vmem:[%s751_s5 + $0x8] sm:$0xff] }
  0x12   :  { %248 = vmatpush.bf16.msra.mxu0 %v479_v15 }
  0x13   :  { %267 = vmatpush.bf16.msra.mxu1 %v487_v16  ;;  %498 = vmatpush.bf16.msra.mxu3 %v479_v15  ;;  %v315_v16 = vld [vmem:[%s750_s4] sm:$0xff]  ;;  %v338_v34 = vld [vmem:[%s751_s5 + $0x10] sm:$0xff] }
  0x16   :  { %249 = vmatpush.bf16.msra.mxu0 %v478_v19 }
  0x17   :  { %268 = vmatpush.bf16.msra.mxu1 %v486_v20  ;;  %499 = vmatpush.bf16.msra.mxu3 %v478_v19  ;;  %v316_v19 = vld [vmem:[%s750_s4 + $0x8] sm:$0xff] }
  0x1a   :  { %250 = vmatpush.bf16.msra.mxu0 %v477_v23  ;;  %469 = vmatmul.msk.bf16.gmra.mxu2 %vm237_vm0, %v395_v25 }
  0x1b   :  { %269 = vmatpush.bf16.msra.mxu1 %v485_v24  ;;  %500 = vmatpush.bf16.msra.mxu3 %v477_v23  ;;  %v336_v23 = vld [vmem:[%s751_s5] sm:$0xff] }
  0x1e   :  { %251 = vmatpush.bf16.msra.mxu0 %v476_v26 }
  0x1f   :  { %270 = vmatpush.bf16.msra.mxu1 %v484_v27  ;;  %501 = vmatpush.bf16.msra.mxu3 %v476_v26 }
  0x21   :  { %252 = vmatmul.bf16.vlgmr.msra.gmra.mxu0 %v375_v35 }
  0x22   :  { %271 = vmatmul.bf16.vlgmr.msra.gmra.mxu1 %v379_v36  ;;  %257 = vmatmul.bf16.vlgmr.msra.gmra.mxu3 %v387_v37  ;;  %v339_v37 = vld [vmem:[%s751_s5 + $0x18] sm:$0xff] }
  0x32   :  { %276 = vmatmul.bf16.gmra.mxu1 %v391_v40 }
  0x76   :  { %v82_v41 = vpop.permute.xlu0 %81 }
  0x7a   :  { %v92_v53 = vpop.permute.xlu1 %91 }
  0x7e   :  { %v87_v50 = vpop.permute.xlu0 %86 }
  0x82   :  { %v97_v2 = vpop.permute.xlu1 %96 }
  0x8d   :  { %v291_v42 = vpop.f32.mrf.mxu2 }
  0x95   :  { %v293_v51 = vpop.f32.mrf.mxu2 }
  0x9d   :  { %v296_v61 = vpop.f32.mrf.mxu2 }
  0x9e   :  { %v253_v44 = vpop.f32.mrf.mxu0 }
  0x9f   :  { %v272_v45 = vpop.f32.mrf.mxu1  ;;  %v254_v47 = vadd.f32 %v253_v44, %v82_v41 }
  0xa1   :  { %v273_v48 = vadd.f32 %v272_v45, %v254_v47 }
  0xa3   :  { %v292_v49 = vadd.f32 %v291_v42, %v273_v48 }
  0xa5   :  { %v311_v52 = vsel %vm310_vm1, %v292_v49, 0.0  ;;  %301 = vst [vmem:[%s749_s3] sm:$0xff] %v292_v49  ;;  %v258_v54 = vpop.f32.mrf.mxu3  ;;  %v298_v9 = vpop.f32.mrf.mxu2 }
  0xa6   :  { %v255_v55 = vpop.f32.mrf.mxu0  ;;  %319 = vadd.xlane.f32.xlu2 %v311_v52  ;;  %v259_v60 = vadd.f32 %v258_v54, %v92_v53  ;;  %v340_v7 = vmul.f32 %v311_v52, %v311_v52 }
  0xa7   :  { %v274_v56 = vpop.f32.mrf.mxu1  ;;  %v256_v57 = vadd.f32 %v255_v55, %v87_v50 }
  0xa9   :  { %v275_v58 = vadd.f32 %v274_v56, %v256_v57 }
  0xab   :  { %v294_v59 = vadd.f32 %v293_v51, %v275_v58 }
  0xad   :  { %302 = vst [vmem:[%s749_s3 + $0x8] sm:$0xff] %v294_v59  ;;  %v312_v62 = vsel %vm310_vm1, %v294_v59, 0.0  ;;  %v260_v3 = vpop.f32.mrf.mxu3 }
  0xae   :  { %321 = vadd.xlane.f32.xlu2 %v312_v62  ;;  %v261_v5 = vadd.f32 %v260_v3, %v97_v2  ;;  %v341_v13 = vmul.f32 %v312_v62, %v312_v62 }
  0xaf   :  { %v277_v63 = vpop.f32.mrf.mxu1 }
  0xb0   :  { %v278_v0 = vadd.f32 %v277_v63, %v259_v60 }
  0xb2   :  { %v297_v4 = vadd.f32 %v296_v61, %v278_v0 }
  0xb4   :  { %303 = vst [vmem:[%s749_s3 + $0x10] sm:$0xff] %v297_v4  ;;  %v313_v6 = vsel %vm310_vm1, %v297_v4, 0.0 }
  0xb5   :  { %323 = vadd.xlane.f32.xlu0 %v313_v6  ;;  %v342_v14 = vmul.f32 %v313_v6, %v313_v6 }
  0xb6   :  { %344 = vadd.xlane.f32.xlu2 %v340_v7 }
  0xb7   :  { %v279_v8 = vpop.f32.mrf.mxu1 }
  0xb8   :  { %v280_v10 = vadd.f32 %v279_v8, %v261_v5 }
  0xba   :  { %v299_v11 = vadd.f32 %v298_v9, %v280_v10 }
  0xbc   :  { %304 = vst [vmem:[%s749_s3 + $0x18] sm:$0xff] %v299_v11  ;;  %v314_v12 = vsel %vm310_vm1, %v299_v11, 0.0 }
  0xbd   :  { %325 = vadd.xlane.f32.xlu1 %v314_v12  ;;  %v343_v15 = vmul.f32 %v314_v12, %v314_v12 }
  0xbe   :  { %346 = vadd.xlane.f32.xlu2 %v341_v13 }
  0xc6   :  { %348 = vadd.xlane.f32.xlu2 %v342_v14 }
  0xce   :  { %350 = vadd.xlane.f32.xlu2 %v343_v15 }
 0x119   :  { %v320_v17 = vpop.xlane.xlu2 %319 }
 0x11a   :  { %v327_v18 = vadd.f32 %v320_v17, %v315_v16 }
 0x11c   :  { %332 = vst.msk [vmem:[%s750_s4] sm:$0xff] %vm22_vm2, %v327_v18 }
 0x121   :  { %v322_v20 = vpop.xlane.xlu2 %321 }
 0x122   :  { %v328_v21 = vadd.f32 %v322_v20, %v316_v19 }
 0x124   :  { %333 = vst.msk [vmem:[%s750_s4 + $0x8] sm:$0xff] %vm22_vm2, %v328_v21 }
 0x128   :  { %v324_v24 = vpop.xlane.xlu0 %323 }
 0x129   :  { %v329_v25 = vadd.f32 %v324_v24, %v317_v22  ;;  %v345_v26 = vpop.xlane.xlu2 %344 }
 0x12a   :  { %v352_v27 = vadd.f32 %v345_v26, %v336_v23 }
 0x12b   :  { %334 = vst.msk [vmem:[%s750_s4 + $0x10] sm:$0xff] %vm22_vm2, %v329_v25 }
 0x12c   :  { %356 = vst.msk [vmem:[%s751_s5] sm:$0xff] %vm22_vm2, %v352_v27 }
 0x130   :  { %v326_v30 = vpop.xlane.xlu1 %325 }
 0x131   :  { %v330_v31 = vadd.f32 %v326_v30, %v318_v28  ;;  %v347_v32 = vpop.xlane.xlu2 %346 }
 0x132   :  { %v353_v33 = vadd.f32 %v347_v32, %v337_v29 }
 0x133   :  { %335 = vst.msk [vmem:[%s750_s4 + $0x18] sm:$0xff] %vm22_vm2, %v330_v31 }
 0x134   :  { %357 = vst.msk [vmem:[%s751_s5 + $0x8] sm:$0xff] %vm22_vm2, %v353_v33 }
 0x139   :  { %v349_v35 = vpop.xlane.xlu2 %348 }
 0x13a   :  { %v354_v36 = vadd.f32 %v349_v35, %v338_v34 }
 0x13c   :  { %358 = vst.msk [vmem:[%s751_s5 + $0x10] sm:$0xff] %vm22_vm2, %v354_v36 }
 0x141   :  { %v351_v38 = vpop.xlane.xlu2 %350 }
 0x142   :  { %v355_v39 = vadd.f32 %v351_v38, %v339_v37 }
 0x144   :  { %359 = vst.msk [vmem:[%s751_s5 + $0x18] sm:$0xff] %vm22_vm2, %v355_v39 }

// kernel: _lambda_.127
= control target key start
LH: loop header
LB: loop body
LE: loop exit
PB: predicated region body
PF: predicated region fallthrough
CT: control target
= control target key end

     0   :  { %v341_v1 = vmov 0   ;;  %vm131_vm0 = vcmask 261120   ;;  %v182_v16 = vlaneseq  ;;  %vm22_vm2 = vcmask 7168   ;;  %s634_s1 = inlined_call_operand.vmem [shape: bf16[1,32,128], index: 1, kind: input, shape index: {}]   ;;  %s635_s2 = inlined_call_operand.vmem [shape: f32[64,1], index: 2, kind: input, shape index: {}]   ;;  %s636_s0 = inlined_call_operand.vmem [shape: bf16[64,32], index: 0, kind: input, shape index: {}]   ;;  %s637_s3 = inlined_call_operand.vmem [shape: f32[1,64,128], index: 3, kind: output, shape index: {0}]   ;;  %s638_s4 = inlined_call_operand.vmem [shape: f32[1,64,1], index: 4, kind: output, shape index: {1}]   ;;  %s639_s5 = inlined_call_operand.vmem [shape: f32[1,64,1], index: 5, kind: output, shape index: {2}]  }
   0x1   :  { %v329_v0 = vld [vmem:[%s634_s1 + $0x8] sm:$0xff]  ;;  %338 = vset.pattern.permute.xlu0 %v341_v1  ;;  %v51_v2 = vld [vmem:[%s635_s2] sm:$0xff]  ;;  %339 = vset.pattern.permute.xlu1 %v341_v1  ;;  %v53_v4 = vld [vmem:[%s635_s2 + $0x10] sm:$0xff]  ;;  %v342_v44 = vmov 0.0  }
   0x2   :  { %61 = vperm.xlu0 %338, %v51_v2   ;;  %340 = vset.pattern.permute.xlu2 %v341_v1  ;;  %v328_v3 = vld [vmem:[%s634_s1] sm:$0xff]  ;;  %v325_v7 = vld [vmem:[%s636_s0 + $0x8] sm:$0xff]  ;;  %v327_v8 = vld [vmem:[%s636_s0 + $0x18] sm:$0xff]  ;;  %v415_v19 = vand.u32 127, %v182_v16  ;;  %25 = vst.msk [vmem:[%s638_s4 + $0x10] sm:$0xff] %vm22_vm2, %v342_v44 }
   0x3   :  { %150 = vmatpush.bf16.msra.mxu0 %v329_v0  ;;  %330 = vmatpush.bf16.msra.mxu1 %v329_v0  ;;  %v55_v5 = vld [vmem:[%s635_s2 + $0x20] sm:$0xff]  ;;  %v326_v9 = vld [vmem:[%s636_s0 + $0x10] sm:$0xff]  ;;  %v52_v10 = vld [vmem:[%s635_s2 + $0x8] sm:$0xff]  ;;  %23 = vst.msk [vmem:[%s638_s4] sm:$0xff] %vm22_vm2, %v342_v44 }
   0x4   :  { %332 = vmatpush.bf16.msra.mxu3 %v329_v0  ;;  %331 = vmatpush.bf16.msra.mxu2 %v329_v0  ;;  %v324_v6 = vld [vmem:[%s636_s0] sm:$0xff]  ;;  %v54_v11 = vld [vmem:[%s635_s2 + $0x18] sm:$0xff]  ;;  %v56_v12 = vld [vmem:[%s635_s2 + $0x28] sm:$0xff]  ;;  %vm186_vm1 = vcmp.lt.s32.totalorder %v415_v19, 16  ;;  %24 = vst.msk [vmem:[%s638_s4 + $0x8] sm:$0xff] %vm22_vm2, %v342_v44 }
   0x5   :  { %71 = vperm.xlu1 %339, %v53_v4   ;;  %81 = vperm.xlu2 %340, %v55_v5   ;;  %v57_v13 = vld [vmem:[%s635_s2 + $0x30] sm:$0xff]  ;;  %v58_v14 = vld [vmem:[%s635_s2 + $0x38] sm:$0xff]  ;;  %26 = vst.msk [vmem:[%s638_s4 + $0x18] sm:$0xff] %vm22_vm2, %v342_v44 }
   0x6   :  { %27 = vst.msk [vmem:[%s638_s4 + $0x20] sm:$0xff] %vm22_vm2, %v342_v44 }
   0x7   :  { %151 = vmatpush.bf16.msra.mxu0 %v328_v3  ;;  %333 = vmatpush.bf16.msra.mxu1 %v328_v3  ;;  %28 = vst.msk [vmem:[%s638_s4 + $0x28] sm:$0xff] %vm22_vm2, %v342_v44 }
   0x8   :  { %335 = vmatpush.bf16.msra.mxu3 %v328_v3  ;;  %334 = vmatpush.bf16.msra.mxu2 %v328_v3  ;;  %29 = vst.msk [vmem:[%s638_s4 + $0x30] sm:$0xff] %vm22_vm2, %v342_v44 }
   0x9   :  { %30 = vst.msk [vmem:[%s638_s4 + $0x38] sm:$0xff] %vm22_vm2, %v342_v44  ;;  %v197_v58 = vld [vmem:[%s638_s4 + $0x10] sm:$0xff] }
   0xa   :  { %320 = vmatmul.msk.bf16.vlgmr.msra.gmra.mxu0 %vm131_vm0, %v324_v6  ;;  %321 = vmatmul.msk.bf16.vlgmr.msra.gmra.mxu1 %vm131_vm0, %v325_v7  ;;  %31 = vst.msk [vmem:[%s639_s5] sm:$0xff] %vm22_vm2, %v342_v44  ;;  %v195_v59 = vld [vmem:[%s638_s4] sm:$0xff] }
   0xb   :  { %323 = vmatmul.msk.bf16.vlgmr.msra.gmra.mxu3 %vm131_vm0, %v327_v8  ;;  %322 = vmatmul.msk.bf16.vlgmr.msra.gmra.mxu2 %vm131_vm0, %v326_v9  ;;  %32 = vst.msk [vmem:[%s639_s5 + $0x8] sm:$0xff] %vm22_vm2, %v342_v44  ;;  %v196_v7 = vld [vmem:[%s638_s4 + $0x8] sm:$0xff] }
   0xc   :  { %66 = vperm.xlu0 %338, %v52_v10   ;;  %33 = vst.msk [vmem:[%s639_s5 + $0x10] sm:$0xff] %vm22_vm2, %v342_v44 }
   0xd   :  { %76 = vperm.xlu1 %339, %v54_v11   ;;  %86 = vperm.xlu2 %340, %v56_v12   ;;  %34 = vst.msk [vmem:[%s639_s5 + $0x18] sm:$0xff] %vm22_vm2, %v342_v44 }
   0xe   :  { %35 = vst.msk [vmem:[%s639_s5 + $0x20] sm:$0xff] %vm22_vm2, %v342_v44 }
   0xf   :  { %36 = vst.msk [vmem:[%s639_s5 + $0x28] sm:$0xff] %vm22_vm2, %v342_v44  ;;  %v201_v3 = vld [vmem:[%s638_s4 + $0x30] sm:$0xff] }
  0x10   :  { %37 = vst.msk [vmem:[%s639_s5 + $0x30] sm:$0xff] %vm22_vm2, %v342_v44 }
  0x11   :  { %38 = vst.msk [vmem:[%s639_s5 + $0x38] sm:$0xff] %vm22_vm2, %v342_v44  ;;  %v236_v62 = vld [vmem:[%s639_s5] sm:$0xff] }
  0x13   :  { %v238_v4 = vld [vmem:[%s639_s5 + $0x10] sm:$0xff] }
  0x14   :  { %91 = vperm.xlu0 %338, %v57_v13   ;;  %v199_v13 = vld [vmem:[%s638_s4 + $0x20] sm:$0xff]  ;;  %v239_v16 = vld [vmem:[%s639_s5 + $0x18] sm:$0xff] }
  0x15   :  { %96 = vperm.xlu1 %339, %v58_v14   ;;  %v240_v12 = vld [vmem:[%s639_s5 + $0x20] sm:$0xff] }
  0x5f   :  { %v82_v26 = vpop.permute.xlu2 %81 }
  0x67   :  { %v87_v41 = vpop.permute.xlu2 %86 }
  0x74   :  { %v62_v15 = vpop.permute.xlu0 %61 }
  0x77   :  { %v72_v17 = vpop.permute.xlu1 %71 }
  0x7e   :  { %v67_v18 = vpop.permute.xlu0 %66 }
  0x7f   :  { %v77_v27 = vpop.permute.xlu1 %76 }
  0x86   :  { %v92_v29 = vpop.permute.xlu0 %91 }
  0x87   :  { %v153_v20 = vpop.f32.mrf.mxu0  ;;  %v158_v21 = vpop.f32.mrf.mxu1 }
  0x88   :  { %v154_v22 = vadd.f32 %v153_v20, %v62_v15  ;;  %v159_v23 = vadd.f32 %v158_v21, %v72_v17  ;;  %v97_v43 = vpop.permute.xlu1 %96  ;;  %v237_v21 = vld [vmem:[%s639_s5 + $0x8] sm:$0xff] }
  0x8a   :  { %173 = vst [vmem:[%s637_s3] sm:$0xff] %v154_v22  ;;  %v189_v24 = vsel %vm186_vm1, %v159_v23, 0.0  ;;  %v187_v25 = vsel %vm186_vm1, %v154_v22, 0.0  ;;  %v198_v22 = vld [vmem:[%s638_s4 + $0x18] sm:$0xff] }
  0x8b   :  { %175 = vst [vmem:[%s637_s3 + $0x10] sm:$0xff] %v159_v23  ;;  %207 = vadd.xlane.f32.xlu1 %v189_v24  ;;  %203 = vadd.xlane.f32.xlu2 %v187_v25  ;;  %v244_v28 = vmul.f32 %v187_v25, %v187_v25  ;;  %v246_v35 = vmul.f32 %v189_v24, %v189_v24  ;;  %v200_v25 = vld [vmem:[%s638_s4 + $0x28] sm:$0xff] }
  0x8d   :  { %252 = vadd.xlane.f32.xlu0 %v244_v28 }
  0x8e   :  { %v168_v30 = vpop.f32.mrf.mxu3  ;;  %v163_v31 = vpop.f32.mrf.mxu2 }
  0x8f   :  { %v169_v32 = vadd.f32 %v168_v30, %v92_v29  ;;  %v155_v33 = vpop.f32.mrf.mxu0  ;;  %v160_v34 = vpop.f32.mrf.mxu1  ;;  %v164_v38 = vadd.f32 %v163_v31, %v82_v26  ;;  %v243_v30 = vld [vmem:[%s639_s5 + $0x38] sm:$0xff] }
  0x90   :  { %v156_v36 = vadd.f32 %v155_v33, %v67_v18  ;;  %v161_v37 = vadd.f32 %v160_v34, %v77_v27  ;;  %v202_v31 = vld [vmem:[%s638_s4 + $0x38] sm:$0xff]  ;;  %v242_v34 = vld [vmem:[%s639_s5 + $0x30] sm:$0xff] }
  0x91   :  { %179 = vst [vmem:[%s637_s3 + $0x30] sm:$0xff] %v169_v32  ;;  %v193_v39 = vsel %vm186_vm1, %v169_v32, 0.0  ;;  %v191_v42 = vsel %vm186_vm1, %v164_v38, 0.0 }
  0x92   :  { %174 = vst [vmem:[%s637_s3 + $0x8] sm:$0xff] %v156_v36  ;;  %v188_v40 = vsel %vm186_vm1, %v156_v36, 0.0  ;;  %v248_v49 = vmul.f32 %v191_v42, %v191_v42  ;;  %v190_v50 = vsel %vm186_vm1, %v161_v37, 0.0  ;;  %v250_v56 = vmul.f32 %v193_v39, %v193_v39 }
  0x93   :  { %176 = vst [vmem:[%s637_s3 + $0x18] sm:$0xff] %v161_v37  ;;  %215 = vadd.xlane.f32.xlu1 %v193_v39  ;;  %256 = vadd.xlane.f32.xlu2 %v246_v35  ;;  %v247_v51 = vmul.f32 %v190_v50, %v190_v50  ;;  %v245_v52 = vmul.f32 %v188_v40, %v188_v40  ;;  %v241_v39 = vld [vmem:[%s639_s5 + $0x28] sm:$0xff] }
  0x94   :  { %177 = vst [vmem:[%s637_s3 + $0x20] sm:$0xff] %v164_v38 }
  0x95   :  { %205 = vadd.xlane.f32.xlu0 %v188_v40 }
  0x96   :  { %v170_v45 = vpop.f32.mrf.mxu3  ;;  %v165_v46 = vpop.f32.mrf.mxu2 }
  0x97   :  { %v171_v47 = vadd.f32 %v170_v45, %v97_v43  ;;  %v166_v48 = vadd.f32 %v165_v46, %v87_v41 }
  0x99   :  { %180 = vst [vmem:[%s637_s3 + $0x38] sm:$0xff] %v171_v47  ;;  %v192_v53 = vsel %vm186_vm1, %v166_v48, 0.0  ;;  %v194_v54 = vsel %vm186_vm1, %v171_v47, 0.0 }
  0x9a   :  { %178 = vst [vmem:[%s637_s3 + $0x28] sm:$0xff] %v166_v48  ;;  %v251_v55 = vmul.f32 %v194_v54, %v194_v54  ;;  %v249_v57 = vmul.f32 %v192_v53, %v192_v53 }
  0x9b   :  { %260 = vadd.xlane.f32.xlu1 %v248_v49  ;;  %211 = vadd.xlane.f32.xlu2 %v191_v42 }
  0x9d   :  { %258 = vadd.xlane.f32.xlu0 %v247_v51 }
  0xa3   :  { %254 = vadd.xlane.f32.xlu1 %v245_v52  ;;  %209 = vadd.xlane.f32.xlu2 %v190_v50 }
  0xa5   :  { %213 = vadd.xlane.f32.xlu0 %v192_v53 }
  0xab   :  { %266 = vadd.xlane.f32.xlu1 %v251_v55  ;;  %217 = vadd.xlane.f32.xlu2 %v194_v54 }
  0xad   :  { %264 = vadd.xlane.f32.xlu0 %v250_v56 }
  0xb3   :  { %262 = vadd.xlane.f32.xlu2 %v249_v57 }
  0xfe   :  { %v208_v60 = vpop.xlane.xlu1 %207  ;;  %v204_v61 = vpop.xlane.xlu2 %203 }
  0xff   :  { %v221_v63 = vadd.f32 %v208_v60, %v197_v58  ;;  %v219_v0 = vadd.f32 %v204_v61, %v195_v59 }
 0x100   :  { %v253_v1 = vpop.xlane.xlu0 %252 }
 0x101   :  { %230 = vst.msk [vmem:[%s638_s4 + $0x10] sm:$0xff] %vm22_vm2, %v221_v63  ;;  %v268_v2 = vadd.f32 %v253_v1, %v236_v62 }
 0x102   :  { %228 = vst.msk [vmem:[%s638_s4] sm:$0xff] %vm22_vm2, %v219_v0 }
 0x103   :  { %276 = vst.msk [vmem:[%s639_s5] sm:$0xff] %vm22_vm2, %v268_v2 }
 0x106   :  { %v216_v5 = vpop.xlane.xlu1 %215  ;;  %v257_v6 = vpop.xlane.xlu2 %256 }
 0x107   :  { %v225_v8 = vadd.f32 %v216_v5, %v201_v3  ;;  %v270_v9 = vadd.f32 %v257_v6, %v238_v4 }
 0x108   :  { %v206_v10 = vpop.xlane.xlu0 %205 }
 0x109   :  { %234 = vst.msk [vmem:[%s638_s4 + $0x30] sm:$0xff] %vm22_vm2, %v225_v8  ;;  %v220_v11 = vadd.f32 %v206_v10, %v196_v7 }
 0x10a   :  { %278 = vst.msk [vmem:[%s639_s5 + $0x10] sm:$0xff] %vm22_vm2, %v270_v9 }
 0x10b   :  { %229 = vst.msk [vmem:[%s638_s4 + $0x8] sm:$0xff] %vm22_vm2, %v220_v11 }
 0x10e   :  { %v261_v14 = vpop.xlane.xlu1 %260  ;;  %v212_v15 = vpop.xlane.xlu2 %211 }
 0x10f   :  { %v272_v17 = vadd.f32 %v261_v14, %v240_v12  ;;  %v223_v18 = vadd.f32 %v212_v15, %v199_v13 }
 0x110   :  { %v259_v19 = vpop.xlane.xlu0 %258 }
 0x111   :  { %280 = vst.msk [vmem:[%s639_s5 + $0x20] sm:$0xff] %vm22_vm2, %v272_v17  ;;  %v271_v20 = vadd.f32 %v259_v19, %v239_v16 }
 0x112   :  { %232 = vst.msk [vmem:[%s638_s4 + $0x20] sm:$0xff] %vm22_vm2, %v223_v18 }
 0x113   :  { %279 = vst.msk [vmem:[%s639_s5 + $0x18] sm:$0xff] %vm22_vm2, %v271_v20 }
 0x116   :  { %v255_v23 = vpop.xlane.xlu1 %254  ;;  %v210_v24 = vpop.xlane.xlu2 %209 }
 0x117   :  { %v269_v26 = vadd.f32 %v255_v23, %v237_v21  ;;  %v222_v27 = vadd.f32 %v210_v24, %v198_v22 }
 0x118   :  { %v214_v28 = vpop.xlane.xlu0 %213 }
 0x119   :  { %277 = vst.msk [vmem:[%s639_s5 + $0x8] sm:$0xff] %vm22_vm2, %v269_v26  ;;  %v224_v29 = vadd.f32 %v214_v28, %v200_v25 }
 0x11a   :  { %231 = vst.msk [vmem:[%s638_s4 + $0x18] sm:$0xff] %vm22_vm2, %v222_v27 }
 0x11b   :  { %233 = vst.msk [vmem:[%s638_s4 + $0x28] sm:$0xff] %vm22_vm2, %v224_v29 }
 0x11e   :  { %v267_v32 = vpop.xlane.xlu1 %266  ;;  %v218_v33 = vpop.xlane.xlu2 %217 }
 0x11f   :  { %v275_v35 = vadd.f32 %v267_v32, %v243_v30  ;;  %v226_v36 = vadd.f32 %v218_v33, %v202_v31 }
 0x120   :  { %v265_v37 = vpop.xlane.xlu0 %264 }
 0x121   :  { %283 = vst.msk [vmem:[%s639_s5 + $0x38] sm:$0xff] %vm22_vm2, %v275_v35  ;;  %v274_v38 = vadd.f32 %v265_v37, %v242_v34 }
 0x122   :  { %235 = vst.msk [vmem:[%s638_s4 + $0x38] sm:$0xff] %vm22_vm2, %v226_v36 }
 0x123   :  { %282 = vst.msk [vmem:[%s639_s5 + $0x30] sm:$0xff] %vm22_vm2, %v274_v38 }
 0x126   :  { %v263_v40 = vpop.xlane.xlu2 %262 }
 0x127   :  { %v273_v41 = vadd.f32 %v263_v40, %v241_v39 }
 0x129   :  { %281 = vst.msk [vmem:[%s639_s5 + $0x28] sm:$0xff] %vm22_vm2, %v273_v41 }

// kernel: _lambda_.133
= control target key start
LH: loop header
LB: loop body
LE: loop exit
PB: predicated region body
PF: predicated region fallthrough
CT: control target
= control target key end

     0   :  { %v196_v1 = vmov 0   ;;  %vm77_vm0 = vcmask 130048   ;;  %v108_v8 = vlaneseq  ;;  %vm22_vm2 = vcmask 7168   ;;  %s353_s1 = inlined_call_operand.vmem [shape: bf16[1,16,128], index: 1, kind: input, shape index: {}]   ;;  %s354_s0 = inlined_call_operand.vmem [shape: bf16[32,16], index: 0, kind: input, shape index: {}]   ;;  %s355_s2 = inlined_call_operand.vmem [shape: f32[32,1], index: 2, kind: input, shape index: {}]   ;;  %s356_s3 = inlined_call_operand.vmem [shape: f32[1,32,128], index: 3, kind: output, shape index: {0}]   ;;  %s357_s4 = inlined_call_operand.vmem [shape: f32[1,32,1], index: 4, kind: output, shape index: {1}]   ;;  %s358_s5 = inlined_call_operand.vmem [shape: f32[1,32,1], index: 5, kind: output, shape index: {2}]  }
   0x1   :  { %v190_v0 = vld [vmem:[%s353_s1] sm:$0xff]  ;;  %194 = vset.pattern.permute.xlu0 %v196_v1  ;;  %195 = vset.pattern.permute.xlu1 %v196_v1  ;;  %v189_v4 = vld [vmem:[%s354_s0 + $0x8] sm:$0xff]  ;;  %v39_v5 = vld [vmem:[%s355_s2 + $0x10] sm:$0xff]  ;;  %v197_v26 = vmov 0.0  }
   0x2   :  { %v37_v2 = vld [vmem:[%s355_s2] sm:$0xff]  ;;  %91 = vmatpush.bf16.msra.mxu0 %v190_v0  ;;  %191 = vmatpush.bf16.msra.mxu1 %v190_v0  ;;  %v38_v6 = vld [vmem:[%s355_s2 + $0x8] sm:$0xff]  ;;  %v40_v7 = vld [vmem:[%s355_s2 + $0x18] sm:$0xff]  ;;  %v109_v9 = vand.u32 127, %v108_v8  ;;  %23 = vst.msk [vmem:[%s357_s4] sm:$0xff] %vm22_vm2, %v197_v26 }
   0x3   :  { %v188_v3 = vld [vmem:[%s354_s0] sm:$0xff]  ;;  %43 = vperm.xlu0 %194, %v37_v2   ;;  %53 = vperm.xlu1 %195, %v39_v5   ;;  %24 = vst.msk [vmem:[%s357_s4 + $0x8] sm:$0xff] %vm22_vm2, %v197_v26 }
   0x4   :  { %vm112_vm1 = vcmp.lt.s32.totalorder %v109_v9, 64  ;;  %25 = vst.msk [vmem:[%s357_s4 + $0x10] sm:$0xff] %vm22_vm2, %v197_v26 }
   0x5   :  { %186 = vmatmul.msk.bf16.vlgmr.msra.gmra.mxu0 %vm77_vm0, %v188_v3  ;;  %187 = vmatmul.msk.bf16.vlgmr.msra.gmra.mxu1 %vm77_vm0, %v189_v4  ;;  %26 = vst.msk [vmem:[%s357_s4 + $0x18] sm:$0xff] %vm22_vm2, %v197_v26 }
   0x6   :  { %27 = vst.msk [vmem:[%s358_s5] sm:$0xff] %vm22_vm2, %v197_v26 }
   0x7   :  { %28 = vst.msk [vmem:[%s358_s5 + $0x8] sm:$0xff] %vm22_vm2, %v197_v26 }
   0x8   :  { %29 = vst.msk [vmem:[%s358_s5 + $0x10] sm:$0xff] %vm22_vm2, %v197_v26 }
   0x9   :  { %30 = vst.msk [vmem:[%s358_s5 + $0x18] sm:$0xff] %vm22_vm2, %v197_v26  ;;  %v117_v31 = vld [vmem:[%s357_s4] sm:$0xff] }
   0xa   :  { %v118_v37 = vld [vmem:[%s357_s4 + $0x8] sm:$0xff] }
   0xb   :  { %48 = vperm.xlu0 %194, %v38_v6   ;;  %58 = vperm.xlu1 %195, %v40_v7   ;;  %v119_v32 = vld [vmem:[%s357_s4 + $0x10] sm:$0xff] }
   0xc   :  { %v120_v38 = vld [vmem:[%s357_s4 + $0x18] sm:$0xff] }
   0xd   :  { %v138_v43 = vld [vmem:[%s358_s5] sm:$0xff] }
   0xe   :  { %v139_v49 = vld [vmem:[%s358_s5 + $0x8] sm:$0xff] }
   0xf   :  { %v140_v46 = vld [vmem:[%s358_s5 + $0x10] sm:$0xff] }
  0x10   :  { %v141_v52 = vld [vmem:[%s358_s5 + $0x18] sm:$0xff] }
  0x75   :  { %v54_v10 = vpop.permute.xlu1 %53  ;;  %v44_v11 = vpop.permute.xlu0 %43 }
  0x7d   :  { %v59_v18 = vpop.permute.xlu1 %58  ;;  %v49_v19 = vpop.permute.xlu0 %48 }
  0x82   :  { %v93_v12 = vpop.f32.mrf.mxu0  ;;  %v98_v13 = vpop.f32.mrf.mxu1 }
  0x83   :  { %v94_v14 = vadd.f32 %v93_v12, %v44_v11  ;;  %v99_v15 = vadd.f32 %v98_v13, %v54_v10 }
  0x85   :  { %103 = vst [vmem:[%s356_s3] sm:$0xff] %v94_v14  ;;  %v113_v16 = vsel %vm112_vm1, %v94_v14, 0.0  ;;  %v115_v17 = vsel %vm112_vm1, %v99_v15, 0.0 }
  0x86   :  { %121 = vadd.xlane.f32.xlu2 %v113_v16  ;;  %105 = vst [vmem:[%s356_s3 + $0x10] sm:$0xff] %v99_v15  ;;  %125 = vadd.xlane.f32.xlu0 %v115_v17  ;;  %v142_v27 = vmul.f32 %v113_v16, %v113_v16  ;;  %v144_v28 = vmul.f32 %v115_v17, %v115_v17 }
  0x8a   :  { %v95_v20 = vpop.f32.mrf.mxu0  ;;  %v100_v21 = vpop.f32.mrf.mxu1 }
  0x8b   :  { %v96_v22 = vadd.f32 %v95_v20, %v49_v19  ;;  %v101_v23 = vadd.f32 %v100_v21, %v59_v18 }
  0x8d   :  { %104 = vst [vmem:[%s356_s3 + $0x8] sm:$0xff] %v96_v22  ;;  %v114_v24 = vsel %vm112_vm1, %v96_v22, 0.0  ;;  %v116_v25 = vsel %vm112_vm1, %v101_v23, 0.0 }
  0x8e   :  { %123 = vadd.xlane.f32.xlu2 %v114_v24  ;;  %106 = vst [vmem:[%s356_s3 + $0x18] sm:$0xff] %v101_v23  ;;  %127 = vadd.xlane.f32.xlu1 %v116_v25  ;;  %v143_v29 = vmul.f32 %v114_v24, %v114_v24  ;;  %v145_v30 = vmul.f32 %v116_v25, %v116_v25 }
  0x96   :  { %146 = vadd.xlane.f32.xlu2 %v142_v27 }
  0x9e   :  { %150 = vadd.xlane.f32.xlu2 %v144_v28 }
  0xa6   :  { %148 = vadd.xlane.f32.xlu2 %v143_v29 }
  0xae   :  { %152 = vadd.xlane.f32.xlu2 %v145_v30 }
  0xf9   :  { %v122_v33 = vpop.xlane.xlu2 %121  ;;  %v126_v34 = vpop.xlane.xlu0 %125 }
  0xfa   :  { %v129_v35 = vadd.f32 %v122_v33, %v117_v31  ;;  %v131_v36 = vadd.f32 %v126_v34, %v119_v32 }
  0xfc   :  { %134 = vst.msk [vmem:[%s357_s4] sm:$0xff] %vm22_vm2, %v129_v35 }
  0xfd   :  { %136 = vst.msk [vmem:[%s357_s4 + $0x10] sm:$0xff] %vm22_vm2, %v131_v36 }
 0x101   :  { %v124_v39 = vpop.xlane.xlu2 %123  ;;  %v128_v40 = vpop.xlane.xlu1 %127 }
 0x102   :  { %v130_v41 = vadd.f32 %v124_v39, %v118_v37  ;;  %v132_v42 = vadd.f32 %v128_v40, %v120_v38 }
 0x104   :  { %135 = vst.msk [vmem:[%s357_s4 + $0x8] sm:$0xff] %vm22_vm2, %v130_v41 }
 0x105   :  { %137 = vst.msk [vmem:[%s357_s4 + $0x18] sm:$0xff] %vm22_vm2, %v132_v42 }
 0x109   :  { %v147_v44 = vpop.xlane.xlu2 %146 }
 0x10a   :  { %v154_v45 = vadd.f32 %v147_v44, %v138_v43 }
 0x10c   :  { %158 = vst.msk [vmem:[%s358_s5] sm:$0xff] %vm22_vm2, %v154_v45 }
 0x111   :  { %v151_v47 = vpop.xlane.xlu2 %150 }
 0x112   :  { %v156_v48 = vadd.f32 %v151_v47, %v140_v46 }
 0x114   :  { %160 = vst.msk [vmem:[%s358_s5 + $0x10] sm:$0xff] %vm22_vm2, %v156_v48 }
 0x119   :  { %v149_v50 = vpop.xlane.xlu2 %148 }
 0x11a   :  { %v155_v51 = vadd.f32 %v149_v50, %v139_v49 }
 0x11c   :  { %159 = vst.msk [vmem:[%s358_s5 + $0x8] sm:$0xff] %vm22_vm2, %v155_v51 }
 0x121   :  { %v153_v53 = vpop.xlane.xlu2 %152 }
 0x122   :  { %v157_v54 = vadd.f32 %v153_v53, %v141_v52 }
 0x124   :  { %161 = vst.msk [vmem:[%s358_s5 + $0x18] sm:$0xff] %vm22_vm2, %v157_v54 }

// kernel: squeeze.84
= control target key start
LH: loop header
LB: loop body
LE: loop exit
PB: predicated region body
PF: predicated region fallthrough
CT: control target
= control target key end

     0   :  { %s37_s8 = smov 104   ;;  %s38_s9 = smov 112   ;;  %vm7_vm0 = vcmask 64512   ;;  %s55_s0 = inlined_call_operand.vmem [shape: f32[32], index: 0, kind: input, shape index: {}]   ;;  %s56_s1 = inlined_call_operand.vmem [shape: f32[4,8], index: 1, kind: output, shape index: {}]  }
   0x1   :  { %v4_v0 = vld [vmem:[%s55_s0] sm:$0x1]  ;;  %s36_s0 = smov 120  }
   0x2   :  { %5 = vst [vmem:[#allocation1] sm:$0x1] %v4_v0 }
   0x9   :  { %v9_v1 = vld [vmem:[#allocation1] sm:$0x1]  }
   0xa   :  { %v21_v2 = vld [vmem:[#allocation1] sm:$0x1]   ;;  %10 = vrot.lane.b32.xlu0 %v9_v1, %s36_s0 }
   0xb   :  { %22 = vrot.lane.b32.xlu1 %v21_v2, %s37_s8  ;;  %v15_v3 = vld [vmem:[#allocation1] sm:$0x1]  }
   0xc   :  { %v6_v4 = vld [vmem:[#allocation1] sm:$0x1]  }
   0xd   :  { %8 = vst.msk [vmem:[#allocation0] sm:$0x1] %vm7_vm0, %v6_v4  }
  0x12   :  { %16 = vrot.lane.b32.xlu0 %v15_v3, %s38_s9 }
  0x7c   :  { %v11_v5 = vpop.permute.xlu0 %10  }
  0x7d   :  { %v23_v6 = vpop.permute.xlu1 %22   ;;  %14 = vst.msk [vmem:[#allocation0 + $0x1] sm:$0x1] %vm7_vm0, %v11_v5  }
  0x7e   :  { %26 = vst.msk [vmem:[#allocation0 + $0x3] sm:$0x1] %vm7_vm0, %v23_v6  }
  0x84   :  { %v17_v7 = vpop.permute.xlu0 %16  }
  0x85   :  { %20 = vst.msk [vmem:[#allocation0 + $0x2] sm:$0x1] %vm7_vm0, %v17_v7  }
  0x8c   :  { %v29_v8 = vld [vmem:[#allocation0] sm:$0xf] }
  0x8d   :  { %32 = vst [vmem:[%s56_s1] sm:$0xf] %v29_v8 }

// kernel: _lambda_.129
= control target key start
LH: loop header
LB: loop body
LE: loop exit
PB: predicated region body
PF: predicated region fallthrough
CT: control target
= control target key end

     0   :  { %v402_v5 = vmov 0   ;;  %vm202_vm0 = vcmask 261120   ;;  %vm22_vm1 = vcmask 7168   ;;  %v403_v30 = vmov 0.0   ;;  %s562_s1 = inlined_call_operand.vmem [shape: bf16[1,288,128], index: 1, kind: input, shape index: {}]   ;;  %s563_s0 = inlined_call_operand.vmem [shape: bf16[16,288], index: 0, kind: input, shape index: {}]   ;;  %s564_s2 = inlined_call_operand.vmem [shape: f32[16,1], index: 2, kind: input, shape index: {}]   ;;  %s565_s4 = inlined_call_operand.vmem [shape: f32[1,16,1], index: 4, kind: output, shape index: {1}]   ;;  %s566_s5 = inlined_call_operand.vmem [shape: f32[1,16,1], index: 5, kind: output, shape index: {2}]   ;;  %s567_s3 = inlined_call_operand.vmem [shape: f32[1,16,128], index: 3, kind: output, shape index: {0}]  }
   0x1   :  { %v388_v0 = vld [vmem:[%s562_s1 + $0x38] sm:$0xff]  ;;  %v387_v2 = vld [vmem:[%s562_s1 + $0x30] sm:$0xff]  ;;  %v398_v4 = vld [vmem:[%s562_s1 + $0x88] sm:$0xff]  ;;  %401 = vset.pattern.permute.xlu0 %v402_v5  ;;  %23 = vst.msk [vmem:[%s565_s4] sm:$0xff] %vm22_vm1, %v403_v30  ;;  %v251_v31 = vlaneseq }
   0x2   :  { %v396_v1 = vld [vmem:[%s562_s1 + $0x78] sm:$0xff]  ;;  %206 = vmatpush.bf16.msra.mxu0 %v388_v0  ;;  %v395_v3 = vld [vmem:[%s562_s1 + $0x70] sm:$0xff]  ;;  %240 = vmatpush.bf16.msra.mxu2 %v398_v4  ;;  %v397_v6 = vld [vmem:[%s562_s1 + $0x80] sm:$0xff]  ;;  %24 = vst.msk [vmem:[%s565_s4 + $0x8] sm:$0xff] %vm22_vm1, %v403_v30 }
   0x3   :  { %220 = vmatpush.bf16.msra.mxu1 %v396_v1  ;;  %v303_v7 = vld [vmem:[%s563_s0 + $0x8] sm:$0xf]  ;;  %v380_v8 = vld [vmem:[%s563_s0 + $0x10] sm:$0xf0]  ;;  %v67_v12 = vld [vmem:[%s564_s2] sm:$0xff]  ;;  %25 = vst.msk [vmem:[%s566_s5] sm:$0xff] %vm22_vm1, %v403_v30 }
   0x4   :  { %v386_v9 = vld [vmem:[%s562_s1 + $0x28] sm:$0xff]  ;;  %v304_v11 = vor.u32 %v380_v8, %v303_v7  ;;  %71 = vperm.xlu0 %401, %v67_v12   ;;  %v385_v13 = vld [vmem:[%s562_s1 + $0x20] sm:$0xff]  ;;  %v384_v15 = vld [vmem:[%s562_s1 + $0x18] sm:$0xff]  ;;  %26 = vst.msk [vmem:[%s566_s5 + $0x8] sm:$0xff] %vm22_vm1, %v403_v30  ;;  %v252_v35 = vand.u32 127, %v251_v31 }
   0x5   :  { %v394_v10 = vld [vmem:[%s562_s1 + $0x68] sm:$0xff]  ;;  %v393_v14 = vld [vmem:[%s562_s1 + $0x60] sm:$0xff]  ;;  %v392_v16 = vld [vmem:[%s562_s1 + $0x58] sm:$0xff] }
   0x6   :  { %207 = vmatpush.bf16.msra.mxu0 %v387_v2  ;;  %241 = vmatpush.bf16.msra.mxu2 %v397_v6  ;;  %v68_v17 = vld [vmem:[%s564_s2 + $0x8] sm:$0xff]  ;;  %v383_v18 = vld [vmem:[%s562_s1 + $0x10] sm:$0xff]  ;;  %v381_v22 = vld [vmem:[%s562_s1] sm:$0xff]  ;;  %vm255_vm2 = vcmp.lt.s32.totalorder %v252_v35, 64 }
   0x7   :  { %221 = vmatpush.bf16.msra.mxu1 %v395_v3  ;;  %v391_v19 = vld [vmem:[%s562_s1 + $0x50] sm:$0xff]  ;;  %v382_v20 = vld [vmem:[%s562_s1 + $0x8] sm:$0xff]  ;;  %v389_v23 = vld [vmem:[%s562_s1 + $0x40] sm:$0xff] }
   0x8   :  { %v390_v21 = vld [vmem:[%s562_s1 + $0x48] sm:$0xff]  ;;  %v295_v24 = vld [vmem:[%s563_s0] sm:$0xf]  ;;  %v378_v26 = vld [vmem:[%s563_s0 + $0x4] sm:$0xf] }
   0x9   :  { %377 = vmatmul.msk.bf16.vlgmr.msra.gmra.mxu2 %vm202_vm0, %v304_v11  ;;  %v379_v25 = vld [vmem:[%s563_s0 + $0x8] sm:$0xf0]  ;;  %v297_v27 = vld [vmem:[%s563_s0 + $0xc] sm:$0xf0]  ;;  %v258_v51 = vld [vmem:[%s565_s4] sm:$0xff] }
   0xa   :  { %208 = vmatpush.bf16.msra.mxu0 %v386_v9  ;;  %v296_v28 = vor.u32 %v379_v25, %v295_v24  ;;  %v300_v29 = vor.u32 %v378_v26, %v297_v27  ;;  %v269_v53 = vld [vmem:[%s566_s5] sm:$0xff]  ;;  %v259_v57 = vld [vmem:[%s565_s4 + $0x8] sm:$0xff] }
   0xb   :  { %222 = vmatpush.bf16.msra.mxu1 %v394_v10  ;;  %v270_v59 = vld [vmem:[%s566_s5 + $0x8] sm:$0xff] }
   0xc   :  { %76 = vperm.xlu0 %401, %v68_v17  }
   0xe   :  { %209 = vmatpush.bf16.msra.mxu0 %v385_v13 }
   0xf   :  { %223 = vmatpush.bf16.msra.mxu1 %v393_v14 }
  0x12   :  { %210 = vmatpush.bf16.msra.mxu0 %v384_v15 }
  0x13   :  { %224 = vmatpush.bf16.msra.mxu1 %v392_v16 }
  0x16   :  { %211 = vmatpush.bf16.msra.mxu0 %v383_v18 }
  0x17   :  { %225 = vmatpush.bf16.msra.mxu1 %v391_v19 }
  0x1a   :  { %212 = vmatpush.bf16.msra.mxu0 %v382_v20 }
  0x1b   :  { %226 = vmatpush.bf16.msra.mxu1 %v390_v21 }
  0x1e   :  { %213 = vmatpush.bf16.msra.mxu0 %v381_v22 }
  0x1f   :  { %227 = vmatpush.bf16.msra.mxu1 %v389_v23 }
  0x21   :  { %214 = vmatmul.bf16.vlgmr.msra.gmra.mxu0 %v296_v28 }
  0x22   :  { %228 = vmatmul.bf16.vlgmr.msra.gmra.mxu1 %v300_v29 }
  0x76   :  { %v72_v32 = vpop.permute.xlu0 %71 }
  0x7e   :  { %v77_v41 = vpop.permute.xlu0 %76 }
  0x8c   :  { %v243_v37 = vpop.f32.mrf.mxu2 }
  0x94   :  { %v245_v47 = vpop.f32.mrf.mxu2 }
  0x9e   :  { %v215_v33 = vpop.f32.mrf.mxu0 }
  0x9f   :  { %v229_v34 = vpop.f32.mrf.mxu1  ;;  %v216_v36 = vadd.f32 %v215_v33, %v72_v32 }
  0xa1   :  { %v230_v38 = vadd.f32 %v229_v34, %v216_v36 }
  0xa3   :  { %v244_v39 = vadd.f32 %v243_v37, %v230_v38 }
  0xa5   :  { %v256_v40 = vsel %vm255_vm2, %v244_v39, 0.0  ;;  %248 = vst [vmem:[%s567_s3] sm:$0xff] %v244_v39 }
  0xa6   :  { %v217_v42 = vpop.f32.mrf.mxu0  ;;  %260 = vadd.xlane.f32.xlu1 %v256_v40  ;;  %v271_v43 = vmul.f32 %v256_v40, %v256_v40 }
  0xa7   :  { %v218_v44 = vadd.f32 %v217_v42, %v77_v41  ;;  %v231_v45 = vpop.f32.mrf.mxu1 }
  0xa8   :  { %273 = vadd.xlane.f32.xlu2 %v271_v43 }
  0xa9   :  { %v232_v46 = vadd.f32 %v231_v45, %v218_v44 }
  0xab   :  { %v246_v48 = vadd.f32 %v245_v47, %v232_v46 }
  0xad   :  { %249 = vst [vmem:[%s567_s3 + $0x8] sm:$0xff] %v246_v48  ;;  %v257_v49 = vsel %vm255_vm2, %v246_v48, 0.0 }
  0xae   :  { %262 = vadd.xlane.f32.xlu1 %v257_v49  ;;  %v272_v50 = vmul.f32 %v257_v49, %v257_v49 }
  0xb0   :  { %275 = vadd.xlane.f32.xlu2 %v272_v50 }
 0x119   :  { %v261_v52 = vpop.xlane.xlu1 %260 }
 0x11a   :  { %v264_v54 = vadd.f32 %v261_v52, %v258_v51 }
 0x11b   :  { %v274_v55 = vpop.xlane.xlu2 %273 }
 0x11c   :  { %267 = vst.msk [vmem:[%s565_s4] sm:$0xff] %vm22_vm1, %v264_v54  ;;  %v277_v56 = vadd.f32 %v274_v55, %v269_v53 }
 0x11e   :  { %279 = vst.msk [vmem:[%s566_s5] sm:$0xff] %vm22_vm1, %v277_v56 }
 0x121   :  { %v263_v58 = vpop.xlane.xlu1 %262 }
 0x122   :  { %v265_v60 = vadd.f32 %v263_v58, %v259_v57 }
 0x123   :  { %v276_v61 = vpop.xlane.xlu2 %275 }
 0x124   :  { %268 = vst.msk [vmem:[%s565_s4 + $0x8] sm:$0xff] %vm22_vm1, %v265_v60  ;;  %v278_v62 = vadd.f32 %v276_v61, %v270_v59 }
 0x126   :  { %280 = vst.msk [vmem:[%s566_s5 + $0x8] sm:$0xff] %vm22_vm1, %v278_v62 }

// kernel: _lambda_.135
= control target key start
LH: loop header
LB: loop body
LE: loop exit
PB: predicated region body
PF: predicated region fallthrough
CT: control target
= control target key end

     0   :  { %vm146_vm0 = vcmask 130048   ;;  %v337_v34 = vmov 0   ;;  %vm22_vm1 = vcmask 7168   ;;  %v338_v62 = vmov 0.0   ;;  %s513_s1 = inlined_call_operand.vmem [shape: bf16[1,144,256], index: 1, kind: input, shape index: {}]   ;;  %s514_s0 = inlined_call_operand.vmem [shape: bf16[8,144], index: 0, kind: input, shape index: {}]   ;;  %s515_s2 = inlined_call_operand.vmem [shape: f32[8,1], index: 2, kind: input, shape index: {}]   ;;  %s516_s4 = inlined_call_operand.vmem [shape: f32[1,8,1], index: 4, kind: output, shape index: {1}]   ;;  %s517_s5 = inlined_call_operand.vmem [shape: f32[1,8,1], index: 5, kind: output, shape index: {2}]   ;;  %s518_s3 = inlined_call_operand.vmem [shape: f32[1,8,256], index: 3, kind: output, shape index: {0}]  }
   0x1   :  { %v300_v0 = vld [vmem:[%s513_s1 + $0x70] sm:$0xf]  ;;  %v331_v1 = vld [vmem:[%s513_s1 + $0x74] sm:$0xf0]  ;;  %v330_v2 = vld [vmem:[%s513_s1 + $0x74] sm:$0xf]  ;;  %336 = vset.pattern.permute.xlu0 %v337_v34 }
   0x2   :  { %v301_v3 = vor.u32 %v331_v1, %v300_v0  ;;  %v302_v4 = vld [vmem:[%s513_s1 + $0x78] sm:$0xf0]  ;;  %v292_v5 = vld [vmem:[%s513_s1 + $0x60] sm:$0xf]  ;;  %v329_v6 = vld [vmem:[%s513_s1 + $0x64] sm:$0xf0] }
   0x3   :  { %v305_v7 = vor.u32 %v330_v2, %v302_v4  ;;  %v328_v8 = vld [vmem:[%s513_s1 + $0x64] sm:$0xf]  ;;  %v294_v9 = vld [vmem:[%s513_s1 + $0x68] sm:$0xf0]  ;;  %v293_v10 = vor.u32 %v329_v6, %v292_v5  ;;  %v284_v12 = vld [vmem:[%s513_s1 + $0x50] sm:$0xf] }
   0x4   :  { %150 = vmatpush.bf16.msra.mxu0 %v301_v3  ;;  %v297_v11 = vor.u32 %v328_v8, %v294_v9  ;;  %v327_v13 = vld [vmem:[%s513_s1 + $0x54] sm:$0xf0]  ;;  %v326_v14 = vld [vmem:[%s513_s1 + $0x54] sm:$0xf]  ;;  %v286_v15 = vld [vmem:[%s513_s1 + $0x58] sm:$0xf0] }
   0x5   :  { %176 = vmatpush.bf16.msra.mxu2 %v305_v7  ;;  %v285_v16 = vor.u32 %v327_v13, %v284_v12  ;;  %v276_v17 = vld [vmem:[%s513_s1 + $0x40] sm:$0xf]  ;;  %v289_v18 = vor.u32 %v326_v14, %v286_v15  ;;  %v325_v19 = vld [vmem:[%s513_s1 + $0x44] sm:$0xf0]  ;;  %v332_v20 = vld [vmem:[%s513_s1 + $0x84] sm:$0xf] }
   0x6   :  { %v310_v21 = vld [vmem:[%s513_s1 + $0x88] sm:$0xf0]  ;;  %v324_v22 = vld [vmem:[%s513_s1 + $0x44] sm:$0xf]  ;;  %v277_v26 = vor.u32 %v325_v19, %v276_v17  ;;  %v308_v28 = vld [vmem:[%s513_s1 + $0x80] sm:$0xf] }
   0x7   :  { %v278_v23 = vld [vmem:[%s513_s1 + $0x48] sm:$0xf0]  ;;  %v313_v24 = vor.u32 %v332_v20, %v310_v21  ;;  %v25_v25 = vld [vmem:[%s514_s0] sm:$0xff]  ;;  %v333_v29 = vld [vmem:[%s513_s1 + $0x84] sm:$0xf0]  ;;  %23 = vst.msk [vmem:[%s516_s4] sm:$0xff] %vm22_vm1, %v338_v62 }
   0x8   :  { %151 = vmatpush.bf16.msra.mxu0 %v293_v10  ;;  %v52_v27 = vunpack.c.h.b16 %v25_v25  ;;  %v281_v30 = vor.u32 %v324_v22, %v278_v23  ;;  %v268_v31 = vld [vmem:[%s513_s1 + $0x30] sm:$0xf]  ;;  %v323_v32 = vld [vmem:[%s513_s1 + $0x34] sm:$0xf0]  ;;  %v309_v33 = vor.u32 %v333_v29, %v308_v28  ;;  %v44_v35 = vld [vmem:[%s515_s2] sm:$0xff]  ;;  %v51_v57 = vunpack.c.l.b16 %v25_v25  ;;  %24 = vst.msk [vmem:[%s517_s5] sm:$0xff] %vm22_vm1, %v338_v62 }
   0x9   :  { %177 = vmatpush.bf16.msra.mxu2 %v297_v11  ;;  %196 = vmatpush.bf16.msra.mxu3 %v313_v24  ;;  %v322_v36 = vld [vmem:[%s513_s1 + $0x34] sm:$0xf]  ;;  %v270_v37 = vld [vmem:[%s513_s1 + $0x38] sm:$0xf0]  ;;  %v269_v39 = vor.u32 %v323_v32, %v268_v31  ;;  %v260_v41 = vld [vmem:[%s513_s1 + $0x20] sm:$0xf] }
   0xa   :  { %v54_v38 = vpack.c.b16 %v52_v27, %v52_v27  ;;  %47 = vperm.xlu0 %336, %v44_v35   ;;  %170 = vmatpush.bf16.msra.mxu1 %v309_v33  ;;  %v273_v40 = vor.u32 %v322_v36, %v270_v37  ;;  %v321_v42 = vld [vmem:[%s513_s1 + $0x24] sm:$0xf0]  ;;  %v320_v43 = vld [vmem:[%s513_s1 + $0x24] sm:$0xf]  ;;  %v262_v44 = vld [vmem:[%s513_s1 + $0x28] sm:$0xf0]  ;;  %v53_v60 = vpack.c.b16 %v51_v57, %v51_v57 }
   0xb   :  { %v261_v45 = vor.u32 %v321_v42, %v260_v41  ;;  %v265_v46 = vor.u32 %v320_v43, %v262_v44  ;;  %v252_v47 = vld [vmem:[%s513_s1 + $0x10] sm:$0xf]  ;;  %v319_v48 = vld [vmem:[%s513_s1 + $0x14] sm:$0xf0]  ;;  %v318_v49 = vld [vmem:[%s513_s1 + $0x14] sm:$0xf] }
   0xc   :  { %152 = vmatpush.bf16.msra.mxu0 %v285_v16  ;;  %315 = vmatmul.msk.bf16.vlgmr.msra.gmra.mxu3 %vm146_vm0, %v54_v38  ;;  %v254_v50 = vld [vmem:[%s513_s1 + $0x18] sm:$0xf0]  ;;  %v253_v51 = vor.u32 %v319_v48, %v252_v47  ;;  %v244_v53 = vld [vmem:[%s513_s1] sm:$0xf]  ;;  %v317_v54 = vld [vmem:[%s513_s1 + $0x4] sm:$0xf0] }
   0xd   :  { %178 = vmatpush.bf16.msra.mxu2 %v289_v18  ;;  %314 = vmatmul.msk.bf16.vlgmr.msra.gmra.mxu1 %vm146_vm0, %v54_v38  ;;  %v257_v52 = vor.u32 %v318_v49, %v254_v50  ;;  %v316_v55 = vld [vmem:[%s513_s1 + $0x4] sm:$0xf]  ;;  %v246_v56 = vld [vmem:[%s513_s1 + $0x8] sm:$0xf0]  ;;  %v245_v58 = vor.u32 %v317_v54, %v244_v53 }
   0xe   :  { %v249_v59 = vor.u32 %v316_v55, %v246_v56  ;;  %v215_v15 = vld [vmem:[%s516_s4] sm:$0xff] }
   0xf   :  { %v222_v17 = vld [vmem:[%s517_s5] sm:$0xff] }
  0x10   :  { %153 = vmatpush.bf16.msra.mxu0 %v277_v26 }
  0x11   :  { %179 = vmatpush.bf16.msra.mxu2 %v281_v30 }
  0x14   :  { %154 = vmatpush.bf16.msra.mxu0 %v269_v39 }
  0x15   :  { %180 = vmatpush.bf16.msra.mxu2 %v273_v40 }
  0x18   :  { %155 = vmatpush.bf16.msra.mxu0 %v261_v45 }
  0x19   :  { %181 = vmatpush.bf16.msra.mxu2 %v265_v46 }
  0x1c   :  { %156 = vmatpush.bf16.msra.mxu0 %v253_v51 }
  0x1d   :  { %182 = vmatpush.bf16.msra.mxu2 %v257_v52 }
  0x20   :  { %157 = vmatpush.bf16.msra.mxu0 %v245_v58 }
  0x21   :  { %183 = vmatpush.bf16.msra.mxu2 %v249_v59 }
  0x23   :  { %158 = vmatmul.bf16.vlgmr.msra.gmra.mxu0 %v53_v60 }
  0x24   :  { %184 = vmatmul.bf16.vlgmr.msra.gmra.mxu2 %v53_v60 }
  0x7c   :  { %v48_v2 = vpop.permute.xlu0 %47 }
  0x8a   :  { %v172_v61 = vpop.f32.mrf.mxu1 }
  0x8f   :  { %v198_v63 = vpop.f32.mrf.mxu3 }
  0x92   :  { %v174_v0 = vpop.f32.mrf.mxu1 }
  0x97   :  { %v200_v1 = vpop.f32.mrf.mxu3 }
  0xa0   :  { %v159_v3 = vpop.f32.mrf.mxu0 }
  0xa1   :  { %v160_v4 = vadd.f32 %v159_v3, %v48_v2 }
  0xa3   :  { %v173_v5 = vadd.f32 %v172_v61, %v160_v4 }
  0xa5   :  { %202 = vst [vmem:[%s518_s3] sm:$0xff] %v173_v5  ;;  %v223_v10 = vmul.f32 %v173_v5, %v173_v5 }
  0xa7   :  { %v185_v6 = vpop.f32.mrf.mxu2 }
  0xa8   :  { %v186_v7 = vadd.f32 %v185_v6, %v48_v2  ;;  %v161_v8 = vpop.f32.mrf.mxu0 }
  0xaa   :  { %v199_v9 = vadd.f32 %v198_v63, %v186_v7 }
  0xac   :  { %203 = vst [vmem:[%s518_s3 + $0x8] sm:$0xff] %v199_v9  ;;  %v216_v11 = vadd.f32 %v199_v9, %v173_v5  ;;  %v224_v12 = vmul.f32 %v199_v9, %v199_v9 }
  0xae   :  { %217 = vadd.xlane.f32.xlu0 %v216_v11  ;;  %v225_v13 = vadd.f32 %v224_v12, %v223_v10 }
  0xaf   :  { %v187_v14 = vpop.f32.mrf.mxu2 }
  0xb0   :  { %226 = vadd.xlane.f32.xlu1 %v225_v13 }
 0x121   :  { %v218_v16 = vpop.xlane.xlu0 %217 }
 0x122   :  { %v219_v18 = vadd.f32 %v218_v16, %v215_v15 }
 0x123   :  { %v227_v19 = vpop.xlane.xlu1 %226 }
 0x124   :  { %221 = vst.msk [vmem:[%s516_s4] sm:$0xff] %vm22_vm1, %v219_v18  ;;  %v228_v20 = vadd.f32 %v227_v19, %v222_v17 }
 0x126   :  { %229 = vst.msk [vmem:[%s517_s5] sm:$0xff] %vm22_vm1, %v228_v20 }

// kernel: _lambda_.139
= control target key start
LH: loop header
LB: loop body
LE: loop exit
PB: predicated region body
PF: predicated region fallthrough
CT: control target
= control target key end

     0   :  { %v75_v1 = vmov 0   ;;  %vm32_vm0 = vcmask 1043456   ;;  %vm28_vm1 = vcmask 64512   ;;  %s111_s1 = inlined_call_operand.vmem [shape: bf16[1,8,256], index: 1, kind: input, shape index: {}]   ;;  %s112_s2 = inlined_call_operand.vmem [shape: f32[8,1], index: 2, kind: input, shape index: {}]   ;;  %s113_s0 = inlined_call_operand.vmem [shape: bf16[8,8], index: 0, kind: input, shape index: {}]   ;;  %s114_s3 = inlined_call_operand.vmem [shape: f32[1,8,256], index: 3, kind: output, shape index: {}]  }
   0x1   :  { %v16_v0 = vld [vmem:[%s111_s1] sm:$0xff]  ;;  %74 = vset.pattern.permute.xlu0 %v75_v1 }
   0x2   :  { %v17_v2 = vld [vmem:[%s112_s2] sm:$0xff]  ;;  %v24_v3 = vunpack.c.l.b16 %v16_v0  ;;  %v25_v4 = vunpack.c.h.b16 %v16_v0 }
   0x3   :  { %20 = vperm.xlu0 %74, %v17_v2   ;;  %v15_v9 = vld [vmem:[%s113_s0] sm:$0xf] }
   0x4   :  { %v26_v5 = vpack.c.b16 %v24_v3, %v24_v3  ;;  %v27_v6 = vpack.c.b16 %v25_v4, %v25_v4 }
   0x6   :  { %v34_v7 = vsel %vm32_vm0, %v26_v5, 0  ;;  %v37_v8 = vsel %vm32_vm0, %v27_v6, 0 }
   0x7   :  { %46 = vmatpush.bf16.msra.mxu0 %v34_v7  ;;  %59 = vmatpush.bf16.msra.mxu1 %v37_v8 }
   0xa   :  { %71 = vmatmul.msk.bf16.vlgmr.msra.gmra.mxu0 %vm28_vm1, %v15_v9  ;;  %72 = vmatmul.msk.bf16.vlgmr.msra.gmra.mxu1 %vm28_vm1, %v15_v9 }
  0x75   :  { %v21_v10 = vpop.permute.xlu0 %20 }
  0x87   :  { %v48_v11 = vpop.f32.mrf.mxu0  ;;  %v61_v12 = vpop.f32.mrf.mxu1 }
  0x88   :  { %v49_v13 = vadd.f32 %v48_v11, %v21_v10  ;;  %v62_v14 = vadd.f32 %v61_v12, %v21_v10 }
  0x8a   :  { %65 = vst [vmem:[%s114_s3] sm:$0xff] %v49_v13 }
  0x8b   :  { %66 = vst [vmem:[%s114_s3 + $0x8] sm:$0xff] %v62_v14 }
  0x8f   :  { %v50_v15 = vpop.f32.mrf.mxu0  ;;  %v63_v16 = vpop.f32.mrf.mxu1 }

// kernel: _lambda_.141
= control target key start
LH: loop header
LB: loop body
LE: loop exit
PB: predicated region body
PF: predicated region fallthrough
CT: control target
= control target key end

     0   :  { %v46_v0 = vmov 0   ;;  %s85_s1 = inlined_call_operand.vmem [shape: f32[1,8,1], index: 1, kind: input, shape index: {}]   ;;  %s86_s2 = inlined_call_operand.vmem [shape: f32[1,8,1], index: 2, kind: input, shape index: {}]   ;;  %s87_s0 = inlined_call_operand.vmem [shape: f32[1,8,256], index: 0, kind: input, shape index: {}]   ;;  %s88_s3 = inlined_call_operand.vmem [shape: f32[1,8,256], index: 3, kind: output, shape index: {}]  }
   0x1   :  { %45 = vset.pattern.permute.xlu0 %v46_v0  ;;  %v16_v1 = vld [vmem:[%s85_s1] sm:$0xff]  ;;  %v15_v5 = vld [vmem:[%s87_s0 + $0x8] sm:$0xff] }
   0x2   :  { %19 = vperm.xlu0 %45, %v16_v1   ;;  %v24_v2 = vld [vmem:[%s86_s2] sm:$0xff] }
   0x3   :  { %v14_v4 = vld [vmem:[%s87_s0] sm:$0xff] }
   0xa   :  { %27 = vperm.xlu0 %45, %v24_v2  }
  0x74   :  { %v20_v3 = vpop.permute.xlu0 %19 }
  0x75   :  { %v22_v6 = vsub.f32 %v14_v4, %v20_v3  ;;  %v23_v7 = vsub.f32 %v15_v5, %v20_v3 }
  0x7c   :  { %v28_v8 = vpop.permute.xlu0 %27 }
  0x7d   :  { %v30_v9 = vmul.f32 %v28_v8, %v22_v6  ;;  %v31_v10 = vmul.f32 %v28_v8, %v23_v7 }
  0x7f   :  { %vm32_vm0 = vcmp.ge.f32.partialorder %v30_v9, 0.0  ;;  %vm33_vm1 = vcmp.ge.f32.partialorder %v31_v10, 0.0  ;;  %v34_v11 = vmul.f32 0.25, %v30_v9  ;;  %v35_v12 = vmul.f32 0.25, %v31_v10 }
  0x81   :  { %v36_v13 = vsel %vm32_vm0, %v30_v9, %v34_v11  ;;  %v37_v14 = vsel %vm33_vm1, %v31_v10, %v35_v12 }
  0x82   :  { %38 = vst [vmem:[%s88_s3] sm:$0xff] %v36_v13 }
  0x83   :  { %39 = vst [vmem:[%s88_s3 + $0x8] sm:$0xff] %v37_v14 }

// kernel: _lambda_.140
= control target key start
LH: loop header
LB: loop body
LE: loop exit
PB: predicated region body
PF: predicated region fallthrough
CT: control target
= control target key end

     0   :  { %vm192_vm0 = vcmask 1043456   ;;  %v416_v54 = vmov 0   ;;  %vm188_vm1 = vcmask 588800   ;;  %vm22_vm2 = vcmask 7168   ;;  %s631_s1 = inlined_call_operand.vmem [shape: bf16[1,200,256], index: 1, kind: input, shape index: {}]   ;;  %s632_s0 = inlined_call_operand.vmem [shape: bf16[8,200], index: 0, kind: input, shape index: {}]   ;;  %s633_s2 = inlined_call_operand.vmem [shape: f32[8,1], index: 2, kind: input, shape index: {}]   ;;  %s634_s4 = inlined_call_operand.vmem [shape: f32[1,8,1], index: 4, kind: output, shape index: {1}]   ;;  %s635_s5 = inlined_call_operand.vmem [shape: f32[1,8,1], index: 5, kind: output, shape index: {2}]   ;;  %s636_s3 = inlined_call_operand.vmem [shape: f32[1,8,256], index: 3, kind: output, shape index: {0}]  }
   0x1   :  { %v349_v0 = vld [vmem:[%s631_s1 + $0x70] sm:$0xf]  ;;  %v404_v1 = vld [vmem:[%s631_s1 + $0x74] sm:$0xf0]  ;;  %v403_v2 = vld [vmem:[%s631_s1 + $0x74] sm:$0xf]  ;;  %415 = vset.pattern.permute.xlu0 %v416_v54 }
   0x2   :  { %v350_v3 = vor.u32 %v404_v1, %v349_v0  ;;  %v351_v4 = vld [vmem:[%s631_s1 + $0x78] sm:$0xf0]  ;;  %v341_v5 = vld [vmem:[%s631_s1 + $0x60] sm:$0xf]  ;;  %v402_v6 = vld [vmem:[%s631_s1 + $0x64] sm:$0xf0] }
   0x3   :  { %v354_v7 = vor.u32 %v403_v2, %v351_v4  ;;  %v401_v8 = vld [vmem:[%s631_s1 + $0x64] sm:$0xf]  ;;  %v343_v9 = vld [vmem:[%s631_s1 + $0x68] sm:$0xf0]  ;;  %v342_v11 = vor.u32 %v402_v6, %v341_v5  ;;  %v333_v15 = vld [vmem:[%s631_s1 + $0x50] sm:$0xf] }
   0x4   :  { %v50_v10 = vld [vmem:[%s631_s1 + $0xc0] sm:$0xff]  ;;  %199 = vmatpush.bf16.msra.mxu0 %v350_v3  ;;  %v346_v14 = vor.u32 %v401_v8, %v343_v9  ;;  %v400_v16 = vld [vmem:[%s631_s1 + $0x54] sm:$0xf0]  ;;  %v399_v17 = vld [vmem:[%s631_s1 + $0x54] sm:$0xf] }
   0x5   :  { %v137_v12 = vunpack.c.h.b16 %v50_v10  ;;  %v136_v13 = vunpack.c.l.b16 %v50_v10  ;;  %225 = vmatpush.bf16.msra.mxu2 %v354_v7  ;;  %v335_v19 = vld [vmem:[%s631_s1 + $0x58] sm:$0xf0]  ;;  %v411_v20 = vld [vmem:[%s631_s1 + $0xb4] sm:$0xf]  ;;  %v334_v24 = vor.u32 %v400_v16, %v333_v15  ;;  %v325_v25 = vld [vmem:[%s631_s1 + $0x40] sm:$0xf] }
   0x6   :  { %v383_v21 = vld [vmem:[%s631_s1 + $0xb8] sm:$0xf0]  ;;  %v398_v26 = vld [vmem:[%s631_s1 + $0x44] sm:$0xf0]  ;;  %v338_v28 = vor.u32 %v399_v17, %v335_v19  ;;  %v397_v30 = vld [vmem:[%s631_s1 + $0x44] sm:$0xf] }
   0x7   :  { %v163_v18 = vpack.c.b16 %v137_v12, %v137_v12  ;;  %v162_v22 = vpack.c.b16 %v136_v13, %v136_v13  ;;  %v386_v29 = vor.u32 %v411_v20, %v383_v21  ;;  %v381_v31 = vld [vmem:[%s631_s1 + $0xb0] sm:$0xf]  ;;  %v412_v32 = vld [vmem:[%s631_s1 + $0xb4] sm:$0xf0]  ;;  %v327_v33 = vld [vmem:[%s631_s1 + $0x48] sm:$0xf0]  ;;  %v326_v38 = vor.u32 %v398_v26, %v325_v25 }
   0x8   :  { %200 = vmatpush.bf16.msra.mxu0 %v342_v11  ;;  %v409_v34 = vld [vmem:[%s631_s1 + $0xa4] sm:$0xf]  ;;  %v375_v35 = vld [vmem:[%s631_s1 + $0xa8] sm:$0xf0]  ;;  %v382_v36 = vor.u32 %v412_v32, %v381_v31  ;;  %v373_v37 = vld [vmem:[%s631_s1 + $0xa0] sm:$0xf]  ;;  %v330_v40 = vor.u32 %v397_v30, %v327_v33 }
   0x9   :  { %v197_v23 = vsel %vm192_vm0, %v163_v18, 0  ;;  %v194_v27 = vsel %vm192_vm0, %v162_v22, 0  ;;  %226 = vmatpush.bf16.msra.mxu2 %v346_v14  ;;  %v410_v39 = vld [vmem:[%s631_s1 + $0xa4] sm:$0xf0]  ;;  %v378_v41 = vor.u32 %v409_v34, %v375_v35  ;;  %v317_v42 = vld [vmem:[%s631_s1 + $0x30] sm:$0xf] }
   0xa   :  { %241 = vmatpush.bf16.msra.mxu3 %v197_v23  ;;  %215 = vmatpush.bf16.msra.mxu1 %v194_v27  ;;  %v396_v43 = vld [vmem:[%s631_s1 + $0x34] sm:$0xf0]  ;;  %v395_v44 = vld [vmem:[%s631_s1 + $0x34] sm:$0xf]  ;;  %v319_v45 = vld [vmem:[%s631_s1 + $0x38] sm:$0xf0]  ;;  %v374_v48 = vor.u32 %v410_v39, %v373_v37 }
   0xb   :  { %v407_v46 = vld [vmem:[%s631_s1 + $0x94] sm:$0xf]  ;;  %v367_v47 = vld [vmem:[%s631_s1 + $0x98] sm:$0xf0]  ;;  %v365_v49 = vld [vmem:[%s631_s1 + $0x90] sm:$0xf]  ;;  %v318_v51 = vor.u32 %v396_v43, %v317_v42  ;;  %v322_v55 = vor.u32 %v395_v44, %v319_v45 }
   0xc   :  { %201 = vmatpush.bf16.msra.mxu0 %v334_v24  ;;  %v408_v50 = vld [vmem:[%s631_s1 + $0x94] sm:$0xf0]  ;;  %v309_v52 = vld [vmem:[%s631_s1 + $0x20] sm:$0xf]  ;;  %v394_v53 = vld [vmem:[%s631_s1 + $0x24] sm:$0xf0]  ;;  %v370_v56 = vor.u32 %v407_v46, %v367_v47 }
   0xd   :  { %227 = vmatpush.bf16.msra.mxu2 %v338_v28  ;;  %v393_v57 = vld [vmem:[%s631_s1 + $0x24] sm:$0xf]  ;;  %v311_v58 = vld [vmem:[%s631_s1 + $0x28] sm:$0xf0]  ;;  %v366_v62 = vor.u32 %v408_v50, %v365_v49  ;;  %v357_v0 = vld [vmem:[%s631_s1 + $0x80] sm:$0xf]  ;;  %v310_v2 = vor.u32 %v394_v53, %v309_v52 }
   0xe   :  { %242 = vmatpush.bf16.msra.mxu3 %v386_v29  ;;  %216 = vmatpush.bf16.msra.mxu1 %v382_v36  ;;  %v25_v59 = vld [vmem:[%s632_s0] sm:$0xff]  ;;  %v359_v61 = vld [vmem:[%s631_s1 + $0x88] sm:$0xf0]  ;;  %v406_v1 = vld [vmem:[%s631_s1 + $0x84] sm:$0xf0]  ;;  %v314_v4 = vor.u32 %v393_v57, %v311_v58  ;;  %v417_v22 = vmov 0.0  }
   0xf   :  { %v405_v60 = vld [vmem:[%s631_s1 + $0x84] sm:$0xf]  ;;  %v59_v3 = vunpack.c.h.b16 %v25_v59  ;;  %v301_v6 = vld [vmem:[%s631_s1 + $0x10] sm:$0xf]  ;;  %v392_v7 = vld [vmem:[%s631_s1 + $0x14] sm:$0xf0]  ;;  %v358_v10 = vor.u32 %v406_v1, %v357_v0  ;;  %v58_v18 = vunpack.c.l.b16 %v25_v59 }
  0x10   :  { %202 = vmatpush.bf16.msra.mxu0 %v326_v38  ;;  %v51_v63 = vld [vmem:[%s633_s2] sm:$0xff]  ;;  %v362_v5 = vor.u32 %v405_v60, %v359_v61  ;;  %v391_v8 = vld [vmem:[%s631_s1 + $0x14] sm:$0xf]  ;;  %v303_v9 = vld [vmem:[%s631_s1 + $0x18] sm:$0xf0]  ;;  %v302_v11 = vor.u32 %v392_v7, %v301_v6  ;;  %23 = vst.msk [vmem:[%s634_s4] sm:$0xff] %vm22_vm2, %v417_v22 }
  0x11   :  { %228 = vmatpush.bf16.msra.mxu2 %v330_v40  ;;  %54 = vperm.xlu0 %415, %v51_v63   ;;  %v61_v12 = vpack.c.b16 %v59_v3, %v59_v3  ;;  %v306_v13 = vor.u32 %v391_v8, %v303_v9  ;;  %v293_v14 = vld [vmem:[%s631_s1] sm:$0xf]  ;;  %v390_v15 = vld [vmem:[%s631_s1 + $0x4] sm:$0xf0]  ;;  %v389_v16 = vld [vmem:[%s631_s1 + $0x4] sm:$0xf]  ;;  %v60_v21 = vpack.c.b16 %v58_v18, %v58_v18 }
  0x12   :  { %243 = vmatpush.bf16.msra.mxu3 %v378_v41  ;;  %217 = vmatpush.bf16.msra.mxu1 %v374_v48  ;;  %v295_v17 = vld [vmem:[%s631_s1 + $0x8] sm:$0xf0]  ;;  %v294_v19 = vor.u32 %v390_v15, %v293_v14  ;;  %24 = vst.msk [vmem:[%s635_s5] sm:$0xff] %vm22_vm2, %v417_v22 }
  0x13   :  { %v298_v20 = vor.u32 %v389_v16, %v295_v17 }
  0x14   :  { %203 = vmatpush.bf16.msra.mxu0 %v318_v51 }
  0x15   :  { %229 = vmatpush.bf16.msra.mxu2 %v322_v55 }
  0x16   :  { %244 = vmatpush.bf16.msra.mxu3 %v370_v56  ;;  %218 = vmatpush.bf16.msra.mxu1 %v366_v62 }
  0x17   :  { %v264_v40 = vld [vmem:[%s634_s4] sm:$0xff] }
  0x18   :  { %204 = vmatpush.bf16.msra.mxu0 %v310_v2 }
  0x19   :  { %230 = vmatpush.bf16.msra.mxu2 %v314_v4  ;;  %v271_v42 = vld [vmem:[%s635_s5] sm:$0xff] }
  0x1a   :  { %245 = vmatpush.bf16.msra.mxu3 %v362_v5  ;;  %219 = vmatpush.bf16.msra.mxu1 %v358_v10 }
  0x1c   :  { %205 = vmatpush.bf16.msra.mxu0 %v302_v11 }
  0x1d   :  { %388 = vmatmul.msk.bf16.vlgmr.msra.gmra.mxu3 %vm188_vm1, %v61_v12  ;;  %231 = vmatpush.bf16.msra.mxu2 %v306_v13 }
  0x1e   :  { %387 = vmatmul.msk.bf16.vlgmr.msra.gmra.mxu1 %vm188_vm1, %v61_v12 }
  0x20   :  { %206 = vmatpush.bf16.msra.mxu0 %v294_v19 }
  0x21   :  { %232 = vmatpush.bf16.msra.mxu2 %v298_v20 }
  0x23   :  { %207 = vmatmul.bf16.vlgmr.msra.gmra.mxu0 %v60_v21 }
  0x24   :  { %233 = vmatmul.bf16.vlgmr.msra.gmra.mxu2 %v60_v21 }
  0x83   :  { %v55_v24 = vpop.permute.xlu0 %54 }
  0x9b   :  { %v221_v23 = vpop.f32.mrf.mxu1 }
  0xa0   :  { %v247_v25 = vpop.f32.mrf.mxu3  ;;  %v208_v26 = vpop.f32.mrf.mxu0 }
  0xa1   :  { %v209_v27 = vadd.f32 %v208_v26, %v55_v24 }
  0xa3   :  { %v223_v28 = vpop.f32.mrf.mxu1  ;;  %v222_v29 = vadd.f32 %v221_v23, %v209_v27 }
  0xa5   :  { %251 = vst [vmem:[%s636_s3] sm:$0xff] %v222_v29  ;;  %v272_v35 = vmul.f32 %v222_v29, %v222_v29 }
  0xa7   :  { %v234_v30 = vpop.f32.mrf.mxu2 }
  0xa8   :  { %v249_v31 = vpop.f32.mrf.mxu3  ;;  %v235_v32 = vadd.f32 %v234_v30, %v55_v24  ;;  %v210_v33 = vpop.f32.mrf.mxu0 }
  0xaa   :  { %v248_v34 = vadd.f32 %v247_v25, %v235_v32 }
  0xac   :  { %252 = vst [vmem:[%s636_s3 + $0x8] sm:$0xff] %v248_v34  ;;  %v265_v36 = vadd.f32 %v248_v34, %v222_v29  ;;  %v273_v37 = vmul.f32 %v248_v34, %v248_v34 }
  0xae   :  { %266 = vadd.xlane.f32.xlu0 %v265_v36  ;;  %v274_v38 = vadd.f32 %v273_v37, %v272_v35 }
  0xaf   :  { %v236_v39 = vpop.f32.mrf.mxu2 }
  0xb0   :  { %275 = vadd.xlane.f32.xlu1 %v274_v38 }
 0x121   :  { %v267_v41 = vpop.xlane.xlu0 %266 }
 0x122   :  { %v268_v43 = vadd.f32 %v267_v41, %v264_v40 }
 0x123   :  { %v276_v44 = vpop.xlane.xlu1 %275 }
 0x124   :  { %270 = vst.msk [vmem:[%s634_s4] sm:$0xff] %vm22_vm2, %v268_v43  ;;  %v277_v45 = vadd.f32 %v276_v44, %v271_v42 }
 0x126   :  { %278 = vst.msk [vmem:[%s635_s5] sm:$0xff] %vm22_vm2, %v277_v45 }

// kernel: _lambda_.169
= control target key start
LH: loop header
LB: loop body
LE: loop exit
PB: predicated region body
PF: predicated region fallthrough
CT: control target
= control target key end

     0   :  { %v80_v1 = vmov 0   ;;  %vm32_vm0 = vcmask 1043456   ;;  %vm28_vm1 = vcmask 64512   ;;  %vm68_vm2 = vcmask 1041408   ;;  %s113_s1 = inlined_call_operand.vmem [shape: bf16[1,8,256], index: 1, kind: input, shape index: {}]   ;;  %s114_s2 = inlined_call_operand.vmem [shape: f32[2,1], index: 2, kind: input, shape index: {}]   ;;  %s115_s0 = inlined_call_operand.vmem [shape: bf16[2,8], index: 0, kind: input, shape index: {}]   ;;  %s116_s3 = inlined_call_operand.vmem [shape: f32[1,2,256], index: 3, kind: output, shape index: {}]  }
   0x1   :  { %v16_v0 = vld [vmem:[%s113_s1] sm:$0xff]  ;;  %79 = vset.pattern.permute.xlu0 %v80_v1 }
   0x2   :  { %v17_v2 = vld [vmem:[%s114_s2] sm:$0x3]  ;;  %v24_v3 = vunpack.c.l.b16 %v16_v0  ;;  %v25_v4 = vunpack.c.h.b16 %v16_v0 }
   0x3   :  { %20 = vperm.xlu0 %79, %v17_v2   ;;  %v15_v9 = vld [vmem:[%s115_s0] sm:$0x1] }
   0x4   :  { %v26_v5 = vpack.c.b16 %v24_v3, %v24_v3  ;;  %v27_v6 = vpack.c.b16 %v25_v4, %v25_v4 }
   0x6   :  { %v34_v7 = vsel %vm32_vm0, %v26_v5, 0  ;;  %v37_v8 = vsel %vm32_vm0, %v27_v6, 0 }
   0x7   :  { %46 = vmatpush.bf16.msra.mxu0 %v34_v7  ;;  %59 = vmatpush.bf16.msra.mxu1 %v37_v8 }
   0xa   :  { %76 = vmatmul.msk.bf16.vlgmr.msra.gmra.mxu0 %vm28_vm1, %v15_v9  ;;  %77 = vmatmul.msk.bf16.vlgmr.msra.gmra.mxu1 %vm28_vm1, %v15_v9 }
  0x75   :  { %v21_v10 = vpop.permute.xlu0 %20 }
  0x87   :  { %v48_v11 = vpop.f32.mrf.mxu0  ;;  %v61_v12 = vpop.f32.mrf.mxu1 }
  0x88   :  { %v62_v13 = vadd.f32 %v61_v12, %v21_v10  ;;  %v49_v14 = vadd.f32 %v48_v11, %v21_v10 }
  0x8a   :  { %v67_v15 = vrot.slane %v62_v13, 6 }
  0x8c   :  { %v69_v16 = vsel %vm68_vm2, %v49_v14, %v67_v15 }
  0x8d   :  { %71 = vst [vmem:[%s116_s3] sm:$0xf] %v69_v16 }
  0x8f   :  { %v50_v17 = vpop.f32.mrf.mxu0  ;;  %v63_v18 = vpop.f32.mrf.mxu1 }

// kernel: _lambda_.145
= control target key start
LH: loop header
LB: loop body
LE: loop exit
PB: predicated region body
PF: predicated region fallthrough
CT: control target
= control target key end

     0   :  { %v142_v1 = vmov 0   ;;  %vm54_vm0 = vcmask 1040384   ;;  %vm50_vm1 = vcmask 146432   ;;  %vm22_vm2 = vcmask 7168   ;;  %s223_s1 = inlined_call_operand.vmem [shape: bf16[1,18,256], index: 1, kind: input, shape index: {}]   ;;  %s224_s2 = inlined_call_operand.vmem [shape: f32[8,1], index: 2, kind: input, shape index: {}]   ;;  %s225_s0 = inlined_call_operand.vmem [shape: bf16[8,18], index: 0, kind: input, shape index: {}]   ;;  %s226_s4 = inlined_call_operand.vmem [shape: f32[1,8,1], index: 4, kind: output, shape index: {1}]   ;;  %s227_s5 = inlined_call_operand.vmem [shape: f32[1,8,1], index: 5, kind: output, shape index: {2}]   ;;  %s228_s3 = inlined_call_operand.vmem [shape: f32[1,8,256], index: 3, kind: output, shape index: {0}]  }
   0x1   :  { %v28_v0 = vld [vmem:[%s223_s1 + $0x10] sm:$0x11]  ;;  %141 = vset.pattern.permute.xlu0 %v142_v1  ;;  %v129_v4 = vld [vmem:[%s223_s1] sm:$0xf]  ;;  %v138_v8 = vld [vmem:[%s223_s1 + $0x4] sm:$0xf0] }
   0x2   :  { %v42_v2 = vunpack.c.l.b16 %v28_v0  ;;  %v43_v3 = vunpack.c.h.b16 %v28_v0  ;;  %v29_v5 = vld [vmem:[%s224_s2] sm:$0xff]  ;;  %v131_v10 = vld [vmem:[%s223_s1 + $0x8] sm:$0xf0]  ;;  %v130_v13 = vor.u32 %v138_v8, %v129_v4  ;;  %v143_v16 = vmov 0.0  }
   0x3   :  { %v137_v9 = vld [vmem:[%s223_s1 + $0x4] sm:$0xf]  ;;  %32 = vperm.xlu0 %141, %v29_v5   ;;  %v25_v15 = vld [vmem:[%s225_s0] sm:$0xf]  ;;  %23 = vst.msk [vmem:[%s226_s4] sm:$0xff] %vm22_vm2, %v143_v16 }
   0x4   :  { %v46_v6 = vpack.c.b16 %v42_v2, %v42_v2  ;;  %v47_v7 = vpack.c.b16 %v43_v3, %v43_v3  ;;  %v134_v14 = vor.u32 %v137_v9, %v131_v10  ;;  %24 = vst.msk [vmem:[%s227_s5] sm:$0xff] %vm22_vm2, %v143_v16 }
   0x6   :  { %v56_v11 = vsel %vm54_vm0, %v46_v6, 0  ;;  %v59_v12 = vsel %vm54_vm0, %v47_v7, 0 }
   0x7   :  { %67 = vmatpush.bf16.msra.mxu0 %v56_v11  ;;  %80 = vmatpush.bf16.msra.mxu1 %v59_v12 }
   0xa   :  { %v100_v28 = vld [vmem:[%s226_s4] sm:$0xff] }
   0xb   :  { %68 = vmatpush.bf16.msra.mxu0 %v130_v13  ;;  %81 = vmatpush.bf16.msra.mxu1 %v134_v14  ;;  %v107_v30 = vld [vmem:[%s227_s5] sm:$0xff] }
   0xe   :  { %135 = vmatmul.msk.bf16.vlgmr.msra.gmra.mxu0 %vm50_vm1, %v25_v15  ;;  %136 = vmatmul.msk.bf16.vlgmr.msra.gmra.mxu1 %vm50_vm1, %v25_v15 }
  0x75   :  { %v33_v17 = vpop.permute.xlu0 %32 }
  0x8b   :  { %v70_v18 = vpop.f32.mrf.mxu0  ;;  %v83_v19 = vpop.f32.mrf.mxu1 }
  0x8c   :  { %v71_v20 = vadd.f32 %v70_v18, %v33_v17  ;;  %v84_v21 = vadd.f32 %v83_v19, %v33_v17 }
  0x8e   :  { %87 = vst [vmem:[%s228_s3] sm:$0xff] %v71_v20  ;;  %v101_v22 = vadd.f32 %v84_v21, %v71_v20  ;;  %v108_v23 = vmul.f32 %v71_v20, %v71_v20  ;;  %v109_v24 = vmul.f32 %v84_v21, %v84_v21 }
  0x8f   :  { %88 = vst [vmem:[%s228_s3 + $0x8] sm:$0xff] %v84_v21 }
  0x90   :  { %102 = vadd.xlane.f32.xlu0 %v101_v22  ;;  %v110_v25 = vadd.f32 %v109_v24, %v108_v23 }
  0x92   :  { %111 = vadd.xlane.f32.xlu1 %v110_v25 }
  0x93   :  { %v72_v26 = vpop.f32.mrf.mxu0  ;;  %v85_v27 = vpop.f32.mrf.mxu1 }
 0x103   :  { %v103_v29 = vpop.xlane.xlu0 %102 }
 0x104   :  { %v104_v31 = vadd.f32 %v103_v29, %v100_v28 }
 0x105   :  { %v112_v32 = vpop.xlane.xlu1 %111 }
 0x106   :  { %106 = vst.msk [vmem:[%s226_s4] sm:$0xff] %vm22_vm2, %v104_v31  ;;  %v113_v33 = vadd.f32 %v112_v32, %v107_v30 }
 0x108   :  { %114 = vst.msk [vmem:[%s227_s5] sm:$0xff] %vm22_vm2, %v113_v33 }

</bundles_post_ra>
